<compile_context>
chip_gen: v6e
topology: v6e:2x2x1
jax: 0.10.0
libtpu: 0.0.40
codegen_flags: <defaults>
</compile_context>

<pallas_src>
import functools

import jax
import jax.numpy as jnp
from jax.experimental import pallas as pl
from jax.experimental.pallas import tpu as pltpu

IN_FEATURES = 196608   # = 3 * 256 * 256, hard-coded in the PyTorch module
OUT_FEATURES = 10


def _linear_kernel(x_ref, w_ref, b_ref, o_ref):
    """One K-tile of y = x @ W.T, accumulated into the resident f32 output.

    x_ref: (B, tile_k)  activations (cast in-register to the weight dtype)
    w_ref: (N, tile_k)  weights, lane-dense, streamed in their storage dtype
    b_ref: (1, N)       bias (f32)
    o_ref: (B, N)       f32 accumulator, resident across the k (reduction) axis
    """
    c = pl.program_id(0)            # K-split (TensorCore) index
    k = pl.program_id(1)            # K-tile index within the split
    nk = pl.num_programs(1)

    @pl.when(k == 0)
    def _init():
        o_ref[...] = jnp.zeros_like(o_ref)

    x = x_ref[...]
    if x.dtype != w_ref.dtype:
        # Explicit dtype policy: the matmul runs in the weight's storage dtype
        # (never upcast the big weight stream); only the tiny activation tile
        # is converted, in-register.
        x = x.astype(w_ref.dtype)

    # NT matmul (contract the lane axis of both operands) -- same pattern as
    # the reference flash-attention q @ k.T; no XLU transpose of the weight.
    o_ref[...] += jax.lax.dot_general(
        x, w_ref[...],
        dimension_numbers=(((1,), (1,)), ((), ())),
        preferred_element_type=jnp.float32,
    )

    @pl.when(k == nk - 1)
    def _epilogue():
        # Fold the bias in exactly once (only on split 0).
        o_ref[...] += (c == 0).astype(jnp.float32) * b_ref[...]


def _default_config(weight_dtype):
    """(num_splits, tile_k) per TPU generation and weight dtype."""
    kind = jax.devices()[0].device_kind.lower()
    if "v7" in kind:
        # Two TensorCores per chip, each with its own HBM path: split the K
        # reduction in half, one K step per core (grid = (2, 1)).
        return 2, IN_FEATURES // 2
    # Single TensorCore (v5e / v6e): one split; size the K tile so the padded,
    # double-buffered VMEM footprint (~12 MiB) fits v5e's scoped default too.
    tile_k = 98304 if weight_dtype.itemsize <= 2 else 65536
    return 1, tile_k


@functools.partial(jax.jit, static_argnames=("num_splits", "tile_k"))
def _learn_linear_pallas(x, weight, bias, *, num_splits, tile_k):
    B, K = x.shape
    N, Kw = weight.shape
    assert K == Kw and bias.shape == (N,)
    assert K % num_splits == 0
    k_split = K // num_splits
    assert k_split % tile_k == 0
    nk = k_split // tile_k           # K steps per split

    bias2d = bias.reshape(1, N).astype(jnp.float32)

    cost = pl.CostEstimate(
        flops=2 * B * K * N,
        transcendentals=0,
        bytes_accessed=(x.size * x.dtype.itemsize
                        + weight.size * weight.dtype.itemsize
                        + bias2d.size * 4
                        + num_splits * B * N * 4),
    )

    in_specs = [
        # x K-tile: (B, tile_k), lane-dense.
        pl.BlockSpec((B, tile_k), lambda c, k: (0, c * nk + k)),
        # weight K-tile: (N, tile_k), lane-dense (no 10->128 lane padding).
        pl.BlockSpec((N, tile_k), lambda c, k: (0, c * nk + k)),
        # bias: full (1, N) block, same for every step.
        pl.BlockSpec((1, N), lambda c, k: (0, 0)),
    ]

    if num_splits == 1:
        out_shape = jax.ShapeDtypeStruct((B, N), jnp.float32)
        out_specs = pl.BlockSpec((B, N), lambda c, k: (0, 0))
    else:
        out_shape = jax.ShapeDtypeStruct((num_splits, B, N), jnp.float32)
        out_specs = pl.BlockSpec((None, B, N), lambda c, k: (c, 0, 0))

    result = pl.pallas_call(
        _linear_kernel,
        out_shape=out_shape,
        grid_spec=pltpu.PrefetchScalarGridSpec(
            num_scalar_prefetch=0,
            grid=(num_splits, nk),
            in_specs=in_specs,
            out_specs=out_specs,
        ),
        compiler_params=pltpu.CompilerParams(
            dimension_semantics=("parallel", "arbitrary"),
            vmem_limit_bytes=32 * 1024 * 1024,   # safe on v5e/v6e/v7x
        ),
        cost_estimate=cost,
    )(x, weight, bias2d)

    if num_splits == 1:
        return result                 # bias already folded in-kernel
    # v7x: combine per-TensorCore partial sums (bias folded into split 0).
    return result.sum(axis=0)


def learn_linear_forward(x, weight, bias, *, num_splits=None, tile_k=None):
    """y = x @ weight.T + bias  (PyTorch nn.Linear semantics).

    x:      (B, K) float32 (or bfloat16)
    weight: (N, K) float32 or bfloat16 (PyTorch-native layout, K on lanes)
    bias:   (N,)   float32
    """
    if num_splits is None or tile_k is None:
        d_splits, d_tile = _default_config(weight.dtype)
        num_splits = d_splits if num_splits is None else num_splits
        tile_k = d_tile if tile_k is None else tile_k
    return _learn_linear_pallas(x, weight, bias,
                                num_splits=num_splits, tile_k=tile_k)


if __name__ == "__main__":
    key = jax.random.PRNGKey(0)
    kx, kw, kb = jax.random.split(key, 3)

    batch = 2
    # Deterministic synthetic parameters (PyTorch-like small uniform init).
    bound = 1.0 / (IN_FEATURES ** 0.5)
    weight_f32 = jax.random.uniform(
        kw, (OUT_FEATURES, IN_FEATURES), jnp.float32, -bound, bound
    )
    bias = jax.random.uniform(kb, (OUT_FEATURES,), jnp.float32, -bound, bound)
    x = jax.random.normal(kx, (batch, IN_FEATURES), jnp.float32)

    ref = x @ weight_f32.T + bias

    # 1) Default deployment path: bf16-stored weights (halves the dominant
    #    HBM stream); bf16 x bf16 MXU matmul, f32 accumulation, f32 bias.
    weight_bf16 = weight_f32.astype(jnp.bfloat16)
    out = jax.block_until_ready(learn_linear_forward(x, weight_bf16, bias))
    assert out.shape == (batch, OUT_FEATURES)
    assert out.dtype == jnp.float32
    assert jnp.allclose(out, ref, atol=2e-2, rtol=2e-2)

    # 2) f32 weights: bit-faithful to the PyTorch module.
    out_f32 = jax.block_until_ready(learn_linear_forward(x, weight_f32, bias))
    assert out_f32.shape == (batch, OUT_FEATURES)
    assert jnp.allclose(out_f32, ref, atol=1e-3, rtol=1e-3)

    print("KERNEL_OK")
</pallas_src>

<mosaic_0001>
module attributes {stable_mosaic.version = 11 : i64} {
  func.func @_linear_kernel(%arg0: i32, %arg1: i32, %arg2: memref<2x98304xf32, #tpu.memory_space<vmem>>, %arg3: memref<10x98304xbf16, #tpu.memory_space<vmem>>, %arg4: memref<1x10xf32, #tpu.memory_space<vmem>>, %arg5: memref<2x10xf32, #tpu.memory_space<vmem>>) attributes {dimension_semantics = [#tpu.dimension_semantics<parallel>, #tpu.dimension_semantics<arbitrary>], iteration_bounds = array<i64: 1, 2>, scalar_prefetch = 0 : i64, scratch_operands = 0 : i64, tpu.core_type = #tpu.core_type<tc>, window_params = [{transform_indices = @transform_0, window_bounds = array<i64: 2, 98304>}, {transform_indices = @transform_1, window_bounds = array<i64: 10, 98304>}, {pipeline_mode = #tpu.pipeline_mode<synchronous>, transform_indices = @transform_2, window_bounds = array<i64: 1, 10>}, {pipeline_mode = #tpu.pipeline_mode<synchronous>, transform_indices = @transform_3, window_bounds = array<i64: 2, 10>}]} {
    %c0_i32 = arith.constant 0 : i32
    %0 = arith.cmpi eq, %arg1, %c0_i32 : i32
    %1 = arith.extui %0 : i1 to i32
    %c0_i32_0 = arith.constant 0 : i32
    %2 = arith.cmpi ne, %1, %c0_i32_0 : i32
    scf.if %2 {
      %cst_9 = arith.constant 0.000000e+00 : f32
      %13 = vector.broadcast %cst_9 : f32 to vector<2x10xf32>
      %c0_10 = arith.constant 0 : index
      %c0_11 = arith.constant 0 : index
      %14 = vector.load %arg5[%c0_10, %c0_11] : memref<2x10xf32, #tpu.memory_space<vmem>>, vector<2x10xf32>
      tpu.vector_store %arg5[%c0_10, %c0_11], %13 {strides = array<i32>} : memref<2x10xf32, #tpu.memory_space<vmem>>, vector<2x10xf32>,
    } else {
    }
    %c0 = arith.constant 0 : index
    %c0_1 = arith.constant 0 : index
    %3 = vector.load %arg2[%c0, %c0_1] : memref<2x98304xf32, #tpu.memory_space<vmem>>, vector<2x98304xf32>
    %4 = arith.truncf %3 : vector<2x98304xf32> to vector<2x98304xbf16>
    %c0_2 = arith.constant 0 : index
    %c0_3 = arith.constant 0 : index
    %5 = vector.load %arg5[%c0_2, %c0_3] : memref<2x10xf32, #tpu.memory_space<vmem>>, vector<2x10xf32>
    %c0_4 = arith.constant 0 : index
    %c0_5 = arith.constant 0 : index
    %6 = vector.load %arg3[%c0_4, %c0_5] : memref<10x98304xbf16, #tpu.memory_space<vmem>>, vector<10x98304xbf16>
    %cst = arith.constant dense<0.000000e+00> : vector<2x10xf32>
    %7 = tpu.matmul %4, %6, %cst {dimension_numbers = #tpu.dot_dimension_numbers<[1], [1], [0], [0], [0, 0, 1, 0], [], []>} : vector<2x98304xbf16>, vector<10x98304xbf16>, vector<2x10xf32> -> vector<2x10xf32>
    %8 = arith.addf %5, %7 : vector<2x10xf32>
    %c0_6 = arith.constant 0 : index
    %c0_7 = arith.constant 0 : index
    %9 = vector.load %arg5[%c0_6, %c0_7] : memref<2x10xf32, #tpu.memory_space<vmem>>, vector<2x10xf32>
    tpu.vector_store %arg5[%c0_6, %c0_7], %8 {strides = array<i32>} : memref<2x10xf32, #tpu.memory_space<vmem>>, vector<2x10xf32>,
    %c1_i32 = arith.constant 1 : i32
    %10 = arith.cmpi eq, %arg1, %c1_i32 : i32
    %11 = arith.extui %10 : i1 to i32
    %c0_i32_8 = arith.constant 0 : i32
    %12 = arith.cmpi ne, %11, %c0_i32_8 : i32
    scf.if %12 {
      %c0_9 = arith.constant 0 : index
      %c0_10 = arith.constant 0 : index
      %13 = vector.load %arg5[%c0_9, %c0_10] : memref<2x10xf32, #tpu.memory_space<vmem>>, vector<2x10xf32>
      %c0_i32_11 = arith.constant 0 : i32
      %14 = arith.cmpi eq, %arg0, %c0_i32_11 : i32
      %15 = arith.extui %14 : i1 to i32
      %16 = arith.sitofp %15 : i32 to f32
      %c0_12 = arith.constant 0 : index
      %c0_13 = arith.constant 0 : index
      %17 = vector.load %arg4[%c0_12, %c0_13] : memref<1x10xf32, #tpu.memory_space<vmem>>, vector<1x10xf32>
      %18 = vector.broadcast %16 : f32 to vector<1x10xf32>
      %19 = arith.mulf %18, %17 : vector<1x10xf32>
      %20 = vector.broadcast %19 : vector<1x10xf32> to vector<2x10xf32>
      %21 = arith.addf %13, %20 : vector<2x10xf32>
      %c0_14 = arith.constant 0 : index
      %c0_15 = arith.constant 0 : index
      %22 = vector.load %arg5[%c0_14, %c0_15] : memref<2x10xf32, #tpu.memory_space<vmem>>, vector<2x10xf32>
      tpu.vector_store %arg5[%c0_14, %c0_15], %21 {strides = array<i32>} : memref<2x10xf32, #tpu.memory_space<vmem>>, vector<2x10xf32>,
    } else {
    }
    return
  }
  func.func @transform_0(%arg0: i32, %arg1: i32) -> (i32, i32) {
    %c2_i32 = arith.constant 2 : i32
    %0 = arith.muli %arg0, %c2_i32 : i32
    %1 = arith.addi %0, %arg1 : i32
    %c0_i32 = arith.constant 0 : i32
    %c0_i32_0 = arith.constant 0 : i32
    return %c0_i32, %1 : i32, i32
  }
  func.func @transform_1(%arg0: i32, %arg1: i32) -> (i32, i32) {
    %c2_i32 = arith.constant 2 : i32
    %0 = arith.muli %arg0, %c2_i32 : i32
    %1 = arith.addi %0, %arg1 : i32
    %c0_i32 = arith.constant 0 : i32
    %c0_i32_0 = arith.constant 0 : i32
    return %c0_i32, %1 : i32, i32
  }
  func.func @transform_2(%arg0: i32, %arg1: i32) -> (i32, i32) {
    %c0_i32 = arith.constant 0 : i32
    %c0_i32_0 = arith.constant 0 : i32
    %c0_i32_1 = arith.constant 0 : i32
    return %c0_i32, %c0_i32_0 : i32, i32
  }
  func.func @transform_3(%arg0: i32, %arg1: i32) -> (i32, i32) {
    %c0_i32 = arith.constant 0 : i32
    %c0_i32_0 = arith.constant 0 : i32
    %c0_i32_1 = arith.constant 0 : i32
    return %c0_i32, %c0_i32_0 : i32, i32
  }
}

</mosaic_0001>

<bundles_post_ra>
// kernel: _learn_linear_pallas.1
= control target key start
LH: loop header
LB: loop body
LE: loop exit
PB: predicated region body
PF: predicated region fallthrough
CT: control target
= control target key end

     0   :  { %8 = vsyncpa [#allocation3], 0  ;;  %s30317_s0 = inlined_call_operand.hbm [shape: f32[2,196608], index: 0, kind: input, shape index: {}]   ;;  %s30318_s1 = inlined_call_operand.hbm [shape: bf16[10,196608], index: 1, kind: input, shape index: {}]   ;;  %s30319_s2 = inlined_call_operand.hbm [shape: f32[1,10], index: 2, kind: input, shape index: {}]   ;;  %s30320_s3 = inlined_call_operand.hbm [shape: f32[2,10], index: 3, kind: output, shape index: {}]  }
   0x1   :  { %10 = vsyncpa [#allocation3 + $0x1], 0 }
   0x2   :  { %11 = vsyncpa [#allocation6], 0 }
   0x3   :  { %13 = vsyncpa [#allocation6 + $0x1], 0 }
   0x4   :  { %14 = vsyncpa [#allocation4], 0  ;;  %s26804_s12 = smov 0   ;;  %s26806_s13 = smov 0  }
   0x5   :  { %s26808_s14 = smov 0   ;;  %s26810_s15 = smov 0  }
   0x6   :  { %s26812_s16 = smov 0   ;;  %s26814_s17 = smov 0  }
   0x7 LB: > { %s26833_s18 = sadd.s32 4294967295, %s26773_s17   ;;  %s43_s19 = sadd.s32 1, %s26761_s14  ;;  %s26773_s17 = sphi %s26814_s17, %s20_s17   ;;  %s26769_s16 = sphi %s26812_s16, %s30338_s16   ;;  %s26765_s15 = sphi %s26810_s15, %s30337_s15   ;;  %s26761_s14 = sphi %s26808_s14, %s30336_s14   ;;  %s26757_s13 = sphi %s26806_s13, %s30335_s13   ;;  %s26753_s12 = sphi %s26804_s12, %s30334_s12  }
   0x8   : > { %p50_p0 = scmp.ne.s32.totalorder %s26761_s14, %s26757_s13  ;;  %p56_p1 = scmp.ne.s32.totalorder %s26757_s13, %s26753_s12 }
   0x9   : > { %p30321_p2 = scmp.eq.s32.totalorder %s26833_s18, 0  ;;  %p25542_p3 = scmp.ge.s32.totalorder %s26773_s17, 1 }
   0xa   : > { %p139_p4 = scmp.lt.s32.totalorder %s26773_s17, 3  ;;  %s26775_s22 = smov [#allocation7]  }
   0xb   : > { %p26844_p5 = por %p30321_p2, %p56_p1  ;;  %s152_s23 = sshll.u32 %s26775_s22, 4  ;;  %s153_s23 = int_to_ptr.vmem [resolvable:$true] %s152_s23 }
   0xc   : > { %p26848_p6 = pnand %p25542_p3, %p139_p4  ;;  %p51_p8 = scmp.eq.s32.totalorder %s26773_s17, 0 }
   0xd   : > { %s30324_s20 = scalar_select %p26844_p5, 1, 0 }
   0xe   : > { %s30325_s21 = scalar_select %p26848_p6, 1, 0 }
   0xf   : > { %p26342_p7 = pneg %p26848_p6  ;;  %s29_s25 = sadd.s32 1, %s26769_s16 }
  0x10   : > { %p26862_p10 = scmp.ge.s32.totalorder %s29_s25, 2  ;;  %p26869_p11 = por %p51_p8, %p50_p0 }
  0x11   : > { %p26857_p9 = pnand %p26342_p7, %p30321_p2  ;;  %p26354_p12 = scmp.lt.s32.totalorder %s26773_s17, 2 }
  0x12   : > { %s26616_s28 = scalar_lea.vmem %s153_s23, 16  ;;  %s26623_s29 = scalar_lea.vmem %s153_s23, 32 }
  0x13   : > { %p26607_p13 = pneg %p26857_p9  ;;  %p26617_p1 = scmp.ne.s32.totalorder %s153_s23, %s26616_s28 }
  0x14   : > { %p26624_p7 = scmp.lt.s32.totalorder %s153_s23, %s153_s23  ;;  %p26625_p2 = scmp.lt.s32.totalorder %s26623_s29, %s26616_s28 }
  0x15   : > { %p26619_p3 = pnand %p26617_p1, %p26607_p13 }
  0x16   : > { %p26626_p5 = por %p26625_p2, %p26624_p7 }
  0x17   : > { %p26620_p4 = pneg %p26619_p3 }
  0x19   : > { %p26627_p6 = pnand %p26626_p5, %p26620_p4 }
  0x1b   : > { %26630 = shalt.err (!%p26627_p6)
}
  0x1c   : > { %26345 = dma.hbm_to_vmem [thread:$0]  (!%p26857_p9), %s30319_s2, 16, %s153_s23, [#allocation6]  }
  0x1d   : > { %s30340_s25 = smov (%p26862_p10, %s29_s25), 0  ;;  %s26886_s5 = sand.u32 1, %s26761_s14  }
  0x1e   : > { %s26324_s6 = smul.u32 24576, %s26769_s16  ;;  %s40_s7 = ssub.s32 %s26769_s16, %s30340_s25 }
  0x1f   : > { %p41_p0 = scmp.eq.s32.totalorder %s40_s7, 0  ;;  %s26326_s8 = smul.u32 1536, %s26886_s5 }
  0x20   : > { %s175_s11 = scalar_lea.hbm %s30317_s0, %s26324_s6  ;;  %p26899_p2 = pnand %p26354_p12, %p26869_p11 }
  0x21   : > { %s26906_s22 = scalar_select %p41_p0, %s26761_s14, %s43_s19  }
  0x22   : > { %s167_s23 = scalar_lea.vmem [#allocation2], %s26326_s8  ;;  %s26327_s26 = smul.u32 6144, %s26886_s5 }
  0x23   : > { %s177_s24 = sshll.u32 %s167_s23, 4  ;;  %s26325_s28 = smul.u32 49152, %s26769_s16  ;;  %s178_s24 = int_to_ptr.vmem [resolvable:$true] %s177_s24 }
  0x24   : > { %s164_s29 = scalar_lea.sflag [#allocation3], %s26886_s5  ;;  %p26633_p5 = pneg %p26899_p2 }
  0x25   : > { %s26644_s30 = scalar_lea.vmem %s178_s24, 24576  ;;  %s26776_s27 = smov [#allocation2]  }
  0x26   : > { %p26645_p6 = scmp.ne.s32.totalorder %s178_s24, %s26644_s30  ;;  %s26649_s4 = sshll.u32 %s26776_s27, 4  ;;  %s26650_s4 = int_to_ptr.vmem [resolvable:$false] %s26649_s4 }
  0x27   : > { %s26651_s6 = scalar_lea.vmem %s26650_s4, 49152  ;;  %p26652_p10 = scmp.lt.s32.totalorder %s178_s24, %s26650_s4 }
  0x28   : > { %p26647_p8 = pnand %p26645_p6, %p26633_p5  ;;  %p26653_p11 = scmp.lt.s32.totalorder %s26651_s6, %s26644_s30 }
  0x2a   : > { %p26648_p9 = pneg %p26647_p8  ;;  %p26654_p12 = por %p26653_p11, %p26652_p10 }
  0x2c   : > { %p26655_p13 = pnand %p26654_p12, %p26648_p9 }
  0x2e   : > { %26658 = shalt.err (!%p26655_p13)
}
  0x2f   : > { %26349 = dma.hbm_to_vmem [thread:$0]  (!%p26899_p2), %s175_s11, 24576, %s178_s24, %s164_s29  }
  0x30   : > { %s196_s7 = scalar_lea.hbm %s30318_s1, %s26325_s28  ;;  %s188_s8 = scalar_lea.vmem [#allocation5], %s26327_s26 }
  0x31   : > { %s197_s9 = sshll.u32 %s188_s8, 4  ;;  %s184_s10 = sand.u32 1, %s26773_s17   ;;  %s198_s9 = int_to_ptr.vmem [resolvable:$true] %s197_s9 }
  0x32   : > { %s185_s23 = scalar_lea.sflag [#allocation6], %s184_s10  ;;  %s26672_s27 = scalar_lea.vmem %s198_s9, 98304 }
  0x33   : > { %p26673_p1 = scmp.ne.s32.totalorder %s198_s9, %s26672_s27  ;;  %s26777_s30 = smov [#allocation5]  }
  0x34   : > { %s26677_s4 = sshll.u32 %s26777_s30, 4  ;;  %s26678_s4 = int_to_ptr.vmem [resolvable:$false] %s26677_s4 }
  0x35   : > { %p26675_p3 = pnand %p26673_p1, %p26633_p5  ;;  %s26679_s6 = scalar_lea.vmem %s26678_s4, 196608 }
  0x36   : > { %p26680_p7 = scmp.lt.s32.totalorder %s198_s9, %s26678_s4  ;;  %p26681_p0 = scmp.lt.s32.totalorder %s26679_s6, %s26672_s27 }
  0x37   : > { %p26676_p4 = pneg %p26675_p3 }
  0x38   : > { %p26682_p6 = por %p26681_p0, %p26680_p7 }
  0x3a   : > { %p26683_p8 = pnand %p26682_p6, %p26676_p4 }
  0x3c   : > { %26686 = shalt.err (!%p26683_p8)
}
  0x3d   : > { %s26778_s11 = smov 98304   ;;  %s26779_s24 = smov 49152  }
  0x3e   : > { %s26780_s26 = smov 3072   ;;  %p30330_p9 = scmp.ne.s32.totalorder %s30325_s21, 0 }
  0x3f   : > { %26352 = dma.hbm_to_vmem [thread:$0]  (!%p26899_p2), %s196_s7, 98304, %s198_s9, %s185_s23, %s26778_s11, %s26779_s24, %s26780_s26  }
  0x40   : > { %209 = sbr.rel (%p30330_p9) target bundleno = 1853 (0x73d), region = 32  ;;  %s211_s28 = sand.u32 (!%p30330_p9), 1, %s26757_s13  }
  0x41   : > { %s26328_s29 = smul.u32 (!%p30330_p9), 1536, %s211_s28  ;;  %s212_s19 = scalar_lea.sflag (!%p30330_p9), [#allocation3], %s211_s28 }
  0x42   : > { %p30331_p5 = scmp.ne.s32.totalorder (!%p30330_p9), %s30324_s20, 0 }
  0x43   : > { %s26930_s5 = scalar_lea.vmem (!%p30330_p9), [#allocation2], %s26328_s29 }
  0x45   : > { %26736 = dma.done.wait (%p30331_p5), %s212_s19, 24576  }
  0x46   : > { %26738 = vsyncadd (%p30331_p5), %s212_s19, 4294942720  ;;  %s220_s8 = sand.u32 1, %s26833_s18   ;;  %s26329_s12 = smul.u32 6144, %s211_s28 }
  0x47   : > { %s221_s7 = scalar_lea.sflag [#allocation6], %s220_s8 }
  0x48   : > { %s26937_s9 = scalar_lea.vmem [#allocation5], %s26329_s12 }
  0x49   : > { %26740 = dma.done.wait (%p30331_p5), %s221_s7, 98304  }
  0x4a   : > { %26742 = vsyncadd (%p30331_p5), %s221_s7, 4294868992  ;;  %p30332_p2 = scmp.eq.s32.totalorder %s26833_s18, 0 }
  0x4c   : > { %26744 = dma.done.wait (%p30332_p2), [#allocation6], 16   ;;  %p30333_p10 = pmov %p30332_p2 }
  0x4d   : > { %p25549_p11 = scmp.ne.s32.totalorder %s26765_s15, 0 }
  0x4e   : > { %26746 = vsyncadd (%p30333_p10), [#allocation6], 4294967280 }
  0x4f   : > { %261 = sbr.rel (%p25549_p11) target bundleno = 86 (0x56), region = 48 }
  0x54   : > { %vm262_vm0 = vcmask 74752   ;;  %v26781_v0 = vmov 0.0  }
  0x55   : > { %263 = vst.msk [vmem:[#allocation8] sm:$0x3] %vm262_vm0, %v26781_v0 }
  0x56 PF: > { %v5449_v1 = vld [vmem:[%s26937_s9] sm:$0xff]  ;;  %v5450_v3 = vld [vmem:[%s26937_s9 + $0x8] sm:$0xff]  ;;  %v652_v4 = vlaneseq  ;;  %v26782_v9 = vmov 1983009808   ;;  %v5451_v11 = vld [vmem:[%s26937_s9 + $0x10] sm:$0xff]  ;;  %vm25418_vm1 = vcmask 74752  }
  0x57   : > { %v5833_v2 = vld [vmem:[%s26937_s9 + $0xc00] sm:$0x11]  ;;  %v5834_v7 = vld [vmem:[%s26937_s9 + $0xc08] sm:$0x11]  ;;  %v650_v10 = vunpack.c.l.s4 %v26782_v9  ;;  %v5835_v15 = vld [vmem:[%s26937_s9 + $0xc10] sm:$0x11] }
  0x58   : > { %v25551_v5 = vcombine.high %v5449_v1, %v5833_v2  ;;  %v25550_v6 = vcombine.low %v5449_v1, %v5833_v2  ;;  %v264_v8 = vld [vmem:[%s26930_s5] sm:$0xff]  ;;  %v25553_v12 = vcombine.high %v5450_v3, %v5834_v7  ;;  %v25552_v13 = vcombine.low %v5450_v3, %v5834_v7  ;;  %v5452_v16 = vld [vmem:[%s26937_s9 + $0x18] sm:$0xff]  ;;  %v265_v21 = vld [vmem:[%s26930_s5 + $0x8] sm:$0xff]  ;;  %p26318_p12 = scmp.ne.s32.totalorder %s26765_s15, 1 }
  0x59   : > { %v653_v14 = vshrl.u32 %v652_v4, 7  ;;  %v5836_v17 = vld [vmem:[%s26937_s9 + $0xc18] sm:$0x11]  ;;  %v651_v18 = vunpack.c.0.s8 %v650_v10  ;;  %v648_v19 = vcombine.high %v264_v8, %v264_v8  ;;  %v25555_v20 = vcombine.high %v5451_v11, %v5835_v15  ;;  %v266_v25 = vld [vmem:[%s26930_s5 + $0x10] sm:$0xff]  ;;  %v5453_v33 = vld [vmem:[%s26937_s9 + $0x20] sm:$0xff] }
  0x5a   : > { %10071 = vmatprep.subr.bf16.mxu0 %v25551_v5  ;;  %10111 = vmatprep.subr.bf16.mxu1 %v25553_v12  ;;  %v25557_v22 = vcombine.high %v5452_v16, %v5836_v17  ;;  %v665_v23 = vcombine.high %v265_v21, %v265_v21  ;;  %v682_v30 = vcombine.high %v266_v25, %v266_v25  ;;  %v5837_v38 = vld [vmem:[%s26937_s9 + $0xc20] sm:$0x11]  ;;  %v5454_v39 = vld [vmem:[%s26937_s9 + $0x28] sm:$0xff]  ;;  %v267_v51 = vld [vmem:[%s26930_s5 + $0x18] sm:$0xff] }
  0x5b   : > { %10072 = vmatpush1.bf16.xpose.msra.mxu0 %v25550_v6  ;;  %10112 = vmatpush1.bf16.xpose.msra.mxu1 %v25552_v13  ;;  %v26958_v24 = vsub.s32 %v651_v18, %v653_v14  ;;  %v5838_v40 = vld [vmem:[%s26937_s9 + $0xc28] sm:$0x11]  ;;  %v25554_v43 = vcombine.low %v5451_v11, %v5835_v15  ;;  %v25556_v44 = vcombine.low %v5452_v16, %v5836_v17  ;;  %v5455_v55 = vld [vmem:[%s26937_s9 + $0x30] sm:$0xff]  ;;  %v5456_v59 = vld [vmem:[%s26937_s9 + $0x38] sm:$0xff] }
  0x5c   : > { %10151 = vmatprep.subr.bf16.mxu0 %v25555_v20  ;;  %10191 = vmatprep.subr.bf16.mxu1 %v25557_v22  ;;  %v25559_v49 = vcombine.high %v5453_v33, %v5837_v38  ;;  %v25561_v50 = vcombine.high %v5454_v39, %v5838_v40  ;;  %v699_v54 = vcombine.high %v267_v51, %v267_v51  ;;  %v5839_v58 = vld [vmem:[%s26937_s9 + $0xc30] sm:$0x11]  ;;  %v5840_v60 = vld [vmem:[%s26937_s9 + $0xc38] sm:$0x11]  ;;  %v268_v5 = vld [vmem:[%s26930_s5 + $0x20] sm:$0xff] }
  0x5d   : > { %v655_v26 = vrot.slane %v264_v8, %v26958_v24  ;;  %v662_v27 = vrot.slane %v648_v19, %v26958_v24  ;;  %v672_v28 = vrot.slane %v265_v21, %v26958_v24  ;;  %v679_v29 = vrot.slane %v665_v23, %v26958_v24  ;;  %v5457_v9 = vld [vmem:[%s26937_s9 + $0x40] sm:$0xff]  ;;  %v5458_v13 = vld [vmem:[%s26937_s9 + $0x48] sm:$0xff] }
  0x5e   : > { %v689_v47 = vrot.slane %v266_v25, %v26958_v24  ;;  %v696_v48 = vrot.slane %v682_v30, %v26958_v24  ;;  %v25558_v61 = vcombine.low %v5453_v33, %v5837_v38  ;;  %v25560_v62 = vcombine.low %v5454_v39, %v5838_v40  ;;  %v5841_v12 = vld [vmem:[%s26937_s9 + $0xc40] sm:$0x11]  ;;  %v5842_v14 = vld [vmem:[%s26937_s9 + $0xc48] sm:$0x11]  ;;  %v5844_v33 = vld [vmem:[%s26937_s9 + $0xc58] sm:$0x11] }
  0x5f   : > { %v663_v31 = vcombine.high %v655_v26, %v655_v26  ;;  %v664_v32 = vcombine.high %v662_v27, %v662_v27  ;;  %v4680_v34 = vpack.c.bf16 %v655_v26, %v655_v26  ;;  %v4682_v35 = vpack.c.bf16 %v662_v27, %v662_v27  ;;  %v269_v23 = vld [vmem:[%s26930_s5 + $0x28] sm:$0xff] }
  0x60   : > { %v680_v36 = vcombine.high %v672_v28, %v672_v28  ;;  %v681_v37 = vcombine.high %v679_v29, %v679_v29  ;;  %v697_v52 = vcombine.high %v689_v47, %v689_v47  ;;  %v698_v53 = vcombine.high %v696_v48, %v696_v48 }
  0x61   : > { %v4681_v41 = vpack.c.bf16 %v663_v31, %v663_v31  ;;  %v4683_v42 = vpack.c.bf16 %v664_v32, %v664_v32  ;;  %v4684_v56 = vpack.c.bf16 %v672_v28, %v672_v28  ;;  %v4686_v57 = vpack.c.bf16 %v679_v29, %v679_v29  ;;  %v5459_v28 = vld [vmem:[%s26937_s9 + $0x50] sm:$0xff]  ;;  %v5460_v32 = vld [vmem:[%s26937_s9 + $0x58] sm:$0xff] }
  0x62   : > { %v4685_v45 = vpack.c.bf16 %v680_v36, %v680_v36  ;;  %v4687_v46 = vpack.c.bf16 %v681_v37, %v681_v37  ;;  %v4689_v63 = vpack.c.bf16 %v697_v52, %v697_v52  ;;  %v4691_v0 = vpack.c.bf16 %v698_v53, %v698_v53  ;;  %v5843_v31 = vld [vmem:[%s26937_s9 + $0xc50] sm:$0x11] }
  0x63   : > { %10089 = vmatprep.mubr.bf16.mxu0 %v4681_v41  ;;  %10129 = vmatprep.mubr.bf16.mxu1 %v4683_v42  ;;  %v706_v1 = vrot.slane %v267_v51, %v26958_v24  ;;  %v713_v2 = vrot.slane %v699_v54, %v26958_v24  ;;  %v25563_v3 = vcombine.high %v5455_v55, %v5839_v58  ;;  %v270_v42 = vld [vmem:[%s26930_s5 + $0x30] sm:$0xff]  ;;  %v5846_v51 = vld [vmem:[%s26937_s9 + $0xc68] sm:$0x11] }
  0x64   : > { %10090 = vmatmul.mubr.bf16.vlgmr.msra.gmra.mxu0 %v4680_v34  ;;  %10130 = vmatmul.mubr.bf16.vlgmr.msra.gmra.mxu1 %v4682_v35  ;;  %v25565_v4 = vcombine.high %v5456_v59, %v5840_v60  ;;  %v716_v8 = vcombine.high %v268_v5, %v268_v5  ;;  %v4688_v10 = vpack.c.bf16 %v689_v47, %v689_v47 }
  0x65   : > { %10152 = vmatpush1.bf16.xpose.msra.mxu0 %v25554_v43  ;;  %10192 = vmatpush1.bf16.xpose.msra.mxu1 %v25556_v44  ;;  %v714_v6 = vcombine.high %v706_v1, %v706_v1  ;;  %v715_v7 = vcombine.high %v713_v2, %v713_v2  ;;  %v4690_v11 = vpack.c.bf16 %v696_v48, %v696_v48 }
  0x66   : > { %10169 = vmatprep.mubr.bf16.mxu0 %v4685_v45  ;;  %10209 = vmatprep.mubr.bf16.mxu1 %v4687_v46  ;;  %v25562_v15 = vcombine.low %v5455_v55, %v5839_v58  ;;  %v25564_v16 = vcombine.low %v5456_v59, %v5840_v60  ;;  %v723_v19 = vrot.slane %v268_v5, %v26958_v24  ;;  %v5461_v46 = vld [vmem:[%s26937_s9 + $0x60] sm:$0xff]  ;;  %v271_v60 = vld [vmem:[%s26930_s5 + $0x38] sm:$0xff] }
  0x67   : > { %10231 = vmatprep.subr.bf16.mxu0 %v25559_v49  ;;  %10271 = vmatprep.subr.bf16.mxu1 %v25561_v50  ;;  %v4693_v17 = vpack.c.bf16 %v714_v6, %v714_v6  ;;  %v4695_v18 = vpack.c.bf16 %v715_v7, %v715_v7  ;;  %v730_v20 = vrot.slane %v716_v8, %v26958_v24  ;;  %v5845_v49 = vld [vmem:[%s26937_s9 + $0xc60] sm:$0x11]  ;;  %v5462_v50 = vld [vmem:[%s26937_s9 + $0x68] sm:$0xff]  ;;  %v5848_v5 = vld [vmem:[%s26937_s9 + $0xc78] sm:$0x11] }
  0x68   : > { %v25567_v21 = vcombine.high %v5457_v9, %v5841_v12  ;;  %v25569_v22 = vcombine.high %v5458_v13, %v5842_v14  ;;  %v731_v25 = vcombine.high %v723_v19, %v723_v19  ;;  %v733_v27 = vcombine.high %v269_v23, %v269_v23 }
  0x69   : > { %v732_v26 = vcombine.high %v730_v20, %v730_v20  ;;  %v4692_v29 = vpack.c.bf16 %v706_v1, %v706_v1  ;;  %v4694_v30 = vpack.c.bf16 %v713_v2, %v713_v2  ;;  %v25566_v34 = vcombine.low %v5457_v9, %v5841_v12 }
  0x6a   : > { %v25568_v35 = vcombine.low %v5458_v13, %v5842_v14  ;;  %v4697_v36 = vpack.c.bf16 %v731_v25, %v731_v25  ;;  %v740_v38 = vrot.slane %v269_v23, %v26958_v24  ;;  %v747_v39 = vrot.slane %v733_v27, %v26958_v24  ;;  %v272_v14 = vld [vmem:[%s26930_s5 + $0x40] sm:$0xff]  ;;  %v5850_v23 = vld [vmem:[%s26937_s9 + $0xc88] sm:$0x11] }
  0x6b   : > { %v4699_v37 = vpack.c.bf16 %v732_v26, %v732_v26  ;;  %v25571_v40 = vcombine.high %v5459_v28, %v5843_v31  ;;  %v25573_v41 = vcombine.high %v5460_v32, %v5844_v33  ;;  %v750_v45 = vcombine.high %v270_v42, %v270_v42 }
  0x6c   : > { %10170 = vmatmul.mubr.bf16.vlgmr.msra.gmra.mxu0 %v4684_v56  ;;  %10210 = vmatmul.mubr.bf16.vlgmr.msra.gmra.mxu1 %v4686_v57  ;;  %v748_v43 = vcombine.high %v740_v38, %v740_v38  ;;  %v749_v44 = vcombine.high %v747_v39, %v747_v39  ;;  %v4696_v47 = vpack.c.bf16 %v723_v19, %v723_v19 }
  0x6d   : > { %10232 = vmatpush1.bf16.xpose.msra.mxu0 %v25558_v61  ;;  %10272 = vmatpush1.bf16.xpose.msra.mxu1 %v25560_v62  ;;  %v4698_v48 = vpack.c.bf16 %v730_v20, %v730_v20  ;;  %v25570_v52 = vcombine.low %v5459_v28, %v5843_v31  ;;  %v25572_v53 = vcombine.low %v5460_v32, %v5844_v33  ;;  %v273_v33 = vld [vmem:[%s26930_s5 + $0x48] sm:$0xff] }
  0x6e   : > { %10249 = vmatprep.mubr.bf16.mxu0 %v4689_v63  ;;  %10289 = vmatprep.mubr.bf16.mxu1 %v4691_v0  ;;  %v4701_v54 = vpack.c.bf16 %v748_v43, %v748_v43  ;;  %v4703_v55 = vpack.c.bf16 %v749_v44, %v749_v44  ;;  %v757_v56 = vrot.slane %v270_v42, %v26958_v24  ;;  %v5463_v0 = vld [vmem:[%s26937_s9 + $0x70] sm:$0xff]  ;;  %v5852_v42 = vld [vmem:[%s26937_s9 + $0xc98] sm:$0x11] }
  0x6f   : > { %10311 = vmatprep.subr.bf16.mxu0 %v25563_v3  ;;  %10351 = vmatprep.subr.bf16.mxu1 %v25565_v4  ;;  %v764_v57 = vrot.slane %v750_v45, %v26958_v24  ;;  %v25575_v58 = vcombine.high %v5461_v46, %v5845_v49  ;;  %v25577_v59 = vcombine.high %v5462_v50, %v5846_v51  ;;  %v5847_v3 = vld [vmem:[%s26937_s9 + $0xc70] sm:$0x11]  ;;  %v5464_v4 = vld [vmem:[%s26937_s9 + $0x78] sm:$0xff] }
  0x70   : > { %v765_v61 = vcombine.high %v757_v56, %v757_v56  ;;  %v767_v63 = vcombine.high %v271_v60, %v271_v60  ;;  %v4700_v1 = vpack.c.bf16 %v740_v38, %v740_v38  ;;  %v4702_v2 = vpack.c.bf16 %v747_v39, %v747_v39 }
  0x71   : > { %v766_v62 = vcombine.high %v764_v57, %v764_v57  ;;  %v25574_v6 = vcombine.low %v5461_v46, %v5845_v49  ;;  %v25576_v7 = vcombine.low %v5462_v50, %v5846_v51  ;;  %v25579_v12 = vcombine.high %v5463_v0, %v5847_v3  ;;  %v274_v51 = vld [vmem:[%s26930_s5 + $0x50] sm:$0xff] }
  0x72   : > { %v4705_v8 = vpack.c.bf16 %v765_v61, %v765_v61  ;;  %v25581_v13 = vcombine.high %v5464_v4, %v5848_v5  ;;  %v4704_v19 = vpack.c.bf16 %v757_v56, %v757_v56  ;;  %v4706_v20 = vpack.c.bf16 %v764_v57, %v764_v57 }
  0x73   : > { %v4707_v9 = vpack.c.bf16 %v766_v62, %v766_v62  ;;  %v25578_v25 = vcombine.low %v5463_v0, %v5847_v3  ;;  %v25580_v26 = vcombine.low %v5464_v4, %v5848_v5  ;;  %v275_v5 = vld [vmem:[%s26930_s5 + $0x58] sm:$0xff] }
  0x74   : > { %10250 = vmatmul.mubr.bf16.vlgmr.msra.gmra.mxu0 %v4688_v10  ;;  %10290 = vmatmul.mubr.bf16.vlgmr.msra.gmra.mxu1 %v4690_v11  ;;  %v774_v10 = vrot.slane %v271_v60, %v26958_v24  ;;  %v781_v11 = vrot.slane %v767_v63, %v26958_v24  ;;  %v5854_v60 = vld [vmem:[%s26937_s9 + $0xca8] sm:$0x11] }
  0x75   : > { %10312 = vmatpush1.bf16.xpose.msra.mxu0 %v25562_v15  ;;  %10352 = vmatpush1.bf16.xpose.msra.mxu1 %v25564_v16 }
  0x76   : > { %10329 = vmatprep.mubr.bf16.mxu0 %v4693_v17  ;;  %10369 = vmatprep.mubr.bf16.mxu1 %v4695_v18  ;;  %v782_v15 = vcombine.high %v774_v10, %v774_v10  ;;  %v783_v16 = vcombine.high %v781_v11, %v781_v11  ;;  %v784_v17 = vcombine.high %v272_v14, %v272_v14  ;;  %v5465_v18 = vld [vmem:[%s26937_s9 + $0x80] sm:$0xff] }
  0x77   : > { %10391 = vmatprep.subr.bf16.mxu0 %v25567_v21  ;;  %10431 = vmatprep.subr.bf16.mxu1 %v25569_v22  ;;  %v5849_v21 = vld [vmem:[%s26937_s9 + $0xc80] sm:$0x11]  ;;  %v5466_v22 = vld [vmem:[%s26937_s9 + $0x88] sm:$0xff]  ;;  %v4708_v38 = vpack.c.bf16 %v774_v10, %v774_v10  ;;  %v4710_v39 = vpack.c.bf16 %v781_v11, %v781_v11 }
  0x78   : > { %v4709_v27 = vpack.c.bf16 %v782_v15, %v782_v15  ;;  %v4711_v28 = vpack.c.bf16 %v783_v16, %v783_v16  ;;  %v25583_v31 = vcombine.high %v5465_v18, %v5849_v21  ;;  %v25585_v32 = vcombine.high %v5466_v22, %v5850_v23 }
  0x79   : > { %v25582_v43 = vcombine.low %v5465_v18, %v5849_v21  ;;  %v25584_v44 = vcombine.low %v5466_v22, %v5850_v23  ;;  %v276_v23 = vld [vmem:[%s26930_s5 + $0x60] sm:$0xff] }
  0x7c   : > { %10330 = vmatmul.mubr.bf16.vlgmr.msra.gmra.mxu0 %v4692_v29  ;;  %10370 = vmatmul.mubr.bf16.vlgmr.msra.gmra.mxu1 %v4694_v30  ;;  %v791_v29 = vrot.slane %v272_v14, %v26958_v24  ;;  %v798_v30 = vrot.slane %v784_v17, %v26958_v24  ;;  %v5856_v14 = vld [vmem:[%s26937_s9 + $0xcb8] sm:$0x11] }
  0x7d   : > { %10392 = vmatpush1.bf16.xpose.msra.mxu0 %v25566_v34  ;;  %10432 = vmatpush1.bf16.xpose.msra.mxu1 %v25568_v35 }
  0x7e   : > { %10409 = vmatprep.mubr.bf16.mxu0 %v4697_v36  ;;  %10449 = vmatprep.mubr.bf16.mxu1 %v4699_v37  ;;  %v799_v34 = vcombine.high %v791_v29, %v791_v29  ;;  %v800_v35 = vcombine.high %v798_v30, %v798_v30  ;;  %v801_v36 = vcombine.high %v273_v33, %v273_v33  ;;  %v5467_v37 = vld [vmem:[%s26937_s9 + $0x90] sm:$0xff] }
  0x7f   : > { %10471 = vmatprep.subr.bf16.mxu0 %v25571_v40  ;;  %10511 = vmatprep.subr.bf16.mxu1 %v25573_v41  ;;  %v5851_v40 = vld [vmem:[%s26937_s9 + $0xc90] sm:$0x11]  ;;  %v5468_v41 = vld [vmem:[%s26937_s9 + $0x98] sm:$0xff]  ;;  %v4712_v56 = vpack.c.bf16 %v791_v29, %v791_v29  ;;  %v4714_v57 = vpack.c.bf16 %v798_v30, %v798_v30 }
  0x80   : > { %v4713_v45 = vpack.c.bf16 %v799_v34, %v799_v34  ;;  %v4715_v46 = vpack.c.bf16 %v800_v35, %v800_v35  ;;  %v25587_v49 = vcombine.high %v5467_v37, %v5851_v40  ;;  %v25589_v50 = vcombine.high %v5468_v41, %v5852_v42 }
  0x81   : > { %v25586_v61 = vcombine.low %v5467_v37, %v5851_v40  ;;  %v25588_v62 = vcombine.low %v5468_v41, %v5852_v42  ;;  %v277_v42 = vld [vmem:[%s26930_s5 + $0x68] sm:$0xff] }
  0x84   : > { %10410 = vmatmul.mubr.bf16.vlgmr.msra.gmra.mxu0 %v4696_v47  ;;  %10450 = vmatmul.mubr.bf16.vlgmr.msra.gmra.mxu1 %v4698_v48  ;;  %v808_v47 = vrot.slane %v273_v33, %v26958_v24  ;;  %v815_v48 = vrot.slane %v801_v36, %v26958_v24  ;;  %v5858_v33 = vld [vmem:[%s26937_s9 + $0xcc8] sm:$0x11] }
  0x85   : > { %10472 = vmatpush1.bf16.xpose.msra.mxu0 %v25570_v52  ;;  %10512 = vmatpush1.bf16.xpose.msra.mxu1 %v25572_v53 }
  0x86   : > { %10489 = vmatprep.mubr.bf16.mxu0 %v4701_v54  ;;  %10529 = vmatprep.mubr.bf16.mxu1 %v4703_v55  ;;  %v816_v52 = vcombine.high %v808_v47, %v808_v47  ;;  %v817_v53 = vcombine.high %v815_v48, %v815_v48  ;;  %v818_v54 = vcombine.high %v274_v51, %v274_v51  ;;  %v5469_v55 = vld [vmem:[%s26937_s9 + $0xa0] sm:$0xff] }
  0x87   : > { %10551 = vmatprep.subr.bf16.mxu0 %v25575_v58  ;;  %10591 = vmatprep.subr.bf16.mxu1 %v25577_v59  ;;  %v5853_v58 = vld [vmem:[%s26937_s9 + $0xca0] sm:$0x11]  ;;  %v5470_v59 = vld [vmem:[%s26937_s9 + $0xa8] sm:$0xff]  ;;  %v4716_v10 = vpack.c.bf16 %v808_v47, %v808_v47  ;;  %v4718_v11 = vpack.c.bf16 %v815_v48, %v815_v48 }
  0x88   : > { %v4717_v63 = vpack.c.bf16 %v816_v52, %v816_v52  ;;  %v4719_v0 = vpack.c.bf16 %v817_v53, %v817_v53  ;;  %v25591_v3 = vcombine.high %v5469_v55, %v5853_v58  ;;  %v25593_v4 = vcombine.high %v5470_v59, %v5854_v60 }
  0x89   : > { %v25590_v15 = vcombine.low %v5469_v55, %v5853_v58  ;;  %v25592_v16 = vcombine.low %v5470_v59, %v5854_v60  ;;  %v278_v60 = vld [vmem:[%s26930_s5 + $0x70] sm:$0xff] }
  0x8c   : > { %10490 = vmatmul.mubr.bf16.vlgmr.msra.gmra.mxu0 %v4700_v1  ;;  %10530 = vmatmul.mubr.bf16.vlgmr.msra.gmra.mxu1 %v4702_v2  ;;  %v825_v1 = vrot.slane %v274_v51, %v26958_v24  ;;  %v832_v2 = vrot.slane %v818_v54, %v26958_v24  ;;  %v5860_v51 = vld [vmem:[%s26937_s9 + $0xcd8] sm:$0x11] }
  0x8d   : > { %10552 = vmatpush1.bf16.xpose.msra.mxu0 %v25574_v6  ;;  %10592 = vmatpush1.bf16.xpose.msra.mxu1 %v25576_v7 }
  0x8e   : > { %10569 = vmatprep.mubr.bf16.mxu0 %v4705_v8  ;;  %10609 = vmatprep.mubr.bf16.mxu1 %v4707_v9  ;;  %v833_v6 = vcombine.high %v825_v1, %v825_v1  ;;  %v834_v7 = vcombine.high %v832_v2, %v832_v2  ;;  %v835_v8 = vcombine.high %v275_v5, %v275_v5  ;;  %v5471_v9 = vld [vmem:[%s26937_s9 + $0xb0] sm:$0xff] }
  0x8f   : > { %10631 = vmatprep.subr.bf16.mxu0 %v25579_v12  ;;  %10671 = vmatprep.subr.bf16.mxu1 %v25581_v13  ;;  %v5855_v12 = vld [vmem:[%s26937_s9 + $0xcb0] sm:$0x11]  ;;  %v5472_v13 = vld [vmem:[%s26937_s9 + $0xb8] sm:$0xff]  ;;  %v4720_v29 = vpack.c.bf16 %v825_v1, %v825_v1  ;;  %v4722_v30 = vpack.c.bf16 %v832_v2, %v832_v2 }
  0x90   : > { %v4721_v17 = vpack.c.bf16 %v833_v6, %v833_v6  ;;  %v4723_v18 = vpack.c.bf16 %v834_v7, %v834_v7  ;;  %v25595_v21 = vcombine.high %v5471_v9, %v5855_v12  ;;  %v25597_v22 = vcombine.high %v5472_v13, %v5856_v14 }
  0x91   : > { %v25594_v34 = vcombine.low %v5471_v9, %v5855_v12  ;;  %v25596_v35 = vcombine.low %v5472_v13, %v5856_v14  ;;  %v279_v14 = vld [vmem:[%s26930_s5 + $0x78] sm:$0xff] }
  0x94   : > { %10570 = vmatmul.mubr.bf16.vlgmr.msra.gmra.mxu0 %v4704_v19  ;;  %10610 = vmatmul.mubr.bf16.vlgmr.msra.gmra.mxu1 %v4706_v20  ;;  %v842_v19 = vrot.slane %v275_v5, %v26958_v24  ;;  %v849_v20 = vrot.slane %v835_v8, %v26958_v24  ;;  %v5862_v5 = vld [vmem:[%s26937_s9 + $0xce8] sm:$0x11] }
  0x95   : > { %10632 = vmatpush1.bf16.xpose.msra.mxu0 %v25578_v25  ;;  %10672 = vmatpush1.bf16.xpose.msra.mxu1 %v25580_v26 }
  0x96   : > { %10649 = vmatprep.mubr.bf16.mxu0 %v4709_v27  ;;  %10689 = vmatprep.mubr.bf16.mxu1 %v4711_v28  ;;  %v850_v25 = vcombine.high %v842_v19, %v842_v19  ;;  %v851_v26 = vcombine.high %v849_v20, %v849_v20  ;;  %v852_v27 = vcombine.high %v276_v23, %v276_v23  ;;  %v5473_v28 = vld [vmem:[%s26937_s9 + $0xc0] sm:$0xff] }
  0x97   : > { %10711 = vmatprep.subr.bf16.mxu0 %v25583_v31  ;;  %10751 = vmatprep.subr.bf16.mxu1 %v25585_v32  ;;  %v5857_v31 = vld [vmem:[%s26937_s9 + $0xcc0] sm:$0x11]  ;;  %v5474_v32 = vld [vmem:[%s26937_s9 + $0xc8] sm:$0xff]  ;;  %v4724_v47 = vpack.c.bf16 %v842_v19, %v842_v19  ;;  %v4726_v48 = vpack.c.bf16 %v849_v20, %v849_v20 }
  0x98   : > { %v4725_v36 = vpack.c.bf16 %v850_v25, %v850_v25  ;;  %v4727_v37 = vpack.c.bf16 %v851_v26, %v851_v26  ;;  %v25599_v40 = vcombine.high %v5473_v28, %v5857_v31  ;;  %v25601_v41 = vcombine.high %v5474_v32, %v5858_v33 }
  0x99   : > { %v25598_v52 = vcombine.low %v5473_v28, %v5857_v31  ;;  %v25600_v53 = vcombine.low %v5474_v32, %v5858_v33  ;;  %v280_v33 = vld [vmem:[%s26930_s5 + $0x80] sm:$0xff] }
  0x9c   : > { %10650 = vmatmul.mubr.bf16.vlgmr.msra.gmra.mxu0 %v4708_v38  ;;  %10690 = vmatmul.mubr.bf16.vlgmr.msra.gmra.mxu1 %v4710_v39  ;;  %v859_v38 = vrot.slane %v276_v23, %v26958_v24  ;;  %v866_v39 = vrot.slane %v852_v27, %v26958_v24  ;;  %v5864_v23 = vld [vmem:[%s26937_s9 + $0xcf8] sm:$0x11] }
  0x9d   : > { %10712 = vmatpush1.bf16.xpose.msra.mxu0 %v25582_v43  ;;  %10752 = vmatpush1.bf16.xpose.msra.mxu1 %v25584_v44 }
  0x9e   : > { %10729 = vmatprep.mubr.bf16.mxu0 %v4713_v45  ;;  %10769 = vmatprep.mubr.bf16.mxu1 %v4715_v46  ;;  %v867_v43 = vcombine.high %v859_v38, %v859_v38  ;;  %v868_v44 = vcombine.high %v866_v39, %v866_v39  ;;  %v869_v45 = vcombine.high %v277_v42, %v277_v42  ;;  %v5475_v46 = vld [vmem:[%s26937_s9 + $0xd0] sm:$0xff] }
  0x9f   : > { %10791 = vmatprep.subr.bf16.mxu0 %v25587_v49  ;;  %10831 = vmatprep.subr.bf16.mxu1 %v25589_v50  ;;  %v5859_v49 = vld [vmem:[%s26937_s9 + $0xcd0] sm:$0x11]  ;;  %v5476_v50 = vld [vmem:[%s26937_s9 + $0xd8] sm:$0xff]  ;;  %v4728_v1 = vpack.c.bf16 %v859_v38, %v859_v38  ;;  %v4730_v2 = vpack.c.bf16 %v866_v39, %v866_v39 }
  0xa0   : > { %v4729_v54 = vpack.c.bf16 %v867_v43, %v867_v43  ;;  %v4731_v55 = vpack.c.bf16 %v868_v44, %v868_v44  ;;  %v25603_v58 = vcombine.high %v5475_v46, %v5859_v49  ;;  %v25605_v59 = vcombine.high %v5476_v50, %v5860_v51 }
  0xa1   : > { %v25602_v6 = vcombine.low %v5475_v46, %v5859_v49  ;;  %v25604_v7 = vcombine.low %v5476_v50, %v5860_v51  ;;  %v281_v51 = vld [vmem:[%s26930_s5 + $0x88] sm:$0xff] }
  0xa4   : > { %10730 = vmatmul.mubr.bf16.vlgmr.msra.gmra.mxu0 %v4712_v56  ;;  %10770 = vmatmul.mubr.bf16.vlgmr.msra.gmra.mxu1 %v4714_v57  ;;  %v876_v56 = vrot.slane %v277_v42, %v26958_v24  ;;  %v883_v57 = vrot.slane %v869_v45, %v26958_v24  ;;  %v5866_v42 = vld [vmem:[%s26937_s9 + $0xd08] sm:$0x11] }
  0xa5   : > { %10792 = vmatpush1.bf16.xpose.msra.mxu0 %v25586_v61  ;;  %10832 = vmatpush1.bf16.xpose.msra.mxu1 %v25588_v62 }
  0xa6   : > { %10809 = vmatprep.mubr.bf16.mxu0 %v4717_v63  ;;  %10849 = vmatprep.mubr.bf16.mxu1 %v4719_v0  ;;  %v884_v61 = vcombine.high %v876_v56, %v876_v56  ;;  %v885_v62 = vcombine.high %v883_v57, %v883_v57  ;;  %v886_v63 = vcombine.high %v278_v60, %v278_v60  ;;  %v5477_v0 = vld [vmem:[%s26937_s9 + $0xe0] sm:$0xff] }
  0xa7   : > { %10871 = vmatprep.subr.bf16.mxu0 %v25591_v3  ;;  %10911 = vmatprep.subr.bf16.mxu1 %v25593_v4  ;;  %v5861_v3 = vld [vmem:[%s26937_s9 + $0xce0] sm:$0x11]  ;;  %v5478_v4 = vld [vmem:[%s26937_s9 + $0xe8] sm:$0xff]  ;;  %v4732_v19 = vpack.c.bf16 %v876_v56, %v876_v56  ;;  %v4734_v20 = vpack.c.bf16 %v883_v57, %v883_v57 }
  0xa8   : > { %v4733_v8 = vpack.c.bf16 %v884_v61, %v884_v61  ;;  %v4735_v9 = vpack.c.bf16 %v885_v62, %v885_v62  ;;  %v25607_v12 = vcombine.high %v5477_v0, %v5861_v3  ;;  %v25609_v13 = vcombine.high %v5478_v4, %v5862_v5 }
  0xa9   : > { %v25606_v25 = vcombine.low %v5477_v0, %v5861_v3  ;;  %v25608_v26 = vcombine.low %v5478_v4, %v5862_v5  ;;  %v282_v5 = vld [vmem:[%s26930_s5 + $0x90] sm:$0xff] }
  0xac   : > { %10810 = vmatmul.mubr.bf16.vlgmr.msra.gmra.mxu0 %v4716_v10  ;;  %10850 = vmatmul.mubr.bf16.vlgmr.msra.gmra.mxu1 %v4718_v11  ;;  %v893_v10 = vrot.slane %v278_v60, %v26958_v24  ;;  %v900_v11 = vrot.slane %v886_v63, %v26958_v24  ;;  %v5868_v60 = vld [vmem:[%s26937_s9 + $0xd18] sm:$0x11] }
  0xad   : > { %10872 = vmatpush1.bf16.xpose.msra.mxu0 %v25590_v15  ;;  %10912 = vmatpush1.bf16.xpose.msra.mxu1 %v25592_v16 }
  0xae   : > { %10889 = vmatprep.mubr.bf16.mxu0 %v4721_v17  ;;  %10929 = vmatprep.mubr.bf16.mxu1 %v4723_v18  ;;  %v901_v15 = vcombine.high %v893_v10, %v893_v10  ;;  %v902_v16 = vcombine.high %v900_v11, %v900_v11  ;;  %v903_v17 = vcombine.high %v279_v14, %v279_v14  ;;  %v5479_v18 = vld [vmem:[%s26937_s9 + $0xf0] sm:$0xff] }
  0xaf   : > { %10951 = vmatprep.subr.bf16.mxu0 %v25595_v21  ;;  %10991 = vmatprep.subr.bf16.mxu1 %v25597_v22  ;;  %v5863_v21 = vld [vmem:[%s26937_s9 + $0xcf0] sm:$0x11]  ;;  %v5480_v22 = vld [vmem:[%s26937_s9 + $0xf8] sm:$0xff]  ;;  %v4736_v38 = vpack.c.bf16 %v893_v10, %v893_v10  ;;  %v4738_v39 = vpack.c.bf16 %v900_v11, %v900_v11 }
  0xb0   : > { %v4737_v27 = vpack.c.bf16 %v901_v15, %v901_v15  ;;  %v4739_v28 = vpack.c.bf16 %v902_v16, %v902_v16  ;;  %v25611_v31 = vcombine.high %v5479_v18, %v5863_v21  ;;  %v25613_v32 = vcombine.high %v5480_v22, %v5864_v23 }
  0xb1   : > { %v25610_v43 = vcombine.low %v5479_v18, %v5863_v21  ;;  %v25612_v44 = vcombine.low %v5480_v22, %v5864_v23  ;;  %v283_v23 = vld [vmem:[%s26930_s5 + $0x98] sm:$0xff] }
  0xb4   : > { %10890 = vmatmul.mubr.bf16.vlgmr.msra.gmra.mxu0 %v4720_v29  ;;  %10930 = vmatmul.mubr.bf16.vlgmr.msra.gmra.mxu1 %v4722_v30  ;;  %v910_v29 = vrot.slane %v279_v14, %v26958_v24  ;;  %v917_v30 = vrot.slane %v903_v17, %v26958_v24  ;;  %v5870_v14 = vld [vmem:[%s26937_s9 + $0xd28] sm:$0x11] }
  0xb5   : > { %10952 = vmatpush1.bf16.xpose.msra.mxu0 %v25594_v34  ;;  %10992 = vmatpush1.bf16.xpose.msra.mxu1 %v25596_v35 }
  0xb6   : > { %10969 = vmatprep.mubr.bf16.mxu0 %v4725_v36  ;;  %11009 = vmatprep.mubr.bf16.mxu1 %v4727_v37  ;;  %v918_v34 = vcombine.high %v910_v29, %v910_v29  ;;  %v919_v35 = vcombine.high %v917_v30, %v917_v30  ;;  %v920_v36 = vcombine.high %v280_v33, %v280_v33  ;;  %v5481_v37 = vld [vmem:[%s26937_s9 + $0x100] sm:$0xff] }
  0xb7   : > { %11031 = vmatprep.subr.bf16.mxu0 %v25599_v40  ;;  %11071 = vmatprep.subr.bf16.mxu1 %v25601_v41  ;;  %v5865_v40 = vld [vmem:[%s26937_s9 + $0xd00] sm:$0x11]  ;;  %v5482_v41 = vld [vmem:[%s26937_s9 + $0x108] sm:$0xff]  ;;  %v4740_v56 = vpack.c.bf16 %v910_v29, %v910_v29  ;;  %v4742_v57 = vpack.c.bf16 %v917_v30, %v917_v30 }
  0xb8   : > { %v4741_v45 = vpack.c.bf16 %v918_v34, %v918_v34  ;;  %v4743_v46 = vpack.c.bf16 %v919_v35, %v919_v35  ;;  %v25615_v49 = vcombine.high %v5481_v37, %v5865_v40  ;;  %v25617_v50 = vcombine.high %v5482_v41, %v5866_v42 }
  0xb9   : > { %v25614_v61 = vcombine.low %v5481_v37, %v5865_v40  ;;  %v25616_v62 = vcombine.low %v5482_v41, %v5866_v42  ;;  %v284_v42 = vld [vmem:[%s26930_s5 + $0xa0] sm:$0xff] }
  0xbc   : > { %10970 = vmatmul.mubr.bf16.vlgmr.msra.gmra.mxu0 %v4724_v47  ;;  %11010 = vmatmul.mubr.bf16.vlgmr.msra.gmra.mxu1 %v4726_v48  ;;  %v927_v47 = vrot.slane %v280_v33, %v26958_v24  ;;  %v934_v48 = vrot.slane %v920_v36, %v26958_v24  ;;  %v5872_v33 = vld [vmem:[%s26937_s9 + $0xd38] sm:$0x11] }
  0xbd   : > { %11032 = vmatpush1.bf16.xpose.msra.mxu0 %v25598_v52  ;;  %11072 = vmatpush1.bf16.xpose.msra.mxu1 %v25600_v53 }
  0xbe   : > { %11049 = vmatprep.mubr.bf16.mxu0 %v4729_v54  ;;  %11089 = vmatprep.mubr.bf16.mxu1 %v4731_v55  ;;  %v935_v52 = vcombine.high %v927_v47, %v927_v47  ;;  %v936_v53 = vcombine.high %v934_v48, %v934_v48  ;;  %v937_v54 = vcombine.high %v281_v51, %v281_v51  ;;  %v5483_v55 = vld [vmem:[%s26937_s9 + $0x110] sm:$0xff] }
  0xbf   : > { %11111 = vmatprep.subr.bf16.mxu0 %v25603_v58  ;;  %11151 = vmatprep.subr.bf16.mxu1 %v25605_v59  ;;  %v5867_v58 = vld [vmem:[%s26937_s9 + $0xd10] sm:$0x11]  ;;  %v5484_v59 = vld [vmem:[%s26937_s9 + $0x118] sm:$0xff]  ;;  %v4744_v10 = vpack.c.bf16 %v927_v47, %v927_v47  ;;  %v4746_v11 = vpack.c.bf16 %v934_v48, %v934_v48 }
  0xc0   : > { %v4745_v63 = vpack.c.bf16 %v935_v52, %v935_v52  ;;  %v4747_v0 = vpack.c.bf16 %v936_v53, %v936_v53  ;;  %v25619_v3 = vcombine.high %v5483_v55, %v5867_v58  ;;  %v25621_v4 = vcombine.high %v5484_v59, %v5868_v60 }
  0xc1   : > { %v25618_v15 = vcombine.low %v5483_v55, %v5867_v58  ;;  %v25620_v16 = vcombine.low %v5484_v59, %v5868_v60  ;;  %v285_v60 = vld [vmem:[%s26930_s5 + $0xa8] sm:$0xff] }
  0xc4   : > { %11050 = vmatmul.mubr.bf16.vlgmr.msra.gmra.mxu0 %v4728_v1  ;;  %11090 = vmatmul.mubr.bf16.vlgmr.msra.gmra.mxu1 %v4730_v2  ;;  %v944_v1 = vrot.slane %v281_v51, %v26958_v24  ;;  %v951_v2 = vrot.slane %v937_v54, %v26958_v24  ;;  %v5874_v51 = vld [vmem:[%s26937_s9 + $0xd48] sm:$0x11] }
  0xc5   : > { %11112 = vmatpush1.bf16.xpose.msra.mxu0 %v25602_v6  ;;  %11152 = vmatpush1.bf16.xpose.msra.mxu1 %v25604_v7 }
  0xc6   : > { %11129 = vmatprep.mubr.bf16.mxu0 %v4733_v8  ;;  %11169 = vmatprep.mubr.bf16.mxu1 %v4735_v9  ;;  %v952_v6 = vcombine.high %v944_v1, %v944_v1  ;;  %v953_v7 = vcombine.high %v951_v2, %v951_v2  ;;  %v954_v8 = vcombine.high %v282_v5, %v282_v5  ;;  %v5485_v9 = vld [vmem:[%s26937_s9 + $0x120] sm:$0xff] }
  0xc7   : > { %11191 = vmatprep.subr.bf16.mxu0 %v25607_v12  ;;  %11231 = vmatprep.subr.bf16.mxu1 %v25609_v13  ;;  %v5869_v12 = vld [vmem:[%s26937_s9 + $0xd20] sm:$0x11]  ;;  %v5486_v13 = vld [vmem:[%s26937_s9 + $0x128] sm:$0xff]  ;;  %v4748_v29 = vpack.c.bf16 %v944_v1, %v944_v1  ;;  %v4750_v30 = vpack.c.bf16 %v951_v2, %v951_v2 }
  0xc8   : > { %v4749_v17 = vpack.c.bf16 %v952_v6, %v952_v6  ;;  %v4751_v18 = vpack.c.bf16 %v953_v7, %v953_v7  ;;  %v25623_v21 = vcombine.high %v5485_v9, %v5869_v12  ;;  %v25625_v22 = vcombine.high %v5486_v13, %v5870_v14 }
  0xc9   : > { %v25622_v34 = vcombine.low %v5485_v9, %v5869_v12  ;;  %v25624_v35 = vcombine.low %v5486_v13, %v5870_v14  ;;  %v286_v14 = vld [vmem:[%s26930_s5 + $0xb0] sm:$0xff] }
  0xcc   : > { %11130 = vmatmul.mubr.bf16.vlgmr.msra.gmra.mxu0 %v4732_v19  ;;  %11170 = vmatmul.mubr.bf16.vlgmr.msra.gmra.mxu1 %v4734_v20  ;;  %v961_v19 = vrot.slane %v282_v5, %v26958_v24  ;;  %v968_v20 = vrot.slane %v954_v8, %v26958_v24  ;;  %v5876_v5 = vld [vmem:[%s26937_s9 + $0xd58] sm:$0x11] }
  0xcd   : > { %11192 = vmatpush1.bf16.xpose.msra.mxu0 %v25606_v25  ;;  %11232 = vmatpush1.bf16.xpose.msra.mxu1 %v25608_v26 }
  0xce   : > { %11209 = vmatprep.mubr.bf16.mxu0 %v4737_v27  ;;  %11249 = vmatprep.mubr.bf16.mxu1 %v4739_v28  ;;  %v969_v25 = vcombine.high %v961_v19, %v961_v19  ;;  %v970_v26 = vcombine.high %v968_v20, %v968_v20  ;;  %v971_v27 = vcombine.high %v283_v23, %v283_v23  ;;  %v5487_v28 = vld [vmem:[%s26937_s9 + $0x130] sm:$0xff] }
  0xcf   : > { %11271 = vmatprep.subr.bf16.mxu0 %v25611_v31  ;;  %11311 = vmatprep.subr.bf16.mxu1 %v25613_v32  ;;  %v5871_v31 = vld [vmem:[%s26937_s9 + $0xd30] sm:$0x11]  ;;  %v5488_v32 = vld [vmem:[%s26937_s9 + $0x138] sm:$0xff]  ;;  %v4752_v47 = vpack.c.bf16 %v961_v19, %v961_v19  ;;  %v4754_v48 = vpack.c.bf16 %v968_v20, %v968_v20 }
  0xd0   : > { %v4753_v36 = vpack.c.bf16 %v969_v25, %v969_v25  ;;  %v4755_v37 = vpack.c.bf16 %v970_v26, %v970_v26  ;;  %v25627_v40 = vcombine.high %v5487_v28, %v5871_v31  ;;  %v25629_v41 = vcombine.high %v5488_v32, %v5872_v33 }
  0xd1   : > { %v25626_v52 = vcombine.low %v5487_v28, %v5871_v31  ;;  %v25628_v53 = vcombine.low %v5488_v32, %v5872_v33  ;;  %v287_v33 = vld [vmem:[%s26930_s5 + $0xb8] sm:$0xff] }
  0xd4   : > { %11210 = vmatmul.mubr.bf16.vlgmr.msra.gmra.mxu0 %v4736_v38  ;;  %11250 = vmatmul.mubr.bf16.vlgmr.msra.gmra.mxu1 %v4738_v39  ;;  %v978_v38 = vrot.slane %v283_v23, %v26958_v24  ;;  %v985_v39 = vrot.slane %v971_v27, %v26958_v24  ;;  %v5878_v23 = vld [vmem:[%s26937_s9 + $0xd68] sm:$0x11] }
  0xd5   : > { %11272 = vmatpush1.bf16.xpose.msra.mxu0 %v25610_v43  ;;  %11312 = vmatpush1.bf16.xpose.msra.mxu1 %v25612_v44 }
  0xd6   : > { %11289 = vmatprep.mubr.bf16.mxu0 %v4741_v45  ;;  %11329 = vmatprep.mubr.bf16.mxu1 %v4743_v46  ;;  %v986_v43 = vcombine.high %v978_v38, %v978_v38  ;;  %v987_v44 = vcombine.high %v985_v39, %v985_v39  ;;  %v988_v45 = vcombine.high %v284_v42, %v284_v42  ;;  %v5489_v46 = vld [vmem:[%s26937_s9 + $0x140] sm:$0xff] }
  0xd7   : > { %11351 = vmatprep.subr.bf16.mxu0 %v25615_v49  ;;  %11391 = vmatprep.subr.bf16.mxu1 %v25617_v50  ;;  %v5873_v49 = vld [vmem:[%s26937_s9 + $0xd40] sm:$0x11]  ;;  %v5490_v50 = vld [vmem:[%s26937_s9 + $0x148] sm:$0xff]  ;;  %v4756_v1 = vpack.c.bf16 %v978_v38, %v978_v38  ;;  %v4758_v2 = vpack.c.bf16 %v985_v39, %v985_v39 }
  0xd8   : > { %v4757_v54 = vpack.c.bf16 %v986_v43, %v986_v43  ;;  %v4759_v55 = vpack.c.bf16 %v987_v44, %v987_v44  ;;  %v25631_v58 = vcombine.high %v5489_v46, %v5873_v49  ;;  %v25633_v59 = vcombine.high %v5490_v50, %v5874_v51 }
  0xd9   : > { %v25630_v6 = vcombine.low %v5489_v46, %v5873_v49  ;;  %v25632_v7 = vcombine.low %v5490_v50, %v5874_v51  ;;  %v288_v51 = vld [vmem:[%s26930_s5 + $0xc0] sm:$0xff] }
  0xdc   : > { %11290 = vmatmul.mubr.bf16.vlgmr.msra.gmra.mxu0 %v4740_v56  ;;  %11330 = vmatmul.mubr.bf16.vlgmr.msra.gmra.mxu1 %v4742_v57  ;;  %v995_v56 = vrot.slane %v284_v42, %v26958_v24  ;;  %v1002_v57 = vrot.slane %v988_v45, %v26958_v24  ;;  %v5880_v42 = vld [vmem:[%s26937_s9 + $0xd78] sm:$0x11] }
  0xdd   : > { %11352 = vmatpush1.bf16.xpose.msra.mxu0 %v25614_v61  ;;  %11392 = vmatpush1.bf16.xpose.msra.mxu1 %v25616_v62 }
  0xde   : > { %11369 = vmatprep.mubr.bf16.mxu0 %v4745_v63  ;;  %11409 = vmatprep.mubr.bf16.mxu1 %v4747_v0  ;;  %v1003_v61 = vcombine.high %v995_v56, %v995_v56  ;;  %v1004_v62 = vcombine.high %v1002_v57, %v1002_v57  ;;  %v1005_v63 = vcombine.high %v285_v60, %v285_v60  ;;  %v5491_v0 = vld [vmem:[%s26937_s9 + $0x150] sm:$0xff] }
  0xdf   : > { %11431 = vmatprep.subr.bf16.mxu0 %v25619_v3  ;;  %11471 = vmatprep.subr.bf16.mxu1 %v25621_v4  ;;  %v5875_v3 = vld [vmem:[%s26937_s9 + $0xd50] sm:$0x11]  ;;  %v5492_v4 = vld [vmem:[%s26937_s9 + $0x158] sm:$0xff]  ;;  %v4760_v19 = vpack.c.bf16 %v995_v56, %v995_v56  ;;  %v4762_v20 = vpack.c.bf16 %v1002_v57, %v1002_v57 }
  0xe0   : > { %v4761_v8 = vpack.c.bf16 %v1003_v61, %v1003_v61  ;;  %v4763_v9 = vpack.c.bf16 %v1004_v62, %v1004_v62  ;;  %v25635_v12 = vcombine.high %v5491_v0, %v5875_v3  ;;  %v25637_v13 = vcombine.high %v5492_v4, %v5876_v5 }
  0xe1   : > { %v25634_v25 = vcombine.low %v5491_v0, %v5875_v3  ;;  %v25636_v26 = vcombine.low %v5492_v4, %v5876_v5  ;;  %v289_v5 = vld [vmem:[%s26930_s5 + $0xc8] sm:$0xff] }
  0xe4   : > { %11370 = vmatmul.mubr.bf16.vlgmr.msra.gmra.mxu0 %v4744_v10  ;;  %11410 = vmatmul.mubr.bf16.vlgmr.msra.gmra.mxu1 %v4746_v11  ;;  %v1012_v10 = vrot.slane %v285_v60, %v26958_v24  ;;  %v1019_v11 = vrot.slane %v1005_v63, %v26958_v24  ;;  %v5882_v60 = vld [vmem:[%s26937_s9 + $0xd88] sm:$0x11] }
  0xe5   : > { %11432 = vmatpush1.bf16.xpose.msra.mxu0 %v25618_v15  ;;  %11472 = vmatpush1.bf16.xpose.msra.mxu1 %v25620_v16 }
  0xe6   : > { %11449 = vmatprep.mubr.bf16.mxu0 %v4749_v17  ;;  %11489 = vmatprep.mubr.bf16.mxu1 %v4751_v18  ;;  %v1020_v15 = vcombine.high %v1012_v10, %v1012_v10  ;;  %v1021_v16 = vcombine.high %v1019_v11, %v1019_v11  ;;  %v1022_v17 = vcombine.high %v286_v14, %v286_v14  ;;  %v5493_v18 = vld [vmem:[%s26937_s9 + $0x160] sm:$0xff] }
  0xe7   : > { %11511 = vmatprep.subr.bf16.mxu0 %v25623_v21  ;;  %11551 = vmatprep.subr.bf16.mxu1 %v25625_v22  ;;  %v5877_v21 = vld [vmem:[%s26937_s9 + $0xd60] sm:$0x11]  ;;  %v5494_v22 = vld [vmem:[%s26937_s9 + $0x168] sm:$0xff]  ;;  %v4764_v38 = vpack.c.bf16 %v1012_v10, %v1012_v10  ;;  %v4766_v39 = vpack.c.bf16 %v1019_v11, %v1019_v11 }
  0xe8   : > { %v4765_v27 = vpack.c.bf16 %v1020_v15, %v1020_v15  ;;  %v4767_v28 = vpack.c.bf16 %v1021_v16, %v1021_v16  ;;  %v25639_v31 = vcombine.high %v5493_v18, %v5877_v21  ;;  %v25641_v32 = vcombine.high %v5494_v22, %v5878_v23 }
  0xe9   : > { %v25638_v43 = vcombine.low %v5493_v18, %v5877_v21  ;;  %v25640_v44 = vcombine.low %v5494_v22, %v5878_v23  ;;  %v290_v23 = vld [vmem:[%s26930_s5 + $0xd0] sm:$0xff] }
  0xec   : > { %11450 = vmatmul.mubr.bf16.vlgmr.msra.gmra.mxu0 %v4748_v29  ;;  %11490 = vmatmul.mubr.bf16.vlgmr.msra.gmra.mxu1 %v4750_v30  ;;  %v1029_v29 = vrot.slane %v286_v14, %v26958_v24  ;;  %v1036_v30 = vrot.slane %v1022_v17, %v26958_v24  ;;  %v5884_v14 = vld [vmem:[%s26937_s9 + $0xd98] sm:$0x11] }
  0xed   : > { %11512 = vmatpush1.bf16.xpose.msra.mxu0 %v25622_v34  ;;  %11552 = vmatpush1.bf16.xpose.msra.mxu1 %v25624_v35 }
  0xee   : > { %11529 = vmatprep.mubr.bf16.mxu0 %v4753_v36  ;;  %11569 = vmatprep.mubr.bf16.mxu1 %v4755_v37  ;;  %v1037_v34 = vcombine.high %v1029_v29, %v1029_v29  ;;  %v1038_v35 = vcombine.high %v1036_v30, %v1036_v30  ;;  %v1039_v36 = vcombine.high %v287_v33, %v287_v33  ;;  %v5495_v37 = vld [vmem:[%s26937_s9 + $0x170] sm:$0xff] }
  0xef   : > { %11591 = vmatprep.subr.bf16.mxu0 %v25627_v40  ;;  %11631 = vmatprep.subr.bf16.mxu1 %v25629_v41  ;;  %v5879_v40 = vld [vmem:[%s26937_s9 + $0xd70] sm:$0x11]  ;;  %v5496_v41 = vld [vmem:[%s26937_s9 + $0x178] sm:$0xff]  ;;  %v4768_v56 = vpack.c.bf16 %v1029_v29, %v1029_v29  ;;  %v4770_v57 = vpack.c.bf16 %v1036_v30, %v1036_v30 }
  0xf0   : > { %v4769_v45 = vpack.c.bf16 %v1037_v34, %v1037_v34  ;;  %v4771_v46 = vpack.c.bf16 %v1038_v35, %v1038_v35  ;;  %v25643_v49 = vcombine.high %v5495_v37, %v5879_v40  ;;  %v25645_v50 = vcombine.high %v5496_v41, %v5880_v42 }
  0xf1   : > { %v25642_v61 = vcombine.low %v5495_v37, %v5879_v40  ;;  %v25644_v62 = vcombine.low %v5496_v41, %v5880_v42  ;;  %v291_v42 = vld [vmem:[%s26930_s5 + $0xd8] sm:$0xff] }
  0xf4   : > { %11530 = vmatmul.mubr.bf16.vlgmr.msra.gmra.mxu0 %v4752_v47  ;;  %11570 = vmatmul.mubr.bf16.vlgmr.msra.gmra.mxu1 %v4754_v48  ;;  %v1046_v47 = vrot.slane %v287_v33, %v26958_v24  ;;  %v1053_v48 = vrot.slane %v1039_v36, %v26958_v24  ;;  %v5886_v33 = vld [vmem:[%s26937_s9 + $0xda8] sm:$0x11] }
  0xf5   : > { %11592 = vmatpush1.bf16.xpose.msra.mxu0 %v25626_v52  ;;  %11632 = vmatpush1.bf16.xpose.msra.mxu1 %v25628_v53 }
  0xf6   : > { %11609 = vmatprep.mubr.bf16.mxu0 %v4757_v54  ;;  %11649 = vmatprep.mubr.bf16.mxu1 %v4759_v55  ;;  %v1054_v52 = vcombine.high %v1046_v47, %v1046_v47  ;;  %v1055_v53 = vcombine.high %v1053_v48, %v1053_v48  ;;  %v1056_v54 = vcombine.high %v288_v51, %v288_v51  ;;  %v5497_v55 = vld [vmem:[%s26937_s9 + $0x180] sm:$0xff] }
  0xf7   : > { %11671 = vmatprep.subr.bf16.mxu0 %v25631_v58  ;;  %11711 = vmatprep.subr.bf16.mxu1 %v25633_v59  ;;  %v5881_v58 = vld [vmem:[%s26937_s9 + $0xd80] sm:$0x11]  ;;  %v5498_v59 = vld [vmem:[%s26937_s9 + $0x188] sm:$0xff]  ;;  %v4772_v10 = vpack.c.bf16 %v1046_v47, %v1046_v47  ;;  %v4774_v11 = vpack.c.bf16 %v1053_v48, %v1053_v48 }
  0xf8   : > { %v4773_v63 = vpack.c.bf16 %v1054_v52, %v1054_v52  ;;  %v4775_v0 = vpack.c.bf16 %v1055_v53, %v1055_v53  ;;  %v25647_v3 = vcombine.high %v5497_v55, %v5881_v58  ;;  %v25649_v4 = vcombine.high %v5498_v59, %v5882_v60 }
  0xf9   : > { %v25646_v15 = vcombine.low %v5497_v55, %v5881_v58  ;;  %v25648_v16 = vcombine.low %v5498_v59, %v5882_v60  ;;  %v5888_v58 = vld [vmem:[%s26937_s9 + $0xdb8] sm:$0x11] }
  0xfc   : > { %11610 = vmatmul.mubr.bf16.vlgmr.msra.gmra.mxu0 %v4756_v1  ;;  %11650 = vmatmul.mubr.bf16.vlgmr.msra.gmra.mxu1 %v4758_v2  ;;  %v1063_v1 = vrot.slane %v288_v51, %v26958_v24  ;;  %v1070_v2 = vrot.slane %v1056_v54, %v26958_v24  ;;  %v5503_v51 = vld [vmem:[%s26937_s9 + $0x1b0] sm:$0xff] }
  0xfd   : > { %11672 = vmatpush1.bf16.xpose.msra.mxu0 %v25630_v6  ;;  %11712 = vmatpush1.bf16.xpose.msra.mxu1 %v25632_v7 }
  0xfe   : > { %11689 = vmatprep.mubr.bf16.mxu0 %v4761_v8  ;;  %11729 = vmatprep.mubr.bf16.mxu1 %v4763_v9  ;;  %v1071_v6 = vcombine.high %v1063_v1, %v1063_v1  ;;  %v1072_v7 = vcombine.high %v1070_v2, %v1070_v2  ;;  %v1073_v8 = vcombine.high %v289_v5, %v289_v5  ;;  %v5499_v9 = vld [vmem:[%s26937_s9 + $0x190] sm:$0xff] }
  0xff   : > { %11751 = vmatprep.subr.bf16.mxu0 %v25635_v12  ;;  %11791 = vmatprep.subr.bf16.mxu1 %v25637_v13  ;;  %v5883_v12 = vld [vmem:[%s26937_s9 + $0xd90] sm:$0x11]  ;;  %v5500_v13 = vld [vmem:[%s26937_s9 + $0x198] sm:$0xff]  ;;  %v4776_v29 = vpack.c.bf16 %v1063_v1, %v1063_v1  ;;  %v4778_v30 = vpack.c.bf16 %v1070_v2, %v1070_v2  ;;  %v27165_v1 = vrot.slane %v291_v42, %v26958_v24 }
 0x100   : > { %v4777_v17 = vpack.c.bf16 %v1071_v6, %v1071_v6  ;;  %v4779_v18 = vpack.c.bf16 %v1072_v7, %v1072_v7  ;;  %v25651_v21 = vcombine.high %v5499_v9, %v5883_v12  ;;  %v25653_v22 = vcombine.high %v5500_v13, %v5884_v14 }
 0x101   : > { %v25650_v34 = vcombine.low %v5499_v9, %v5883_v12  ;;  %v25652_v35 = vcombine.low %v5500_v13, %v5884_v14 }
 0x104   : > { %11690 = vmatmul.mubr.bf16.vlgmr.msra.gmra.mxu0 %v4760_v19  ;;  %11730 = vmatmul.mubr.bf16.vlgmr.msra.gmra.mxu1 %v4762_v20  ;;  %v27131_v19 = vrot.slane %v289_v5, %v26958_v24  ;;  %v27134_v20 = vrot.slane %v1073_v8, %v26958_v24  ;;  %v292_v5 = vld [vmem:[%s26930_s5 + $0xe0] sm:$0xff] }
 0x105   : > { %11752 = vmatpush1.bf16.xpose.msra.mxu0 %v25634_v25  ;;  %11792 = vmatpush1.bf16.xpose.msra.mxu1 %v25636_v26  ;;  %v1124_v13 = vcombine.high %v292_v5, %v292_v5 }
 0x106   : > { %11769 = vmatprep.mubr.bf16.mxu0 %v4765_v27  ;;  %11809 = vmatprep.mubr.bf16.mxu1 %v4767_v28  ;;  %v1088_v25 = vcombine.high %v27131_v19, %v27131_v19  ;;  %v1089_v26 = vcombine.high %v27134_v20, %v27134_v20  ;;  %v1090_v27 = vcombine.high %v290_v23, %v290_v23  ;;  %v5501_v28 = vld [vmem:[%s26937_s9 + $0x1a0] sm:$0xff] }
 0x107   : > { %11831 = vmatprep.subr.bf16.mxu0 %v25639_v31  ;;  %11871 = vmatprep.subr.bf16.mxu1 %v25641_v32  ;;  %v5885_v31 = vld [vmem:[%s26937_s9 + $0xda0] sm:$0x11]  ;;  %v5502_v32 = vld [vmem:[%s26937_s9 + $0x1a8] sm:$0xff]  ;;  %v4780_v54 = vpack.c.bf16 %v27131_v19, %v27131_v19  ;;  %v4782_v55 = vpack.c.bf16 %v27134_v20, %v27134_v20 }
 0x108   : > { %v4781_v36 = vpack.c.bf16 %v1088_v25, %v1088_v25  ;;  %v4783_v37 = vpack.c.bf16 %v1089_v26, %v1089_v26  ;;  %v25655_v40 = vcombine.high %v5501_v28, %v5885_v31  ;;  %v25657_v41 = vcombine.high %v5502_v32, %v5886_v33  ;;  %v5889_v20 = vld [vmem:[%s26937_s9 + $0xdc0] sm:$0x11] }
 0x109   : > { %v25654_v59 = vcombine.low %v5501_v28, %v5885_v31  ;;  %v25656_v60 = vcombine.low %v5502_v32, %v5886_v33  ;;  %v27187_v31 = vrot.slane %v1124_v13, %v26958_v24  ;;  %v5893_v13 = vld [vmem:[%s26937_s9 + $0xde0] sm:$0x11] }
 0x10c   : > { %11770 = vmatmul.mubr.bf16.vlgmr.msra.gmra.mxu0 %v4764_v38  ;;  %11810 = vmatmul.mubr.bf16.vlgmr.msra.gmra.mxu1 %v4766_v39  ;;  %v27146_v38 = vrot.slane %v290_v23, %v26958_v24  ;;  %v27149_v39 = vrot.slane %v1090_v27, %v26958_v24 }
 0x10d   : > { %11832 = vmatpush1.bf16.xpose.msra.mxu0 %v25638_v43  ;;  %11872 = vmatpush1.bf16.xpose.msra.mxu1 %v25640_v44 }
 0x10e   : > { %11849 = vmatprep.mubr.bf16.mxu0 %v4769_v45  ;;  %11889 = vmatprep.mubr.bf16.mxu1 %v4771_v46  ;;  %v1105_v48 = vcombine.high %v27146_v38, %v27146_v38  ;;  %v4786_v19 = vpack.c.bf16 %v27149_v39, %v27149_v39 }
 0x10f   : > { %11911 = vmatprep.subr.bf16.mxu0 %v25643_v49  ;;  %11951 = vmatprep.subr.bf16.mxu1 %v25645_v50  ;;  %v1106_v49 = vcombine.high %v27149_v39, %v27149_v39  ;;  %v1107_v50 = vcombine.high %v291_v42, %v291_v42 }
 0x111   : > { %v27168_v2 = vrot.slane %v1107_v50, %v26958_v24  ;;  %v5508_v50 = vld [vmem:[%s26937_s9 + $0x1d8] sm:$0xff] }
 0x113   : > { %v1123_v12 = vcombine.high %v27168_v2, %v27168_v2 }
 0x114   : > { %11850 = vmatmul.mubr.bf16.vlgmr.msra.gmra.mxu0 %v4768_v56  ;;  %11890 = vmatmul.mubr.bf16.vlgmr.msra.gmra.mxu1 %v4770_v57  ;;  %v5887_v56 = vld [vmem:[%s26937_s9 + $0xdb0] sm:$0x11]  ;;  %v5504_v57 = vld [vmem:[%s26937_s9 + $0x1b8] sm:$0xff] }
 0x115   : > { %11912 = vmatpush1.bf16.xpose.msra.mxu0 %v25642_v61  ;;  %11952 = vmatpush1.bf16.xpose.msra.mxu1 %v25644_v62  ;;  %v25658_v23 = vcombine.low %v5503_v51, %v5887_v56  ;;  %v25660_v25 = vcombine.low %v5504_v57, %v5888_v58 }
 0x116   : > { %11929 = vmatprep.mubr.bf16.mxu0 %v4773_v63  ;;  %11969 = vmatprep.mubr.bf16.mxu1 %v4775_v0  ;;  %v4785_v63 = vpack.c.bf16 %v1105_v48, %v1105_v48  ;;  %v4787_v0 = vpack.c.bf16 %v1106_v49, %v1106_v49  ;;  %v4790_v48 = vpack.c.bf16 %v27168_v2, %v27168_v2  ;;  %v5891_v49 = vld [vmem:[%s26937_s9 + $0xdd0] sm:$0x11] }
 0x117   : > { %11991 = vmatprep.subr.bf16.mxu0 %v25647_v3  ;;  %12031 = vmatprep.subr.bf16.mxu1 %v25649_v4  ;;  %v25659_v3 = vcombine.high %v5503_v51, %v5887_v56  ;;  %v25661_v4 = vcombine.high %v5504_v57, %v5888_v58  ;;  %v5892_v51 = vld [vmem:[%s26937_s9 + $0xdd8] sm:$0x11] }
 0x11c   : > { %11930 = vmatmul.mubr.bf16.vlgmr.msra.gmra.mxu0 %v4772_v10  ;;  %11970 = vmatmul.mubr.bf16.vlgmr.msra.gmra.mxu1 %v4774_v11  ;;  %v1122_v11 = vcombine.high %v27165_v1, %v27165_v1 }
 0x11d   : > { %11992 = vmatpush1.bf16.xpose.msra.mxu0 %v25646_v15  ;;  %12032 = vmatpush1.bf16.xpose.msra.mxu1 %v25648_v16  ;;  %v5505_v15 = vld [vmem:[%s26937_s9 + $0x1c0] sm:$0xff] }
 0x11e   : > { %12009 = vmatprep.mubr.bf16.mxu0 %v4777_v17  ;;  %12049 = vmatprep.mubr.bf16.mxu1 %v4779_v18  ;;  %v4784_v18 = vpack.c.bf16 %v27146_v38, %v27146_v38  ;;  %v4789_v28 = vpack.c.bf16 %v1122_v11, %v1122_v11  ;;  %v25663_v32 = vcombine.high %v5505_v15, %v5889_v20 }
 0x11f   : > { %12071 = vmatprep.subr.bf16.mxu0 %v25651_v21  ;;  %12111 = vmatprep.subr.bf16.mxu1 %v25653_v22  ;;  %v5506_v21 = vld [vmem:[%s26937_s9 + $0x1c8] sm:$0xff] }
 0x120   : > { %v5890_v22 = vld [vmem:[%s26937_s9 + $0xdc8] sm:$0x11] }
 0x121   : > { %v25665_v33 = vcombine.high %v5506_v21, %v5890_v22 }
 0x124   : > { %v10091_v43 = vpop.f32.mrf.mxu0  ;;  %v10131_v44 = vpop.f32.mrf.mxu1  ;;  %12010 = vmatmul.mubr.bf16.vlgmr.msra.gmra.mxu0 %v4776_v29  ;;  %12050 = vmatmul.mubr.bf16.vlgmr.msra.gmra.mxu1 %v4778_v30  ;;  %v4791_v29 = vpack.c.bf16 %v1123_v12, %v1123_v12  ;;  %v27184_v30 = vrot.slane %v292_v5, %v26958_v24  ;;  %v4794_v12 = vpack.c.bf16 %v27187_v31, %v27187_v31 }
 0x125   : > { %v10132_v45 = vadd.f32 %v10131_v44, %v10091_v43  ;;  %12072 = vmatpush1.bf16.xpose.msra.mxu0 %v25650_v34  ;;  %12112 = vmatpush1.bf16.xpose.msra.mxu1 %v25652_v35  ;;  %v293_v34 = vld [vmem:[%s26930_s5 + $0xe8] sm:$0xff]  ;;  %v5507_v44 = vld [vmem:[%s26937_s9 + $0x1d0] sm:$0xff] }
 0x126   : > { %v10093_v46 = vpop.f32.mrf.mxu0  ;;  %v10133_v47 = vpop.f32.mrf.mxu1  ;;  %12089 = vmatprep.mubr.bf16.mxu0 %v4781_v36  ;;  %12129 = vmatprep.mubr.bf16.mxu1 %v4783_v37  ;;  %v1141_v42 = vcombine.high %v293_v34, %v293_v34  ;;  %v27203_v58 = vrot.slane %v293_v34, %v26958_v24  ;;  %v4792_v11 = vpack.c.bf16 %v27184_v30, %v27184_v30 }
 0x127   : > { %12151 = vmatprep.subr.bf16.mxu0 %v25655_v40  ;;  %12191 = vmatprep.subr.bf16.mxu1 %v25657_v41  ;;  %v1139_v40 = vcombine.high %v27184_v30, %v27184_v30  ;;  %v1140_v41 = vcombine.high %v27187_v31, %v27187_v31  ;;  %v4788_v47 = vpack.c.bf16 %v27165_v1, %v27165_v1 }
 0x128   : > { %v10094_v52 = vpop.f32.mrf.mxu0  ;;  %v10134_v53 = vpop.f32.mrf.mxu1 }
 0x129   : > { %v25662_v52 = vcombine.low %v5505_v15, %v5889_v20  ;;  %v25664_v53 = vcombine.low %v5506_v21, %v5890_v22  ;;  %v4793_v56 = vpack.c.bf16 %v1139_v40, %v1139_v40  ;;  %v4795_v57 = vpack.c.bf16 %v1140_v41, %v1140_v41  ;;  %v5894_v15 = vld [vmem:[%s26937_s9 + $0xde8] sm:$0x11] }
 0x12a   : > { %v10095_v61 = vpop.f32.mrf.mxu0  ;;  %v10135_v62 = vpop.f32.mrf.mxu1  ;;  %v4796_v40 = vpack.c.bf16 %v27203_v58, %v27203_v58 }
 0x12b   : > { %v25669_v61 = vcombine.high %v5508_v50, %v5892_v51  ;;  %v294_v62 = vld [vmem:[%s26930_s5 + $0xf0] sm:$0xff] }
 0x12c   : > { %v10171_v6 = vpop.f32.mrf.mxu0  ;;  %v10211_v7 = vpop.f32.mrf.mxu1  ;;  %12090 = vmatmul.mubr.bf16.vlgmr.msra.gmra.mxu0 %v4780_v54  ;;  %12130 = vmatmul.mubr.bf16.vlgmr.msra.gmra.mxu1 %v4782_v55  ;;  %v27222_v22 = vrot.slane %v294_v62, %v26958_v24 }
 0x12d   : > { %v10172_v8 = vadd.f32 %v10171_v6, %v10132_v45  ;;  %12152 = vmatpush1.bf16.xpose.msra.mxu0 %v25654_v59  ;;  %12192 = vmatpush1.bf16.xpose.msra.mxu1 %v25656_v60  ;;  %v27206_v59 = vrot.slane %v1141_v42, %v26958_v24  ;;  %v25667_v60 = vcombine.high %v5507_v44, %v5891_v49  ;;  %v5895_v42 = vld [vmem:[%s26937_s9 + $0xdf0] sm:$0x11] }
 0x12e   : > { %v10173_v9 = vpop.f32.mrf.mxu0  ;;  %v10213_v10 = vpop.f32.mrf.mxu1  ;;  %12169 = vmatprep.mubr.bf16.mxu0 %v4785_v63  ;;  %12209 = vmatprep.mubr.bf16.mxu1 %v4787_v0  ;;  %v1158_v6 = vcombine.high %v294_v62, %v294_v62 }
 0x12f   : > { %v10212_v14 = vadd.f32 %v10211_v7, %v10172_v8  ;;  %12231 = vmatprep.subr.bf16.mxu0 %v25659_v3  ;;  %12271 = vmatprep.subr.bf16.mxu1 %v25661_v4  ;;  %v1156_v4 = vcombine.high %v27203_v58, %v27203_v58  ;;  %v1157_v5 = vcombine.high %v27206_v59, %v27206_v59  ;;  %v5509_v8 = vld [vmem:[%s26937_s9 + $0x1e0] sm:$0xff] }
 0x130   : > { %v10174_v16 = vpop.f32.mrf.mxu0  ;;  %v10214_v17 = vpop.f32.mrf.mxu1  ;;  %v4798_v41 = vpack.c.bf16 %v27206_v59, %v27206_v59 }
 0x131   : > { %v25666_v16 = vcombine.low %v5507_v44, %v5891_v49  ;;  %v25668_v17 = vcombine.low %v5508_v50, %v5892_v51  ;;  %v4797_v20 = vpack.c.bf16 %v1156_v4, %v1156_v4  ;;  %v4799_v21 = vpack.c.bf16 %v1157_v5, %v1157_v5  ;;  %v5896_v44 = vld [vmem:[%s26937_s9 + $0xdf8] sm:$0x11] }
 0x132   : > { %v10175_v26 = vpop.f32.mrf.mxu0  ;;  %v10215_v27 = vpop.f32.mrf.mxu1  ;;  %v4800_v4 = vpack.c.bf16 %v27222_v22, %v27222_v22 }
 0x133   : > { %v295_v27 = vld [vmem:[%s26930_s5 + $0xf8] sm:$0xff] }
 0x134   : > { %v10251_v35 = vpop.f32.mrf.mxu0  ;;  %v10291_v36 = vpop.f32.mrf.mxu1  ;;  %12170 = vmatmul.mubr.bf16.vlgmr.msra.gmra.mxu0 %v4784_v18  ;;  %12210 = vmatmul.mubr.bf16.vlgmr.msra.gmra.mxu1 %v4786_v19  ;;  %v27241_v51 = vrot.slane %v295_v27, %v26958_v24 }
 0x135   : > { %v10252_v37 = vadd.f32 %v10251_v35, %v10212_v14  ;;  %12232 = vmatpush1.bf16.xpose.msra.mxu0 %v25658_v23  ;;  %12272 = vmatpush1.bf16.xpose.msra.mxu1 %v25660_v25  ;;  %v5510_v14 = vld [vmem:[%s26937_s9 + $0x1e8] sm:$0xff]  ;;  %v27225_v23 = vrot.slane %v1158_v6, %v26958_v24  ;;  %v25671_v25 = vcombine.high %v5509_v8, %v5893_v13  ;;  %v5897_v6 = vld [vmem:[%s26937_s9 + $0xe00] sm:$0x11] }
 0x136   : > { %v10253_v38 = vpop.f32.mrf.mxu0  ;;  %v10293_v39 = vpop.f32.mrf.mxu1  ;;  %12249 = vmatprep.mubr.bf16.mxu0 %v4789_v28  ;;  %12289 = vmatprep.mubr.bf16.mxu1 %v4791_v29  ;;  %v25673_v26 = vcombine.high %v5510_v14, %v5894_v15  ;;  %v1175_v35 = vcombine.high %v295_v27, %v295_v27 }
 0x137   : > { %v10292_v43 = vadd.f32 %v10291_v36, %v10252_v37  ;;  %12311 = vmatprep.subr.bf16.mxu0 %v25663_v32  ;;  %12351 = vmatprep.subr.bf16.mxu1 %v25665_v33  ;;  %v1173_v33 = vcombine.high %v27222_v22, %v27222_v22  ;;  %v1174_v34 = vcombine.high %v27225_v23, %v27225_v23  ;;  %v5511_v37 = vld [vmem:[%s26937_s9 + $0x1f0] sm:$0xff] }
 0x138   : > { %v10254_v45 = vpop.f32.mrf.mxu0  ;;  %v10294_v46 = vpop.f32.mrf.mxu1  ;;  %v4802_v5 = vpack.c.bf16 %v27225_v23, %v27225_v23 }
 0x139   : > { %v25670_v45 = vcombine.low %v5509_v8, %v5893_v13  ;;  %v25672_v46 = vcombine.low %v5510_v14, %v5894_v15  ;;  %v4801_v49 = vpack.c.bf16 %v1173_v33, %v1173_v33  ;;  %v4803_v50 = vpack.c.bf16 %v1174_v34, %v1174_v34  ;;  %v5898_v8 = vld [vmem:[%s26937_s9 + $0xe08] sm:$0x11] }
 0x13a   : > { %v10255_v54 = vpop.f32.mrf.mxu0  ;;  %v10295_v55 = vpop.f32.mrf.mxu1  ;;  %v4804_v33 = vpack.c.bf16 %v27241_v51, %v27241_v51 }
 0x13b   : > { %v296_v55 = vld [vmem:[%s26930_s5 + $0x100] sm:$0xff] }
 0x13c   : > { %v10331_v63 = vpop.f32.mrf.mxu0  ;;  %v10371_v0 = vpop.f32.mrf.mxu1  ;;  %12250 = vmatmul.mubr.bf16.vlgmr.msra.gmra.mxu0 %v4788_v47  ;;  %12290 = vmatmul.mubr.bf16.vlgmr.msra.gmra.mxu1 %v4790_v48  ;;  %v27260_v15 = vrot.slane %v296_v55, %v26958_v24 }
 0x13d   : > { %v10332_v1 = vadd.f32 %v10331_v63, %v10292_v43  ;;  %12312 = vmatpush1.bf16.xpose.msra.mxu0 %v25662_v52  ;;  %12352 = vmatpush1.bf16.xpose.msra.mxu1 %v25664_v53  ;;  %v5512_v43 = vld [vmem:[%s26937_s9 + $0x1f8] sm:$0xff]  ;;  %v27244_v52 = vrot.slane %v1175_v35, %v26958_v24  ;;  %v25675_v53 = vcombine.high %v5511_v37, %v5895_v42  ;;  %v5899_v35 = vld [vmem:[%s26937_s9 + $0xe10] sm:$0x11] }
 0x13e   : > { %v10333_v2 = vpop.f32.mrf.mxu0  ;;  %v10373_v3 = vpop.f32.mrf.mxu1  ;;  %12329 = vmatprep.mubr.bf16.mxu0 %v4793_v56  ;;  %12369 = vmatprep.mubr.bf16.mxu1 %v4795_v57  ;;  %v25677_v54 = vcombine.high %v5512_v43, %v5896_v44  ;;  %v1192_v63 = vcombine.high %v296_v55, %v296_v55 }
 0x13f   : > { %v10372_v7 = vadd.f32 %v10371_v0, %v10332_v1  ;;  %12391 = vmatprep.subr.bf16.mxu0 %v25667_v60  ;;  %12431 = vmatprep.subr.bf16.mxu1 %v25669_v61  ;;  %v1190_v61 = vcombine.high %v27241_v51, %v27241_v51  ;;  %v1191_v62 = vcombine.high %v27244_v52, %v27244_v52  ;;  %v5513_v1 = vld [vmem:[%s26937_s9 + $0x200] sm:$0xff] }
 0x140   : > { %v10334_v9 = vpop.f32.mrf.mxu0  ;;  %v10374_v10 = vpop.f32.mrf.mxu1  ;;  %v4806_v34 = vpack.c.bf16 %v27244_v52, %v27244_v52 }
 0x141   : > { %v25674_v9 = vcombine.low %v5511_v37, %v5895_v42  ;;  %v25676_v10 = vcombine.low %v5512_v43, %v5896_v44  ;;  %v4805_v13 = vpack.c.bf16 %v1190_v61, %v1190_v61  ;;  %v4807_v14 = vpack.c.bf16 %v1191_v62, %v1191_v62  ;;  %v5900_v37 = vld [vmem:[%s26937_s9 + $0xe18] sm:$0x11] }
 0x142   : > { %v10335_v18 = vpop.f32.mrf.mxu0  ;;  %v10375_v19 = vpop.f32.mrf.mxu1  ;;  %v4808_v61 = vpack.c.bf16 %v27260_v15, %v27260_v15 }
 0x143   : > { %v297_v19 = vld [vmem:[%s26930_s5 + $0x108] sm:$0xff] }
 0x144   : > { %v10411_v28 = vpop.f32.mrf.mxu0  ;;  %v10451_v29 = vpop.f32.mrf.mxu1  ;;  %12330 = vmatmul.mubr.bf16.vlgmr.msra.gmra.mxu0 %v4792_v11  ;;  %12370 = vmatmul.mubr.bf16.vlgmr.msra.gmra.mxu1 %v4794_v12  ;;  %v27279_v44 = vrot.slane %v297_v19, %v26958_v24 }
 0x145   : > { %v10412_v30 = vadd.f32 %v10411_v28, %v10372_v7  ;;  %12392 = vmatpush1.bf16.xpose.msra.mxu0 %v25666_v16  ;;  %12432 = vmatpush1.bf16.xpose.msra.mxu1 %v25668_v17  ;;  %v5514_v7 = vld [vmem:[%s26937_s9 + $0x208] sm:$0xff]  ;;  %v27263_v16 = vrot.slane %v1192_v63, %v26958_v24  ;;  %v25679_v17 = vcombine.high %v5513_v1, %v5897_v6  ;;  %v5901_v63 = vld [vmem:[%s26937_s9 + $0xe20] sm:$0x11] }
 0x146   : > { %v10413_v31 = vpop.f32.mrf.mxu0  ;;  %v10453_v32 = vpop.f32.mrf.mxu1  ;;  %12409 = vmatprep.mubr.bf16.mxu0 %v4797_v20  ;;  %12449 = vmatprep.mubr.bf16.mxu1 %v4799_v21  ;;  %v25681_v18 = vcombine.high %v5514_v7, %v5898_v8  ;;  %v1209_v28 = vcombine.high %v297_v19, %v297_v19 }
 0x147   : > { %v10452_v36 = vadd.f32 %v10451_v29, %v10412_v30  ;;  %12471 = vmatprep.subr.bf16.mxu0 %v25671_v25  ;;  %12511 = vmatprep.subr.bf16.mxu1 %v25673_v26  ;;  %v1207_v26 = vcombine.high %v27260_v15, %v27260_v15  ;;  %v1208_v27 = vcombine.high %v27263_v16, %v27263_v16  ;;  %v5515_v30 = vld [vmem:[%s26937_s9 + $0x210] sm:$0xff] }
 0x148   : > { %v10414_v38 = vpop.f32.mrf.mxu0  ;;  %v10454_v39 = vpop.f32.mrf.mxu1  ;;  %v4810_v62 = vpack.c.bf16 %v27263_v16, %v27263_v16 }
 0x149   : > { %v25678_v38 = vcombine.low %v5513_v1, %v5897_v6  ;;  %v25680_v39 = vcombine.low %v5514_v7, %v5898_v8  ;;  %v4809_v42 = vpack.c.bf16 %v1207_v26, %v1207_v26  ;;  %v4811_v43 = vpack.c.bf16 %v1208_v27, %v1208_v27  ;;  %v5902_v1 = vld [vmem:[%s26937_s9 + $0xe28] sm:$0x11] }
 0x14a   : > { %v10415_v47 = vpop.f32.mrf.mxu0  ;;  %v10455_v48 = vpop.f32.mrf.mxu1  ;;  %v4812_v26 = vpack.c.bf16 %v27279_v44, %v27279_v44 }
 0x14b   : > { %v298_v48 = vld [vmem:[%s26930_s5 + $0x110] sm:$0xff] }
 0x14c   : > { %v10491_v56 = vpop.f32.mrf.mxu0  ;;  %v10531_v57 = vpop.f32.mrf.mxu1  ;;  %12410 = vmatmul.mubr.bf16.vlgmr.msra.gmra.mxu0 %v4796_v40  ;;  %12450 = vmatmul.mubr.bf16.vlgmr.msra.gmra.mxu1 %v4798_v41  ;;  %v27298_v8 = vrot.slane %v298_v48, %v26958_v24 }
 0x14d   : > { %v10492_v58 = vadd.f32 %v10491_v56, %v10452_v36  ;;  %12472 = vmatpush1.bf16.xpose.msra.mxu0 %v25670_v45  ;;  %12512 = vmatpush1.bf16.xpose.msra.mxu1 %v25672_v46  ;;  %v5516_v36 = vld [vmem:[%s26937_s9 + $0x218] sm:$0xff]  ;;  %v27282_v45 = vrot.slane %v1209_v28, %v26958_v24  ;;  %v25683_v46 = vcombine.high %v5515_v30, %v5899_v35  ;;  %v5903_v28 = vld [vmem:[%s26937_s9 + $0xe30] sm:$0x11] }
 0x14e   : > { %v10493_v59 = vpop.f32.mrf.mxu0  ;;  %v10533_v60 = vpop.f32.mrf.mxu1  ;;  %12489 = vmatprep.mubr.bf16.mxu0 %v4801_v49  ;;  %12529 = vmatprep.mubr.bf16.mxu1 %v4803_v50  ;;  %v25685_v47 = vcombine.high %v5516_v36, %v5900_v37  ;;  %v1226_v56 = vcombine.high %v298_v48, %v298_v48 }
 0x14f   : > { %v10532_v0 = vadd.f32 %v10531_v57, %v10492_v58  ;;  %12551 = vmatprep.subr.bf16.mxu0 %v25675_v53  ;;  %12591 = vmatprep.subr.bf16.mxu1 %v25677_v54  ;;  %v1224_v54 = vcombine.high %v27279_v44, %v27279_v44  ;;  %v1225_v55 = vcombine.high %v27282_v45, %v27282_v45  ;;  %v5517_v58 = vld [vmem:[%s26937_s9 + $0x220] sm:$0xff] }
 0x150   : > { %v10494_v2 = vpop.f32.mrf.mxu0  ;;  %v10534_v3 = vpop.f32.mrf.mxu1  ;;  %v4814_v27 = vpack.c.bf16 %v27282_v45, %v27282_v45 }
 0x151   : > { %v25682_v2 = vcombine.low %v5515_v30, %v5899_v35  ;;  %v25684_v3 = vcombine.low %v5516_v36, %v5900_v37  ;;  %v4813_v6 = vpack.c.bf16 %v1224_v54, %v1224_v54  ;;  %v4815_v7 = vpack.c.bf16 %v1225_v55, %v1225_v55  ;;  %v5904_v30 = vld [vmem:[%s26937_s9 + $0xe38] sm:$0x11] }
 0x152   : > { %v10495_v11 = vpop.f32.mrf.mxu0  ;;  %v10535_v12 = vpop.f32.mrf.mxu1  ;;  %v4816_v54 = vpack.c.bf16 %v27298_v8, %v27298_v8 }
 0x153   : > { %v299_v12 = vld [vmem:[%s26930_s5 + $0x118] sm:$0xff] }
 0x154   : > { %v10571_v20 = vpop.f32.mrf.mxu0  ;;  %v10611_v21 = vpop.f32.mrf.mxu1  ;;  %12490 = vmatmul.mubr.bf16.vlgmr.msra.gmra.mxu0 %v4800_v4  ;;  %12530 = vmatmul.mubr.bf16.vlgmr.msra.gmra.mxu1 %v4802_v5  ;;  %v27317_v37 = vrot.slane %v299_v12, %v26958_v24 }
 0x155   : > { %v10572_v22 = vadd.f32 %v10571_v20, %v10532_v0  ;;  %12552 = vmatpush1.bf16.xpose.msra.mxu0 %v25674_v9  ;;  %12592 = vmatpush1.bf16.xpose.msra.mxu1 %v25676_v10  ;;  %v5518_v0 = vld [vmem:[%s26937_s9 + $0x228] sm:$0xff]  ;;  %v27301_v9 = vrot.slane %v1226_v56, %v26958_v24  ;;  %v25687_v10 = vcombine.high %v5517_v58, %v5901_v63  ;;  %v5905_v56 = vld [vmem:[%s26937_s9 + $0xe40] sm:$0x11] }
 0x156   : > { %v10573_v23 = vpop.f32.mrf.mxu0  ;;  %v10613_v25 = vpop.f32.mrf.mxu1  ;;  %12569 = vmatprep.mubr.bf16.mxu0 %v4805_v13  ;;  %12609 = vmatprep.mubr.bf16.mxu1 %v4807_v14  ;;  %v25689_v11 = vcombine.high %v5518_v0, %v5902_v1  ;;  %v1243_v20 = vcombine.high %v299_v12, %v299_v12 }
 0x157   : > { %v10612_v29 = vadd.f32 %v10611_v21, %v10572_v22  ;;  %12631 = vmatprep.subr.bf16.mxu0 %v25679_v17  ;;  %12671 = vmatprep.subr.bf16.mxu1 %v25681_v18  ;;  %v1241_v18 = vcombine.high %v27298_v8, %v27298_v8  ;;  %v1242_v19 = vcombine.high %v27301_v9, %v27301_v9  ;;  %v5519_v22 = vld [vmem:[%s26937_s9 + $0x230] sm:$0xff] }
 0x158   : > { %v10574_v31 = vpop.f32.mrf.mxu0  ;;  %v10614_v32 = vpop.f32.mrf.mxu1  ;;  %v4818_v55 = vpack.c.bf16 %v27301_v9, %v27301_v9 }
 0x159   : > { %v25686_v31 = vcombine.low %v5517_v58, %v5901_v63  ;;  %v25688_v32 = vcombine.low %v5518_v0, %v5902_v1  ;;  %v4817_v35 = vpack.c.bf16 %v1241_v18, %v1241_v18  ;;  %v4819_v36 = vpack.c.bf16 %v1242_v19, %v1242_v19  ;;  %v5906_v58 = vld [vmem:[%s26937_s9 + $0xe48] sm:$0x11] }
 0x15a   : > { %v10575_v40 = vpop.f32.mrf.mxu0  ;;  %v10615_v41 = vpop.f32.mrf.mxu1  ;;  %v4820_v18 = vpack.c.bf16 %v27317_v37, %v27317_v37 }
 0x15b   : > { %v300_v41 = vld [vmem:[%s26930_s5 + $0x120] sm:$0xff] }
 0x15c   : > { %v10651_v49 = vpop.f32.mrf.mxu0  ;;  %v10691_v50 = vpop.f32.mrf.mxu1  ;;  %12570 = vmatmul.mubr.bf16.vlgmr.msra.gmra.mxu0 %v4804_v33  ;;  %12610 = vmatmul.mubr.bf16.vlgmr.msra.gmra.mxu1 %v4806_v34  ;;  %v27336_v1 = vrot.slane %v300_v41, %v26958_v24 }
 0x15d   : > { %v10652_v51 = vadd.f32 %v10651_v49, %v10612_v29  ;;  %12632 = vmatpush1.bf16.xpose.msra.mxu0 %v25678_v38  ;;  %12672 = vmatpush1.bf16.xpose.msra.mxu1 %v25680_v39  ;;  %v5520_v29 = vld [vmem:[%s26937_s9 + $0x238] sm:$0xff]  ;;  %v27320_v38 = vrot.slane %v1243_v20, %v26958_v24  ;;  %v25691_v39 = vcombine.high %v5519_v22, %v5903_v28  ;;  %v5907_v20 = vld [vmem:[%s26937_s9 + $0xe50] sm:$0x11] }
 0x15e   : > { %v10653_v52 = vpop.f32.mrf.mxu0  ;;  %v10693_v53 = vpop.f32.mrf.mxu1  ;;  %12649 = vmatprep.mubr.bf16.mxu0 %v4809_v42  ;;  %12689 = vmatprep.mubr.bf16.mxu1 %v4811_v43  ;;  %v25693_v40 = vcombine.high %v5520_v29, %v5904_v30  ;;  %v1260_v49 = vcombine.high %v300_v41, %v300_v41 }
 0x15f   : > { %v10692_v57 = vadd.f32 %v10691_v50, %v10652_v51  ;;  %12711 = vmatprep.subr.bf16.mxu0 %v25683_v46  ;;  %12751 = vmatprep.subr.bf16.mxu1 %v25685_v47  ;;  %v1258_v47 = vcombine.high %v27317_v37, %v27317_v37  ;;  %v1259_v48 = vcombine.high %v27320_v38, %v27320_v38  ;;  %v5521_v51 = vld [vmem:[%s26937_s9 + $0x240] sm:$0xff] }
 0x160   : > { %v10654_v59 = vpop.f32.mrf.mxu0  ;;  %v10694_v60 = vpop.f32.mrf.mxu1  ;;  %v4822_v19 = vpack.c.bf16 %v27320_v38, %v27320_v38 }
 0x161   : > { %v25690_v59 = vcombine.low %v5519_v22, %v5903_v28  ;;  %v25692_v60 = vcombine.low %v5520_v29, %v5904_v30  ;;  %v4821_v63 = vpack.c.bf16 %v1258_v47, %v1258_v47  ;;  %v4823_v0 = vpack.c.bf16 %v1259_v48, %v1259_v48  ;;  %v5908_v22 = vld [vmem:[%s26937_s9 + $0xe58] sm:$0x11] }
 0x162   : > { %v10655_v4 = vpop.f32.mrf.mxu0  ;;  %v10695_v5 = vpop.f32.mrf.mxu1  ;;  %v4824_v47 = vpack.c.bf16 %v27336_v1, %v27336_v1 }
 0x163   : > { %v301_v5 = vld [vmem:[%s26930_s5 + $0x128] sm:$0xff] }
 0x164   : > { %v10731_v13 = vpop.f32.mrf.mxu0  ;;  %v10771_v14 = vpop.f32.mrf.mxu1  ;;  %12650 = vmatmul.mubr.bf16.vlgmr.msra.gmra.mxu0 %v4808_v61  ;;  %12690 = vmatmul.mubr.bf16.vlgmr.msra.gmra.mxu1 %v4810_v62  ;;  %v27355_v30 = vrot.slane %v301_v5, %v26958_v24 }
 0x165   : > { %v10732_v15 = vadd.f32 %v10731_v13, %v10692_v57  ;;  %12712 = vmatpush1.bf16.xpose.msra.mxu0 %v25682_v2  ;;  %12752 = vmatpush1.bf16.xpose.msra.mxu1 %v25684_v3  ;;  %v5522_v57 = vld [vmem:[%s26937_s9 + $0x248] sm:$0xff]  ;;  %v27339_v2 = vrot.slane %v1260_v49, %v26958_v24  ;;  %v25695_v3 = vcombine.high %v5521_v51, %v5905_v56  ;;  %v5909_v49 = vld [vmem:[%s26937_s9 + $0xe60] sm:$0x11] }
 0x166   : > { %v10733_v16 = vpop.f32.mrf.mxu0  ;;  %v10773_v17 = vpop.f32.mrf.mxu1  ;;  %12729 = vmatprep.mubr.bf16.mxu0 %v4813_v6  ;;  %12769 = vmatprep.mubr.bf16.mxu1 %v4815_v7  ;;  %v25697_v4 = vcombine.high %v5522_v57, %v5906_v58  ;;  %v1277_v13 = vcombine.high %v301_v5, %v301_v5 }
 0x167   : > { %v10772_v21 = vadd.f32 %v10771_v14, %v10732_v15  ;;  %12791 = vmatprep.subr.bf16.mxu0 %v25687_v10  ;;  %12831 = vmatprep.subr.bf16.mxu1 %v25689_v11  ;;  %v1275_v11 = vcombine.high %v27336_v1, %v27336_v1  ;;  %v1276_v12 = vcombine.high %v27339_v2, %v27339_v2  ;;  %v5523_v15 = vld [vmem:[%s26937_s9 + $0x250] sm:$0xff] }
 0x168   : > { %v10734_v23 = vpop.f32.mrf.mxu0  ;;  %v10774_v25 = vpop.f32.mrf.mxu1  ;;  %v4826_v48 = vpack.c.bf16 %v27339_v2, %v27339_v2 }
 0x169   : > { %v25694_v23 = vcombine.low %v5521_v51, %v5905_v56  ;;  %v25696_v25 = vcombine.low %v5522_v57, %v5906_v58  ;;  %v4825_v28 = vpack.c.bf16 %v1275_v11, %v1275_v11  ;;  %v4827_v29 = vpack.c.bf16 %v1276_v12, %v1276_v12  ;;  %v5910_v51 = vld [vmem:[%s26937_s9 + $0xe68] sm:$0x11] }
 0x16a   : > { %v10735_v33 = vpop.f32.mrf.mxu0  ;;  %v10775_v34 = vpop.f32.mrf.mxu1  ;;  %v4828_v11 = vpack.c.bf16 %v27355_v30, %v27355_v30 }
 0x16b   : > { %v302_v34 = vld [vmem:[%s26930_s5 + $0x130] sm:$0xff] }
 0x16c   : > { %v10811_v42 = vpop.f32.mrf.mxu0  ;;  %v10851_v43 = vpop.f32.mrf.mxu1  ;;  %12730 = vmatmul.mubr.bf16.vlgmr.msra.gmra.mxu0 %v4812_v26  ;;  %12770 = vmatmul.mubr.bf16.vlgmr.msra.gmra.mxu1 %v4814_v27  ;;  %v27374_v58 = vrot.slane %v302_v34, %v26958_v24 }
 0x16d   : > { %v10812_v44 = vadd.f32 %v10811_v42, %v10772_v21  ;;  %12792 = vmatpush1.bf16.xpose.msra.mxu0 %v25686_v31  ;;  %12832 = vmatpush1.bf16.xpose.msra.mxu1 %v25688_v32  ;;  %v5524_v21 = vld [vmem:[%s26937_s9 + $0x258] sm:$0xff]  ;;  %v27358_v31 = vrot.slane %v1277_v13, %v26958_v24  ;;  %v25699_v32 = vcombine.high %v5523_v15, %v5907_v20  ;;  %v5911_v13 = vld [vmem:[%s26937_s9 + $0xe70] sm:$0x11] }
 0x16e   : > { %v10813_v45 = vpop.f32.mrf.mxu0  ;;  %v10853_v46 = vpop.f32.mrf.mxu1  ;;  %12809 = vmatprep.mubr.bf16.mxu0 %v4817_v35  ;;  %12849 = vmatprep.mubr.bf16.mxu1 %v4819_v36  ;;  %v25701_v33 = vcombine.high %v5524_v21, %v5908_v22  ;;  %v1294_v42 = vcombine.high %v302_v34, %v302_v34 }
 0x16f   : > { %v10852_v50 = vadd.f32 %v10851_v43, %v10812_v44  ;;  %12871 = vmatprep.subr.bf16.mxu0 %v25691_v39  ;;  %12911 = vmatprep.subr.bf16.mxu1 %v25693_v40  ;;  %v1292_v40 = vcombine.high %v27355_v30, %v27355_v30  ;;  %v1293_v41 = vcombine.high %v27358_v31, %v27358_v31  ;;  %v5525_v44 = vld [vmem:[%s26937_s9 + $0x260] sm:$0xff] }
 0x170   : > { %v10814_v52 = vpop.f32.mrf.mxu0  ;;  %v10854_v53 = vpop.f32.mrf.mxu1  ;;  %v4830_v12 = vpack.c.bf16 %v27358_v31, %v27358_v31 }
 0x171   : > { %v25698_v52 = vcombine.low %v5523_v15, %v5907_v20  ;;  %v25700_v53 = vcombine.low %v5524_v21, %v5908_v22  ;;  %v4829_v56 = vpack.c.bf16 %v1292_v40, %v1292_v40  ;;  %v4831_v57 = vpack.c.bf16 %v1293_v41, %v1293_v41  ;;  %v5912_v15 = vld [vmem:[%s26937_s9 + $0xe78] sm:$0x11] }
 0x172   : > { %v10815_v61 = vpop.f32.mrf.mxu0  ;;  %v10855_v62 = vpop.f32.mrf.mxu1  ;;  %v4832_v40 = vpack.c.bf16 %v27374_v58, %v27374_v58 }
 0x173   : > { %v303_v62 = vld [vmem:[%s26930_s5 + $0x138] sm:$0xff] }
 0x174   : > { %v10891_v6 = vpop.f32.mrf.mxu0  ;;  %v10931_v7 = vpop.f32.mrf.mxu1  ;;  %12810 = vmatmul.mubr.bf16.vlgmr.msra.gmra.mxu0 %v4816_v54  ;;  %12850 = vmatmul.mubr.bf16.vlgmr.msra.gmra.mxu1 %v4818_v55  ;;  %v27393_v22 = vrot.slane %v303_v62, %v26958_v24 }
 0x175   : > { %v10892_v8 = vadd.f32 %v10891_v6, %v10852_v50  ;;  %12872 = vmatpush1.bf16.xpose.msra.mxu0 %v25690_v59  ;;  %12912 = vmatpush1.bf16.xpose.msra.mxu1 %v25692_v60  ;;  %v5526_v50 = vld [vmem:[%s26937_s9 + $0x268] sm:$0xff]  ;;  %v27377_v59 = vrot.slane %v1294_v42, %v26958_v24  ;;  %v25703_v60 = vcombine.high %v5525_v44, %v5909_v49  ;;  %v5913_v42 = vld [vmem:[%s26937_s9 + $0xe80] sm:$0x11] }
 0x176   : > { %v10893_v9 = vpop.f32.mrf.mxu0  ;;  %v10933_v10 = vpop.f32.mrf.mxu1  ;;  %12889 = vmatprep.mubr.bf16.mxu0 %v4821_v63  ;;  %12929 = vmatprep.mubr.bf16.mxu1 %v4823_v0  ;;  %v25705_v61 = vcombine.high %v5526_v50, %v5910_v51  ;;  %v1311_v6 = vcombine.high %v303_v62, %v303_v62 }
 0x177   : > { %v10932_v14 = vadd.f32 %v10931_v7, %v10892_v8  ;;  %12951 = vmatprep.subr.bf16.mxu0 %v25695_v3  ;;  %12991 = vmatprep.subr.bf16.mxu1 %v25697_v4  ;;  %v1309_v4 = vcombine.high %v27374_v58, %v27374_v58  ;;  %v1310_v5 = vcombine.high %v27377_v59, %v27377_v59  ;;  %v5527_v8 = vld [vmem:[%s26937_s9 + $0x270] sm:$0xff] }
 0x178   : > { %v10894_v16 = vpop.f32.mrf.mxu0  ;;  %v10934_v17 = vpop.f32.mrf.mxu1  ;;  %v4834_v41 = vpack.c.bf16 %v27377_v59, %v27377_v59 }
 0x179   : > { %v25702_v16 = vcombine.low %v5525_v44, %v5909_v49  ;;  %v25704_v17 = vcombine.low %v5526_v50, %v5910_v51  ;;  %v4833_v20 = vpack.c.bf16 %v1309_v4, %v1309_v4  ;;  %v4835_v21 = vpack.c.bf16 %v1310_v5, %v1310_v5  ;;  %v5914_v44 = vld [vmem:[%s26937_s9 + $0xe88] sm:$0x11] }
 0x17a   : > { %v10895_v26 = vpop.f32.mrf.mxu0  ;;  %v10935_v27 = vpop.f32.mrf.mxu1  ;;  %v4836_v4 = vpack.c.bf16 %v27393_v22, %v27393_v22 }
 0x17b   : > { %v304_v27 = vld [vmem:[%s26930_s5 + $0x140] sm:$0xff] }
 0x17c   : > { %v10971_v35 = vpop.f32.mrf.mxu0  ;;  %v11011_v36 = vpop.f32.mrf.mxu1  ;;  %12890 = vmatmul.mubr.bf16.vlgmr.msra.gmra.mxu0 %v4820_v18  ;;  %12930 = vmatmul.mubr.bf16.vlgmr.msra.gmra.mxu1 %v4822_v19  ;;  %v27412_v51 = vrot.slane %v304_v27, %v26958_v24 }
 0x17d   : > { %v10972_v37 = vadd.f32 %v10971_v35, %v10932_v14  ;;  %12952 = vmatpush1.bf16.xpose.msra.mxu0 %v25694_v23  ;;  %12992 = vmatpush1.bf16.xpose.msra.mxu1 %v25696_v25  ;;  %v5528_v14 = vld [vmem:[%s26937_s9 + $0x278] sm:$0xff]  ;;  %v27396_v23 = vrot.slane %v1311_v6, %v26958_v24  ;;  %v25707_v25 = vcombine.high %v5527_v8, %v5911_v13  ;;  %v5915_v6 = vld [vmem:[%s26937_s9 + $0xe90] sm:$0x11] }
 0x17e   : > { %v10973_v38 = vpop.f32.mrf.mxu0  ;;  %v11013_v39 = vpop.f32.mrf.mxu1  ;;  %12969 = vmatprep.mubr.bf16.mxu0 %v4825_v28  ;;  %13009 = vmatprep.mubr.bf16.mxu1 %v4827_v29  ;;  %v25709_v26 = vcombine.high %v5528_v14, %v5912_v15  ;;  %v1328_v35 = vcombine.high %v304_v27, %v304_v27 }
 0x17f   : > { %v11012_v43 = vadd.f32 %v11011_v36, %v10972_v37  ;;  %13031 = vmatprep.subr.bf16.mxu0 %v25699_v32  ;;  %13071 = vmatprep.subr.bf16.mxu1 %v25701_v33  ;;  %v1326_v33 = vcombine.high %v27393_v22, %v27393_v22  ;;  %v1327_v34 = vcombine.high %v27396_v23, %v27396_v23  ;;  %v5529_v37 = vld [vmem:[%s26937_s9 + $0x280] sm:$0xff] }
 0x180   : > { %v10974_v45 = vpop.f32.mrf.mxu0  ;;  %v11014_v46 = vpop.f32.mrf.mxu1  ;;  %v4838_v5 = vpack.c.bf16 %v27396_v23, %v27396_v23 }
 0x181   : > { %v25706_v45 = vcombine.low %v5527_v8, %v5911_v13  ;;  %v25708_v46 = vcombine.low %v5528_v14, %v5912_v15  ;;  %v4837_v49 = vpack.c.bf16 %v1326_v33, %v1326_v33  ;;  %v4839_v50 = vpack.c.bf16 %v1327_v34, %v1327_v34  ;;  %v5916_v8 = vld [vmem:[%s26937_s9 + $0xe98] sm:$0x11] }
 0x182   : > { %v10975_v54 = vpop.f32.mrf.mxu0  ;;  %v11015_v55 = vpop.f32.mrf.mxu1  ;;  %v4840_v33 = vpack.c.bf16 %v27412_v51, %v27412_v51 }
 0x183   : > { %v305_v55 = vld [vmem:[%s26930_s5 + $0x148] sm:$0xff] }
 0x184   : > { %v11051_v63 = vpop.f32.mrf.mxu0  ;;  %v11091_v0 = vpop.f32.mrf.mxu1  ;;  %12970 = vmatmul.mubr.bf16.vlgmr.msra.gmra.mxu0 %v4824_v47  ;;  %13010 = vmatmul.mubr.bf16.vlgmr.msra.gmra.mxu1 %v4826_v48  ;;  %v27431_v15 = vrot.slane %v305_v55, %v26958_v24 }
 0x185   : > { %v11052_v1 = vadd.f32 %v11051_v63, %v11012_v43  ;;  %13032 = vmatpush1.bf16.xpose.msra.mxu0 %v25698_v52  ;;  %13072 = vmatpush1.bf16.xpose.msra.mxu1 %v25700_v53  ;;  %v5530_v43 = vld [vmem:[%s26937_s9 + $0x288] sm:$0xff]  ;;  %v27415_v52 = vrot.slane %v1328_v35, %v26958_v24  ;;  %v25711_v53 = vcombine.high %v5529_v37, %v5913_v42  ;;  %v5917_v35 = vld [vmem:[%s26937_s9 + $0xea0] sm:$0x11] }
 0x186   : > { %v11053_v2 = vpop.f32.mrf.mxu0  ;;  %v11093_v3 = vpop.f32.mrf.mxu1  ;;  %13049 = vmatprep.mubr.bf16.mxu0 %v4829_v56  ;;  %13089 = vmatprep.mubr.bf16.mxu1 %v4831_v57  ;;  %v25713_v54 = vcombine.high %v5530_v43, %v5914_v44  ;;  %v1345_v63 = vcombine.high %v305_v55, %v305_v55 }
 0x187   : > { %v11092_v7 = vadd.f32 %v11091_v0, %v11052_v1  ;;  %13111 = vmatprep.subr.bf16.mxu0 %v25703_v60  ;;  %13151 = vmatprep.subr.bf16.mxu1 %v25705_v61  ;;  %v1343_v61 = vcombine.high %v27412_v51, %v27412_v51  ;;  %v1344_v62 = vcombine.high %v27415_v52, %v27415_v52  ;;  %v5531_v1 = vld [vmem:[%s26937_s9 + $0x290] sm:$0xff] }
 0x188   : > { %v11054_v9 = vpop.f32.mrf.mxu0  ;;  %v11094_v10 = vpop.f32.mrf.mxu1  ;;  %v4842_v34 = vpack.c.bf16 %v27415_v52, %v27415_v52 }
 0x189   : > { %v25710_v9 = vcombine.low %v5529_v37, %v5913_v42  ;;  %v25712_v10 = vcombine.low %v5530_v43, %v5914_v44  ;;  %v4841_v13 = vpack.c.bf16 %v1343_v61, %v1343_v61  ;;  %v4843_v14 = vpack.c.bf16 %v1344_v62, %v1344_v62  ;;  %v5918_v37 = vld [vmem:[%s26937_s9 + $0xea8] sm:$0x11] }
 0x18a   : > { %v11055_v18 = vpop.f32.mrf.mxu0  ;;  %v11095_v19 = vpop.f32.mrf.mxu1  ;;  %v4844_v61 = vpack.c.bf16 %v27431_v15, %v27431_v15 }
 0x18b   : > { %v306_v19 = vld [vmem:[%s26930_s5 + $0x150] sm:$0xff] }
 0x18c   : > { %v11131_v28 = vpop.f32.mrf.mxu0  ;;  %v11171_v29 = vpop.f32.mrf.mxu1  ;;  %13050 = vmatmul.mubr.bf16.vlgmr.msra.gmra.mxu0 %v4828_v11  ;;  %13090 = vmatmul.mubr.bf16.vlgmr.msra.gmra.mxu1 %v4830_v12  ;;  %v27450_v44 = vrot.slane %v306_v19, %v26958_v24 }
 0x18d   : > { %v11132_v30 = vadd.f32 %v11131_v28, %v11092_v7  ;;  %13112 = vmatpush1.bf16.xpose.msra.mxu0 %v25702_v16  ;;  %13152 = vmatpush1.bf16.xpose.msra.mxu1 %v25704_v17  ;;  %v5532_v7 = vld [vmem:[%s26937_s9 + $0x298] sm:$0xff]  ;;  %v27434_v16 = vrot.slane %v1345_v63, %v26958_v24  ;;  %v25715_v17 = vcombine.high %v5531_v1, %v5915_v6  ;;  %v5919_v63 = vld [vmem:[%s26937_s9 + $0xeb0] sm:$0x11] }
 0x18e   : > { %v11133_v31 = vpop.f32.mrf.mxu0  ;;  %v11173_v32 = vpop.f32.mrf.mxu1  ;;  %13129 = vmatprep.mubr.bf16.mxu0 %v4833_v20  ;;  %13169 = vmatprep.mubr.bf16.mxu1 %v4835_v21  ;;  %v25717_v18 = vcombine.high %v5532_v7, %v5916_v8  ;;  %v1362_v28 = vcombine.high %v306_v19, %v306_v19 }
 0x18f   : > { %v11172_v36 = vadd.f32 %v11171_v29, %v11132_v30  ;;  %13191 = vmatprep.subr.bf16.mxu0 %v25707_v25  ;;  %13231 = vmatprep.subr.bf16.mxu1 %v25709_v26  ;;  %v1360_v26 = vcombine.high %v27431_v15, %v27431_v15  ;;  %v1361_v27 = vcombine.high %v27434_v16, %v27434_v16  ;;  %v5533_v30 = vld [vmem:[%s26937_s9 + $0x2a0] sm:$0xff] }
 0x190   : > { %v11134_v38 = vpop.f32.mrf.mxu0  ;;  %v11174_v39 = vpop.f32.mrf.mxu1  ;;  %v4846_v62 = vpack.c.bf16 %v27434_v16, %v27434_v16 }
 0x191   : > { %v25714_v38 = vcombine.low %v5531_v1, %v5915_v6  ;;  %v25716_v39 = vcombine.low %v5532_v7, %v5916_v8  ;;  %v4845_v42 = vpack.c.bf16 %v1360_v26, %v1360_v26  ;;  %v4847_v43 = vpack.c.bf16 %v1361_v27, %v1361_v27  ;;  %v5920_v1 = vld [vmem:[%s26937_s9 + $0xeb8] sm:$0x11] }
 0x192   : > { %v11135_v47 = vpop.f32.mrf.mxu0  ;;  %v11175_v48 = vpop.f32.mrf.mxu1  ;;  %v4848_v26 = vpack.c.bf16 %v27450_v44, %v27450_v44 }
 0x193   : > { %v307_v48 = vld [vmem:[%s26930_s5 + $0x158] sm:$0xff] }
 0x194   : > { %v11211_v56 = vpop.f32.mrf.mxu0  ;;  %v11251_v57 = vpop.f32.mrf.mxu1  ;;  %13130 = vmatmul.mubr.bf16.vlgmr.msra.gmra.mxu0 %v4832_v40  ;;  %13170 = vmatmul.mubr.bf16.vlgmr.msra.gmra.mxu1 %v4834_v41  ;;  %v27469_v8 = vrot.slane %v307_v48, %v26958_v24 }
 0x195   : > { %v11212_v58 = vadd.f32 %v11211_v56, %v11172_v36  ;;  %13192 = vmatpush1.bf16.xpose.msra.mxu0 %v25706_v45  ;;  %13232 = vmatpush1.bf16.xpose.msra.mxu1 %v25708_v46  ;;  %v5534_v36 = vld [vmem:[%s26937_s9 + $0x2a8] sm:$0xff]  ;;  %v27453_v45 = vrot.slane %v1362_v28, %v26958_v24  ;;  %v25719_v46 = vcombine.high %v5533_v30, %v5917_v35  ;;  %v5921_v28 = vld [vmem:[%s26937_s9 + $0xec0] sm:$0x11] }
 0x196   : > { %v11213_v59 = vpop.f32.mrf.mxu0  ;;  %v11253_v60 = vpop.f32.mrf.mxu1  ;;  %13209 = vmatprep.mubr.bf16.mxu0 %v4837_v49  ;;  %13249 = vmatprep.mubr.bf16.mxu1 %v4839_v50  ;;  %v25721_v47 = vcombine.high %v5534_v36, %v5918_v37  ;;  %v1379_v56 = vcombine.high %v307_v48, %v307_v48 }
 0x197   : > { %v11252_v0 = vadd.f32 %v11251_v57, %v11212_v58  ;;  %13271 = vmatprep.subr.bf16.mxu0 %v25711_v53  ;;  %13311 = vmatprep.subr.bf16.mxu1 %v25713_v54  ;;  %v1377_v54 = vcombine.high %v27450_v44, %v27450_v44  ;;  %v1378_v55 = vcombine.high %v27453_v45, %v27453_v45  ;;  %v5535_v58 = vld [vmem:[%s26937_s9 + $0x2b0] sm:$0xff] }
 0x198   : > { %v11214_v2 = vpop.f32.mrf.mxu0  ;;  %v11254_v3 = vpop.f32.mrf.mxu1  ;;  %v4850_v27 = vpack.c.bf16 %v27453_v45, %v27453_v45 }
 0x199   : > { %v25718_v2 = vcombine.low %v5533_v30, %v5917_v35  ;;  %v25720_v3 = vcombine.low %v5534_v36, %v5918_v37  ;;  %v4849_v6 = vpack.c.bf16 %v1377_v54, %v1377_v54  ;;  %v4851_v7 = vpack.c.bf16 %v1378_v55, %v1378_v55  ;;  %v5922_v30 = vld [vmem:[%s26937_s9 + $0xec8] sm:$0x11] }
 0x19a   : > { %v11215_v11 = vpop.f32.mrf.mxu0  ;;  %v11255_v12 = vpop.f32.mrf.mxu1  ;;  %v4852_v54 = vpack.c.bf16 %v27469_v8, %v27469_v8 }
 0x19b   : > { %v308_v12 = vld [vmem:[%s26930_s5 + $0x160] sm:$0xff] }
 0x19c   : > { %v11291_v20 = vpop.f32.mrf.mxu0  ;;  %v11331_v21 = vpop.f32.mrf.mxu1  ;;  %13210 = vmatmul.mubr.bf16.vlgmr.msra.gmra.mxu0 %v4836_v4  ;;  %13250 = vmatmul.mubr.bf16.vlgmr.msra.gmra.mxu1 %v4838_v5  ;;  %v27488_v37 = vrot.slane %v308_v12, %v26958_v24 }
 0x19d   : > { %v11292_v22 = vadd.f32 %v11291_v20, %v11252_v0  ;;  %13272 = vmatpush1.bf16.xpose.msra.mxu0 %v25710_v9  ;;  %13312 = vmatpush1.bf16.xpose.msra.mxu1 %v25712_v10  ;;  %v5536_v0 = vld [vmem:[%s26937_s9 + $0x2b8] sm:$0xff]  ;;  %v27472_v9 = vrot.slane %v1379_v56, %v26958_v24  ;;  %v25723_v10 = vcombine.high %v5535_v58, %v5919_v63  ;;  %v5923_v56 = vld [vmem:[%s26937_s9 + $0xed0] sm:$0x11] }
 0x19e   : > { %v11293_v23 = vpop.f32.mrf.mxu0  ;;  %v11333_v25 = vpop.f32.mrf.mxu1  ;;  %13289 = vmatprep.mubr.bf16.mxu0 %v4841_v13  ;;  %13329 = vmatprep.mubr.bf16.mxu1 %v4843_v14  ;;  %v25725_v11 = vcombine.high %v5536_v0, %v5920_v1  ;;  %v1396_v20 = vcombine.high %v308_v12, %v308_v12 }
 0x19f   : > { %v11332_v29 = vadd.f32 %v11331_v21, %v11292_v22  ;;  %13351 = vmatprep.subr.bf16.mxu0 %v25715_v17  ;;  %13391 = vmatprep.subr.bf16.mxu1 %v25717_v18  ;;  %v1394_v18 = vcombine.high %v27469_v8, %v27469_v8  ;;  %v1395_v19 = vcombine.high %v27472_v9, %v27472_v9  ;;  %v5537_v22 = vld [vmem:[%s26937_s9 + $0x2c0] sm:$0xff] }
 0x1a0   : > { %v11294_v31 = vpop.f32.mrf.mxu0  ;;  %v11334_v32 = vpop.f32.mrf.mxu1  ;;  %v4854_v55 = vpack.c.bf16 %v27472_v9, %v27472_v9 }
 0x1a1   : > { %v25722_v31 = vcombine.low %v5535_v58, %v5919_v63  ;;  %v25724_v32 = vcombine.low %v5536_v0, %v5920_v1  ;;  %v4853_v35 = vpack.c.bf16 %v1394_v18, %v1394_v18  ;;  %v4855_v36 = vpack.c.bf16 %v1395_v19, %v1395_v19  ;;  %v5924_v58 = vld [vmem:[%s26937_s9 + $0xed8] sm:$0x11] }
 0x1a2   : > { %v11295_v40 = vpop.f32.mrf.mxu0  ;;  %v11335_v41 = vpop.f32.mrf.mxu1  ;;  %v4856_v18 = vpack.c.bf16 %v27488_v37, %v27488_v37 }
 0x1a3   : > { %v309_v41 = vld [vmem:[%s26930_s5 + $0x168] sm:$0xff] }
 0x1a4   : > { %v11371_v49 = vpop.f32.mrf.mxu0  ;;  %v11411_v50 = vpop.f32.mrf.mxu1  ;;  %13290 = vmatmul.mubr.bf16.vlgmr.msra.gmra.mxu0 %v4840_v33  ;;  %13330 = vmatmul.mubr.bf16.vlgmr.msra.gmra.mxu1 %v4842_v34  ;;  %v27507_v1 = vrot.slane %v309_v41, %v26958_v24 }
 0x1a5   : > { %v11372_v51 = vadd.f32 %v11371_v49, %v11332_v29  ;;  %13352 = vmatpush1.bf16.xpose.msra.mxu0 %v25714_v38  ;;  %13392 = vmatpush1.bf16.xpose.msra.mxu1 %v25716_v39  ;;  %v5538_v29 = vld [vmem:[%s26937_s9 + $0x2c8] sm:$0xff]  ;;  %v27491_v38 = vrot.slane %v1396_v20, %v26958_v24  ;;  %v25727_v39 = vcombine.high %v5537_v22, %v5921_v28  ;;  %v5925_v20 = vld [vmem:[%s26937_s9 + $0xee0] sm:$0x11] }
 0x1a6   : > { %v11373_v52 = vpop.f32.mrf.mxu0  ;;  %v11413_v53 = vpop.f32.mrf.mxu1  ;;  %13369 = vmatprep.mubr.bf16.mxu0 %v4845_v42  ;;  %13409 = vmatprep.mubr.bf16.mxu1 %v4847_v43  ;;  %v25729_v40 = vcombine.high %v5538_v29, %v5922_v30  ;;  %v1413_v49 = vcombine.high %v309_v41, %v309_v41 }
 0x1a7   : > { %v11412_v57 = vadd.f32 %v11411_v50, %v11372_v51  ;;  %13431 = vmatprep.subr.bf16.mxu0 %v25719_v46  ;;  %13471 = vmatprep.subr.bf16.mxu1 %v25721_v47  ;;  %v1411_v47 = vcombine.high %v27488_v37, %v27488_v37  ;;  %v1412_v48 = vcombine.high %v27491_v38, %v27491_v38  ;;  %v5539_v51 = vld [vmem:[%s26937_s9 + $0x2d0] sm:$0xff] }
 0x1a8   : > { %v11374_v59 = vpop.f32.mrf.mxu0  ;;  %v11414_v60 = vpop.f32.mrf.mxu1  ;;  %v4858_v19 = vpack.c.bf16 %v27491_v38, %v27491_v38 }
 0x1a9   : > { %v25726_v59 = vcombine.low %v5537_v22, %v5921_v28  ;;  %v25728_v60 = vcombine.low %v5538_v29, %v5922_v30  ;;  %v4857_v63 = vpack.c.bf16 %v1411_v47, %v1411_v47  ;;  %v4859_v0 = vpack.c.bf16 %v1412_v48, %v1412_v48  ;;  %v5926_v22 = vld [vmem:[%s26937_s9 + $0xee8] sm:$0x11] }
 0x1aa   : > { %v11375_v4 = vpop.f32.mrf.mxu0  ;;  %v11415_v5 = vpop.f32.mrf.mxu1  ;;  %v4860_v47 = vpack.c.bf16 %v27507_v1, %v27507_v1 }
 0x1ab   : > { %v310_v5 = vld [vmem:[%s26930_s5 + $0x170] sm:$0xff] }
 0x1ac   : > { %v11451_v13 = vpop.f32.mrf.mxu0  ;;  %v11491_v14 = vpop.f32.mrf.mxu1  ;;  %13370 = vmatmul.mubr.bf16.vlgmr.msra.gmra.mxu0 %v4844_v61  ;;  %13410 = vmatmul.mubr.bf16.vlgmr.msra.gmra.mxu1 %v4846_v62  ;;  %v27526_v30 = vrot.slane %v310_v5, %v26958_v24 }
 0x1ad   : > { %v11452_v15 = vadd.f32 %v11451_v13, %v11412_v57  ;;  %13432 = vmatpush1.bf16.xpose.msra.mxu0 %v25718_v2  ;;  %13472 = vmatpush1.bf16.xpose.msra.mxu1 %v25720_v3  ;;  %v5540_v57 = vld [vmem:[%s26937_s9 + $0x2d8] sm:$0xff]  ;;  %v27510_v2 = vrot.slane %v1413_v49, %v26958_v24  ;;  %v25731_v3 = vcombine.high %v5539_v51, %v5923_v56  ;;  %v5927_v49 = vld [vmem:[%s26937_s9 + $0xef0] sm:$0x11] }
 0x1ae   : > { %v11453_v16 = vpop.f32.mrf.mxu0  ;;  %v11493_v17 = vpop.f32.mrf.mxu1  ;;  %13449 = vmatprep.mubr.bf16.mxu0 %v4849_v6  ;;  %13489 = vmatprep.mubr.bf16.mxu1 %v4851_v7  ;;  %v25733_v4 = vcombine.high %v5540_v57, %v5924_v58  ;;  %v1430_v13 = vcombine.high %v310_v5, %v310_v5 }
 0x1af   : > { %v11492_v21 = vadd.f32 %v11491_v14, %v11452_v15  ;;  %13511 = vmatprep.subr.bf16.mxu0 %v25723_v10  ;;  %13551 = vmatprep.subr.bf16.mxu1 %v25725_v11  ;;  %v1428_v11 = vcombine.high %v27507_v1, %v27507_v1  ;;  %v1429_v12 = vcombine.high %v27510_v2, %v27510_v2  ;;  %v5541_v15 = vld [vmem:[%s26937_s9 + $0x2e0] sm:$0xff] }
 0x1b0   : > { %v11454_v23 = vpop.f32.mrf.mxu0  ;;  %v11494_v25 = vpop.f32.mrf.mxu1  ;;  %v4862_v48 = vpack.c.bf16 %v27510_v2, %v27510_v2 }
 0x1b1   : > { %v25730_v23 = vcombine.low %v5539_v51, %v5923_v56  ;;  %v25732_v25 = vcombine.low %v5540_v57, %v5924_v58  ;;  %v4861_v28 = vpack.c.bf16 %v1428_v11, %v1428_v11  ;;  %v4863_v29 = vpack.c.bf16 %v1429_v12, %v1429_v12  ;;  %v5928_v51 = vld [vmem:[%s26937_s9 + $0xef8] sm:$0x11] }
 0x1b2   : > { %v11455_v33 = vpop.f32.mrf.mxu0  ;;  %v11495_v34 = vpop.f32.mrf.mxu1  ;;  %v4864_v11 = vpack.c.bf16 %v27526_v30, %v27526_v30 }
 0x1b3   : > { %v311_v34 = vld [vmem:[%s26930_s5 + $0x178] sm:$0xff] }
 0x1b4   : > { %v11531_v42 = vpop.f32.mrf.mxu0  ;;  %v11571_v43 = vpop.f32.mrf.mxu1  ;;  %13450 = vmatmul.mubr.bf16.vlgmr.msra.gmra.mxu0 %v4848_v26  ;;  %13490 = vmatmul.mubr.bf16.vlgmr.msra.gmra.mxu1 %v4850_v27  ;;  %v27545_v58 = vrot.slane %v311_v34, %v26958_v24 }
 0x1b5   : > { %v11532_v44 = vadd.f32 %v11531_v42, %v11492_v21  ;;  %13512 = vmatpush1.bf16.xpose.msra.mxu0 %v25722_v31  ;;  %13552 = vmatpush1.bf16.xpose.msra.mxu1 %v25724_v32  ;;  %v5542_v21 = vld [vmem:[%s26937_s9 + $0x2e8] sm:$0xff]  ;;  %v27529_v31 = vrot.slane %v1430_v13, %v26958_v24  ;;  %v25735_v32 = vcombine.high %v5541_v15, %v5925_v20  ;;  %v5929_v13 = vld [vmem:[%s26937_s9 + $0xf00] sm:$0x11] }
 0x1b6   : > { %v11533_v45 = vpop.f32.mrf.mxu0  ;;  %v11573_v46 = vpop.f32.mrf.mxu1  ;;  %13529 = vmatprep.mubr.bf16.mxu0 %v4853_v35  ;;  %13569 = vmatprep.mubr.bf16.mxu1 %v4855_v36  ;;  %v25737_v33 = vcombine.high %v5542_v21, %v5926_v22  ;;  %v1447_v42 = vcombine.high %v311_v34, %v311_v34 }
 0x1b7   : > { %v11572_v50 = vadd.f32 %v11571_v43, %v11532_v44  ;;  %13591 = vmatprep.subr.bf16.mxu0 %v25727_v39  ;;  %13631 = vmatprep.subr.bf16.mxu1 %v25729_v40  ;;  %v1445_v40 = vcombine.high %v27526_v30, %v27526_v30  ;;  %v1446_v41 = vcombine.high %v27529_v31, %v27529_v31  ;;  %v5543_v44 = vld [vmem:[%s26937_s9 + $0x2f0] sm:$0xff] }
 0x1b8   : > { %v11534_v52 = vpop.f32.mrf.mxu0  ;;  %v11574_v53 = vpop.f32.mrf.mxu1  ;;  %v4866_v12 = vpack.c.bf16 %v27529_v31, %v27529_v31 }
 0x1b9   : > { %v25734_v52 = vcombine.low %v5541_v15, %v5925_v20  ;;  %v25736_v53 = vcombine.low %v5542_v21, %v5926_v22  ;;  %v4865_v56 = vpack.c.bf16 %v1445_v40, %v1445_v40  ;;  %v4867_v57 = vpack.c.bf16 %v1446_v41, %v1446_v41  ;;  %v5930_v15 = vld [vmem:[%s26937_s9 + $0xf08] sm:$0x11] }
 0x1ba   : > { %v11535_v61 = vpop.f32.mrf.mxu0  ;;  %v11575_v62 = vpop.f32.mrf.mxu1  ;;  %v4868_v40 = vpack.c.bf16 %v27545_v58, %v27545_v58 }
 0x1bb   : > { %v312_v62 = vld [vmem:[%s26930_s5 + $0x180] sm:$0xff] }
 0x1bc   : > { %v11611_v6 = vpop.f32.mrf.mxu0  ;;  %v11651_v7 = vpop.f32.mrf.mxu1  ;;  %13530 = vmatmul.mubr.bf16.vlgmr.msra.gmra.mxu0 %v4852_v54  ;;  %13570 = vmatmul.mubr.bf16.vlgmr.msra.gmra.mxu1 %v4854_v55  ;;  %v27564_v22 = vrot.slane %v312_v62, %v26958_v24 }
 0x1bd   : > { %v11612_v8 = vadd.f32 %v11611_v6, %v11572_v50  ;;  %13592 = vmatpush1.bf16.xpose.msra.mxu0 %v25726_v59  ;;  %13632 = vmatpush1.bf16.xpose.msra.mxu1 %v25728_v60  ;;  %v5544_v50 = vld [vmem:[%s26937_s9 + $0x2f8] sm:$0xff]  ;;  %v27548_v59 = vrot.slane %v1447_v42, %v26958_v24  ;;  %v25739_v60 = vcombine.high %v5543_v44, %v5927_v49  ;;  %v5931_v42 = vld [vmem:[%s26937_s9 + $0xf10] sm:$0x11] }
 0x1be   : > { %v11613_v9 = vpop.f32.mrf.mxu0  ;;  %v11653_v10 = vpop.f32.mrf.mxu1  ;;  %13609 = vmatprep.mubr.bf16.mxu0 %v4857_v63  ;;  %13649 = vmatprep.mubr.bf16.mxu1 %v4859_v0  ;;  %v25741_v61 = vcombine.high %v5544_v50, %v5928_v51  ;;  %v1464_v6 = vcombine.high %v312_v62, %v312_v62 }
 0x1bf   : > { %v11652_v14 = vadd.f32 %v11651_v7, %v11612_v8  ;;  %13671 = vmatprep.subr.bf16.mxu0 %v25731_v3  ;;  %13711 = vmatprep.subr.bf16.mxu1 %v25733_v4  ;;  %v1462_v4 = vcombine.high %v27545_v58, %v27545_v58  ;;  %v1463_v5 = vcombine.high %v27548_v59, %v27548_v59  ;;  %v5545_v8 = vld [vmem:[%s26937_s9 + $0x300] sm:$0xff] }
 0x1c0   : > { %v11614_v16 = vpop.f32.mrf.mxu0  ;;  %v11654_v17 = vpop.f32.mrf.mxu1  ;;  %v4870_v41 = vpack.c.bf16 %v27548_v59, %v27548_v59 }
 0x1c1   : > { %v25738_v16 = vcombine.low %v5543_v44, %v5927_v49  ;;  %v25740_v17 = vcombine.low %v5544_v50, %v5928_v51  ;;  %v4869_v20 = vpack.c.bf16 %v1462_v4, %v1462_v4  ;;  %v4871_v21 = vpack.c.bf16 %v1463_v5, %v1463_v5  ;;  %v5932_v44 = vld [vmem:[%s26937_s9 + $0xf18] sm:$0x11] }
 0x1c2   : > { %v11615_v26 = vpop.f32.mrf.mxu0  ;;  %v11655_v27 = vpop.f32.mrf.mxu1  ;;  %v4872_v4 = vpack.c.bf16 %v27564_v22, %v27564_v22 }
 0x1c3   : > { %v313_v27 = vld [vmem:[%s26930_s5 + $0x188] sm:$0xff] }
 0x1c4   : > { %v11691_v35 = vpop.f32.mrf.mxu0  ;;  %v11731_v36 = vpop.f32.mrf.mxu1  ;;  %13610 = vmatmul.mubr.bf16.vlgmr.msra.gmra.mxu0 %v4856_v18  ;;  %13650 = vmatmul.mubr.bf16.vlgmr.msra.gmra.mxu1 %v4858_v19  ;;  %v27583_v51 = vrot.slane %v313_v27, %v26958_v24 }
 0x1c5   : > { %v11692_v37 = vadd.f32 %v11691_v35, %v11652_v14  ;;  %13672 = vmatpush1.bf16.xpose.msra.mxu0 %v25730_v23  ;;  %13712 = vmatpush1.bf16.xpose.msra.mxu1 %v25732_v25  ;;  %v5546_v14 = vld [vmem:[%s26937_s9 + $0x308] sm:$0xff]  ;;  %v27567_v23 = vrot.slane %v1464_v6, %v26958_v24  ;;  %v25743_v25 = vcombine.high %v5545_v8, %v5929_v13  ;;  %v5933_v6 = vld [vmem:[%s26937_s9 + $0xf20] sm:$0x11] }
 0x1c6   : > { %v11693_v38 = vpop.f32.mrf.mxu0  ;;  %v11733_v39 = vpop.f32.mrf.mxu1  ;;  %13689 = vmatprep.mubr.bf16.mxu0 %v4861_v28  ;;  %13729 = vmatprep.mubr.bf16.mxu1 %v4863_v29  ;;  %v25745_v26 = vcombine.high %v5546_v14, %v5930_v15  ;;  %v1481_v35 = vcombine.high %v313_v27, %v313_v27 }
 0x1c7   : > { %v11732_v43 = vadd.f32 %v11731_v36, %v11692_v37  ;;  %13751 = vmatprep.subr.bf16.mxu0 %v25735_v32  ;;  %13791 = vmatprep.subr.bf16.mxu1 %v25737_v33  ;;  %v1479_v33 = vcombine.high %v27564_v22, %v27564_v22  ;;  %v1480_v34 = vcombine.high %v27567_v23, %v27567_v23  ;;  %v5547_v37 = vld [vmem:[%s26937_s9 + $0x310] sm:$0xff] }
 0x1c8   : > { %v11694_v45 = vpop.f32.mrf.mxu0  ;;  %v11734_v46 = vpop.f32.mrf.mxu1  ;;  %v4874_v5 = vpack.c.bf16 %v27567_v23, %v27567_v23 }
 0x1c9   : > { %v25742_v45 = vcombine.low %v5545_v8, %v5929_v13  ;;  %v25744_v46 = vcombine.low %v5546_v14, %v5930_v15  ;;  %v4873_v49 = vpack.c.bf16 %v1479_v33, %v1479_v33  ;;  %v4875_v50 = vpack.c.bf16 %v1480_v34, %v1480_v34  ;;  %v5934_v8 = vld [vmem:[%s26937_s9 + $0xf28] sm:$0x11] }
 0x1ca   : > { %v11695_v54 = vpop.f32.mrf.mxu0  ;;  %v11735_v55 = vpop.f32.mrf.mxu1  ;;  %v4876_v33 = vpack.c.bf16 %v27583_v51, %v27583_v51 }
 0x1cb   : > { %v314_v55 = vld [vmem:[%s26930_s5 + $0x190] sm:$0xff] }
 0x1cc   : > { %v11771_v63 = vpop.f32.mrf.mxu0  ;;  %v11811_v0 = vpop.f32.mrf.mxu1  ;;  %13690 = vmatmul.mubr.bf16.vlgmr.msra.gmra.mxu0 %v4860_v47  ;;  %13730 = vmatmul.mubr.bf16.vlgmr.msra.gmra.mxu1 %v4862_v48  ;;  %v27602_v15 = vrot.slane %v314_v55, %v26958_v24 }
 0x1cd   : > { %v11772_v1 = vadd.f32 %v11771_v63, %v11732_v43  ;;  %13752 = vmatpush1.bf16.xpose.msra.mxu0 %v25734_v52  ;;  %13792 = vmatpush1.bf16.xpose.msra.mxu1 %v25736_v53  ;;  %v5548_v43 = vld [vmem:[%s26937_s9 + $0x318] sm:$0xff]  ;;  %v27586_v52 = vrot.slane %v1481_v35, %v26958_v24  ;;  %v25747_v53 = vcombine.high %v5547_v37, %v5931_v42  ;;  %v5935_v35 = vld [vmem:[%s26937_s9 + $0xf30] sm:$0x11] }
 0x1ce   : > { %v11773_v2 = vpop.f32.mrf.mxu0  ;;  %v11813_v3 = vpop.f32.mrf.mxu1  ;;  %13769 = vmatprep.mubr.bf16.mxu0 %v4865_v56  ;;  %13809 = vmatprep.mubr.bf16.mxu1 %v4867_v57  ;;  %v25749_v54 = vcombine.high %v5548_v43, %v5932_v44  ;;  %v1498_v63 = vcombine.high %v314_v55, %v314_v55 }
 0x1cf   : > { %v11812_v7 = vadd.f32 %v11811_v0, %v11772_v1  ;;  %13831 = vmatprep.subr.bf16.mxu0 %v25739_v60  ;;  %13871 = vmatprep.subr.bf16.mxu1 %v25741_v61  ;;  %v1496_v61 = vcombine.high %v27583_v51, %v27583_v51  ;;  %v1497_v62 = vcombine.high %v27586_v52, %v27586_v52  ;;  %v5549_v1 = vld [vmem:[%s26937_s9 + $0x320] sm:$0xff] }
 0x1d0   : > { %v11774_v9 = vpop.f32.mrf.mxu0  ;;  %v11814_v10 = vpop.f32.mrf.mxu1  ;;  %v4878_v34 = vpack.c.bf16 %v27586_v52, %v27586_v52 }
 0x1d1   : > { %v25746_v9 = vcombine.low %v5547_v37, %v5931_v42  ;;  %v25748_v10 = vcombine.low %v5548_v43, %v5932_v44  ;;  %v4877_v13 = vpack.c.bf16 %v1496_v61, %v1496_v61  ;;  %v4879_v14 = vpack.c.bf16 %v1497_v62, %v1497_v62  ;;  %v5936_v37 = vld [vmem:[%s26937_s9 + $0xf38] sm:$0x11] }
 0x1d2   : > { %v11775_v18 = vpop.f32.mrf.mxu0  ;;  %v11815_v19 = vpop.f32.mrf.mxu1  ;;  %v4880_v61 = vpack.c.bf16 %v27602_v15, %v27602_v15 }
 0x1d3   : > { %v315_v19 = vld [vmem:[%s26930_s5 + $0x198] sm:$0xff] }
 0x1d4   : > { %v11851_v28 = vpop.f32.mrf.mxu0  ;;  %v11891_v29 = vpop.f32.mrf.mxu1  ;;  %13770 = vmatmul.mubr.bf16.vlgmr.msra.gmra.mxu0 %v4864_v11  ;;  %13810 = vmatmul.mubr.bf16.vlgmr.msra.gmra.mxu1 %v4866_v12  ;;  %v27621_v44 = vrot.slane %v315_v19, %v26958_v24 }
 0x1d5   : > { %v11852_v30 = vadd.f32 %v11851_v28, %v11812_v7  ;;  %13832 = vmatpush1.bf16.xpose.msra.mxu0 %v25738_v16  ;;  %13872 = vmatpush1.bf16.xpose.msra.mxu1 %v25740_v17  ;;  %v5550_v7 = vld [vmem:[%s26937_s9 + $0x328] sm:$0xff]  ;;  %v27605_v16 = vrot.slane %v1498_v63, %v26958_v24  ;;  %v25751_v17 = vcombine.high %v5549_v1, %v5933_v6  ;;  %v5937_v63 = vld [vmem:[%s26937_s9 + $0xf40] sm:$0x11] }
 0x1d6   : > { %v11853_v31 = vpop.f32.mrf.mxu0  ;;  %v11893_v32 = vpop.f32.mrf.mxu1  ;;  %13849 = vmatprep.mubr.bf16.mxu0 %v4869_v20  ;;  %13889 = vmatprep.mubr.bf16.mxu1 %v4871_v21  ;;  %v25753_v18 = vcombine.high %v5550_v7, %v5934_v8  ;;  %v1515_v28 = vcombine.high %v315_v19, %v315_v19 }
 0x1d7   : > { %v11892_v36 = vadd.f32 %v11891_v29, %v11852_v30  ;;  %13911 = vmatprep.subr.bf16.mxu0 %v25743_v25  ;;  %13951 = vmatprep.subr.bf16.mxu1 %v25745_v26  ;;  %v1513_v26 = vcombine.high %v27602_v15, %v27602_v15  ;;  %v1514_v27 = vcombine.high %v27605_v16, %v27605_v16  ;;  %v5551_v30 = vld [vmem:[%s26937_s9 + $0x330] sm:$0xff] }
 0x1d8   : > { %v11854_v38 = vpop.f32.mrf.mxu0  ;;  %v11894_v39 = vpop.f32.mrf.mxu1  ;;  %v4882_v62 = vpack.c.bf16 %v27605_v16, %v27605_v16 }
 0x1d9   : > { %v25750_v38 = vcombine.low %v5549_v1, %v5933_v6  ;;  %v25752_v39 = vcombine.low %v5550_v7, %v5934_v8  ;;  %v4881_v42 = vpack.c.bf16 %v1513_v26, %v1513_v26  ;;  %v4883_v43 = vpack.c.bf16 %v1514_v27, %v1514_v27  ;;  %v5938_v1 = vld [vmem:[%s26937_s9 + $0xf48] sm:$0x11] }
 0x1da   : > { %v11855_v47 = vpop.f32.mrf.mxu0  ;;  %v11895_v48 = vpop.f32.mrf.mxu1  ;;  %v4884_v26 = vpack.c.bf16 %v27621_v44, %v27621_v44 }
 0x1db   : > { %v316_v48 = vld [vmem:[%s26930_s5 + $0x1a0] sm:$0xff] }
 0x1dc   : > { %v11931_v56 = vpop.f32.mrf.mxu0  ;;  %v11971_v57 = vpop.f32.mrf.mxu1  ;;  %13850 = vmatmul.mubr.bf16.vlgmr.msra.gmra.mxu0 %v4868_v40  ;;  %13890 = vmatmul.mubr.bf16.vlgmr.msra.gmra.mxu1 %v4870_v41  ;;  %v27640_v8 = vrot.slane %v316_v48, %v26958_v24 }
 0x1dd   : > { %v11932_v58 = vadd.f32 %v11931_v56, %v11892_v36  ;;  %13912 = vmatpush1.bf16.xpose.msra.mxu0 %v25742_v45  ;;  %13952 = vmatpush1.bf16.xpose.msra.mxu1 %v25744_v46  ;;  %v5552_v36 = vld [vmem:[%s26937_s9 + $0x338] sm:$0xff]  ;;  %v27624_v45 = vrot.slane %v1515_v28, %v26958_v24  ;;  %v25755_v46 = vcombine.high %v5551_v30, %v5935_v35  ;;  %v5939_v28 = vld [vmem:[%s26937_s9 + $0xf50] sm:$0x11] }
 0x1de   : > { %v11933_v59 = vpop.f32.mrf.mxu0  ;;  %v11973_v60 = vpop.f32.mrf.mxu1  ;;  %13929 = vmatprep.mubr.bf16.mxu0 %v4873_v49  ;;  %13969 = vmatprep.mubr.bf16.mxu1 %v4875_v50  ;;  %v25757_v47 = vcombine.high %v5552_v36, %v5936_v37  ;;  %v1532_v56 = vcombine.high %v316_v48, %v316_v48 }
 0x1df   : > { %v11972_v0 = vadd.f32 %v11971_v57, %v11932_v58  ;;  %13991 = vmatprep.subr.bf16.mxu0 %v25747_v53  ;;  %14031 = vmatprep.subr.bf16.mxu1 %v25749_v54  ;;  %v1530_v54 = vcombine.high %v27621_v44, %v27621_v44  ;;  %v1531_v55 = vcombine.high %v27624_v45, %v27624_v45  ;;  %v5553_v58 = vld [vmem:[%s26937_s9 + $0x340] sm:$0xff] }
 0x1e0   : > { %v11934_v2 = vpop.f32.mrf.mxu0  ;;  %v11974_v3 = vpop.f32.mrf.mxu1  ;;  %v4886_v27 = vpack.c.bf16 %v27624_v45, %v27624_v45 }
 0x1e1   : > { %v25754_v2 = vcombine.low %v5551_v30, %v5935_v35  ;;  %v25756_v3 = vcombine.low %v5552_v36, %v5936_v37  ;;  %v4885_v6 = vpack.c.bf16 %v1530_v54, %v1530_v54  ;;  %v4887_v7 = vpack.c.bf16 %v1531_v55, %v1531_v55  ;;  %v5940_v30 = vld [vmem:[%s26937_s9 + $0xf58] sm:$0x11] }
 0x1e2   : > { %v11935_v11 = vpop.f32.mrf.mxu0  ;;  %v11975_v12 = vpop.f32.mrf.mxu1  ;;  %v4888_v54 = vpack.c.bf16 %v27640_v8, %v27640_v8 }
 0x1e3   : > { %v317_v12 = vld [vmem:[%s26930_s5 + $0x1a8] sm:$0xff] }
 0x1e4   : > { %v12011_v20 = vpop.f32.mrf.mxu0  ;;  %v12051_v21 = vpop.f32.mrf.mxu1  ;;  %13930 = vmatmul.mubr.bf16.vlgmr.msra.gmra.mxu0 %v4872_v4  ;;  %13970 = vmatmul.mubr.bf16.vlgmr.msra.gmra.mxu1 %v4874_v5  ;;  %v27659_v37 = vrot.slane %v317_v12, %v26958_v24 }
 0x1e5   : > { %v12012_v22 = vadd.f32 %v12011_v20, %v11972_v0  ;;  %13992 = vmatpush1.bf16.xpose.msra.mxu0 %v25746_v9  ;;  %14032 = vmatpush1.bf16.xpose.msra.mxu1 %v25748_v10  ;;  %v5554_v0 = vld [vmem:[%s26937_s9 + $0x348] sm:$0xff]  ;;  %v27643_v9 = vrot.slane %v1532_v56, %v26958_v24  ;;  %v25759_v10 = vcombine.high %v5553_v58, %v5937_v63  ;;  %v5941_v56 = vld [vmem:[%s26937_s9 + $0xf60] sm:$0x11] }
 0x1e6   : > { %v12013_v23 = vpop.f32.mrf.mxu0  ;;  %v12053_v25 = vpop.f32.mrf.mxu1  ;;  %14009 = vmatprep.mubr.bf16.mxu0 %v4877_v13  ;;  %14049 = vmatprep.mubr.bf16.mxu1 %v4879_v14  ;;  %v25761_v11 = vcombine.high %v5554_v0, %v5938_v1  ;;  %v1549_v20 = vcombine.high %v317_v12, %v317_v12 }
 0x1e7   : > { %v12052_v29 = vadd.f32 %v12051_v21, %v12012_v22  ;;  %14071 = vmatprep.subr.bf16.mxu0 %v25751_v17  ;;  %14111 = vmatprep.subr.bf16.mxu1 %v25753_v18  ;;  %v1547_v18 = vcombine.high %v27640_v8, %v27640_v8  ;;  %v1548_v19 = vcombine.high %v27643_v9, %v27643_v9  ;;  %v5555_v22 = vld [vmem:[%s26937_s9 + $0x350] sm:$0xff] }
 0x1e8   : > { %v12014_v31 = vpop.f32.mrf.mxu0  ;;  %v12054_v32 = vpop.f32.mrf.mxu1  ;;  %v4890_v55 = vpack.c.bf16 %v27643_v9, %v27643_v9 }
 0x1e9   : > { %v25758_v31 = vcombine.low %v5553_v58, %v5937_v63  ;;  %v25760_v32 = vcombine.low %v5554_v0, %v5938_v1  ;;  %v4889_v35 = vpack.c.bf16 %v1547_v18, %v1547_v18  ;;  %v4891_v36 = vpack.c.bf16 %v1548_v19, %v1548_v19  ;;  %v5942_v58 = vld [vmem:[%s26937_s9 + $0xf68] sm:$0x11] }
 0x1ea   : > { %v12015_v40 = vpop.f32.mrf.mxu0  ;;  %v12055_v41 = vpop.f32.mrf.mxu1  ;;  %v4892_v18 = vpack.c.bf16 %v27659_v37, %v27659_v37 }
 0x1eb   : > { %v318_v41 = vld [vmem:[%s26930_s5 + $0x1b0] sm:$0xff] }
 0x1ec   : > { %v12091_v49 = vpop.f32.mrf.mxu0  ;;  %v12131_v50 = vpop.f32.mrf.mxu1  ;;  %14010 = vmatmul.mubr.bf16.vlgmr.msra.gmra.mxu0 %v4876_v33  ;;  %14050 = vmatmul.mubr.bf16.vlgmr.msra.gmra.mxu1 %v4878_v34  ;;  %v27678_v1 = vrot.slane %v318_v41, %v26958_v24 }
 0x1ed   : > { %v12092_v51 = vadd.f32 %v12091_v49, %v12052_v29  ;;  %14072 = vmatpush1.bf16.xpose.msra.mxu0 %v25750_v38  ;;  %14112 = vmatpush1.bf16.xpose.msra.mxu1 %v25752_v39  ;;  %v5556_v29 = vld [vmem:[%s26937_s9 + $0x358] sm:$0xff]  ;;  %v27662_v38 = vrot.slane %v1549_v20, %v26958_v24  ;;  %v25763_v39 = vcombine.high %v5555_v22, %v5939_v28  ;;  %v5943_v20 = vld [vmem:[%s26937_s9 + $0xf70] sm:$0x11] }
 0x1ee   : > { %v12093_v52 = vpop.f32.mrf.mxu0  ;;  %v12133_v53 = vpop.f32.mrf.mxu1  ;;  %14089 = vmatprep.mubr.bf16.mxu0 %v4881_v42  ;;  %14129 = vmatprep.mubr.bf16.mxu1 %v4883_v43  ;;  %v25765_v40 = vcombine.high %v5556_v29, %v5940_v30  ;;  %v1566_v49 = vcombine.high %v318_v41, %v318_v41 }
 0x1ef   : > { %v12132_v57 = vadd.f32 %v12131_v50, %v12092_v51  ;;  %14151 = vmatprep.subr.bf16.mxu0 %v25755_v46  ;;  %14191 = vmatprep.subr.bf16.mxu1 %v25757_v47  ;;  %v1564_v47 = vcombine.high %v27659_v37, %v27659_v37  ;;  %v1565_v48 = vcombine.high %v27662_v38, %v27662_v38  ;;  %v5557_v51 = vld [vmem:[%s26937_s9 + $0x360] sm:$0xff] }
 0x1f0   : > { %v12094_v59 = vpop.f32.mrf.mxu0  ;;  %v12134_v60 = vpop.f32.mrf.mxu1  ;;  %v4894_v19 = vpack.c.bf16 %v27662_v38, %v27662_v38 }
 0x1f1   : > { %v25762_v59 = vcombine.low %v5555_v22, %v5939_v28  ;;  %v25764_v60 = vcombine.low %v5556_v29, %v5940_v30  ;;  %v4893_v63 = vpack.c.bf16 %v1564_v47, %v1564_v47  ;;  %v4895_v0 = vpack.c.bf16 %v1565_v48, %v1565_v48  ;;  %v5944_v22 = vld [vmem:[%s26937_s9 + $0xf78] sm:$0x11] }
 0x1f2   : > { %v12095_v4 = vpop.f32.mrf.mxu0  ;;  %v12135_v5 = vpop.f32.mrf.mxu1  ;;  %v4896_v47 = vpack.c.bf16 %v27678_v1, %v27678_v1 }
 0x1f3   : > { %v319_v5 = vld [vmem:[%s26930_s5 + $0x1b8] sm:$0xff] }
 0x1f4   : > { %v12171_v13 = vpop.f32.mrf.mxu0  ;;  %v12211_v14 = vpop.f32.mrf.mxu1  ;;  %14090 = vmatmul.mubr.bf16.vlgmr.msra.gmra.mxu0 %v4880_v61  ;;  %14130 = vmatmul.mubr.bf16.vlgmr.msra.gmra.mxu1 %v4882_v62  ;;  %v27697_v30 = vrot.slane %v319_v5, %v26958_v24 }
 0x1f5   : > { %v12172_v15 = vadd.f32 %v12171_v13, %v12132_v57  ;;  %14152 = vmatpush1.bf16.xpose.msra.mxu0 %v25754_v2  ;;  %14192 = vmatpush1.bf16.xpose.msra.mxu1 %v25756_v3  ;;  %v5558_v57 = vld [vmem:[%s26937_s9 + $0x368] sm:$0xff]  ;;  %v27681_v2 = vrot.slane %v1566_v49, %v26958_v24  ;;  %v25767_v3 = vcombine.high %v5557_v51, %v5941_v56  ;;  %v5945_v49 = vld [vmem:[%s26937_s9 + $0xf80] sm:$0x11] }
 0x1f6   : > { %v12173_v16 = vpop.f32.mrf.mxu0  ;;  %v12213_v17 = vpop.f32.mrf.mxu1  ;;  %14169 = vmatprep.mubr.bf16.mxu0 %v4885_v6  ;;  %14209 = vmatprep.mubr.bf16.mxu1 %v4887_v7  ;;  %v25769_v4 = vcombine.high %v5558_v57, %v5942_v58  ;;  %v1583_v13 = vcombine.high %v319_v5, %v319_v5 }
 0x1f7   : > { %v12212_v21 = vadd.f32 %v12211_v14, %v12172_v15  ;;  %14231 = vmatprep.subr.bf16.mxu0 %v25759_v10  ;;  %14271 = vmatprep.subr.bf16.mxu1 %v25761_v11  ;;  %v1581_v11 = vcombine.high %v27678_v1, %v27678_v1  ;;  %v1582_v12 = vcombine.high %v27681_v2, %v27681_v2  ;;  %v5559_v15 = vld [vmem:[%s26937_s9 + $0x370] sm:$0xff] }
 0x1f8   : > { %v12174_v23 = vpop.f32.mrf.mxu0  ;;  %v12214_v25 = vpop.f32.mrf.mxu1  ;;  %v4898_v48 = vpack.c.bf16 %v27681_v2, %v27681_v2 }
 0x1f9   : > { %v25766_v23 = vcombine.low %v5557_v51, %v5941_v56  ;;  %v25768_v25 = vcombine.low %v5558_v57, %v5942_v58  ;;  %v4897_v28 = vpack.c.bf16 %v1581_v11, %v1581_v11  ;;  %v4899_v29 = vpack.c.bf16 %v1582_v12, %v1582_v12  ;;  %v5946_v51 = vld [vmem:[%s26937_s9 + $0xf88] sm:$0x11] }
 0x1fa   : > { %v12175_v33 = vpop.f32.mrf.mxu0  ;;  %v12215_v34 = vpop.f32.mrf.mxu1  ;;  %v4900_v11 = vpack.c.bf16 %v27697_v30, %v27697_v30 }
 0x1fb   : > { %v320_v34 = vld [vmem:[%s26930_s5 + $0x1c0] sm:$0xff] }
 0x1fc   : > { %v12251_v42 = vpop.f32.mrf.mxu0  ;;  %v12291_v43 = vpop.f32.mrf.mxu1  ;;  %14170 = vmatmul.mubr.bf16.vlgmr.msra.gmra.mxu0 %v4884_v26  ;;  %14210 = vmatmul.mubr.bf16.vlgmr.msra.gmra.mxu1 %v4886_v27  ;;  %v27716_v58 = vrot.slane %v320_v34, %v26958_v24 }
 0x1fd   : > { %v12252_v44 = vadd.f32 %v12251_v42, %v12212_v21  ;;  %14232 = vmatpush1.bf16.xpose.msra.mxu0 %v25758_v31  ;;  %14272 = vmatpush1.bf16.xpose.msra.mxu1 %v25760_v32  ;;  %v5560_v21 = vld [vmem:[%s26937_s9 + $0x378] sm:$0xff]  ;;  %v27700_v31 = vrot.slane %v1583_v13, %v26958_v24  ;;  %v25771_v32 = vcombine.high %v5559_v15, %v5943_v20  ;;  %v5947_v13 = vld [vmem:[%s26937_s9 + $0xf90] sm:$0x11] }
 0x1fe   : > { %v12253_v45 = vpop.f32.mrf.mxu0  ;;  %v12293_v46 = vpop.f32.mrf.mxu1  ;;  %14249 = vmatprep.mubr.bf16.mxu0 %v4889_v35  ;;  %14289 = vmatprep.mubr.bf16.mxu1 %v4891_v36  ;;  %v25773_v33 = vcombine.high %v5560_v21, %v5944_v22  ;;  %v1600_v42 = vcombine.high %v320_v34, %v320_v34 }
 0x1ff   : > { %v12292_v50 = vadd.f32 %v12291_v43, %v12252_v44  ;;  %14311 = vmatprep.subr.bf16.mxu0 %v25763_v39  ;;  %14351 = vmatprep.subr.bf16.mxu1 %v25765_v40  ;;  %v1598_v40 = vcombine.high %v27697_v30, %v27697_v30  ;;  %v1599_v41 = vcombine.high %v27700_v31, %v27700_v31  ;;  %v5561_v44 = vld [vmem:[%s26937_s9 + $0x380] sm:$0xff] }
 0x200   : > { %v12254_v52 = vpop.f32.mrf.mxu0  ;;  %v12294_v53 = vpop.f32.mrf.mxu1  ;;  %v4902_v12 = vpack.c.bf16 %v27700_v31, %v27700_v31 }
 0x201   : > { %v25770_v52 = vcombine.low %v5559_v15, %v5943_v20  ;;  %v25772_v53 = vcombine.low %v5560_v21, %v5944_v22  ;;  %v4901_v56 = vpack.c.bf16 %v1598_v40, %v1598_v40  ;;  %v4903_v57 = vpack.c.bf16 %v1599_v41, %v1599_v41  ;;  %v5948_v15 = vld [vmem:[%s26937_s9 + $0xf98] sm:$0x11] }
 0x202   : > { %v12255_v61 = vpop.f32.mrf.mxu0  ;;  %v12295_v62 = vpop.f32.mrf.mxu1  ;;  %v4904_v40 = vpack.c.bf16 %v27716_v58, %v27716_v58 }
 0x203   : > { %v321_v62 = vld [vmem:[%s26930_s5 + $0x1c8] sm:$0xff] }
 0x204   : > { %v12331_v6 = vpop.f32.mrf.mxu0  ;;  %v12371_v7 = vpop.f32.mrf.mxu1  ;;  %14250 = vmatmul.mubr.bf16.vlgmr.msra.gmra.mxu0 %v4888_v54  ;;  %14290 = vmatmul.mubr.bf16.vlgmr.msra.gmra.mxu1 %v4890_v55  ;;  %v27735_v22 = vrot.slane %v321_v62, %v26958_v24 }
 0x205   : > { %v12332_v8 = vadd.f32 %v12331_v6, %v12292_v50  ;;  %14312 = vmatpush1.bf16.xpose.msra.mxu0 %v25762_v59  ;;  %14352 = vmatpush1.bf16.xpose.msra.mxu1 %v25764_v60  ;;  %v5562_v50 = vld [vmem:[%s26937_s9 + $0x388] sm:$0xff]  ;;  %v27719_v59 = vrot.slane %v1600_v42, %v26958_v24  ;;  %v25775_v60 = vcombine.high %v5561_v44, %v5945_v49  ;;  %v5949_v42 = vld [vmem:[%s26937_s9 + $0xfa0] sm:$0x11] }
 0x206   : > { %v12333_v9 = vpop.f32.mrf.mxu0  ;;  %v12373_v10 = vpop.f32.mrf.mxu1  ;;  %14329 = vmatprep.mubr.bf16.mxu0 %v4893_v63  ;;  %14369 = vmatprep.mubr.bf16.mxu1 %v4895_v0  ;;  %v25777_v61 = vcombine.high %v5562_v50, %v5946_v51  ;;  %v1617_v6 = vcombine.high %v321_v62, %v321_v62 }
 0x207   : > { %v12372_v14 = vadd.f32 %v12371_v7, %v12332_v8  ;;  %14391 = vmatprep.subr.bf16.mxu0 %v25767_v3  ;;  %14431 = vmatprep.subr.bf16.mxu1 %v25769_v4  ;;  %v1615_v4 = vcombine.high %v27716_v58, %v27716_v58  ;;  %v1616_v5 = vcombine.high %v27719_v59, %v27719_v59  ;;  %v5563_v8 = vld [vmem:[%s26937_s9 + $0x390] sm:$0xff] }
 0x208   : > { %v12334_v16 = vpop.f32.mrf.mxu0  ;;  %v12374_v17 = vpop.f32.mrf.mxu1  ;;  %v4906_v41 = vpack.c.bf16 %v27719_v59, %v27719_v59 }
 0x209   : > { %v25774_v16 = vcombine.low %v5561_v44, %v5945_v49  ;;  %v25776_v17 = vcombine.low %v5562_v50, %v5946_v51  ;;  %v4905_v20 = vpack.c.bf16 %v1615_v4, %v1615_v4  ;;  %v4907_v21 = vpack.c.bf16 %v1616_v5, %v1616_v5  ;;  %v5950_v44 = vld [vmem:[%s26937_s9 + $0xfa8] sm:$0x11] }
 0x20a   : > { %v12335_v26 = vpop.f32.mrf.mxu0  ;;  %v12375_v27 = vpop.f32.mrf.mxu1  ;;  %v4908_v4 = vpack.c.bf16 %v27735_v22, %v27735_v22 }
 0x20b   : > { %v322_v27 = vld [vmem:[%s26930_s5 + $0x1d0] sm:$0xff] }
 0x20c   : > { %v12411_v35 = vpop.f32.mrf.mxu0  ;;  %v12451_v36 = vpop.f32.mrf.mxu1  ;;  %14330 = vmatmul.mubr.bf16.vlgmr.msra.gmra.mxu0 %v4892_v18  ;;  %14370 = vmatmul.mubr.bf16.vlgmr.msra.gmra.mxu1 %v4894_v19  ;;  %v27754_v51 = vrot.slane %v322_v27, %v26958_v24 }
 0x20d   : > { %v12412_v37 = vadd.f32 %v12411_v35, %v12372_v14  ;;  %14392 = vmatpush1.bf16.xpose.msra.mxu0 %v25766_v23  ;;  %14432 = vmatpush1.bf16.xpose.msra.mxu1 %v25768_v25  ;;  %v5564_v14 = vld [vmem:[%s26937_s9 + $0x398] sm:$0xff]  ;;  %v27738_v23 = vrot.slane %v1617_v6, %v26958_v24  ;;  %v25779_v25 = vcombine.high %v5563_v8, %v5947_v13  ;;  %v5951_v6 = vld [vmem:[%s26937_s9 + $0xfb0] sm:$0x11] }
 0x20e   : > { %v12413_v38 = vpop.f32.mrf.mxu0  ;;  %v12453_v39 = vpop.f32.mrf.mxu1  ;;  %14409 = vmatprep.mubr.bf16.mxu0 %v4897_v28  ;;  %14449 = vmatprep.mubr.bf16.mxu1 %v4899_v29  ;;  %v25781_v26 = vcombine.high %v5564_v14, %v5948_v15  ;;  %v1634_v35 = vcombine.high %v322_v27, %v322_v27 }
 0x20f   : > { %v12452_v43 = vadd.f32 %v12451_v36, %v12412_v37  ;;  %14471 = vmatprep.subr.bf16.mxu0 %v25771_v32  ;;  %14511 = vmatprep.subr.bf16.mxu1 %v25773_v33  ;;  %v1632_v33 = vcombine.high %v27735_v22, %v27735_v22  ;;  %v1633_v34 = vcombine.high %v27738_v23, %v27738_v23  ;;  %v5565_v37 = vld [vmem:[%s26937_s9 + $0x3a0] sm:$0xff] }
 0x210   : > { %v12414_v45 = vpop.f32.mrf.mxu0  ;;  %v12454_v46 = vpop.f32.mrf.mxu1  ;;  %v4910_v5 = vpack.c.bf16 %v27738_v23, %v27738_v23 }
 0x211   : > { %v25778_v45 = vcombine.low %v5563_v8, %v5947_v13  ;;  %v25780_v46 = vcombine.low %v5564_v14, %v5948_v15  ;;  %v4909_v49 = vpack.c.bf16 %v1632_v33, %v1632_v33  ;;  %v4911_v50 = vpack.c.bf16 %v1633_v34, %v1633_v34  ;;  %v5952_v8 = vld [vmem:[%s26937_s9 + $0xfb8] sm:$0x11] }
 0x212   : > { %v12415_v54 = vpop.f32.mrf.mxu0  ;;  %v12455_v55 = vpop.f32.mrf.mxu1  ;;  %v4912_v33 = vpack.c.bf16 %v27754_v51, %v27754_v51 }
 0x213   : > { %v323_v55 = vld [vmem:[%s26930_s5 + $0x1d8] sm:$0xff] }
 0x214   : > { %v12491_v63 = vpop.f32.mrf.mxu0  ;;  %v12531_v0 = vpop.f32.mrf.mxu1  ;;  %14410 = vmatmul.mubr.bf16.vlgmr.msra.gmra.mxu0 %v4896_v47  ;;  %14450 = vmatmul.mubr.bf16.vlgmr.msra.gmra.mxu1 %v4898_v48  ;;  %v27773_v15 = vrot.slane %v323_v55, %v26958_v24 }
 0x215   : > { %v12492_v1 = vadd.f32 %v12491_v63, %v12452_v43  ;;  %14472 = vmatpush1.bf16.xpose.msra.mxu0 %v25770_v52  ;;  %14512 = vmatpush1.bf16.xpose.msra.mxu1 %v25772_v53  ;;  %v5566_v43 = vld [vmem:[%s26937_s9 + $0x3a8] sm:$0xff]  ;;  %v27757_v52 = vrot.slane %v1634_v35, %v26958_v24  ;;  %v25783_v53 = vcombine.high %v5565_v37, %v5949_v42  ;;  %v5953_v35 = vld [vmem:[%s26937_s9 + $0xfc0] sm:$0x11] }
 0x216   : > { %v12493_v2 = vpop.f32.mrf.mxu0  ;;  %v12533_v3 = vpop.f32.mrf.mxu1  ;;  %14489 = vmatprep.mubr.bf16.mxu0 %v4901_v56  ;;  %14529 = vmatprep.mubr.bf16.mxu1 %v4903_v57  ;;  %v25785_v54 = vcombine.high %v5566_v43, %v5950_v44  ;;  %v1651_v63 = vcombine.high %v323_v55, %v323_v55 }
 0x217   : > { %v12532_v7 = vadd.f32 %v12531_v0, %v12492_v1  ;;  %14551 = vmatprep.subr.bf16.mxu0 %v25775_v60  ;;  %14591 = vmatprep.subr.bf16.mxu1 %v25777_v61  ;;  %v1649_v61 = vcombine.high %v27754_v51, %v27754_v51  ;;  %v1650_v62 = vcombine.high %v27757_v52, %v27757_v52  ;;  %v5567_v1 = vld [vmem:[%s26937_s9 + $0x3b0] sm:$0xff] }
 0x218   : > { %v12494_v9 = vpop.f32.mrf.mxu0  ;;  %v12534_v10 = vpop.f32.mrf.mxu1  ;;  %v4914_v34 = vpack.c.bf16 %v27757_v52, %v27757_v52 }
 0x219   : > { %v25782_v9 = vcombine.low %v5565_v37, %v5949_v42  ;;  %v25784_v10 = vcombine.low %v5566_v43, %v5950_v44  ;;  %v4913_v13 = vpack.c.bf16 %v1649_v61, %v1649_v61  ;;  %v4915_v14 = vpack.c.bf16 %v1650_v62, %v1650_v62  ;;  %v5954_v37 = vld [vmem:[%s26937_s9 + $0xfc8] sm:$0x11] }
 0x21a   : > { %v12495_v18 = vpop.f32.mrf.mxu0  ;;  %v12535_v19 = vpop.f32.mrf.mxu1  ;;  %v4916_v61 = vpack.c.bf16 %v27773_v15, %v27773_v15 }
 0x21b   : > { %v324_v19 = vld [vmem:[%s26930_s5 + $0x1e0] sm:$0xff] }
 0x21c   : > { %v12571_v28 = vpop.f32.mrf.mxu0  ;;  %v12611_v29 = vpop.f32.mrf.mxu1  ;;  %14490 = vmatmul.mubr.bf16.vlgmr.msra.gmra.mxu0 %v4900_v11  ;;  %14530 = vmatmul.mubr.bf16.vlgmr.msra.gmra.mxu1 %v4902_v12  ;;  %v27792_v44 = vrot.slane %v324_v19, %v26958_v24 }
 0x21d   : > { %v12572_v30 = vadd.f32 %v12571_v28, %v12532_v7  ;;  %14552 = vmatpush1.bf16.xpose.msra.mxu0 %v25774_v16  ;;  %14592 = vmatpush1.bf16.xpose.msra.mxu1 %v25776_v17  ;;  %v5568_v7 = vld [vmem:[%s26937_s9 + $0x3b8] sm:$0xff]  ;;  %v27776_v16 = vrot.slane %v1651_v63, %v26958_v24  ;;  %v25787_v17 = vcombine.high %v5567_v1, %v5951_v6  ;;  %v5955_v63 = vld [vmem:[%s26937_s9 + $0xfd0] sm:$0x11] }
 0x21e   : > { %v12573_v31 = vpop.f32.mrf.mxu0  ;;  %v12613_v32 = vpop.f32.mrf.mxu1  ;;  %14569 = vmatprep.mubr.bf16.mxu0 %v4905_v20  ;;  %14609 = vmatprep.mubr.bf16.mxu1 %v4907_v21  ;;  %v25789_v18 = vcombine.high %v5568_v7, %v5952_v8  ;;  %v1668_v28 = vcombine.high %v324_v19, %v324_v19 }
 0x21f   : > { %v12612_v36 = vadd.f32 %v12611_v29, %v12572_v30  ;;  %14631 = vmatprep.subr.bf16.mxu0 %v25779_v25  ;;  %14671 = vmatprep.subr.bf16.mxu1 %v25781_v26  ;;  %v1666_v26 = vcombine.high %v27773_v15, %v27773_v15  ;;  %v1667_v27 = vcombine.high %v27776_v16, %v27776_v16  ;;  %v5569_v30 = vld [vmem:[%s26937_s9 + $0x3c0] sm:$0xff] }
 0x220   : > { %v12574_v38 = vpop.f32.mrf.mxu0  ;;  %v12614_v39 = vpop.f32.mrf.mxu1  ;;  %v4918_v62 = vpack.c.bf16 %v27776_v16, %v27776_v16 }
 0x221   : > { %v25786_v38 = vcombine.low %v5567_v1, %v5951_v6  ;;  %v25788_v39 = vcombine.low %v5568_v7, %v5952_v8  ;;  %v4917_v42 = vpack.c.bf16 %v1666_v26, %v1666_v26  ;;  %v4919_v43 = vpack.c.bf16 %v1667_v27, %v1667_v27  ;;  %v5956_v1 = vld [vmem:[%s26937_s9 + $0xfd8] sm:$0x11] }
 0x222   : > { %v12575_v47 = vpop.f32.mrf.mxu0  ;;  %v12615_v48 = vpop.f32.mrf.mxu1  ;;  %v4920_v26 = vpack.c.bf16 %v27792_v44, %v27792_v44 }
 0x223   : > { %v325_v48 = vld [vmem:[%s26930_s5 + $0x1e8] sm:$0xff] }
 0x224   : > { %v12651_v56 = vpop.f32.mrf.mxu0  ;;  %v12691_v57 = vpop.f32.mrf.mxu1  ;;  %14570 = vmatmul.mubr.bf16.vlgmr.msra.gmra.mxu0 %v4904_v40  ;;  %14610 = vmatmul.mubr.bf16.vlgmr.msra.gmra.mxu1 %v4906_v41  ;;  %v27811_v8 = vrot.slane %v325_v48, %v26958_v24 }
 0x225   : > { %v12652_v58 = vadd.f32 %v12651_v56, %v12612_v36  ;;  %14632 = vmatpush1.bf16.xpose.msra.mxu0 %v25778_v45  ;;  %14672 = vmatpush1.bf16.xpose.msra.mxu1 %v25780_v46  ;;  %v5570_v36 = vld [vmem:[%s26937_s9 + $0x3c8] sm:$0xff]  ;;  %v27795_v45 = vrot.slane %v1668_v28, %v26958_v24  ;;  %v25791_v46 = vcombine.high %v5569_v30, %v5953_v35  ;;  %v5957_v28 = vld [vmem:[%s26937_s9 + $0xfe0] sm:$0x11] }
 0x226   : > { %v12653_v59 = vpop.f32.mrf.mxu0  ;;  %v12693_v60 = vpop.f32.mrf.mxu1  ;;  %14649 = vmatprep.mubr.bf16.mxu0 %v4909_v49  ;;  %14689 = vmatprep.mubr.bf16.mxu1 %v4911_v50  ;;  %v25793_v47 = vcombine.high %v5570_v36, %v5954_v37  ;;  %v1685_v56 = vcombine.high %v325_v48, %v325_v48 }
 0x227   : > { %v12692_v0 = vadd.f32 %v12691_v57, %v12652_v58  ;;  %14711 = vmatprep.subr.bf16.mxu0 %v25783_v53  ;;  %14751 = vmatprep.subr.bf16.mxu1 %v25785_v54  ;;  %v1683_v54 = vcombine.high %v27792_v44, %v27792_v44  ;;  %v1684_v55 = vcombine.high %v27795_v45, %v27795_v45  ;;  %v5571_v58 = vld [vmem:[%s26937_s9 + $0x3d0] sm:$0xff] }
 0x228   : > { %v12654_v2 = vpop.f32.mrf.mxu0  ;;  %v12694_v3 = vpop.f32.mrf.mxu1  ;;  %v4922_v27 = vpack.c.bf16 %v27795_v45, %v27795_v45 }
 0x229   : > { %v25790_v2 = vcombine.low %v5569_v30, %v5953_v35  ;;  %v25792_v3 = vcombine.low %v5570_v36, %v5954_v37  ;;  %v4921_v6 = vpack.c.bf16 %v1683_v54, %v1683_v54  ;;  %v4923_v7 = vpack.c.bf16 %v1684_v55, %v1684_v55  ;;  %v5958_v30 = vld [vmem:[%s26937_s9 + $0xfe8] sm:$0x11] }
 0x22a   : > { %v12655_v11 = vpop.f32.mrf.mxu0  ;;  %v12695_v12 = vpop.f32.mrf.mxu1  ;;  %v4924_v54 = vpack.c.bf16 %v27811_v8, %v27811_v8 }
 0x22b   : > { %v326_v12 = vld [vmem:[%s26930_s5 + $0x1f0] sm:$0xff] }
 0x22c   : > { %v12731_v20 = vpop.f32.mrf.mxu0  ;;  %v12771_v21 = vpop.f32.mrf.mxu1  ;;  %14650 = vmatmul.mubr.bf16.vlgmr.msra.gmra.mxu0 %v4908_v4  ;;  %14690 = vmatmul.mubr.bf16.vlgmr.msra.gmra.mxu1 %v4910_v5  ;;  %v27830_v37 = vrot.slane %v326_v12, %v26958_v24 }
 0x22d   : > { %v12732_v22 = vadd.f32 %v12731_v20, %v12692_v0  ;;  %14712 = vmatpush1.bf16.xpose.msra.mxu0 %v25782_v9  ;;  %14752 = vmatpush1.bf16.xpose.msra.mxu1 %v25784_v10  ;;  %v5572_v0 = vld [vmem:[%s26937_s9 + $0x3d8] sm:$0xff]  ;;  %v27814_v9 = vrot.slane %v1685_v56, %v26958_v24  ;;  %v25795_v10 = vcombine.high %v5571_v58, %v5955_v63  ;;  %v5959_v56 = vld [vmem:[%s26937_s9 + $0xff0] sm:$0x11] }
 0x22e   : > { %v12733_v23 = vpop.f32.mrf.mxu0  ;;  %v12773_v25 = vpop.f32.mrf.mxu1  ;;  %14729 = vmatprep.mubr.bf16.mxu0 %v4913_v13  ;;  %14769 = vmatprep.mubr.bf16.mxu1 %v4915_v14  ;;  %v25797_v11 = vcombine.high %v5572_v0, %v5956_v1  ;;  %v1702_v20 = vcombine.high %v326_v12, %v326_v12 }
 0x22f   : > { %v12772_v29 = vadd.f32 %v12771_v21, %v12732_v22  ;;  %14791 = vmatprep.subr.bf16.mxu0 %v25787_v17  ;;  %14831 = vmatprep.subr.bf16.mxu1 %v25789_v18  ;;  %v1700_v18 = vcombine.high %v27811_v8, %v27811_v8  ;;  %v1701_v19 = vcombine.high %v27814_v9, %v27814_v9  ;;  %v5573_v22 = vld [vmem:[%s26937_s9 + $0x3e0] sm:$0xff] }
 0x230   : > { %v12734_v31 = vpop.f32.mrf.mxu0  ;;  %v12774_v32 = vpop.f32.mrf.mxu1  ;;  %v4926_v55 = vpack.c.bf16 %v27814_v9, %v27814_v9 }
 0x231   : > { %v25794_v31 = vcombine.low %v5571_v58, %v5955_v63  ;;  %v25796_v32 = vcombine.low %v5572_v0, %v5956_v1  ;;  %v4925_v35 = vpack.c.bf16 %v1700_v18, %v1700_v18  ;;  %v4927_v36 = vpack.c.bf16 %v1701_v19, %v1701_v19  ;;  %v5960_v58 = vld [vmem:[%s26937_s9 + $0xff8] sm:$0x11] }
 0x232   : > { %v12735_v40 = vpop.f32.mrf.mxu0  ;;  %v12775_v41 = vpop.f32.mrf.mxu1  ;;  %v4928_v18 = vpack.c.bf16 %v27830_v37, %v27830_v37 }
 0x233   : > { %v327_v41 = vld [vmem:[%s26930_s5 + $0x1f8] sm:$0xff] }
 0x234   : > { %v12811_v49 = vpop.f32.mrf.mxu0  ;;  %v12851_v50 = vpop.f32.mrf.mxu1  ;;  %14730 = vmatmul.mubr.bf16.vlgmr.msra.gmra.mxu0 %v4912_v33  ;;  %14770 = vmatmul.mubr.bf16.vlgmr.msra.gmra.mxu1 %v4914_v34  ;;  %v27849_v1 = vrot.slane %v327_v41, %v26958_v24 }
 0x235   : > { %v12812_v51 = vadd.f32 %v12811_v49, %v12772_v29  ;;  %14792 = vmatpush1.bf16.xpose.msra.mxu0 %v25786_v38  ;;  %14832 = vmatpush1.bf16.xpose.msra.mxu1 %v25788_v39  ;;  %v5574_v29 = vld [vmem:[%s26937_s9 + $0x3e8] sm:$0xff]  ;;  %v27833_v38 = vrot.slane %v1702_v20, %v26958_v24  ;;  %v25799_v39 = vcombine.high %v5573_v22, %v5957_v28  ;;  %v5961_v20 = vld [vmem:[%s26937_s9 + $0x1000] sm:$0x11] }
 0x236   : > { %v12813_v52 = vpop.f32.mrf.mxu0  ;;  %v12853_v53 = vpop.f32.mrf.mxu1  ;;  %14809 = vmatprep.mubr.bf16.mxu0 %v4917_v42  ;;  %14849 = vmatprep.mubr.bf16.mxu1 %v4919_v43  ;;  %v25801_v40 = vcombine.high %v5574_v29, %v5958_v30  ;;  %v1719_v49 = vcombine.high %v327_v41, %v327_v41 }
 0x237   : > { %v12852_v57 = vadd.f32 %v12851_v50, %v12812_v51  ;;  %14871 = vmatprep.subr.bf16.mxu0 %v25791_v46  ;;  %14911 = vmatprep.subr.bf16.mxu1 %v25793_v47  ;;  %v1717_v47 = vcombine.high %v27830_v37, %v27830_v37  ;;  %v1718_v48 = vcombine.high %v27833_v38, %v27833_v38  ;;  %v5575_v51 = vld [vmem:[%s26937_s9 + $0x3f0] sm:$0xff] }
 0x238   : > { %v12814_v59 = vpop.f32.mrf.mxu0  ;;  %v12854_v60 = vpop.f32.mrf.mxu1  ;;  %v4930_v19 = vpack.c.bf16 %v27833_v38, %v27833_v38 }
 0x239   : > { %v25798_v59 = vcombine.low %v5573_v22, %v5957_v28  ;;  %v25800_v60 = vcombine.low %v5574_v29, %v5958_v30  ;;  %v4929_v63 = vpack.c.bf16 %v1717_v47, %v1717_v47  ;;  %v4931_v0 = vpack.c.bf16 %v1718_v48, %v1718_v48  ;;  %v5962_v22 = vld [vmem:[%s26937_s9 + $0x1008] sm:$0x11] }
 0x23a   : > { %v12815_v4 = vpop.f32.mrf.mxu0  ;;  %v12855_v5 = vpop.f32.mrf.mxu1  ;;  %v4932_v47 = vpack.c.bf16 %v27849_v1, %v27849_v1 }
 0x23b   : > { %v328_v5 = vld [vmem:[%s26930_s5 + $0x200] sm:$0xff] }
 0x23c   : > { %v12891_v13 = vpop.f32.mrf.mxu0  ;;  %v12931_v14 = vpop.f32.mrf.mxu1  ;;  %14810 = vmatmul.mubr.bf16.vlgmr.msra.gmra.mxu0 %v4916_v61  ;;  %14850 = vmatmul.mubr.bf16.vlgmr.msra.gmra.mxu1 %v4918_v62  ;;  %v27868_v30 = vrot.slane %v328_v5, %v26958_v24 }
 0x23d   : > { %v12892_v15 = vadd.f32 %v12891_v13, %v12852_v57  ;;  %14872 = vmatpush1.bf16.xpose.msra.mxu0 %v25790_v2  ;;  %14912 = vmatpush1.bf16.xpose.msra.mxu1 %v25792_v3  ;;  %v5576_v57 = vld [vmem:[%s26937_s9 + $0x3f8] sm:$0xff]  ;;  %v27852_v2 = vrot.slane %v1719_v49, %v26958_v24  ;;  %v25803_v3 = vcombine.high %v5575_v51, %v5959_v56  ;;  %v5963_v49 = vld [vmem:[%s26937_s9 + $0x1010] sm:$0x11] }
 0x23e   : > { %v12893_v16 = vpop.f32.mrf.mxu0  ;;  %v12933_v17 = vpop.f32.mrf.mxu1  ;;  %14889 = vmatprep.mubr.bf16.mxu0 %v4921_v6  ;;  %14929 = vmatprep.mubr.bf16.mxu1 %v4923_v7  ;;  %v25805_v4 = vcombine.high %v5576_v57, %v5960_v58  ;;  %v1736_v13 = vcombine.high %v328_v5, %v328_v5 }
 0x23f   : > { %v12932_v21 = vadd.f32 %v12931_v14, %v12892_v15  ;;  %14951 = vmatprep.subr.bf16.mxu0 %v25795_v10  ;;  %14991 = vmatprep.subr.bf16.mxu1 %v25797_v11  ;;  %v1734_v11 = vcombine.high %v27849_v1, %v27849_v1  ;;  %v1735_v12 = vcombine.high %v27852_v2, %v27852_v2  ;;  %v5577_v15 = vld [vmem:[%s26937_s9 + $0x400] sm:$0xff] }
 0x240   : > { %v12894_v23 = vpop.f32.mrf.mxu0  ;;  %v12934_v25 = vpop.f32.mrf.mxu1  ;;  %v4934_v48 = vpack.c.bf16 %v27852_v2, %v27852_v2 }
 0x241   : > { %v25802_v23 = vcombine.low %v5575_v51, %v5959_v56  ;;  %v25804_v25 = vcombine.low %v5576_v57, %v5960_v58  ;;  %v4933_v28 = vpack.c.bf16 %v1734_v11, %v1734_v11  ;;  %v4935_v29 = vpack.c.bf16 %v1735_v12, %v1735_v12  ;;  %v5964_v51 = vld [vmem:[%s26937_s9 + $0x1018] sm:$0x11] }
 0x242   : > { %v12895_v33 = vpop.f32.mrf.mxu0  ;;  %v12935_v34 = vpop.f32.mrf.mxu1  ;;  %v4936_v11 = vpack.c.bf16 %v27868_v30, %v27868_v30 }
 0x243   : > { %v329_v34 = vld [vmem:[%s26930_s5 + $0x208] sm:$0xff] }
 0x244   : > { %v12971_v42 = vpop.f32.mrf.mxu0  ;;  %v13011_v43 = vpop.f32.mrf.mxu1  ;;  %14890 = vmatmul.mubr.bf16.vlgmr.msra.gmra.mxu0 %v4920_v26  ;;  %14930 = vmatmul.mubr.bf16.vlgmr.msra.gmra.mxu1 %v4922_v27  ;;  %v27887_v58 = vrot.slane %v329_v34, %v26958_v24 }
 0x245   : > { %v12972_v44 = vadd.f32 %v12971_v42, %v12932_v21  ;;  %14952 = vmatpush1.bf16.xpose.msra.mxu0 %v25794_v31  ;;  %14992 = vmatpush1.bf16.xpose.msra.mxu1 %v25796_v32  ;;  %v5578_v21 = vld [vmem:[%s26937_s9 + $0x408] sm:$0xff]  ;;  %v27871_v31 = vrot.slane %v1736_v13, %v26958_v24  ;;  %v25807_v32 = vcombine.high %v5577_v15, %v5961_v20  ;;  %v5965_v13 = vld [vmem:[%s26937_s9 + $0x1020] sm:$0x11] }
 0x246   : > { %v12973_v45 = vpop.f32.mrf.mxu0  ;;  %v13013_v46 = vpop.f32.mrf.mxu1  ;;  %14969 = vmatprep.mubr.bf16.mxu0 %v4925_v35  ;;  %15009 = vmatprep.mubr.bf16.mxu1 %v4927_v36  ;;  %v25809_v33 = vcombine.high %v5578_v21, %v5962_v22  ;;  %v1753_v42 = vcombine.high %v329_v34, %v329_v34 }
 0x247   : > { %v13012_v50 = vadd.f32 %v13011_v43, %v12972_v44  ;;  %15031 = vmatprep.subr.bf16.mxu0 %v25799_v39  ;;  %15071 = vmatprep.subr.bf16.mxu1 %v25801_v40  ;;  %v1751_v40 = vcombine.high %v27868_v30, %v27868_v30  ;;  %v1752_v41 = vcombine.high %v27871_v31, %v27871_v31  ;;  %v5579_v44 = vld [vmem:[%s26937_s9 + $0x410] sm:$0xff] }
 0x248   : > { %v12974_v52 = vpop.f32.mrf.mxu0  ;;  %v13014_v53 = vpop.f32.mrf.mxu1  ;;  %v4938_v12 = vpack.c.bf16 %v27871_v31, %v27871_v31 }
 0x249   : > { %v25806_v52 = vcombine.low %v5577_v15, %v5961_v20  ;;  %v25808_v53 = vcombine.low %v5578_v21, %v5962_v22  ;;  %v4937_v56 = vpack.c.bf16 %v1751_v40, %v1751_v40  ;;  %v4939_v57 = vpack.c.bf16 %v1752_v41, %v1752_v41  ;;  %v5966_v15 = vld [vmem:[%s26937_s9 + $0x1028] sm:$0x11] }
 0x24a   : > { %v12975_v61 = vpop.f32.mrf.mxu0  ;;  %v13015_v62 = vpop.f32.mrf.mxu1  ;;  %v4940_v40 = vpack.c.bf16 %v27887_v58, %v27887_v58 }
 0x24b   : > { %v330_v62 = vld [vmem:[%s26930_s5 + $0x210] sm:$0xff] }
 0x24c   : > { %v13051_v6 = vpop.f32.mrf.mxu0  ;;  %v13091_v7 = vpop.f32.mrf.mxu1  ;;  %14970 = vmatmul.mubr.bf16.vlgmr.msra.gmra.mxu0 %v4924_v54  ;;  %15010 = vmatmul.mubr.bf16.vlgmr.msra.gmra.mxu1 %v4926_v55  ;;  %v27906_v22 = vrot.slane %v330_v62, %v26958_v24 }
 0x24d   : > { %v13052_v8 = vadd.f32 %v13051_v6, %v13012_v50  ;;  %15032 = vmatpush1.bf16.xpose.msra.mxu0 %v25798_v59  ;;  %15072 = vmatpush1.bf16.xpose.msra.mxu1 %v25800_v60  ;;  %v5580_v50 = vld [vmem:[%s26937_s9 + $0x418] sm:$0xff]  ;;  %v27890_v59 = vrot.slane %v1753_v42, %v26958_v24  ;;  %v25811_v60 = vcombine.high %v5579_v44, %v5963_v49  ;;  %v5967_v42 = vld [vmem:[%s26937_s9 + $0x1030] sm:$0x11] }
 0x24e   : > { %v13053_v9 = vpop.f32.mrf.mxu0  ;;  %v13093_v10 = vpop.f32.mrf.mxu1  ;;  %15049 = vmatprep.mubr.bf16.mxu0 %v4929_v63  ;;  %15089 = vmatprep.mubr.bf16.mxu1 %v4931_v0  ;;  %v25813_v61 = vcombine.high %v5580_v50, %v5964_v51  ;;  %v1770_v6 = vcombine.high %v330_v62, %v330_v62 }
 0x24f   : > { %v13092_v14 = vadd.f32 %v13091_v7, %v13052_v8  ;;  %15111 = vmatprep.subr.bf16.mxu0 %v25803_v3  ;;  %15151 = vmatprep.subr.bf16.mxu1 %v25805_v4  ;;  %v1768_v4 = vcombine.high %v27887_v58, %v27887_v58  ;;  %v1769_v5 = vcombine.high %v27890_v59, %v27890_v59  ;;  %v5581_v8 = vld [vmem:[%s26937_s9 + $0x420] sm:$0xff] }
 0x250   : > { %v13054_v16 = vpop.f32.mrf.mxu0  ;;  %v13094_v17 = vpop.f32.mrf.mxu1  ;;  %v4942_v41 = vpack.c.bf16 %v27890_v59, %v27890_v59 }
 0x251   : > { %v25810_v16 = vcombine.low %v5579_v44, %v5963_v49  ;;  %v25812_v17 = vcombine.low %v5580_v50, %v5964_v51  ;;  %v4941_v20 = vpack.c.bf16 %v1768_v4, %v1768_v4  ;;  %v4943_v21 = vpack.c.bf16 %v1769_v5, %v1769_v5  ;;  %v5968_v44 = vld [vmem:[%s26937_s9 + $0x1038] sm:$0x11] }
 0x252   : > { %v13055_v26 = vpop.f32.mrf.mxu0  ;;  %v13095_v27 = vpop.f32.mrf.mxu1  ;;  %v4944_v4 = vpack.c.bf16 %v27906_v22, %v27906_v22 }
 0x253   : > { %v331_v27 = vld [vmem:[%s26930_s5 + $0x218] sm:$0xff] }
 0x254   : > { %v13131_v35 = vpop.f32.mrf.mxu0  ;;  %v13171_v36 = vpop.f32.mrf.mxu1  ;;  %15050 = vmatmul.mubr.bf16.vlgmr.msra.gmra.mxu0 %v4928_v18  ;;  %15090 = vmatmul.mubr.bf16.vlgmr.msra.gmra.mxu1 %v4930_v19  ;;  %v27925_v51 = vrot.slane %v331_v27, %v26958_v24 }
 0x255   : > { %v13132_v37 = vadd.f32 %v13131_v35, %v13092_v14  ;;  %15112 = vmatpush1.bf16.xpose.msra.mxu0 %v25802_v23  ;;  %15152 = vmatpush1.bf16.xpose.msra.mxu1 %v25804_v25  ;;  %v5582_v14 = vld [vmem:[%s26937_s9 + $0x428] sm:$0xff]  ;;  %v27909_v23 = vrot.slane %v1770_v6, %v26958_v24  ;;  %v25815_v25 = vcombine.high %v5581_v8, %v5965_v13  ;;  %v5969_v6 = vld [vmem:[%s26937_s9 + $0x1040] sm:$0x11] }
 0x256   : > { %v13133_v38 = vpop.f32.mrf.mxu0  ;;  %v13173_v39 = vpop.f32.mrf.mxu1  ;;  %15129 = vmatprep.mubr.bf16.mxu0 %v4933_v28  ;;  %15169 = vmatprep.mubr.bf16.mxu1 %v4935_v29  ;;  %v25817_v26 = vcombine.high %v5582_v14, %v5966_v15  ;;  %v1787_v35 = vcombine.high %v331_v27, %v331_v27 }
 0x257   : > { %v13172_v43 = vadd.f32 %v13171_v36, %v13132_v37  ;;  %15191 = vmatprep.subr.bf16.mxu0 %v25807_v32  ;;  %15231 = vmatprep.subr.bf16.mxu1 %v25809_v33  ;;  %v1785_v33 = vcombine.high %v27906_v22, %v27906_v22  ;;  %v1786_v34 = vcombine.high %v27909_v23, %v27909_v23  ;;  %v5583_v37 = vld [vmem:[%s26937_s9 + $0x430] sm:$0xff] }
 0x258   : > { %v13134_v45 = vpop.f32.mrf.mxu0  ;;  %v13174_v46 = vpop.f32.mrf.mxu1  ;;  %v4946_v5 = vpack.c.bf16 %v27909_v23, %v27909_v23 }
 0x259   : > { %v25814_v45 = vcombine.low %v5581_v8, %v5965_v13  ;;  %v25816_v46 = vcombine.low %v5582_v14, %v5966_v15  ;;  %v4945_v49 = vpack.c.bf16 %v1785_v33, %v1785_v33  ;;  %v4947_v50 = vpack.c.bf16 %v1786_v34, %v1786_v34  ;;  %v5970_v8 = vld [vmem:[%s26937_s9 + $0x1048] sm:$0x11] }
 0x25a   : > { %v13135_v54 = vpop.f32.mrf.mxu0  ;;  %v13175_v55 = vpop.f32.mrf.mxu1  ;;  %v4948_v33 = vpack.c.bf16 %v27925_v51, %v27925_v51 }
 0x25b   : > { %v332_v55 = vld [vmem:[%s26930_s5 + $0x220] sm:$0xff] }
 0x25c   : > { %v13211_v63 = vpop.f32.mrf.mxu0  ;;  %v13251_v0 = vpop.f32.mrf.mxu1  ;;  %15130 = vmatmul.mubr.bf16.vlgmr.msra.gmra.mxu0 %v4932_v47  ;;  %15170 = vmatmul.mubr.bf16.vlgmr.msra.gmra.mxu1 %v4934_v48  ;;  %v27944_v15 = vrot.slane %v332_v55, %v26958_v24 }
 0x25d   : > { %v13212_v1 = vadd.f32 %v13211_v63, %v13172_v43  ;;  %15192 = vmatpush1.bf16.xpose.msra.mxu0 %v25806_v52  ;;  %15232 = vmatpush1.bf16.xpose.msra.mxu1 %v25808_v53  ;;  %v5584_v43 = vld [vmem:[%s26937_s9 + $0x438] sm:$0xff]  ;;  %v27928_v52 = vrot.slane %v1787_v35, %v26958_v24  ;;  %v25819_v53 = vcombine.high %v5583_v37, %v5967_v42  ;;  %v5971_v35 = vld [vmem:[%s26937_s9 + $0x1050] sm:$0x11] }
 0x25e   : > { %v13213_v2 = vpop.f32.mrf.mxu0  ;;  %v13253_v3 = vpop.f32.mrf.mxu1  ;;  %15209 = vmatprep.mubr.bf16.mxu0 %v4937_v56  ;;  %15249 = vmatprep.mubr.bf16.mxu1 %v4939_v57  ;;  %v25821_v54 = vcombine.high %v5584_v43, %v5968_v44  ;;  %v1804_v63 = vcombine.high %v332_v55, %v332_v55 }
 0x25f   : > { %v13252_v7 = vadd.f32 %v13251_v0, %v13212_v1  ;;  %15271 = vmatprep.subr.bf16.mxu0 %v25811_v60  ;;  %15311 = vmatprep.subr.bf16.mxu1 %v25813_v61  ;;  %v1802_v61 = vcombine.high %v27925_v51, %v27925_v51  ;;  %v1803_v62 = vcombine.high %v27928_v52, %v27928_v52  ;;  %v5585_v1 = vld [vmem:[%s26937_s9 + $0x440] sm:$0xff] }
 0x260   : > { %v13214_v9 = vpop.f32.mrf.mxu0  ;;  %v13254_v10 = vpop.f32.mrf.mxu1  ;;  %v4950_v34 = vpack.c.bf16 %v27928_v52, %v27928_v52 }
 0x261   : > { %v25818_v9 = vcombine.low %v5583_v37, %v5967_v42  ;;  %v25820_v10 = vcombine.low %v5584_v43, %v5968_v44  ;;  %v4949_v13 = vpack.c.bf16 %v1802_v61, %v1802_v61  ;;  %v4951_v14 = vpack.c.bf16 %v1803_v62, %v1803_v62  ;;  %v5972_v37 = vld [vmem:[%s26937_s9 + $0x1058] sm:$0x11] }
 0x262   : > { %v13215_v18 = vpop.f32.mrf.mxu0  ;;  %v13255_v19 = vpop.f32.mrf.mxu1  ;;  %v4952_v61 = vpack.c.bf16 %v27944_v15, %v27944_v15 }
 0x263   : > { %v333_v19 = vld [vmem:[%s26930_s5 + $0x228] sm:$0xff] }
 0x264   : > { %v13291_v28 = vpop.f32.mrf.mxu0  ;;  %v13331_v29 = vpop.f32.mrf.mxu1  ;;  %15210 = vmatmul.mubr.bf16.vlgmr.msra.gmra.mxu0 %v4936_v11  ;;  %15250 = vmatmul.mubr.bf16.vlgmr.msra.gmra.mxu1 %v4938_v12  ;;  %v27963_v44 = vrot.slane %v333_v19, %v26958_v24 }
 0x265   : > { %v13292_v30 = vadd.f32 %v13291_v28, %v13252_v7  ;;  %15272 = vmatpush1.bf16.xpose.msra.mxu0 %v25810_v16  ;;  %15312 = vmatpush1.bf16.xpose.msra.mxu1 %v25812_v17  ;;  %v5586_v7 = vld [vmem:[%s26937_s9 + $0x448] sm:$0xff]  ;;  %v27947_v16 = vrot.slane %v1804_v63, %v26958_v24  ;;  %v25823_v17 = vcombine.high %v5585_v1, %v5969_v6  ;;  %v5973_v63 = vld [vmem:[%s26937_s9 + $0x1060] sm:$0x11] }
 0x266   : > { %v13293_v31 = vpop.f32.mrf.mxu0  ;;  %v13333_v32 = vpop.f32.mrf.mxu1  ;;  %15289 = vmatprep.mubr.bf16.mxu0 %v4941_v20  ;;  %15329 = vmatprep.mubr.bf16.mxu1 %v4943_v21  ;;  %v25825_v18 = vcombine.high %v5586_v7, %v5970_v8  ;;  %v1821_v28 = vcombine.high %v333_v19, %v333_v19 }
 0x267   : > { %v13332_v36 = vadd.f32 %v13331_v29, %v13292_v30  ;;  %15351 = vmatprep.subr.bf16.mxu0 %v25815_v25  ;;  %15391 = vmatprep.subr.bf16.mxu1 %v25817_v26  ;;  %v1819_v26 = vcombine.high %v27944_v15, %v27944_v15  ;;  %v1820_v27 = vcombine.high %v27947_v16, %v27947_v16  ;;  %v5587_v30 = vld [vmem:[%s26937_s9 + $0x450] sm:$0xff] }
 0x268   : > { %v13294_v38 = vpop.f32.mrf.mxu0  ;;  %v13334_v39 = vpop.f32.mrf.mxu1  ;;  %v4954_v62 = vpack.c.bf16 %v27947_v16, %v27947_v16 }
 0x269   : > { %v25822_v38 = vcombine.low %v5585_v1, %v5969_v6  ;;  %v25824_v39 = vcombine.low %v5586_v7, %v5970_v8  ;;  %v4953_v42 = vpack.c.bf16 %v1819_v26, %v1819_v26  ;;  %v4955_v43 = vpack.c.bf16 %v1820_v27, %v1820_v27  ;;  %v5974_v1 = vld [vmem:[%s26937_s9 + $0x1068] sm:$0x11] }
 0x26a   : > { %v13295_v47 = vpop.f32.mrf.mxu0  ;;  %v13335_v48 = vpop.f32.mrf.mxu1  ;;  %v4956_v26 = vpack.c.bf16 %v27963_v44, %v27963_v44 }
 0x26b   : > { %v334_v48 = vld [vmem:[%s26930_s5 + $0x230] sm:$0xff] }
 0x26c   : > { %v13371_v56 = vpop.f32.mrf.mxu0  ;;  %v13411_v57 = vpop.f32.mrf.mxu1  ;;  %15290 = vmatmul.mubr.bf16.vlgmr.msra.gmra.mxu0 %v4940_v40  ;;  %15330 = vmatmul.mubr.bf16.vlgmr.msra.gmra.mxu1 %v4942_v41  ;;  %v27982_v8 = vrot.slane %v334_v48, %v26958_v24 }
 0x26d   : > { %v13372_v58 = vadd.f32 %v13371_v56, %v13332_v36  ;;  %15352 = vmatpush1.bf16.xpose.msra.mxu0 %v25814_v45  ;;  %15392 = vmatpush1.bf16.xpose.msra.mxu1 %v25816_v46  ;;  %v5588_v36 = vld [vmem:[%s26937_s9 + $0x458] sm:$0xff]  ;;  %v27966_v45 = vrot.slane %v1821_v28, %v26958_v24  ;;  %v25827_v46 = vcombine.high %v5587_v30, %v5971_v35  ;;  %v5975_v28 = vld [vmem:[%s26937_s9 + $0x1070] sm:$0x11] }
 0x26e   : > { %v13373_v59 = vpop.f32.mrf.mxu0  ;;  %v13413_v60 = vpop.f32.mrf.mxu1  ;;  %15369 = vmatprep.mubr.bf16.mxu0 %v4945_v49  ;;  %15409 = vmatprep.mubr.bf16.mxu1 %v4947_v50  ;;  %v25829_v47 = vcombine.high %v5588_v36, %v5972_v37  ;;  %v1838_v56 = vcombine.high %v334_v48, %v334_v48 }
 0x26f   : > { %v13412_v0 = vadd.f32 %v13411_v57, %v13372_v58  ;;  %15431 = vmatprep.subr.bf16.mxu0 %v25819_v53  ;;  %15471 = vmatprep.subr.bf16.mxu1 %v25821_v54  ;;  %v1836_v54 = vcombine.high %v27963_v44, %v27963_v44  ;;  %v1837_v55 = vcombine.high %v27966_v45, %v27966_v45  ;;  %v5589_v58 = vld [vmem:[%s26937_s9 + $0x460] sm:$0xff] }
 0x270   : > { %v13374_v2 = vpop.f32.mrf.mxu0  ;;  %v13414_v3 = vpop.f32.mrf.mxu1  ;;  %v4958_v27 = vpack.c.bf16 %v27966_v45, %v27966_v45 }
 0x271   : > { %v25826_v2 = vcombine.low %v5587_v30, %v5971_v35  ;;  %v25828_v3 = vcombine.low %v5588_v36, %v5972_v37  ;;  %v4957_v6 = vpack.c.bf16 %v1836_v54, %v1836_v54  ;;  %v4959_v7 = vpack.c.bf16 %v1837_v55, %v1837_v55  ;;  %v5976_v30 = vld [vmem:[%s26937_s9 + $0x1078] sm:$0x11] }
 0x272   : > { %v13375_v11 = vpop.f32.mrf.mxu0  ;;  %v13415_v12 = vpop.f32.mrf.mxu1  ;;  %v4960_v54 = vpack.c.bf16 %v27982_v8, %v27982_v8 }
 0x273   : > { %v335_v12 = vld [vmem:[%s26930_s5 + $0x238] sm:$0xff] }
 0x274   : > { %v13451_v20 = vpop.f32.mrf.mxu0  ;;  %v13491_v21 = vpop.f32.mrf.mxu1  ;;  %15370 = vmatmul.mubr.bf16.vlgmr.msra.gmra.mxu0 %v4944_v4  ;;  %15410 = vmatmul.mubr.bf16.vlgmr.msra.gmra.mxu1 %v4946_v5  ;;  %v28001_v37 = vrot.slane %v335_v12, %v26958_v24 }
 0x275   : > { %v13452_v22 = vadd.f32 %v13451_v20, %v13412_v0  ;;  %15432 = vmatpush1.bf16.xpose.msra.mxu0 %v25818_v9  ;;  %15472 = vmatpush1.bf16.xpose.msra.mxu1 %v25820_v10  ;;  %v5590_v0 = vld [vmem:[%s26937_s9 + $0x468] sm:$0xff]  ;;  %v27985_v9 = vrot.slane %v1838_v56, %v26958_v24  ;;  %v25831_v10 = vcombine.high %v5589_v58, %v5973_v63  ;;  %v5977_v56 = vld [vmem:[%s26937_s9 + $0x1080] sm:$0x11] }
 0x276   : > { %v13453_v23 = vpop.f32.mrf.mxu0  ;;  %v13493_v25 = vpop.f32.mrf.mxu1  ;;  %15449 = vmatprep.mubr.bf16.mxu0 %v4949_v13  ;;  %15489 = vmatprep.mubr.bf16.mxu1 %v4951_v14  ;;  %v25833_v11 = vcombine.high %v5590_v0, %v5974_v1  ;;  %v1855_v20 = vcombine.high %v335_v12, %v335_v12 }
 0x277   : > { %v13492_v29 = vadd.f32 %v13491_v21, %v13452_v22  ;;  %15511 = vmatprep.subr.bf16.mxu0 %v25823_v17  ;;  %15551 = vmatprep.subr.bf16.mxu1 %v25825_v18  ;;  %v1853_v18 = vcombine.high %v27982_v8, %v27982_v8  ;;  %v1854_v19 = vcombine.high %v27985_v9, %v27985_v9  ;;  %v5591_v22 = vld [vmem:[%s26937_s9 + $0x470] sm:$0xff] }
 0x278   : > { %v13454_v31 = vpop.f32.mrf.mxu0  ;;  %v13494_v32 = vpop.f32.mrf.mxu1  ;;  %v4962_v55 = vpack.c.bf16 %v27985_v9, %v27985_v9 }
 0x279   : > { %v25830_v31 = vcombine.low %v5589_v58, %v5973_v63  ;;  %v25832_v32 = vcombine.low %v5590_v0, %v5974_v1  ;;  %v4961_v35 = vpack.c.bf16 %v1853_v18, %v1853_v18  ;;  %v4963_v36 = vpack.c.bf16 %v1854_v19, %v1854_v19  ;;  %v5978_v58 = vld [vmem:[%s26937_s9 + $0x1088] sm:$0x11] }
 0x27a   : > { %v13455_v40 = vpop.f32.mrf.mxu0  ;;  %v13495_v41 = vpop.f32.mrf.mxu1  ;;  %v4964_v18 = vpack.c.bf16 %v28001_v37, %v28001_v37 }
 0x27b   : > { %v336_v41 = vld [vmem:[%s26930_s5 + $0x240] sm:$0xff] }
 0x27c   : > { %v13531_v49 = vpop.f32.mrf.mxu0  ;;  %v13571_v50 = vpop.f32.mrf.mxu1  ;;  %15450 = vmatmul.mubr.bf16.vlgmr.msra.gmra.mxu0 %v4948_v33  ;;  %15490 = vmatmul.mubr.bf16.vlgmr.msra.gmra.mxu1 %v4950_v34  ;;  %v28020_v1 = vrot.slane %v336_v41, %v26958_v24 }
 0x27d   : > { %v13532_v51 = vadd.f32 %v13531_v49, %v13492_v29  ;;  %15512 = vmatpush1.bf16.xpose.msra.mxu0 %v25822_v38  ;;  %15552 = vmatpush1.bf16.xpose.msra.mxu1 %v25824_v39  ;;  %v5592_v29 = vld [vmem:[%s26937_s9 + $0x478] sm:$0xff]  ;;  %v28004_v38 = vrot.slane %v1855_v20, %v26958_v24  ;;  %v25835_v39 = vcombine.high %v5591_v22, %v5975_v28  ;;  %v5979_v20 = vld [vmem:[%s26937_s9 + $0x1090] sm:$0x11] }
 0x27e   : > { %v13533_v52 = vpop.f32.mrf.mxu0  ;;  %v13573_v53 = vpop.f32.mrf.mxu1  ;;  %15529 = vmatprep.mubr.bf16.mxu0 %v4953_v42  ;;  %15569 = vmatprep.mubr.bf16.mxu1 %v4955_v43  ;;  %v25837_v40 = vcombine.high %v5592_v29, %v5976_v30  ;;  %v1872_v49 = vcombine.high %v336_v41, %v336_v41 }
 0x27f   : > { %v13572_v57 = vadd.f32 %v13571_v50, %v13532_v51  ;;  %15591 = vmatprep.subr.bf16.mxu0 %v25827_v46  ;;  %15631 = vmatprep.subr.bf16.mxu1 %v25829_v47  ;;  %v1870_v47 = vcombine.high %v28001_v37, %v28001_v37  ;;  %v1871_v48 = vcombine.high %v28004_v38, %v28004_v38  ;;  %v5593_v51 = vld [vmem:[%s26937_s9 + $0x480] sm:$0xff] }
 0x280   : > { %v13534_v59 = vpop.f32.mrf.mxu0  ;;  %v13574_v60 = vpop.f32.mrf.mxu1  ;;  %v4966_v19 = vpack.c.bf16 %v28004_v38, %v28004_v38 }
 0x281   : > { %v25834_v59 = vcombine.low %v5591_v22, %v5975_v28  ;;  %v25836_v60 = vcombine.low %v5592_v29, %v5976_v30  ;;  %v4965_v63 = vpack.c.bf16 %v1870_v47, %v1870_v47  ;;  %v4967_v0 = vpack.c.bf16 %v1871_v48, %v1871_v48  ;;  %v5980_v22 = vld [vmem:[%s26937_s9 + $0x1098] sm:$0x11] }
 0x282   : > { %v13535_v4 = vpop.f32.mrf.mxu0  ;;  %v13575_v5 = vpop.f32.mrf.mxu1  ;;  %v4968_v47 = vpack.c.bf16 %v28020_v1, %v28020_v1 }
 0x283   : > { %v337_v5 = vld [vmem:[%s26930_s5 + $0x248] sm:$0xff] }
 0x284   : > { %v13611_v13 = vpop.f32.mrf.mxu0  ;;  %v13651_v14 = vpop.f32.mrf.mxu1  ;;  %15530 = vmatmul.mubr.bf16.vlgmr.msra.gmra.mxu0 %v4952_v61  ;;  %15570 = vmatmul.mubr.bf16.vlgmr.msra.gmra.mxu1 %v4954_v62  ;;  %v28039_v30 = vrot.slane %v337_v5, %v26958_v24 }
 0x285   : > { %v13612_v15 = vadd.f32 %v13611_v13, %v13572_v57  ;;  %15592 = vmatpush1.bf16.xpose.msra.mxu0 %v25826_v2  ;;  %15632 = vmatpush1.bf16.xpose.msra.mxu1 %v25828_v3  ;;  %v5594_v57 = vld [vmem:[%s26937_s9 + $0x488] sm:$0xff]  ;;  %v28023_v2 = vrot.slane %v1872_v49, %v26958_v24  ;;  %v25839_v3 = vcombine.high %v5593_v51, %v5977_v56  ;;  %v5981_v49 = vld [vmem:[%s26937_s9 + $0x10a0] sm:$0x11] }
 0x286   : > { %v13613_v16 = vpop.f32.mrf.mxu0  ;;  %v13653_v17 = vpop.f32.mrf.mxu1  ;;  %15609 = vmatprep.mubr.bf16.mxu0 %v4957_v6  ;;  %15649 = vmatprep.mubr.bf16.mxu1 %v4959_v7  ;;  %v25841_v4 = vcombine.high %v5594_v57, %v5978_v58  ;;  %v1889_v13 = vcombine.high %v337_v5, %v337_v5 }
 0x287   : > { %v13652_v21 = vadd.f32 %v13651_v14, %v13612_v15  ;;  %15671 = vmatprep.subr.bf16.mxu0 %v25831_v10  ;;  %15711 = vmatprep.subr.bf16.mxu1 %v25833_v11  ;;  %v1887_v11 = vcombine.high %v28020_v1, %v28020_v1  ;;  %v1888_v12 = vcombine.high %v28023_v2, %v28023_v2  ;;  %v5595_v15 = vld [vmem:[%s26937_s9 + $0x490] sm:$0xff] }
 0x288   : > { %v13614_v23 = vpop.f32.mrf.mxu0  ;;  %v13654_v25 = vpop.f32.mrf.mxu1  ;;  %v4970_v48 = vpack.c.bf16 %v28023_v2, %v28023_v2 }
 0x289   : > { %v25838_v23 = vcombine.low %v5593_v51, %v5977_v56  ;;  %v25840_v25 = vcombine.low %v5594_v57, %v5978_v58  ;;  %v4969_v28 = vpack.c.bf16 %v1887_v11, %v1887_v11  ;;  %v4971_v29 = vpack.c.bf16 %v1888_v12, %v1888_v12  ;;  %v5982_v51 = vld [vmem:[%s26937_s9 + $0x10a8] sm:$0x11] }
 0x28a   : > { %v13615_v33 = vpop.f32.mrf.mxu0  ;;  %v13655_v34 = vpop.f32.mrf.mxu1  ;;  %v4972_v11 = vpack.c.bf16 %v28039_v30, %v28039_v30 }
 0x28b   : > { %v338_v34 = vld [vmem:[%s26930_s5 + $0x250] sm:$0xff] }
 0x28c   : > { %v13691_v42 = vpop.f32.mrf.mxu0  ;;  %v13731_v43 = vpop.f32.mrf.mxu1  ;;  %15610 = vmatmul.mubr.bf16.vlgmr.msra.gmra.mxu0 %v4956_v26  ;;  %15650 = vmatmul.mubr.bf16.vlgmr.msra.gmra.mxu1 %v4958_v27  ;;  %v28058_v58 = vrot.slane %v338_v34, %v26958_v24 }
 0x28d   : > { %v13692_v44 = vadd.f32 %v13691_v42, %v13652_v21  ;;  %15672 = vmatpush1.bf16.xpose.msra.mxu0 %v25830_v31  ;;  %15712 = vmatpush1.bf16.xpose.msra.mxu1 %v25832_v32  ;;  %v5596_v21 = vld [vmem:[%s26937_s9 + $0x498] sm:$0xff]  ;;  %v28042_v31 = vrot.slane %v1889_v13, %v26958_v24  ;;  %v25843_v32 = vcombine.high %v5595_v15, %v5979_v20  ;;  %v5983_v13 = vld [vmem:[%s26937_s9 + $0x10b0] sm:$0x11] }
 0x28e   : > { %v13693_v45 = vpop.f32.mrf.mxu0  ;;  %v13733_v46 = vpop.f32.mrf.mxu1  ;;  %15689 = vmatprep.mubr.bf16.mxu0 %v4961_v35  ;;  %15729 = vmatprep.mubr.bf16.mxu1 %v4963_v36  ;;  %v25845_v33 = vcombine.high %v5596_v21, %v5980_v22  ;;  %v1906_v42 = vcombine.high %v338_v34, %v338_v34 }
 0x28f   : > { %v13732_v50 = vadd.f32 %v13731_v43, %v13692_v44  ;;  %15751 = vmatprep.subr.bf16.mxu0 %v25835_v39  ;;  %15791 = vmatprep.subr.bf16.mxu1 %v25837_v40  ;;  %v1904_v40 = vcombine.high %v28039_v30, %v28039_v30  ;;  %v1905_v41 = vcombine.high %v28042_v31, %v28042_v31  ;;  %v5597_v44 = vld [vmem:[%s26937_s9 + $0x4a0] sm:$0xff] }
 0x290   : > { %v13694_v52 = vpop.f32.mrf.mxu0  ;;  %v13734_v53 = vpop.f32.mrf.mxu1  ;;  %v4974_v12 = vpack.c.bf16 %v28042_v31, %v28042_v31 }
 0x291   : > { %v25842_v52 = vcombine.low %v5595_v15, %v5979_v20  ;;  %v25844_v53 = vcombine.low %v5596_v21, %v5980_v22  ;;  %v4973_v56 = vpack.c.bf16 %v1904_v40, %v1904_v40  ;;  %v4975_v57 = vpack.c.bf16 %v1905_v41, %v1905_v41  ;;  %v5984_v15 = vld [vmem:[%s26937_s9 + $0x10b8] sm:$0x11] }
 0x292   : > { %v13695_v61 = vpop.f32.mrf.mxu0  ;;  %v13735_v62 = vpop.f32.mrf.mxu1  ;;  %v4976_v40 = vpack.c.bf16 %v28058_v58, %v28058_v58 }
 0x293   : > { %v339_v62 = vld [vmem:[%s26930_s5 + $0x258] sm:$0xff] }
 0x294   : > { %v13771_v6 = vpop.f32.mrf.mxu0  ;;  %v13811_v7 = vpop.f32.mrf.mxu1  ;;  %15690 = vmatmul.mubr.bf16.vlgmr.msra.gmra.mxu0 %v4960_v54  ;;  %15730 = vmatmul.mubr.bf16.vlgmr.msra.gmra.mxu1 %v4962_v55  ;;  %v28077_v22 = vrot.slane %v339_v62, %v26958_v24 }
 0x295   : > { %v13772_v8 = vadd.f32 %v13771_v6, %v13732_v50  ;;  %15752 = vmatpush1.bf16.xpose.msra.mxu0 %v25834_v59  ;;  %15792 = vmatpush1.bf16.xpose.msra.mxu1 %v25836_v60  ;;  %v5598_v50 = vld [vmem:[%s26937_s9 + $0x4a8] sm:$0xff]  ;;  %v28061_v59 = vrot.slane %v1906_v42, %v26958_v24  ;;  %v25847_v60 = vcombine.high %v5597_v44, %v5981_v49  ;;  %v5985_v42 = vld [vmem:[%s26937_s9 + $0x10c0] sm:$0x11] }
 0x296   : > { %v13773_v9 = vpop.f32.mrf.mxu0  ;;  %v13813_v10 = vpop.f32.mrf.mxu1  ;;  %15769 = vmatprep.mubr.bf16.mxu0 %v4965_v63  ;;  %15809 = vmatprep.mubr.bf16.mxu1 %v4967_v0  ;;  %v25849_v61 = vcombine.high %v5598_v50, %v5982_v51  ;;  %v1923_v6 = vcombine.high %v339_v62, %v339_v62 }
 0x297   : > { %v13812_v14 = vadd.f32 %v13811_v7, %v13772_v8  ;;  %15831 = vmatprep.subr.bf16.mxu0 %v25839_v3  ;;  %15871 = vmatprep.subr.bf16.mxu1 %v25841_v4  ;;  %v1921_v4 = vcombine.high %v28058_v58, %v28058_v58  ;;  %v1922_v5 = vcombine.high %v28061_v59, %v28061_v59  ;;  %v5599_v8 = vld [vmem:[%s26937_s9 + $0x4b0] sm:$0xff] }
 0x298   : > { %v13774_v16 = vpop.f32.mrf.mxu0  ;;  %v13814_v17 = vpop.f32.mrf.mxu1  ;;  %v4978_v41 = vpack.c.bf16 %v28061_v59, %v28061_v59 }
 0x299   : > { %v25846_v16 = vcombine.low %v5597_v44, %v5981_v49  ;;  %v25848_v17 = vcombine.low %v5598_v50, %v5982_v51  ;;  %v4977_v20 = vpack.c.bf16 %v1921_v4, %v1921_v4  ;;  %v4979_v21 = vpack.c.bf16 %v1922_v5, %v1922_v5  ;;  %v5986_v44 = vld [vmem:[%s26937_s9 + $0x10c8] sm:$0x11] }
 0x29a   : > { %v13775_v26 = vpop.f32.mrf.mxu0  ;;  %v13815_v27 = vpop.f32.mrf.mxu1  ;;  %v4980_v4 = vpack.c.bf16 %v28077_v22, %v28077_v22 }
 0x29b   : > { %v340_v27 = vld [vmem:[%s26930_s5 + $0x260] sm:$0xff] }
 0x29c   : > { %v13851_v35 = vpop.f32.mrf.mxu0  ;;  %v13891_v36 = vpop.f32.mrf.mxu1  ;;  %15770 = vmatmul.mubr.bf16.vlgmr.msra.gmra.mxu0 %v4964_v18  ;;  %15810 = vmatmul.mubr.bf16.vlgmr.msra.gmra.mxu1 %v4966_v19  ;;  %v28096_v51 = vrot.slane %v340_v27, %v26958_v24 }
 0x29d   : > { %v13852_v37 = vadd.f32 %v13851_v35, %v13812_v14  ;;  %15832 = vmatpush1.bf16.xpose.msra.mxu0 %v25838_v23  ;;  %15872 = vmatpush1.bf16.xpose.msra.mxu1 %v25840_v25  ;;  %v5600_v14 = vld [vmem:[%s26937_s9 + $0x4b8] sm:$0xff]  ;;  %v28080_v23 = vrot.slane %v1923_v6, %v26958_v24  ;;  %v25851_v25 = vcombine.high %v5599_v8, %v5983_v13  ;;  %v5987_v6 = vld [vmem:[%s26937_s9 + $0x10d0] sm:$0x11] }
 0x29e   : > { %v13853_v38 = vpop.f32.mrf.mxu0  ;;  %v13893_v39 = vpop.f32.mrf.mxu1  ;;  %15849 = vmatprep.mubr.bf16.mxu0 %v4969_v28  ;;  %15889 = vmatprep.mubr.bf16.mxu1 %v4971_v29  ;;  %v25853_v26 = vcombine.high %v5600_v14, %v5984_v15  ;;  %v1940_v35 = vcombine.high %v340_v27, %v340_v27 }
 0x29f   : > { %v13892_v43 = vadd.f32 %v13891_v36, %v13852_v37  ;;  %15911 = vmatprep.subr.bf16.mxu0 %v25843_v32  ;;  %15951 = vmatprep.subr.bf16.mxu1 %v25845_v33  ;;  %v1938_v33 = vcombine.high %v28077_v22, %v28077_v22  ;;  %v1939_v34 = vcombine.high %v28080_v23, %v28080_v23  ;;  %v5601_v37 = vld [vmem:[%s26937_s9 + $0x4c0] sm:$0xff] }
 0x2a0   : > { %v13854_v45 = vpop.f32.mrf.mxu0  ;;  %v13894_v46 = vpop.f32.mrf.mxu1  ;;  %v4982_v5 = vpack.c.bf16 %v28080_v23, %v28080_v23 }
 0x2a1   : > { %v25850_v45 = vcombine.low %v5599_v8, %v5983_v13  ;;  %v25852_v46 = vcombine.low %v5600_v14, %v5984_v15  ;;  %v4981_v49 = vpack.c.bf16 %v1938_v33, %v1938_v33  ;;  %v4983_v50 = vpack.c.bf16 %v1939_v34, %v1939_v34  ;;  %v5988_v8 = vld [vmem:[%s26937_s9 + $0x10d8] sm:$0x11] }
 0x2a2   : > { %v13855_v54 = vpop.f32.mrf.mxu0  ;;  %v13895_v55 = vpop.f32.mrf.mxu1  ;;  %v4984_v33 = vpack.c.bf16 %v28096_v51, %v28096_v51 }
 0x2a3   : > { %v341_v55 = vld [vmem:[%s26930_s5 + $0x268] sm:$0xff] }
 0x2a4   : > { %v13931_v63 = vpop.f32.mrf.mxu0  ;;  %v13971_v0 = vpop.f32.mrf.mxu1  ;;  %15850 = vmatmul.mubr.bf16.vlgmr.msra.gmra.mxu0 %v4968_v47  ;;  %15890 = vmatmul.mubr.bf16.vlgmr.msra.gmra.mxu1 %v4970_v48  ;;  %v28115_v15 = vrot.slane %v341_v55, %v26958_v24 }
 0x2a5   : > { %v13932_v1 = vadd.f32 %v13931_v63, %v13892_v43  ;;  %15912 = vmatpush1.bf16.xpose.msra.mxu0 %v25842_v52  ;;  %15952 = vmatpush1.bf16.xpose.msra.mxu1 %v25844_v53  ;;  %v5602_v43 = vld [vmem:[%s26937_s9 + $0x4c8] sm:$0xff]  ;;  %v28099_v52 = vrot.slane %v1940_v35, %v26958_v24  ;;  %v25855_v53 = vcombine.high %v5601_v37, %v5985_v42  ;;  %v5989_v35 = vld [vmem:[%s26937_s9 + $0x10e0] sm:$0x11] }
 0x2a6   : > { %v13933_v2 = vpop.f32.mrf.mxu0  ;;  %v13973_v3 = vpop.f32.mrf.mxu1  ;;  %15929 = vmatprep.mubr.bf16.mxu0 %v4973_v56  ;;  %15969 = vmatprep.mubr.bf16.mxu1 %v4975_v57  ;;  %v25857_v54 = vcombine.high %v5602_v43, %v5986_v44  ;;  %v1957_v63 = vcombine.high %v341_v55, %v341_v55 }
 0x2a7   : > { %v13972_v7 = vadd.f32 %v13971_v0, %v13932_v1  ;;  %15991 = vmatprep.subr.bf16.mxu0 %v25847_v60  ;;  %16031 = vmatprep.subr.bf16.mxu1 %v25849_v61  ;;  %v1955_v61 = vcombine.high %v28096_v51, %v28096_v51  ;;  %v1956_v62 = vcombine.high %v28099_v52, %v28099_v52  ;;  %v5603_v1 = vld [vmem:[%s26937_s9 + $0x4d0] sm:$0xff] }
 0x2a8   : > { %v13934_v9 = vpop.f32.mrf.mxu0  ;;  %v13974_v10 = vpop.f32.mrf.mxu1  ;;  %v4986_v34 = vpack.c.bf16 %v28099_v52, %v28099_v52 }
 0x2a9   : > { %v25854_v9 = vcombine.low %v5601_v37, %v5985_v42  ;;  %v25856_v10 = vcombine.low %v5602_v43, %v5986_v44  ;;  %v4985_v13 = vpack.c.bf16 %v1955_v61, %v1955_v61  ;;  %v4987_v14 = vpack.c.bf16 %v1956_v62, %v1956_v62  ;;  %v5990_v37 = vld [vmem:[%s26937_s9 + $0x10e8] sm:$0x11] }
 0x2aa   : > { %v13935_v18 = vpop.f32.mrf.mxu0  ;;  %v13975_v19 = vpop.f32.mrf.mxu1  ;;  %v4988_v61 = vpack.c.bf16 %v28115_v15, %v28115_v15 }
 0x2ab   : > { %v342_v19 = vld [vmem:[%s26930_s5 + $0x270] sm:$0xff] }
 0x2ac   : > { %v14011_v28 = vpop.f32.mrf.mxu0  ;;  %v14051_v29 = vpop.f32.mrf.mxu1  ;;  %15930 = vmatmul.mubr.bf16.vlgmr.msra.gmra.mxu0 %v4972_v11  ;;  %15970 = vmatmul.mubr.bf16.vlgmr.msra.gmra.mxu1 %v4974_v12  ;;  %v28134_v44 = vrot.slane %v342_v19, %v26958_v24 }
 0x2ad   : > { %v14012_v30 = vadd.f32 %v14011_v28, %v13972_v7  ;;  %15992 = vmatpush1.bf16.xpose.msra.mxu0 %v25846_v16  ;;  %16032 = vmatpush1.bf16.xpose.msra.mxu1 %v25848_v17  ;;  %v5604_v7 = vld [vmem:[%s26937_s9 + $0x4d8] sm:$0xff]  ;;  %v28118_v16 = vrot.slane %v1957_v63, %v26958_v24  ;;  %v25859_v17 = vcombine.high %v5603_v1, %v5987_v6  ;;  %v5991_v63 = vld [vmem:[%s26937_s9 + $0x10f0] sm:$0x11] }
 0x2ae   : > { %v14013_v31 = vpop.f32.mrf.mxu0  ;;  %v14053_v32 = vpop.f32.mrf.mxu1  ;;  %16009 = vmatprep.mubr.bf16.mxu0 %v4977_v20  ;;  %16049 = vmatprep.mubr.bf16.mxu1 %v4979_v21  ;;  %v25861_v18 = vcombine.high %v5604_v7, %v5988_v8  ;;  %v1974_v28 = vcombine.high %v342_v19, %v342_v19 }
 0x2af   : > { %v14052_v36 = vadd.f32 %v14051_v29, %v14012_v30  ;;  %16071 = vmatprep.subr.bf16.mxu0 %v25851_v25  ;;  %16111 = vmatprep.subr.bf16.mxu1 %v25853_v26  ;;  %v1972_v26 = vcombine.high %v28115_v15, %v28115_v15  ;;  %v1973_v27 = vcombine.high %v28118_v16, %v28118_v16  ;;  %v5605_v30 = vld [vmem:[%s26937_s9 + $0x4e0] sm:$0xff] }
 0x2b0   : > { %v14014_v38 = vpop.f32.mrf.mxu0  ;;  %v14054_v39 = vpop.f32.mrf.mxu1  ;;  %v4990_v62 = vpack.c.bf16 %v28118_v16, %v28118_v16 }
 0x2b1   : > { %v25858_v38 = vcombine.low %v5603_v1, %v5987_v6  ;;  %v25860_v39 = vcombine.low %v5604_v7, %v5988_v8  ;;  %v4989_v42 = vpack.c.bf16 %v1972_v26, %v1972_v26  ;;  %v4991_v43 = vpack.c.bf16 %v1973_v27, %v1973_v27  ;;  %v5992_v1 = vld [vmem:[%s26937_s9 + $0x10f8] sm:$0x11] }
 0x2b2   : > { %v14015_v47 = vpop.f32.mrf.mxu0  ;;  %v14055_v48 = vpop.f32.mrf.mxu1  ;;  %v4992_v26 = vpack.c.bf16 %v28134_v44, %v28134_v44 }
 0x2b3   : > { %v343_v48 = vld [vmem:[%s26930_s5 + $0x278] sm:$0xff] }
 0x2b4   : > { %v14091_v56 = vpop.f32.mrf.mxu0  ;;  %v14131_v57 = vpop.f32.mrf.mxu1  ;;  %16010 = vmatmul.mubr.bf16.vlgmr.msra.gmra.mxu0 %v4976_v40  ;;  %16050 = vmatmul.mubr.bf16.vlgmr.msra.gmra.mxu1 %v4978_v41  ;;  %v28153_v8 = vrot.slane %v343_v48, %v26958_v24 }
 0x2b5   : > { %v14092_v58 = vadd.f32 %v14091_v56, %v14052_v36  ;;  %16072 = vmatpush1.bf16.xpose.msra.mxu0 %v25850_v45  ;;  %16112 = vmatpush1.bf16.xpose.msra.mxu1 %v25852_v46  ;;  %v5606_v36 = vld [vmem:[%s26937_s9 + $0x4e8] sm:$0xff]  ;;  %v28137_v45 = vrot.slane %v1974_v28, %v26958_v24  ;;  %v25863_v46 = vcombine.high %v5605_v30, %v5989_v35  ;;  %v5993_v28 = vld [vmem:[%s26937_s9 + $0x1100] sm:$0x11] }
 0x2b6   : > { %v14093_v59 = vpop.f32.mrf.mxu0  ;;  %v14133_v60 = vpop.f32.mrf.mxu1  ;;  %16089 = vmatprep.mubr.bf16.mxu0 %v4981_v49  ;;  %16129 = vmatprep.mubr.bf16.mxu1 %v4983_v50  ;;  %v25865_v47 = vcombine.high %v5606_v36, %v5990_v37  ;;  %v1991_v56 = vcombine.high %v343_v48, %v343_v48 }
 0x2b7   : > { %v14132_v0 = vadd.f32 %v14131_v57, %v14092_v58  ;;  %16151 = vmatprep.subr.bf16.mxu0 %v25855_v53  ;;  %16191 = vmatprep.subr.bf16.mxu1 %v25857_v54  ;;  %v1989_v54 = vcombine.high %v28134_v44, %v28134_v44  ;;  %v1990_v55 = vcombine.high %v28137_v45, %v28137_v45  ;;  %v5607_v58 = vld [vmem:[%s26937_s9 + $0x4f0] sm:$0xff] }
 0x2b8   : > { %v14094_v2 = vpop.f32.mrf.mxu0  ;;  %v14134_v3 = vpop.f32.mrf.mxu1  ;;  %v4994_v27 = vpack.c.bf16 %v28137_v45, %v28137_v45 }
 0x2b9   : > { %v25862_v2 = vcombine.low %v5605_v30, %v5989_v35  ;;  %v25864_v3 = vcombine.low %v5606_v36, %v5990_v37  ;;  %v4993_v6 = vpack.c.bf16 %v1989_v54, %v1989_v54  ;;  %v4995_v7 = vpack.c.bf16 %v1990_v55, %v1990_v55  ;;  %v5994_v30 = vld [vmem:[%s26937_s9 + $0x1108] sm:$0x11] }
 0x2ba   : > { %v14095_v11 = vpop.f32.mrf.mxu0  ;;  %v14135_v12 = vpop.f32.mrf.mxu1  ;;  %v4996_v54 = vpack.c.bf16 %v28153_v8, %v28153_v8 }
 0x2bb   : > { %v344_v12 = vld [vmem:[%s26930_s5 + $0x280] sm:$0xff] }
 0x2bc   : > { %v14171_v20 = vpop.f32.mrf.mxu0  ;;  %v14211_v21 = vpop.f32.mrf.mxu1  ;;  %16090 = vmatmul.mubr.bf16.vlgmr.msra.gmra.mxu0 %v4980_v4  ;;  %16130 = vmatmul.mubr.bf16.vlgmr.msra.gmra.mxu1 %v4982_v5  ;;  %v28172_v37 = vrot.slane %v344_v12, %v26958_v24 }
 0x2bd   : > { %v14172_v22 = vadd.f32 %v14171_v20, %v14132_v0  ;;  %16152 = vmatpush1.bf16.xpose.msra.mxu0 %v25854_v9  ;;  %16192 = vmatpush1.bf16.xpose.msra.mxu1 %v25856_v10  ;;  %v5608_v0 = vld [vmem:[%s26937_s9 + $0x4f8] sm:$0xff]  ;;  %v28156_v9 = vrot.slane %v1991_v56, %v26958_v24  ;;  %v25867_v10 = vcombine.high %v5607_v58, %v5991_v63  ;;  %v5995_v56 = vld [vmem:[%s26937_s9 + $0x1110] sm:$0x11] }
 0x2be   : > { %v14173_v23 = vpop.f32.mrf.mxu0  ;;  %v14213_v25 = vpop.f32.mrf.mxu1  ;;  %16169 = vmatprep.mubr.bf16.mxu0 %v4985_v13  ;;  %16209 = vmatprep.mubr.bf16.mxu1 %v4987_v14  ;;  %v25869_v11 = vcombine.high %v5608_v0, %v5992_v1  ;;  %v2008_v20 = vcombine.high %v344_v12, %v344_v12 }
 0x2bf   : > { %v14212_v29 = vadd.f32 %v14211_v21, %v14172_v22  ;;  %16231 = vmatprep.subr.bf16.mxu0 %v25859_v17  ;;  %16271 = vmatprep.subr.bf16.mxu1 %v25861_v18  ;;  %v2006_v18 = vcombine.high %v28153_v8, %v28153_v8  ;;  %v2007_v19 = vcombine.high %v28156_v9, %v28156_v9  ;;  %v5609_v22 = vld [vmem:[%s26937_s9 + $0x500] sm:$0xff] }
 0x2c0   : > { %v14174_v31 = vpop.f32.mrf.mxu0  ;;  %v14214_v32 = vpop.f32.mrf.mxu1  ;;  %v4998_v55 = vpack.c.bf16 %v28156_v9, %v28156_v9 }
 0x2c1   : > { %v25866_v31 = vcombine.low %v5607_v58, %v5991_v63  ;;  %v25868_v32 = vcombine.low %v5608_v0, %v5992_v1  ;;  %v4997_v35 = vpack.c.bf16 %v2006_v18, %v2006_v18  ;;  %v4999_v36 = vpack.c.bf16 %v2007_v19, %v2007_v19  ;;  %v5996_v58 = vld [vmem:[%s26937_s9 + $0x1118] sm:$0x11] }
 0x2c2   : > { %v14175_v40 = vpop.f32.mrf.mxu0  ;;  %v14215_v41 = vpop.f32.mrf.mxu1  ;;  %v5000_v18 = vpack.c.bf16 %v28172_v37, %v28172_v37 }
 0x2c3   : > { %v345_v41 = vld [vmem:[%s26930_s5 + $0x288] sm:$0xff] }
 0x2c4   : > { %v14251_v49 = vpop.f32.mrf.mxu0  ;;  %v14291_v50 = vpop.f32.mrf.mxu1  ;;  %16170 = vmatmul.mubr.bf16.vlgmr.msra.gmra.mxu0 %v4984_v33  ;;  %16210 = vmatmul.mubr.bf16.vlgmr.msra.gmra.mxu1 %v4986_v34  ;;  %v28191_v1 = vrot.slane %v345_v41, %v26958_v24 }
 0x2c5   : > { %v14252_v51 = vadd.f32 %v14251_v49, %v14212_v29  ;;  %16232 = vmatpush1.bf16.xpose.msra.mxu0 %v25858_v38  ;;  %16272 = vmatpush1.bf16.xpose.msra.mxu1 %v25860_v39  ;;  %v5610_v29 = vld [vmem:[%s26937_s9 + $0x508] sm:$0xff]  ;;  %v28175_v38 = vrot.slane %v2008_v20, %v26958_v24  ;;  %v25871_v39 = vcombine.high %v5609_v22, %v5993_v28  ;;  %v5997_v20 = vld [vmem:[%s26937_s9 + $0x1120] sm:$0x11] }
 0x2c6   : > { %v14253_v52 = vpop.f32.mrf.mxu0  ;;  %v14293_v53 = vpop.f32.mrf.mxu1  ;;  %16249 = vmatprep.mubr.bf16.mxu0 %v4989_v42  ;;  %16289 = vmatprep.mubr.bf16.mxu1 %v4991_v43  ;;  %v25873_v40 = vcombine.high %v5610_v29, %v5994_v30  ;;  %v2025_v49 = vcombine.high %v345_v41, %v345_v41 }
 0x2c7   : > { %v14292_v57 = vadd.f32 %v14291_v50, %v14252_v51  ;;  %16311 = vmatprep.subr.bf16.mxu0 %v25863_v46  ;;  %16351 = vmatprep.subr.bf16.mxu1 %v25865_v47  ;;  %v2023_v47 = vcombine.high %v28172_v37, %v28172_v37  ;;  %v2024_v48 = vcombine.high %v28175_v38, %v28175_v38  ;;  %v5611_v51 = vld [vmem:[%s26937_s9 + $0x510] sm:$0xff] }
 0x2c8   : > { %v14254_v59 = vpop.f32.mrf.mxu0  ;;  %v14294_v60 = vpop.f32.mrf.mxu1  ;;  %v5002_v19 = vpack.c.bf16 %v28175_v38, %v28175_v38 }
 0x2c9   : > { %v25870_v59 = vcombine.low %v5609_v22, %v5993_v28  ;;  %v25872_v60 = vcombine.low %v5610_v29, %v5994_v30  ;;  %v5001_v63 = vpack.c.bf16 %v2023_v47, %v2023_v47  ;;  %v5003_v0 = vpack.c.bf16 %v2024_v48, %v2024_v48  ;;  %v5998_v22 = vld [vmem:[%s26937_s9 + $0x1128] sm:$0x11] }
 0x2ca   : > { %v14255_v4 = vpop.f32.mrf.mxu0  ;;  %v14295_v5 = vpop.f32.mrf.mxu1  ;;  %v5004_v47 = vpack.c.bf16 %v28191_v1, %v28191_v1 }
 0x2cb   : > { %v346_v5 = vld [vmem:[%s26930_s5 + $0x290] sm:$0xff] }
 0x2cc   : > { %v14331_v13 = vpop.f32.mrf.mxu0  ;;  %v14371_v14 = vpop.f32.mrf.mxu1  ;;  %16250 = vmatmul.mubr.bf16.vlgmr.msra.gmra.mxu0 %v4988_v61  ;;  %16290 = vmatmul.mubr.bf16.vlgmr.msra.gmra.mxu1 %v4990_v62  ;;  %v28210_v30 = vrot.slane %v346_v5, %v26958_v24 }
 0x2cd   : > { %v14332_v15 = vadd.f32 %v14331_v13, %v14292_v57  ;;  %16312 = vmatpush1.bf16.xpose.msra.mxu0 %v25862_v2  ;;  %16352 = vmatpush1.bf16.xpose.msra.mxu1 %v25864_v3  ;;  %v5612_v57 = vld [vmem:[%s26937_s9 + $0x518] sm:$0xff]  ;;  %v28194_v2 = vrot.slane %v2025_v49, %v26958_v24  ;;  %v25875_v3 = vcombine.high %v5611_v51, %v5995_v56  ;;  %v5999_v49 = vld [vmem:[%s26937_s9 + $0x1130] sm:$0x11] }
 0x2ce   : > { %v14333_v16 = vpop.f32.mrf.mxu0  ;;  %v14373_v17 = vpop.f32.mrf.mxu1  ;;  %16329 = vmatprep.mubr.bf16.mxu0 %v4993_v6  ;;  %16369 = vmatprep.mubr.bf16.mxu1 %v4995_v7  ;;  %v25877_v4 = vcombine.high %v5612_v57, %v5996_v58  ;;  %v2042_v13 = vcombine.high %v346_v5, %v346_v5 }
 0x2cf   : > { %v14372_v21 = vadd.f32 %v14371_v14, %v14332_v15  ;;  %16391 = vmatprep.subr.bf16.mxu0 %v25867_v10  ;;  %16431 = vmatprep.subr.bf16.mxu1 %v25869_v11  ;;  %v2040_v11 = vcombine.high %v28191_v1, %v28191_v1  ;;  %v2041_v12 = vcombine.high %v28194_v2, %v28194_v2  ;;  %v5613_v15 = vld [vmem:[%s26937_s9 + $0x520] sm:$0xff] }
 0x2d0   : > { %v14334_v23 = vpop.f32.mrf.mxu0  ;;  %v14374_v25 = vpop.f32.mrf.mxu1  ;;  %v5006_v48 = vpack.c.bf16 %v28194_v2, %v28194_v2 }
 0x2d1   : > { %v25874_v23 = vcombine.low %v5611_v51, %v5995_v56  ;;  %v25876_v25 = vcombine.low %v5612_v57, %v5996_v58  ;;  %v5005_v28 = vpack.c.bf16 %v2040_v11, %v2040_v11  ;;  %v5007_v29 = vpack.c.bf16 %v2041_v12, %v2041_v12  ;;  %v6000_v51 = vld [vmem:[%s26937_s9 + $0x1138] sm:$0x11] }
 0x2d2   : > { %v14335_v33 = vpop.f32.mrf.mxu0  ;;  %v14375_v34 = vpop.f32.mrf.mxu1  ;;  %v5008_v11 = vpack.c.bf16 %v28210_v30, %v28210_v30 }
 0x2d3   : > { %v347_v34 = vld [vmem:[%s26930_s5 + $0x298] sm:$0xff] }
 0x2d4   : > { %v14411_v42 = vpop.f32.mrf.mxu0  ;;  %v14451_v43 = vpop.f32.mrf.mxu1  ;;  %16330 = vmatmul.mubr.bf16.vlgmr.msra.gmra.mxu0 %v4992_v26  ;;  %16370 = vmatmul.mubr.bf16.vlgmr.msra.gmra.mxu1 %v4994_v27  ;;  %v28229_v58 = vrot.slane %v347_v34, %v26958_v24 }
 0x2d5   : > { %v14412_v44 = vadd.f32 %v14411_v42, %v14372_v21  ;;  %16392 = vmatpush1.bf16.xpose.msra.mxu0 %v25866_v31  ;;  %16432 = vmatpush1.bf16.xpose.msra.mxu1 %v25868_v32  ;;  %v5614_v21 = vld [vmem:[%s26937_s9 + $0x528] sm:$0xff]  ;;  %v28213_v31 = vrot.slane %v2042_v13, %v26958_v24  ;;  %v25879_v32 = vcombine.high %v5613_v15, %v5997_v20  ;;  %v6001_v13 = vld [vmem:[%s26937_s9 + $0x1140] sm:$0x11] }
 0x2d6   : > { %v14413_v45 = vpop.f32.mrf.mxu0  ;;  %v14453_v46 = vpop.f32.mrf.mxu1  ;;  %16409 = vmatprep.mubr.bf16.mxu0 %v4997_v35  ;;  %16449 = vmatprep.mubr.bf16.mxu1 %v4999_v36  ;;  %v25881_v33 = vcombine.high %v5614_v21, %v5998_v22  ;;  %v2059_v42 = vcombine.high %v347_v34, %v347_v34 }
 0x2d7   : > { %v14452_v50 = vadd.f32 %v14451_v43, %v14412_v44  ;;  %16471 = vmatprep.subr.bf16.mxu0 %v25871_v39  ;;  %16511 = vmatprep.subr.bf16.mxu1 %v25873_v40  ;;  %v2057_v40 = vcombine.high %v28210_v30, %v28210_v30  ;;  %v2058_v41 = vcombine.high %v28213_v31, %v28213_v31  ;;  %v5615_v44 = vld [vmem:[%s26937_s9 + $0x530] sm:$0xff] }
 0x2d8   : > { %v14414_v52 = vpop.f32.mrf.mxu0  ;;  %v14454_v53 = vpop.f32.mrf.mxu1  ;;  %v5010_v12 = vpack.c.bf16 %v28213_v31, %v28213_v31 }
 0x2d9   : > { %v25878_v52 = vcombine.low %v5613_v15, %v5997_v20  ;;  %v25880_v53 = vcombine.low %v5614_v21, %v5998_v22  ;;  %v5009_v56 = vpack.c.bf16 %v2057_v40, %v2057_v40  ;;  %v5011_v57 = vpack.c.bf16 %v2058_v41, %v2058_v41  ;;  %v6002_v15 = vld [vmem:[%s26937_s9 + $0x1148] sm:$0x11] }
 0x2da   : > { %v14415_v61 = vpop.f32.mrf.mxu0  ;;  %v14455_v62 = vpop.f32.mrf.mxu1  ;;  %v5012_v40 = vpack.c.bf16 %v28229_v58, %v28229_v58 }
 0x2db   : > { %v348_v62 = vld [vmem:[%s26930_s5 + $0x2a0] sm:$0xff] }
 0x2dc   : > { %v14491_v6 = vpop.f32.mrf.mxu0  ;;  %v14531_v7 = vpop.f32.mrf.mxu1  ;;  %16410 = vmatmul.mubr.bf16.vlgmr.msra.gmra.mxu0 %v4996_v54  ;;  %16450 = vmatmul.mubr.bf16.vlgmr.msra.gmra.mxu1 %v4998_v55  ;;  %v28248_v22 = vrot.slane %v348_v62, %v26958_v24 }
 0x2dd   : > { %v14492_v8 = vadd.f32 %v14491_v6, %v14452_v50  ;;  %16472 = vmatpush1.bf16.xpose.msra.mxu0 %v25870_v59  ;;  %16512 = vmatpush1.bf16.xpose.msra.mxu1 %v25872_v60  ;;  %v5616_v50 = vld [vmem:[%s26937_s9 + $0x538] sm:$0xff]  ;;  %v28232_v59 = vrot.slane %v2059_v42, %v26958_v24  ;;  %v25883_v60 = vcombine.high %v5615_v44, %v5999_v49  ;;  %v6003_v42 = vld [vmem:[%s26937_s9 + $0x1150] sm:$0x11] }
 0x2de   : > { %v14493_v9 = vpop.f32.mrf.mxu0  ;;  %v14533_v10 = vpop.f32.mrf.mxu1  ;;  %16489 = vmatprep.mubr.bf16.mxu0 %v5001_v63  ;;  %16529 = vmatprep.mubr.bf16.mxu1 %v5003_v0  ;;  %v25885_v61 = vcombine.high %v5616_v50, %v6000_v51  ;;  %v2076_v6 = vcombine.high %v348_v62, %v348_v62 }
 0x2df   : > { %v14532_v14 = vadd.f32 %v14531_v7, %v14492_v8  ;;  %16551 = vmatprep.subr.bf16.mxu0 %v25875_v3  ;;  %16591 = vmatprep.subr.bf16.mxu1 %v25877_v4  ;;  %v2074_v4 = vcombine.high %v28229_v58, %v28229_v58  ;;  %v2075_v5 = vcombine.high %v28232_v59, %v28232_v59  ;;  %v5617_v8 = vld [vmem:[%s26937_s9 + $0x540] sm:$0xff] }
 0x2e0   : > { %v14494_v16 = vpop.f32.mrf.mxu0  ;;  %v14534_v17 = vpop.f32.mrf.mxu1  ;;  %v5014_v41 = vpack.c.bf16 %v28232_v59, %v28232_v59 }
 0x2e1   : > { %v25882_v16 = vcombine.low %v5615_v44, %v5999_v49  ;;  %v25884_v17 = vcombine.low %v5616_v50, %v6000_v51  ;;  %v5013_v20 = vpack.c.bf16 %v2074_v4, %v2074_v4  ;;  %v5015_v21 = vpack.c.bf16 %v2075_v5, %v2075_v5  ;;  %v6004_v44 = vld [vmem:[%s26937_s9 + $0x1158] sm:$0x11] }
 0x2e2   : > { %v14495_v26 = vpop.f32.mrf.mxu0  ;;  %v14535_v27 = vpop.f32.mrf.mxu1  ;;  %v5016_v4 = vpack.c.bf16 %v28248_v22, %v28248_v22 }
 0x2e3   : > { %v349_v27 = vld [vmem:[%s26930_s5 + $0x2a8] sm:$0xff] }
 0x2e4   : > { %v14571_v35 = vpop.f32.mrf.mxu0  ;;  %v14611_v36 = vpop.f32.mrf.mxu1  ;;  %16490 = vmatmul.mubr.bf16.vlgmr.msra.gmra.mxu0 %v5000_v18  ;;  %16530 = vmatmul.mubr.bf16.vlgmr.msra.gmra.mxu1 %v5002_v19  ;;  %v28267_v51 = vrot.slane %v349_v27, %v26958_v24 }
 0x2e5   : > { %v14572_v37 = vadd.f32 %v14571_v35, %v14532_v14  ;;  %16552 = vmatpush1.bf16.xpose.msra.mxu0 %v25874_v23  ;;  %16592 = vmatpush1.bf16.xpose.msra.mxu1 %v25876_v25  ;;  %v5618_v14 = vld [vmem:[%s26937_s9 + $0x548] sm:$0xff]  ;;  %v28251_v23 = vrot.slane %v2076_v6, %v26958_v24  ;;  %v25887_v25 = vcombine.high %v5617_v8, %v6001_v13  ;;  %v6005_v6 = vld [vmem:[%s26937_s9 + $0x1160] sm:$0x11] }
 0x2e6   : > { %v14573_v38 = vpop.f32.mrf.mxu0  ;;  %v14613_v39 = vpop.f32.mrf.mxu1  ;;  %16569 = vmatprep.mubr.bf16.mxu0 %v5005_v28  ;;  %16609 = vmatprep.mubr.bf16.mxu1 %v5007_v29  ;;  %v25889_v26 = vcombine.high %v5618_v14, %v6002_v15  ;;  %v2093_v35 = vcombine.high %v349_v27, %v349_v27 }
 0x2e7   : > { %v14612_v43 = vadd.f32 %v14611_v36, %v14572_v37  ;;  %16631 = vmatprep.subr.bf16.mxu0 %v25879_v32  ;;  %16671 = vmatprep.subr.bf16.mxu1 %v25881_v33  ;;  %v2091_v33 = vcombine.high %v28248_v22, %v28248_v22  ;;  %v2092_v34 = vcombine.high %v28251_v23, %v28251_v23  ;;  %v5619_v37 = vld [vmem:[%s26937_s9 + $0x550] sm:$0xff] }
 0x2e8   : > { %v14574_v45 = vpop.f32.mrf.mxu0  ;;  %v14614_v46 = vpop.f32.mrf.mxu1  ;;  %v5018_v5 = vpack.c.bf16 %v28251_v23, %v28251_v23 }
 0x2e9   : > { %v25886_v45 = vcombine.low %v5617_v8, %v6001_v13  ;;  %v25888_v46 = vcombine.low %v5618_v14, %v6002_v15  ;;  %v5017_v49 = vpack.c.bf16 %v2091_v33, %v2091_v33  ;;  %v5019_v50 = vpack.c.bf16 %v2092_v34, %v2092_v34  ;;  %v6006_v8 = vld [vmem:[%s26937_s9 + $0x1168] sm:$0x11] }
 0x2ea   : > { %v14575_v54 = vpop.f32.mrf.mxu0  ;;  %v14615_v55 = vpop.f32.mrf.mxu1  ;;  %v5020_v33 = vpack.c.bf16 %v28267_v51, %v28267_v51 }
 0x2eb   : > { %v350_v55 = vld [vmem:[%s26930_s5 + $0x2b0] sm:$0xff] }
 0x2ec   : > { %v14651_v63 = vpop.f32.mrf.mxu0  ;;  %v14691_v0 = vpop.f32.mrf.mxu1  ;;  %16570 = vmatmul.mubr.bf16.vlgmr.msra.gmra.mxu0 %v5004_v47  ;;  %16610 = vmatmul.mubr.bf16.vlgmr.msra.gmra.mxu1 %v5006_v48  ;;  %v28286_v15 = vrot.slane %v350_v55, %v26958_v24 }
 0x2ed   : > { %v14652_v1 = vadd.f32 %v14651_v63, %v14612_v43  ;;  %16632 = vmatpush1.bf16.xpose.msra.mxu0 %v25878_v52  ;;  %16672 = vmatpush1.bf16.xpose.msra.mxu1 %v25880_v53  ;;  %v5620_v43 = vld [vmem:[%s26937_s9 + $0x558] sm:$0xff]  ;;  %v28270_v52 = vrot.slane %v2093_v35, %v26958_v24  ;;  %v25891_v53 = vcombine.high %v5619_v37, %v6003_v42  ;;  %v6007_v35 = vld [vmem:[%s26937_s9 + $0x1170] sm:$0x11] }
 0x2ee   : > { %v14653_v2 = vpop.f32.mrf.mxu0  ;;  %v14693_v3 = vpop.f32.mrf.mxu1  ;;  %16649 = vmatprep.mubr.bf16.mxu0 %v5009_v56  ;;  %16689 = vmatprep.mubr.bf16.mxu1 %v5011_v57  ;;  %v25893_v54 = vcombine.high %v5620_v43, %v6004_v44  ;;  %v2110_v63 = vcombine.high %v350_v55, %v350_v55 }
 0x2ef   : > { %v14692_v7 = vadd.f32 %v14691_v0, %v14652_v1  ;;  %16711 = vmatprep.subr.bf16.mxu0 %v25883_v60  ;;  %16751 = vmatprep.subr.bf16.mxu1 %v25885_v61  ;;  %v2108_v61 = vcombine.high %v28267_v51, %v28267_v51  ;;  %v2109_v62 = vcombine.high %v28270_v52, %v28270_v52  ;;  %v5621_v1 = vld [vmem:[%s26937_s9 + $0x560] sm:$0xff] }
 0x2f0   : > { %v14654_v9 = vpop.f32.mrf.mxu0  ;;  %v14694_v10 = vpop.f32.mrf.mxu1  ;;  %v5022_v34 = vpack.c.bf16 %v28270_v52, %v28270_v52 }
 0x2f1   : > { %v25890_v9 = vcombine.low %v5619_v37, %v6003_v42  ;;  %v25892_v10 = vcombine.low %v5620_v43, %v6004_v44  ;;  %v5021_v13 = vpack.c.bf16 %v2108_v61, %v2108_v61  ;;  %v5023_v14 = vpack.c.bf16 %v2109_v62, %v2109_v62  ;;  %v6008_v37 = vld [vmem:[%s26937_s9 + $0x1178] sm:$0x11] }
 0x2f2   : > { %v14655_v18 = vpop.f32.mrf.mxu0  ;;  %v14695_v19 = vpop.f32.mrf.mxu1  ;;  %v5024_v61 = vpack.c.bf16 %v28286_v15, %v28286_v15 }
 0x2f3   : > { %v351_v19 = vld [vmem:[%s26930_s5 + $0x2b8] sm:$0xff] }
 0x2f4   : > { %v14731_v28 = vpop.f32.mrf.mxu0  ;;  %v14771_v29 = vpop.f32.mrf.mxu1  ;;  %16650 = vmatmul.mubr.bf16.vlgmr.msra.gmra.mxu0 %v5008_v11  ;;  %16690 = vmatmul.mubr.bf16.vlgmr.msra.gmra.mxu1 %v5010_v12  ;;  %v28305_v44 = vrot.slane %v351_v19, %v26958_v24 }
 0x2f5   : > { %v14732_v30 = vadd.f32 %v14731_v28, %v14692_v7  ;;  %16712 = vmatpush1.bf16.xpose.msra.mxu0 %v25882_v16  ;;  %16752 = vmatpush1.bf16.xpose.msra.mxu1 %v25884_v17  ;;  %v5622_v7 = vld [vmem:[%s26937_s9 + $0x568] sm:$0xff]  ;;  %v28289_v16 = vrot.slane %v2110_v63, %v26958_v24  ;;  %v25895_v17 = vcombine.high %v5621_v1, %v6005_v6  ;;  %v6009_v63 = vld [vmem:[%s26937_s9 + $0x1180] sm:$0x11] }
 0x2f6   : > { %v14733_v31 = vpop.f32.mrf.mxu0  ;;  %v14773_v32 = vpop.f32.mrf.mxu1  ;;  %16729 = vmatprep.mubr.bf16.mxu0 %v5013_v20  ;;  %16769 = vmatprep.mubr.bf16.mxu1 %v5015_v21  ;;  %v25897_v18 = vcombine.high %v5622_v7, %v6006_v8  ;;  %v2127_v28 = vcombine.high %v351_v19, %v351_v19 }
 0x2f7   : > { %v14772_v36 = vadd.f32 %v14771_v29, %v14732_v30  ;;  %16791 = vmatprep.subr.bf16.mxu0 %v25887_v25  ;;  %16831 = vmatprep.subr.bf16.mxu1 %v25889_v26  ;;  %v2125_v26 = vcombine.high %v28286_v15, %v28286_v15  ;;  %v2126_v27 = vcombine.high %v28289_v16, %v28289_v16  ;;  %v5623_v30 = vld [vmem:[%s26937_s9 + $0x570] sm:$0xff] }
 0x2f8   : > { %v14734_v38 = vpop.f32.mrf.mxu0  ;;  %v14774_v39 = vpop.f32.mrf.mxu1  ;;  %v5026_v62 = vpack.c.bf16 %v28289_v16, %v28289_v16 }
 0x2f9   : > { %v25894_v38 = vcombine.low %v5621_v1, %v6005_v6  ;;  %v25896_v39 = vcombine.low %v5622_v7, %v6006_v8  ;;  %v5025_v42 = vpack.c.bf16 %v2125_v26, %v2125_v26  ;;  %v5027_v43 = vpack.c.bf16 %v2126_v27, %v2126_v27  ;;  %v6010_v1 = vld [vmem:[%s26937_s9 + $0x1188] sm:$0x11] }
 0x2fa   : > { %v14735_v47 = vpop.f32.mrf.mxu0  ;;  %v14775_v48 = vpop.f32.mrf.mxu1  ;;  %v5028_v26 = vpack.c.bf16 %v28305_v44, %v28305_v44 }
 0x2fb   : > { %v352_v48 = vld [vmem:[%s26930_s5 + $0x2c0] sm:$0xff] }
 0x2fc   : > { %v14811_v56 = vpop.f32.mrf.mxu0  ;;  %v14851_v57 = vpop.f32.mrf.mxu1  ;;  %16730 = vmatmul.mubr.bf16.vlgmr.msra.gmra.mxu0 %v5012_v40  ;;  %16770 = vmatmul.mubr.bf16.vlgmr.msra.gmra.mxu1 %v5014_v41  ;;  %v28324_v8 = vrot.slane %v352_v48, %v26958_v24 }
 0x2fd   : > { %v14812_v58 = vadd.f32 %v14811_v56, %v14772_v36  ;;  %16792 = vmatpush1.bf16.xpose.msra.mxu0 %v25886_v45  ;;  %16832 = vmatpush1.bf16.xpose.msra.mxu1 %v25888_v46  ;;  %v5624_v36 = vld [vmem:[%s26937_s9 + $0x578] sm:$0xff]  ;;  %v28308_v45 = vrot.slane %v2127_v28, %v26958_v24  ;;  %v25899_v46 = vcombine.high %v5623_v30, %v6007_v35  ;;  %v6011_v28 = vld [vmem:[%s26937_s9 + $0x1190] sm:$0x11] }
 0x2fe   : > { %v14813_v59 = vpop.f32.mrf.mxu0  ;;  %v14853_v60 = vpop.f32.mrf.mxu1  ;;  %16809 = vmatprep.mubr.bf16.mxu0 %v5017_v49  ;;  %16849 = vmatprep.mubr.bf16.mxu1 %v5019_v50  ;;  %v25901_v47 = vcombine.high %v5624_v36, %v6008_v37  ;;  %v2144_v56 = vcombine.high %v352_v48, %v352_v48 }
 0x2ff   : > { %v14852_v0 = vadd.f32 %v14851_v57, %v14812_v58  ;;  %16871 = vmatprep.subr.bf16.mxu0 %v25891_v53  ;;  %16911 = vmatprep.subr.bf16.mxu1 %v25893_v54  ;;  %v2142_v54 = vcombine.high %v28305_v44, %v28305_v44  ;;  %v2143_v55 = vcombine.high %v28308_v45, %v28308_v45  ;;  %v5625_v58 = vld [vmem:[%s26937_s9 + $0x580] sm:$0xff] }
 0x300   : > { %v14814_v2 = vpop.f32.mrf.mxu0  ;;  %v14854_v3 = vpop.f32.mrf.mxu1  ;;  %v5030_v27 = vpack.c.bf16 %v28308_v45, %v28308_v45 }
 0x301   : > { %v25898_v2 = vcombine.low %v5623_v30, %v6007_v35  ;;  %v25900_v3 = vcombine.low %v5624_v36, %v6008_v37  ;;  %v5029_v6 = vpack.c.bf16 %v2142_v54, %v2142_v54  ;;  %v5031_v7 = vpack.c.bf16 %v2143_v55, %v2143_v55  ;;  %v6012_v30 = vld [vmem:[%s26937_s9 + $0x1198] sm:$0x11] }
 0x302   : > { %v14815_v11 = vpop.f32.mrf.mxu0  ;;  %v14855_v12 = vpop.f32.mrf.mxu1  ;;  %v5032_v54 = vpack.c.bf16 %v28324_v8, %v28324_v8 }
 0x303   : > { %v353_v12 = vld [vmem:[%s26930_s5 + $0x2c8] sm:$0xff] }
 0x304   : > { %v14891_v20 = vpop.f32.mrf.mxu0  ;;  %v14931_v21 = vpop.f32.mrf.mxu1  ;;  %16810 = vmatmul.mubr.bf16.vlgmr.msra.gmra.mxu0 %v5016_v4  ;;  %16850 = vmatmul.mubr.bf16.vlgmr.msra.gmra.mxu1 %v5018_v5  ;;  %v28343_v37 = vrot.slane %v353_v12, %v26958_v24 }
 0x305   : > { %v14892_v22 = vadd.f32 %v14891_v20, %v14852_v0  ;;  %16872 = vmatpush1.bf16.xpose.msra.mxu0 %v25890_v9  ;;  %16912 = vmatpush1.bf16.xpose.msra.mxu1 %v25892_v10  ;;  %v5626_v0 = vld [vmem:[%s26937_s9 + $0x588] sm:$0xff]  ;;  %v28327_v9 = vrot.slane %v2144_v56, %v26958_v24  ;;  %v25903_v10 = vcombine.high %v5625_v58, %v6009_v63  ;;  %v6013_v56 = vld [vmem:[%s26937_s9 + $0x11a0] sm:$0x11] }
 0x306   : > { %v14893_v23 = vpop.f32.mrf.mxu0  ;;  %v14933_v25 = vpop.f32.mrf.mxu1  ;;  %16889 = vmatprep.mubr.bf16.mxu0 %v5021_v13  ;;  %16929 = vmatprep.mubr.bf16.mxu1 %v5023_v14  ;;  %v25905_v11 = vcombine.high %v5626_v0, %v6010_v1  ;;  %v2161_v20 = vcombine.high %v353_v12, %v353_v12 }
 0x307   : > { %v14932_v29 = vadd.f32 %v14931_v21, %v14892_v22  ;;  %16951 = vmatprep.subr.bf16.mxu0 %v25895_v17  ;;  %16991 = vmatprep.subr.bf16.mxu1 %v25897_v18  ;;  %v2159_v18 = vcombine.high %v28324_v8, %v28324_v8  ;;  %v2160_v19 = vcombine.high %v28327_v9, %v28327_v9  ;;  %v5627_v22 = vld [vmem:[%s26937_s9 + $0x590] sm:$0xff] }
 0x308   : > { %v14894_v31 = vpop.f32.mrf.mxu0  ;;  %v14934_v32 = vpop.f32.mrf.mxu1  ;;  %v5034_v55 = vpack.c.bf16 %v28327_v9, %v28327_v9 }
 0x309   : > { %v25902_v31 = vcombine.low %v5625_v58, %v6009_v63  ;;  %v25904_v32 = vcombine.low %v5626_v0, %v6010_v1  ;;  %v5033_v35 = vpack.c.bf16 %v2159_v18, %v2159_v18  ;;  %v5035_v36 = vpack.c.bf16 %v2160_v19, %v2160_v19  ;;  %v6014_v58 = vld [vmem:[%s26937_s9 + $0x11a8] sm:$0x11] }
 0x30a   : > { %v14895_v40 = vpop.f32.mrf.mxu0  ;;  %v14935_v41 = vpop.f32.mrf.mxu1  ;;  %v5036_v18 = vpack.c.bf16 %v28343_v37, %v28343_v37 }
 0x30b   : > { %v354_v41 = vld [vmem:[%s26930_s5 + $0x2d0] sm:$0xff] }
 0x30c   : > { %v14971_v49 = vpop.f32.mrf.mxu0  ;;  %v15011_v50 = vpop.f32.mrf.mxu1  ;;  %16890 = vmatmul.mubr.bf16.vlgmr.msra.gmra.mxu0 %v5020_v33  ;;  %16930 = vmatmul.mubr.bf16.vlgmr.msra.gmra.mxu1 %v5022_v34  ;;  %v28362_v1 = vrot.slane %v354_v41, %v26958_v24 }
 0x30d   : > { %v14972_v51 = vadd.f32 %v14971_v49, %v14932_v29  ;;  %16952 = vmatpush1.bf16.xpose.msra.mxu0 %v25894_v38  ;;  %16992 = vmatpush1.bf16.xpose.msra.mxu1 %v25896_v39  ;;  %v5628_v29 = vld [vmem:[%s26937_s9 + $0x598] sm:$0xff]  ;;  %v28346_v38 = vrot.slane %v2161_v20, %v26958_v24  ;;  %v25907_v39 = vcombine.high %v5627_v22, %v6011_v28  ;;  %v6015_v20 = vld [vmem:[%s26937_s9 + $0x11b0] sm:$0x11] }
 0x30e   : > { %v14973_v52 = vpop.f32.mrf.mxu0  ;;  %v15013_v53 = vpop.f32.mrf.mxu1  ;;  %16969 = vmatprep.mubr.bf16.mxu0 %v5025_v42  ;;  %17009 = vmatprep.mubr.bf16.mxu1 %v5027_v43  ;;  %v25909_v40 = vcombine.high %v5628_v29, %v6012_v30  ;;  %v2178_v49 = vcombine.high %v354_v41, %v354_v41 }
 0x30f   : > { %v15012_v57 = vadd.f32 %v15011_v50, %v14972_v51  ;;  %17031 = vmatprep.subr.bf16.mxu0 %v25899_v46  ;;  %17071 = vmatprep.subr.bf16.mxu1 %v25901_v47  ;;  %v2176_v47 = vcombine.high %v28343_v37, %v28343_v37  ;;  %v2177_v48 = vcombine.high %v28346_v38, %v28346_v38  ;;  %v5629_v51 = vld [vmem:[%s26937_s9 + $0x5a0] sm:$0xff] }
 0x310   : > { %v14974_v59 = vpop.f32.mrf.mxu0  ;;  %v15014_v60 = vpop.f32.mrf.mxu1  ;;  %v5038_v19 = vpack.c.bf16 %v28346_v38, %v28346_v38 }
 0x311   : > { %v25906_v59 = vcombine.low %v5627_v22, %v6011_v28  ;;  %v25908_v60 = vcombine.low %v5628_v29, %v6012_v30  ;;  %v5037_v63 = vpack.c.bf16 %v2176_v47, %v2176_v47  ;;  %v5039_v0 = vpack.c.bf16 %v2177_v48, %v2177_v48  ;;  %v6016_v22 = vld [vmem:[%s26937_s9 + $0x11b8] sm:$0x11] }
 0x312   : > { %v14975_v4 = vpop.f32.mrf.mxu0  ;;  %v15015_v5 = vpop.f32.mrf.mxu1  ;;  %v5040_v47 = vpack.c.bf16 %v28362_v1, %v28362_v1 }
 0x313   : > { %v355_v5 = vld [vmem:[%s26930_s5 + $0x2d8] sm:$0xff] }
 0x314   : > { %v15051_v13 = vpop.f32.mrf.mxu0  ;;  %v15091_v14 = vpop.f32.mrf.mxu1  ;;  %16970 = vmatmul.mubr.bf16.vlgmr.msra.gmra.mxu0 %v5024_v61  ;;  %17010 = vmatmul.mubr.bf16.vlgmr.msra.gmra.mxu1 %v5026_v62  ;;  %v28381_v30 = vrot.slane %v355_v5, %v26958_v24 }
 0x315   : > { %v15052_v15 = vadd.f32 %v15051_v13, %v15012_v57  ;;  %17032 = vmatpush1.bf16.xpose.msra.mxu0 %v25898_v2  ;;  %17072 = vmatpush1.bf16.xpose.msra.mxu1 %v25900_v3  ;;  %v5630_v57 = vld [vmem:[%s26937_s9 + $0x5a8] sm:$0xff]  ;;  %v28365_v2 = vrot.slane %v2178_v49, %v26958_v24  ;;  %v25911_v3 = vcombine.high %v5629_v51, %v6013_v56  ;;  %v6017_v49 = vld [vmem:[%s26937_s9 + $0x11c0] sm:$0x11] }
 0x316   : > { %v15053_v16 = vpop.f32.mrf.mxu0  ;;  %v15093_v17 = vpop.f32.mrf.mxu1  ;;  %17049 = vmatprep.mubr.bf16.mxu0 %v5029_v6  ;;  %17089 = vmatprep.mubr.bf16.mxu1 %v5031_v7  ;;  %v25913_v4 = vcombine.high %v5630_v57, %v6014_v58  ;;  %v2195_v13 = vcombine.high %v355_v5, %v355_v5 }
 0x317   : > { %v15092_v21 = vadd.f32 %v15091_v14, %v15052_v15  ;;  %17111 = vmatprep.subr.bf16.mxu0 %v25903_v10  ;;  %17151 = vmatprep.subr.bf16.mxu1 %v25905_v11  ;;  %v2193_v11 = vcombine.high %v28362_v1, %v28362_v1  ;;  %v2194_v12 = vcombine.high %v28365_v2, %v28365_v2  ;;  %v5631_v15 = vld [vmem:[%s26937_s9 + $0x5b0] sm:$0xff] }
 0x318   : > { %v15054_v23 = vpop.f32.mrf.mxu0  ;;  %v15094_v25 = vpop.f32.mrf.mxu1  ;;  %v5042_v48 = vpack.c.bf16 %v28365_v2, %v28365_v2 }
 0x319   : > { %v25910_v23 = vcombine.low %v5629_v51, %v6013_v56  ;;  %v25912_v25 = vcombine.low %v5630_v57, %v6014_v58  ;;  %v5041_v28 = vpack.c.bf16 %v2193_v11, %v2193_v11  ;;  %v5043_v29 = vpack.c.bf16 %v2194_v12, %v2194_v12  ;;  %v6018_v51 = vld [vmem:[%s26937_s9 + $0x11c8] sm:$0x11] }
 0x31a   : > { %v15055_v33 = vpop.f32.mrf.mxu0  ;;  %v15095_v34 = vpop.f32.mrf.mxu1  ;;  %v5044_v11 = vpack.c.bf16 %v28381_v30, %v28381_v30 }
 0x31b   : > { %v356_v34 = vld [vmem:[%s26930_s5 + $0x2e0] sm:$0xff] }
 0x31c   : > { %v15131_v42 = vpop.f32.mrf.mxu0  ;;  %v15171_v43 = vpop.f32.mrf.mxu1  ;;  %17050 = vmatmul.mubr.bf16.vlgmr.msra.gmra.mxu0 %v5028_v26  ;;  %17090 = vmatmul.mubr.bf16.vlgmr.msra.gmra.mxu1 %v5030_v27  ;;  %v28400_v58 = vrot.slane %v356_v34, %v26958_v24 }
 0x31d   : > { %v15132_v44 = vadd.f32 %v15131_v42, %v15092_v21  ;;  %17112 = vmatpush1.bf16.xpose.msra.mxu0 %v25902_v31  ;;  %17152 = vmatpush1.bf16.xpose.msra.mxu1 %v25904_v32  ;;  %v5632_v21 = vld [vmem:[%s26937_s9 + $0x5b8] sm:$0xff]  ;;  %v28384_v31 = vrot.slane %v2195_v13, %v26958_v24  ;;  %v25915_v32 = vcombine.high %v5631_v15, %v6015_v20  ;;  %v6019_v13 = vld [vmem:[%s26937_s9 + $0x11d0] sm:$0x11] }
 0x31e   : > { %v15133_v45 = vpop.f32.mrf.mxu0  ;;  %v15173_v46 = vpop.f32.mrf.mxu1  ;;  %17129 = vmatprep.mubr.bf16.mxu0 %v5033_v35  ;;  %17169 = vmatprep.mubr.bf16.mxu1 %v5035_v36  ;;  %v25917_v33 = vcombine.high %v5632_v21, %v6016_v22  ;;  %v2212_v42 = vcombine.high %v356_v34, %v356_v34 }
 0x31f   : > { %v15172_v50 = vadd.f32 %v15171_v43, %v15132_v44  ;;  %17191 = vmatprep.subr.bf16.mxu0 %v25907_v39  ;;  %17231 = vmatprep.subr.bf16.mxu1 %v25909_v40  ;;  %v2210_v40 = vcombine.high %v28381_v30, %v28381_v30  ;;  %v2211_v41 = vcombine.high %v28384_v31, %v28384_v31  ;;  %v5633_v44 = vld [vmem:[%s26937_s9 + $0x5c0] sm:$0xff] }
 0x320   : > { %v15134_v52 = vpop.f32.mrf.mxu0  ;;  %v15174_v53 = vpop.f32.mrf.mxu1  ;;  %v5046_v12 = vpack.c.bf16 %v28384_v31, %v28384_v31 }
 0x321   : > { %v25914_v52 = vcombine.low %v5631_v15, %v6015_v20  ;;  %v25916_v53 = vcombine.low %v5632_v21, %v6016_v22  ;;  %v5045_v56 = vpack.c.bf16 %v2210_v40, %v2210_v40  ;;  %v5047_v57 = vpack.c.bf16 %v2211_v41, %v2211_v41  ;;  %v6020_v15 = vld [vmem:[%s26937_s9 + $0x11d8] sm:$0x11] }
 0x322   : > { %v15135_v61 = vpop.f32.mrf.mxu0  ;;  %v15175_v62 = vpop.f32.mrf.mxu1  ;;  %v5048_v40 = vpack.c.bf16 %v28400_v58, %v28400_v58 }
 0x323   : > { %v357_v62 = vld [vmem:[%s26930_s5 + $0x2e8] sm:$0xff] }
 0x324   : > { %v15211_v6 = vpop.f32.mrf.mxu0  ;;  %v15251_v7 = vpop.f32.mrf.mxu1  ;;  %17130 = vmatmul.mubr.bf16.vlgmr.msra.gmra.mxu0 %v5032_v54  ;;  %17170 = vmatmul.mubr.bf16.vlgmr.msra.gmra.mxu1 %v5034_v55  ;;  %v28419_v22 = vrot.slane %v357_v62, %v26958_v24 }
 0x325   : > { %v15212_v8 = vadd.f32 %v15211_v6, %v15172_v50  ;;  %17192 = vmatpush1.bf16.xpose.msra.mxu0 %v25906_v59  ;;  %17232 = vmatpush1.bf16.xpose.msra.mxu1 %v25908_v60  ;;  %v5634_v50 = vld [vmem:[%s26937_s9 + $0x5c8] sm:$0xff]  ;;  %v28403_v59 = vrot.slane %v2212_v42, %v26958_v24  ;;  %v25919_v60 = vcombine.high %v5633_v44, %v6017_v49  ;;  %v6021_v42 = vld [vmem:[%s26937_s9 + $0x11e0] sm:$0x11] }
 0x326   : > { %v15213_v9 = vpop.f32.mrf.mxu0  ;;  %v15253_v10 = vpop.f32.mrf.mxu1  ;;  %17209 = vmatprep.mubr.bf16.mxu0 %v5037_v63  ;;  %17249 = vmatprep.mubr.bf16.mxu1 %v5039_v0  ;;  %v25921_v61 = vcombine.high %v5634_v50, %v6018_v51  ;;  %v2229_v6 = vcombine.high %v357_v62, %v357_v62 }
 0x327   : > { %v15252_v14 = vadd.f32 %v15251_v7, %v15212_v8  ;;  %17271 = vmatprep.subr.bf16.mxu0 %v25911_v3  ;;  %17311 = vmatprep.subr.bf16.mxu1 %v25913_v4  ;;  %v2227_v4 = vcombine.high %v28400_v58, %v28400_v58  ;;  %v2228_v5 = vcombine.high %v28403_v59, %v28403_v59  ;;  %v5635_v8 = vld [vmem:[%s26937_s9 + $0x5d0] sm:$0xff] }
 0x328   : > { %v15214_v16 = vpop.f32.mrf.mxu0  ;;  %v15254_v17 = vpop.f32.mrf.mxu1  ;;  %v5050_v41 = vpack.c.bf16 %v28403_v59, %v28403_v59 }
 0x329   : > { %v25918_v16 = vcombine.low %v5633_v44, %v6017_v49  ;;  %v25920_v17 = vcombine.low %v5634_v50, %v6018_v51  ;;  %v5049_v20 = vpack.c.bf16 %v2227_v4, %v2227_v4  ;;  %v5051_v21 = vpack.c.bf16 %v2228_v5, %v2228_v5  ;;  %v6022_v44 = vld [vmem:[%s26937_s9 + $0x11e8] sm:$0x11] }
 0x32a   : > { %v15215_v26 = vpop.f32.mrf.mxu0  ;;  %v15255_v27 = vpop.f32.mrf.mxu1  ;;  %v5052_v4 = vpack.c.bf16 %v28419_v22, %v28419_v22 }
 0x32b   : > { %v358_v27 = vld [vmem:[%s26930_s5 + $0x2f0] sm:$0xff] }
 0x32c   : > { %v15291_v35 = vpop.f32.mrf.mxu0  ;;  %v15331_v36 = vpop.f32.mrf.mxu1  ;;  %17210 = vmatmul.mubr.bf16.vlgmr.msra.gmra.mxu0 %v5036_v18  ;;  %17250 = vmatmul.mubr.bf16.vlgmr.msra.gmra.mxu1 %v5038_v19  ;;  %v28438_v51 = vrot.slane %v358_v27, %v26958_v24 }
 0x32d   : > { %v15292_v37 = vadd.f32 %v15291_v35, %v15252_v14  ;;  %17272 = vmatpush1.bf16.xpose.msra.mxu0 %v25910_v23  ;;  %17312 = vmatpush1.bf16.xpose.msra.mxu1 %v25912_v25  ;;  %v5636_v14 = vld [vmem:[%s26937_s9 + $0x5d8] sm:$0xff]  ;;  %v28422_v23 = vrot.slane %v2229_v6, %v26958_v24  ;;  %v25923_v25 = vcombine.high %v5635_v8, %v6019_v13  ;;  %v6023_v6 = vld [vmem:[%s26937_s9 + $0x11f0] sm:$0x11] }
 0x32e   : > { %v15293_v38 = vpop.f32.mrf.mxu0  ;;  %v15333_v39 = vpop.f32.mrf.mxu1  ;;  %17289 = vmatprep.mubr.bf16.mxu0 %v5041_v28  ;;  %17329 = vmatprep.mubr.bf16.mxu1 %v5043_v29  ;;  %v25925_v26 = vcombine.high %v5636_v14, %v6020_v15  ;;  %v2246_v35 = vcombine.high %v358_v27, %v358_v27 }
 0x32f   : > { %v15332_v43 = vadd.f32 %v15331_v36, %v15292_v37  ;;  %17351 = vmatprep.subr.bf16.mxu0 %v25915_v32  ;;  %17391 = vmatprep.subr.bf16.mxu1 %v25917_v33  ;;  %v2244_v33 = vcombine.high %v28419_v22, %v28419_v22  ;;  %v2245_v34 = vcombine.high %v28422_v23, %v28422_v23  ;;  %v5637_v37 = vld [vmem:[%s26937_s9 + $0x5e0] sm:$0xff] }
 0x330   : > { %v15294_v45 = vpop.f32.mrf.mxu0  ;;  %v15334_v46 = vpop.f32.mrf.mxu1  ;;  %v5054_v5 = vpack.c.bf16 %v28422_v23, %v28422_v23 }
 0x331   : > { %v25922_v45 = vcombine.low %v5635_v8, %v6019_v13  ;;  %v25924_v46 = vcombine.low %v5636_v14, %v6020_v15  ;;  %v5053_v49 = vpack.c.bf16 %v2244_v33, %v2244_v33  ;;  %v5055_v50 = vpack.c.bf16 %v2245_v34, %v2245_v34  ;;  %v6024_v8 = vld [vmem:[%s26937_s9 + $0x11f8] sm:$0x11] }
 0x332   : > { %v15295_v54 = vpop.f32.mrf.mxu0  ;;  %v15335_v55 = vpop.f32.mrf.mxu1  ;;  %v5056_v33 = vpack.c.bf16 %v28438_v51, %v28438_v51 }
 0x333   : > { %v359_v55 = vld [vmem:[%s26930_s5 + $0x2f8] sm:$0xff] }
 0x334   : > { %v15371_v63 = vpop.f32.mrf.mxu0  ;;  %v15411_v0 = vpop.f32.mrf.mxu1  ;;  %17290 = vmatmul.mubr.bf16.vlgmr.msra.gmra.mxu0 %v5040_v47  ;;  %17330 = vmatmul.mubr.bf16.vlgmr.msra.gmra.mxu1 %v5042_v48  ;;  %v28457_v15 = vrot.slane %v359_v55, %v26958_v24 }
 0x335   : > { %v15372_v1 = vadd.f32 %v15371_v63, %v15332_v43  ;;  %17352 = vmatpush1.bf16.xpose.msra.mxu0 %v25914_v52  ;;  %17392 = vmatpush1.bf16.xpose.msra.mxu1 %v25916_v53  ;;  %v5638_v43 = vld [vmem:[%s26937_s9 + $0x5e8] sm:$0xff]  ;;  %v28441_v52 = vrot.slane %v2246_v35, %v26958_v24  ;;  %v25927_v53 = vcombine.high %v5637_v37, %v6021_v42  ;;  %v6025_v35 = vld [vmem:[%s26937_s9 + $0x1200] sm:$0x11] }
 0x336   : > { %v15373_v2 = vpop.f32.mrf.mxu0  ;;  %v15413_v3 = vpop.f32.mrf.mxu1  ;;  %17369 = vmatprep.mubr.bf16.mxu0 %v5045_v56  ;;  %17409 = vmatprep.mubr.bf16.mxu1 %v5047_v57  ;;  %v25929_v54 = vcombine.high %v5638_v43, %v6022_v44  ;;  %v2263_v63 = vcombine.high %v359_v55, %v359_v55 }
 0x337   : > { %v15412_v7 = vadd.f32 %v15411_v0, %v15372_v1  ;;  %17431 = vmatprep.subr.bf16.mxu0 %v25919_v60  ;;  %17471 = vmatprep.subr.bf16.mxu1 %v25921_v61  ;;  %v2261_v61 = vcombine.high %v28438_v51, %v28438_v51  ;;  %v2262_v62 = vcombine.high %v28441_v52, %v28441_v52  ;;  %v5639_v1 = vld [vmem:[%s26937_s9 + $0x5f0] sm:$0xff] }
 0x338   : > { %v15374_v9 = vpop.f32.mrf.mxu0  ;;  %v15414_v10 = vpop.f32.mrf.mxu1  ;;  %v5058_v34 = vpack.c.bf16 %v28441_v52, %v28441_v52 }
 0x339   : > { %v25926_v9 = vcombine.low %v5637_v37, %v6021_v42  ;;  %v25928_v10 = vcombine.low %v5638_v43, %v6022_v44  ;;  %v5057_v13 = vpack.c.bf16 %v2261_v61, %v2261_v61  ;;  %v5059_v14 = vpack.c.bf16 %v2262_v62, %v2262_v62  ;;  %v6026_v37 = vld [vmem:[%s26937_s9 + $0x1208] sm:$0x11] }
 0x33a   : > { %v15375_v18 = vpop.f32.mrf.mxu0  ;;  %v15415_v19 = vpop.f32.mrf.mxu1  ;;  %v5060_v61 = vpack.c.bf16 %v28457_v15, %v28457_v15 }
 0x33b   : > { %v360_v19 = vld [vmem:[%s26930_s5 + $0x300] sm:$0xff] }
 0x33c   : > { %v15451_v28 = vpop.f32.mrf.mxu0  ;;  %v15491_v29 = vpop.f32.mrf.mxu1  ;;  %17370 = vmatmul.mubr.bf16.vlgmr.msra.gmra.mxu0 %v5044_v11  ;;  %17410 = vmatmul.mubr.bf16.vlgmr.msra.gmra.mxu1 %v5046_v12  ;;  %v28476_v44 = vrot.slane %v360_v19, %v26958_v24 }
 0x33d   : > { %v15452_v30 = vadd.f32 %v15451_v28, %v15412_v7  ;;  %17432 = vmatpush1.bf16.xpose.msra.mxu0 %v25918_v16  ;;  %17472 = vmatpush1.bf16.xpose.msra.mxu1 %v25920_v17  ;;  %v5640_v7 = vld [vmem:[%s26937_s9 + $0x5f8] sm:$0xff]  ;;  %v28460_v16 = vrot.slane %v2263_v63, %v26958_v24  ;;  %v25931_v17 = vcombine.high %v5639_v1, %v6023_v6  ;;  %v6027_v63 = vld [vmem:[%s26937_s9 + $0x1210] sm:$0x11] }
 0x33e   : > { %v15453_v31 = vpop.f32.mrf.mxu0  ;;  %v15493_v32 = vpop.f32.mrf.mxu1  ;;  %17449 = vmatprep.mubr.bf16.mxu0 %v5049_v20  ;;  %17489 = vmatprep.mubr.bf16.mxu1 %v5051_v21  ;;  %v25933_v18 = vcombine.high %v5640_v7, %v6024_v8  ;;  %v2280_v28 = vcombine.high %v360_v19, %v360_v19 }
 0x33f   : > { %v15492_v36 = vadd.f32 %v15491_v29, %v15452_v30  ;;  %17511 = vmatprep.subr.bf16.mxu0 %v25923_v25  ;;  %17551 = vmatprep.subr.bf16.mxu1 %v25925_v26  ;;  %v2278_v26 = vcombine.high %v28457_v15, %v28457_v15  ;;  %v2279_v27 = vcombine.high %v28460_v16, %v28460_v16  ;;  %v5641_v30 = vld [vmem:[%s26937_s9 + $0x600] sm:$0xff] }
 0x340   : > { %v15454_v38 = vpop.f32.mrf.mxu0  ;;  %v15494_v39 = vpop.f32.mrf.mxu1  ;;  %v5062_v62 = vpack.c.bf16 %v28460_v16, %v28460_v16 }
 0x341   : > { %v25930_v38 = vcombine.low %v5639_v1, %v6023_v6  ;;  %v25932_v39 = vcombine.low %v5640_v7, %v6024_v8  ;;  %v5061_v42 = vpack.c.bf16 %v2278_v26, %v2278_v26  ;;  %v5063_v43 = vpack.c.bf16 %v2279_v27, %v2279_v27  ;;  %v6028_v1 = vld [vmem:[%s26937_s9 + $0x1218] sm:$0x11] }
 0x342   : > { %v15455_v47 = vpop.f32.mrf.mxu0  ;;  %v15495_v48 = vpop.f32.mrf.mxu1  ;;  %v5064_v26 = vpack.c.bf16 %v28476_v44, %v28476_v44 }
 0x343   : > { %v361_v48 = vld [vmem:[%s26930_s5 + $0x308] sm:$0xff] }
 0x344   : > { %v15531_v56 = vpop.f32.mrf.mxu0  ;;  %v15571_v57 = vpop.f32.mrf.mxu1  ;;  %17450 = vmatmul.mubr.bf16.vlgmr.msra.gmra.mxu0 %v5048_v40  ;;  %17490 = vmatmul.mubr.bf16.vlgmr.msra.gmra.mxu1 %v5050_v41  ;;  %v28495_v8 = vrot.slane %v361_v48, %v26958_v24 }
 0x345   : > { %v15532_v58 = vadd.f32 %v15531_v56, %v15492_v36  ;;  %17512 = vmatpush1.bf16.xpose.msra.mxu0 %v25922_v45  ;;  %17552 = vmatpush1.bf16.xpose.msra.mxu1 %v25924_v46  ;;  %v5642_v36 = vld [vmem:[%s26937_s9 + $0x608] sm:$0xff]  ;;  %v28479_v45 = vrot.slane %v2280_v28, %v26958_v24  ;;  %v25935_v46 = vcombine.high %v5641_v30, %v6025_v35  ;;  %v6029_v28 = vld [vmem:[%s26937_s9 + $0x1220] sm:$0x11] }
 0x346   : > { %v15533_v59 = vpop.f32.mrf.mxu0  ;;  %v15573_v60 = vpop.f32.mrf.mxu1  ;;  %17529 = vmatprep.mubr.bf16.mxu0 %v5053_v49  ;;  %17569 = vmatprep.mubr.bf16.mxu1 %v5055_v50  ;;  %v25937_v47 = vcombine.high %v5642_v36, %v6026_v37  ;;  %v2297_v56 = vcombine.high %v361_v48, %v361_v48 }
 0x347   : > { %v15572_v0 = vadd.f32 %v15571_v57, %v15532_v58  ;;  %17591 = vmatprep.subr.bf16.mxu0 %v25927_v53  ;;  %17631 = vmatprep.subr.bf16.mxu1 %v25929_v54  ;;  %v2295_v54 = vcombine.high %v28476_v44, %v28476_v44  ;;  %v2296_v55 = vcombine.high %v28479_v45, %v28479_v45  ;;  %v5643_v58 = vld [vmem:[%s26937_s9 + $0x610] sm:$0xff] }
 0x348   : > { %v15534_v2 = vpop.f32.mrf.mxu0  ;;  %v15574_v3 = vpop.f32.mrf.mxu1  ;;  %v5066_v27 = vpack.c.bf16 %v28479_v45, %v28479_v45 }
 0x349   : > { %v25934_v2 = vcombine.low %v5641_v30, %v6025_v35  ;;  %v25936_v3 = vcombine.low %v5642_v36, %v6026_v37  ;;  %v5065_v6 = vpack.c.bf16 %v2295_v54, %v2295_v54  ;;  %v5067_v7 = vpack.c.bf16 %v2296_v55, %v2296_v55  ;;  %v6030_v30 = vld [vmem:[%s26937_s9 + $0x1228] sm:$0x11] }
 0x34a   : > { %v15535_v11 = vpop.f32.mrf.mxu0  ;;  %v15575_v12 = vpop.f32.mrf.mxu1  ;;  %v5068_v54 = vpack.c.bf16 %v28495_v8, %v28495_v8 }
 0x34b   : > { %v362_v12 = vld [vmem:[%s26930_s5 + $0x310] sm:$0xff] }
 0x34c   : > { %v15611_v20 = vpop.f32.mrf.mxu0  ;;  %v15651_v21 = vpop.f32.mrf.mxu1  ;;  %17530 = vmatmul.mubr.bf16.vlgmr.msra.gmra.mxu0 %v5052_v4  ;;  %17570 = vmatmul.mubr.bf16.vlgmr.msra.gmra.mxu1 %v5054_v5  ;;  %v28514_v37 = vrot.slane %v362_v12, %v26958_v24 }
 0x34d   : > { %v15612_v22 = vadd.f32 %v15611_v20, %v15572_v0  ;;  %17592 = vmatpush1.bf16.xpose.msra.mxu0 %v25926_v9  ;;  %17632 = vmatpush1.bf16.xpose.msra.mxu1 %v25928_v10  ;;  %v5644_v0 = vld [vmem:[%s26937_s9 + $0x618] sm:$0xff]  ;;  %v28498_v9 = vrot.slane %v2297_v56, %v26958_v24  ;;  %v25939_v10 = vcombine.high %v5643_v58, %v6027_v63  ;;  %v6031_v56 = vld [vmem:[%s26937_s9 + $0x1230] sm:$0x11] }
 0x34e   : > { %v15613_v23 = vpop.f32.mrf.mxu0  ;;  %v15653_v25 = vpop.f32.mrf.mxu1  ;;  %17609 = vmatprep.mubr.bf16.mxu0 %v5057_v13  ;;  %17649 = vmatprep.mubr.bf16.mxu1 %v5059_v14  ;;  %v25941_v11 = vcombine.high %v5644_v0, %v6028_v1  ;;  %v2314_v20 = vcombine.high %v362_v12, %v362_v12 }
 0x34f   : > { %v15652_v29 = vadd.f32 %v15651_v21, %v15612_v22  ;;  %17671 = vmatprep.subr.bf16.mxu0 %v25931_v17  ;;  %17711 = vmatprep.subr.bf16.mxu1 %v25933_v18  ;;  %v2312_v18 = vcombine.high %v28495_v8, %v28495_v8  ;;  %v2313_v19 = vcombine.high %v28498_v9, %v28498_v9  ;;  %v5645_v22 = vld [vmem:[%s26937_s9 + $0x620] sm:$0xff] }
 0x350   : > { %v15614_v31 = vpop.f32.mrf.mxu0  ;;  %v15654_v32 = vpop.f32.mrf.mxu1  ;;  %v5070_v55 = vpack.c.bf16 %v28498_v9, %v28498_v9 }
 0x351   : > { %v25938_v31 = vcombine.low %v5643_v58, %v6027_v63  ;;  %v25940_v32 = vcombine.low %v5644_v0, %v6028_v1  ;;  %v5069_v35 = vpack.c.bf16 %v2312_v18, %v2312_v18  ;;  %v5071_v36 = vpack.c.bf16 %v2313_v19, %v2313_v19  ;;  %v6032_v58 = vld [vmem:[%s26937_s9 + $0x1238] sm:$0x11] }
 0x352   : > { %v15615_v40 = vpop.f32.mrf.mxu0  ;;  %v15655_v41 = vpop.f32.mrf.mxu1  ;;  %v5072_v18 = vpack.c.bf16 %v28514_v37, %v28514_v37 }
 0x353   : > { %v363_v41 = vld [vmem:[%s26930_s5 + $0x318] sm:$0xff] }
 0x354   : > { %v15691_v49 = vpop.f32.mrf.mxu0  ;;  %v15731_v50 = vpop.f32.mrf.mxu1  ;;  %17610 = vmatmul.mubr.bf16.vlgmr.msra.gmra.mxu0 %v5056_v33  ;;  %17650 = vmatmul.mubr.bf16.vlgmr.msra.gmra.mxu1 %v5058_v34  ;;  %v28533_v1 = vrot.slane %v363_v41, %v26958_v24 }
 0x355   : > { %v15692_v51 = vadd.f32 %v15691_v49, %v15652_v29  ;;  %17672 = vmatpush1.bf16.xpose.msra.mxu0 %v25930_v38  ;;  %17712 = vmatpush1.bf16.xpose.msra.mxu1 %v25932_v39  ;;  %v5646_v29 = vld [vmem:[%s26937_s9 + $0x628] sm:$0xff]  ;;  %v28517_v38 = vrot.slane %v2314_v20, %v26958_v24  ;;  %v25943_v39 = vcombine.high %v5645_v22, %v6029_v28  ;;  %v6033_v20 = vld [vmem:[%s26937_s9 + $0x1240] sm:$0x11] }
 0x356   : > { %v15693_v52 = vpop.f32.mrf.mxu0  ;;  %v15733_v53 = vpop.f32.mrf.mxu1  ;;  %17689 = vmatprep.mubr.bf16.mxu0 %v5061_v42  ;;  %17729 = vmatprep.mubr.bf16.mxu1 %v5063_v43  ;;  %v25945_v40 = vcombine.high %v5646_v29, %v6030_v30  ;;  %v2331_v49 = vcombine.high %v363_v41, %v363_v41 }
 0x357   : > { %v15732_v57 = vadd.f32 %v15731_v50, %v15692_v51  ;;  %17751 = vmatprep.subr.bf16.mxu0 %v25935_v46  ;;  %17791 = vmatprep.subr.bf16.mxu1 %v25937_v47  ;;  %v2329_v47 = vcombine.high %v28514_v37, %v28514_v37  ;;  %v2330_v48 = vcombine.high %v28517_v38, %v28517_v38  ;;  %v5647_v51 = vld [vmem:[%s26937_s9 + $0x630] sm:$0xff] }
 0x358   : > { %v15694_v59 = vpop.f32.mrf.mxu0  ;;  %v15734_v60 = vpop.f32.mrf.mxu1  ;;  %v5074_v19 = vpack.c.bf16 %v28517_v38, %v28517_v38 }
 0x359   : > { %v25942_v59 = vcombine.low %v5645_v22, %v6029_v28  ;;  %v25944_v60 = vcombine.low %v5646_v29, %v6030_v30  ;;  %v5073_v63 = vpack.c.bf16 %v2329_v47, %v2329_v47  ;;  %v5075_v0 = vpack.c.bf16 %v2330_v48, %v2330_v48  ;;  %v6034_v22 = vld [vmem:[%s26937_s9 + $0x1248] sm:$0x11] }
 0x35a   : > { %v15695_v4 = vpop.f32.mrf.mxu0  ;;  %v15735_v5 = vpop.f32.mrf.mxu1  ;;  %v5076_v47 = vpack.c.bf16 %v28533_v1, %v28533_v1 }
 0x35b   : > { %v364_v5 = vld [vmem:[%s26930_s5 + $0x320] sm:$0xff] }
 0x35c   : > { %v15771_v13 = vpop.f32.mrf.mxu0  ;;  %v15811_v14 = vpop.f32.mrf.mxu1  ;;  %17690 = vmatmul.mubr.bf16.vlgmr.msra.gmra.mxu0 %v5060_v61  ;;  %17730 = vmatmul.mubr.bf16.vlgmr.msra.gmra.mxu1 %v5062_v62  ;;  %v28552_v30 = vrot.slane %v364_v5, %v26958_v24 }
 0x35d   : > { %v15772_v15 = vadd.f32 %v15771_v13, %v15732_v57  ;;  %17752 = vmatpush1.bf16.xpose.msra.mxu0 %v25934_v2  ;;  %17792 = vmatpush1.bf16.xpose.msra.mxu1 %v25936_v3  ;;  %v5648_v57 = vld [vmem:[%s26937_s9 + $0x638] sm:$0xff]  ;;  %v28536_v2 = vrot.slane %v2331_v49, %v26958_v24  ;;  %v25947_v3 = vcombine.high %v5647_v51, %v6031_v56  ;;  %v6035_v49 = vld [vmem:[%s26937_s9 + $0x1250] sm:$0x11] }
 0x35e   : > { %v15773_v16 = vpop.f32.mrf.mxu0  ;;  %v15813_v17 = vpop.f32.mrf.mxu1  ;;  %17769 = vmatprep.mubr.bf16.mxu0 %v5065_v6  ;;  %17809 = vmatprep.mubr.bf16.mxu1 %v5067_v7  ;;  %v25949_v4 = vcombine.high %v5648_v57, %v6032_v58  ;;  %v2348_v13 = vcombine.high %v364_v5, %v364_v5 }
 0x35f   : > { %v15812_v21 = vadd.f32 %v15811_v14, %v15772_v15  ;;  %17831 = vmatprep.subr.bf16.mxu0 %v25939_v10  ;;  %17871 = vmatprep.subr.bf16.mxu1 %v25941_v11  ;;  %v2346_v11 = vcombine.high %v28533_v1, %v28533_v1  ;;  %v2347_v12 = vcombine.high %v28536_v2, %v28536_v2  ;;  %v5649_v15 = vld [vmem:[%s26937_s9 + $0x640] sm:$0xff] }
 0x360   : > { %v15774_v23 = vpop.f32.mrf.mxu0  ;;  %v15814_v25 = vpop.f32.mrf.mxu1  ;;  %v5078_v48 = vpack.c.bf16 %v28536_v2, %v28536_v2 }
 0x361   : > { %v25946_v23 = vcombine.low %v5647_v51, %v6031_v56  ;;  %v25948_v25 = vcombine.low %v5648_v57, %v6032_v58  ;;  %v5077_v28 = vpack.c.bf16 %v2346_v11, %v2346_v11  ;;  %v5079_v29 = vpack.c.bf16 %v2347_v12, %v2347_v12  ;;  %v6036_v51 = vld [vmem:[%s26937_s9 + $0x1258] sm:$0x11] }
 0x362   : > { %v15775_v33 = vpop.f32.mrf.mxu0  ;;  %v15815_v34 = vpop.f32.mrf.mxu1  ;;  %v5080_v11 = vpack.c.bf16 %v28552_v30, %v28552_v30 }
 0x363   : > { %v365_v34 = vld [vmem:[%s26930_s5 + $0x328] sm:$0xff] }
 0x364   : > { %v15851_v42 = vpop.f32.mrf.mxu0  ;;  %v15891_v43 = vpop.f32.mrf.mxu1  ;;  %17770 = vmatmul.mubr.bf16.vlgmr.msra.gmra.mxu0 %v5064_v26  ;;  %17810 = vmatmul.mubr.bf16.vlgmr.msra.gmra.mxu1 %v5066_v27  ;;  %v28571_v58 = vrot.slane %v365_v34, %v26958_v24 }
 0x365   : > { %v15852_v44 = vadd.f32 %v15851_v42, %v15812_v21  ;;  %17832 = vmatpush1.bf16.xpose.msra.mxu0 %v25938_v31  ;;  %17872 = vmatpush1.bf16.xpose.msra.mxu1 %v25940_v32  ;;  %v5650_v21 = vld [vmem:[%s26937_s9 + $0x648] sm:$0xff]  ;;  %v28555_v31 = vrot.slane %v2348_v13, %v26958_v24  ;;  %v25951_v32 = vcombine.high %v5649_v15, %v6033_v20  ;;  %v6037_v13 = vld [vmem:[%s26937_s9 + $0x1260] sm:$0x11] }
 0x366   : > { %v15853_v45 = vpop.f32.mrf.mxu0  ;;  %v15893_v46 = vpop.f32.mrf.mxu1  ;;  %17849 = vmatprep.mubr.bf16.mxu0 %v5069_v35  ;;  %17889 = vmatprep.mubr.bf16.mxu1 %v5071_v36  ;;  %v25953_v33 = vcombine.high %v5650_v21, %v6034_v22  ;;  %v2365_v42 = vcombine.high %v365_v34, %v365_v34 }
 0x367   : > { %v15892_v50 = vadd.f32 %v15891_v43, %v15852_v44  ;;  %17911 = vmatprep.subr.bf16.mxu0 %v25943_v39  ;;  %17951 = vmatprep.subr.bf16.mxu1 %v25945_v40  ;;  %v2363_v40 = vcombine.high %v28552_v30, %v28552_v30  ;;  %v2364_v41 = vcombine.high %v28555_v31, %v28555_v31  ;;  %v5651_v44 = vld [vmem:[%s26937_s9 + $0x650] sm:$0xff] }
 0x368   : > { %v15854_v52 = vpop.f32.mrf.mxu0  ;;  %v15894_v53 = vpop.f32.mrf.mxu1  ;;  %v5082_v12 = vpack.c.bf16 %v28555_v31, %v28555_v31 }
 0x369   : > { %v25950_v52 = vcombine.low %v5649_v15, %v6033_v20  ;;  %v25952_v53 = vcombine.low %v5650_v21, %v6034_v22  ;;  %v5081_v56 = vpack.c.bf16 %v2363_v40, %v2363_v40  ;;  %v5083_v57 = vpack.c.bf16 %v2364_v41, %v2364_v41  ;;  %v6038_v15 = vld [vmem:[%s26937_s9 + $0x1268] sm:$0x11] }
 0x36a   : > { %v15855_v61 = vpop.f32.mrf.mxu0  ;;  %v15895_v62 = vpop.f32.mrf.mxu1  ;;  %v5084_v40 = vpack.c.bf16 %v28571_v58, %v28571_v58 }
 0x36b   : > { %v366_v62 = vld [vmem:[%s26930_s5 + $0x330] sm:$0xff] }
 0x36c   : > { %v15931_v6 = vpop.f32.mrf.mxu0  ;;  %v15971_v7 = vpop.f32.mrf.mxu1  ;;  %17850 = vmatmul.mubr.bf16.vlgmr.msra.gmra.mxu0 %v5068_v54  ;;  %17890 = vmatmul.mubr.bf16.vlgmr.msra.gmra.mxu1 %v5070_v55  ;;  %v28590_v22 = vrot.slane %v366_v62, %v26958_v24 }
 0x36d   : > { %v15932_v8 = vadd.f32 %v15931_v6, %v15892_v50  ;;  %17912 = vmatpush1.bf16.xpose.msra.mxu0 %v25942_v59  ;;  %17952 = vmatpush1.bf16.xpose.msra.mxu1 %v25944_v60  ;;  %v5652_v50 = vld [vmem:[%s26937_s9 + $0x658] sm:$0xff]  ;;  %v28574_v59 = vrot.slane %v2365_v42, %v26958_v24  ;;  %v25955_v60 = vcombine.high %v5651_v44, %v6035_v49  ;;  %v6039_v42 = vld [vmem:[%s26937_s9 + $0x1270] sm:$0x11] }
 0x36e   : > { %v15933_v9 = vpop.f32.mrf.mxu0  ;;  %v15973_v10 = vpop.f32.mrf.mxu1  ;;  %17929 = vmatprep.mubr.bf16.mxu0 %v5073_v63  ;;  %17969 = vmatprep.mubr.bf16.mxu1 %v5075_v0  ;;  %v25957_v61 = vcombine.high %v5652_v50, %v6036_v51  ;;  %v2382_v6 = vcombine.high %v366_v62, %v366_v62 }
 0x36f   : > { %v15972_v14 = vadd.f32 %v15971_v7, %v15932_v8  ;;  %17991 = vmatprep.subr.bf16.mxu0 %v25947_v3  ;;  %18031 = vmatprep.subr.bf16.mxu1 %v25949_v4  ;;  %v2380_v4 = vcombine.high %v28571_v58, %v28571_v58  ;;  %v2381_v5 = vcombine.high %v28574_v59, %v28574_v59  ;;  %v5653_v8 = vld [vmem:[%s26937_s9 + $0x660] sm:$0xff] }
 0x370   : > { %v15934_v16 = vpop.f32.mrf.mxu0  ;;  %v15974_v17 = vpop.f32.mrf.mxu1  ;;  %v5086_v41 = vpack.c.bf16 %v28574_v59, %v28574_v59 }
 0x371   : > { %v25954_v16 = vcombine.low %v5651_v44, %v6035_v49  ;;  %v25956_v17 = vcombine.low %v5652_v50, %v6036_v51  ;;  %v5085_v20 = vpack.c.bf16 %v2380_v4, %v2380_v4  ;;  %v5087_v21 = vpack.c.bf16 %v2381_v5, %v2381_v5  ;;  %v6040_v44 = vld [vmem:[%s26937_s9 + $0x1278] sm:$0x11] }
 0x372   : > { %v15935_v26 = vpop.f32.mrf.mxu0  ;;  %v15975_v27 = vpop.f32.mrf.mxu1  ;;  %v5088_v4 = vpack.c.bf16 %v28590_v22, %v28590_v22 }
 0x373   : > { %v367_v27 = vld [vmem:[%s26930_s5 + $0x338] sm:$0xff] }
 0x374   : > { %v16011_v35 = vpop.f32.mrf.mxu0  ;;  %v16051_v36 = vpop.f32.mrf.mxu1  ;;  %17930 = vmatmul.mubr.bf16.vlgmr.msra.gmra.mxu0 %v5072_v18  ;;  %17970 = vmatmul.mubr.bf16.vlgmr.msra.gmra.mxu1 %v5074_v19  ;;  %v28609_v51 = vrot.slane %v367_v27, %v26958_v24 }
 0x375   : > { %v16012_v37 = vadd.f32 %v16011_v35, %v15972_v14  ;;  %17992 = vmatpush1.bf16.xpose.msra.mxu0 %v25946_v23  ;;  %18032 = vmatpush1.bf16.xpose.msra.mxu1 %v25948_v25  ;;  %v5654_v14 = vld [vmem:[%s26937_s9 + $0x668] sm:$0xff]  ;;  %v28593_v23 = vrot.slane %v2382_v6, %v26958_v24  ;;  %v25959_v25 = vcombine.high %v5653_v8, %v6037_v13  ;;  %v6041_v6 = vld [vmem:[%s26937_s9 + $0x1280] sm:$0x11] }
 0x376   : > { %v16013_v38 = vpop.f32.mrf.mxu0  ;;  %v16053_v39 = vpop.f32.mrf.mxu1  ;;  %18009 = vmatprep.mubr.bf16.mxu0 %v5077_v28  ;;  %18049 = vmatprep.mubr.bf16.mxu1 %v5079_v29  ;;  %v25961_v26 = vcombine.high %v5654_v14, %v6038_v15  ;;  %v2399_v35 = vcombine.high %v367_v27, %v367_v27 }
 0x377   : > { %v16052_v43 = vadd.f32 %v16051_v36, %v16012_v37  ;;  %18071 = vmatprep.subr.bf16.mxu0 %v25951_v32  ;;  %18111 = vmatprep.subr.bf16.mxu1 %v25953_v33  ;;  %v2397_v33 = vcombine.high %v28590_v22, %v28590_v22  ;;  %v2398_v34 = vcombine.high %v28593_v23, %v28593_v23  ;;  %v5655_v37 = vld [vmem:[%s26937_s9 + $0x670] sm:$0xff] }
 0x378   : > { %v16014_v45 = vpop.f32.mrf.mxu0  ;;  %v16054_v46 = vpop.f32.mrf.mxu1  ;;  %v5090_v5 = vpack.c.bf16 %v28593_v23, %v28593_v23 }
 0x379   : > { %v25958_v45 = vcombine.low %v5653_v8, %v6037_v13  ;;  %v25960_v46 = vcombine.low %v5654_v14, %v6038_v15  ;;  %v5089_v49 = vpack.c.bf16 %v2397_v33, %v2397_v33  ;;  %v5091_v50 = vpack.c.bf16 %v2398_v34, %v2398_v34  ;;  %v6042_v8 = vld [vmem:[%s26937_s9 + $0x1288] sm:$0x11] }
 0x37a   : > { %v16015_v54 = vpop.f32.mrf.mxu0  ;;  %v16055_v55 = vpop.f32.mrf.mxu1  ;;  %v5092_v33 = vpack.c.bf16 %v28609_v51, %v28609_v51 }
 0x37b   : > { %v368_v55 = vld [vmem:[%s26930_s5 + $0x340] sm:$0xff] }
 0x37c   : > { %v16091_v63 = vpop.f32.mrf.mxu0  ;;  %v16131_v0 = vpop.f32.mrf.mxu1  ;;  %18010 = vmatmul.mubr.bf16.vlgmr.msra.gmra.mxu0 %v5076_v47  ;;  %18050 = vmatmul.mubr.bf16.vlgmr.msra.gmra.mxu1 %v5078_v48  ;;  %v28628_v15 = vrot.slane %v368_v55, %v26958_v24 }
 0x37d   : > { %v16092_v1 = vadd.f32 %v16091_v63, %v16052_v43  ;;  %18072 = vmatpush1.bf16.xpose.msra.mxu0 %v25950_v52  ;;  %18112 = vmatpush1.bf16.xpose.msra.mxu1 %v25952_v53  ;;  %v5656_v43 = vld [vmem:[%s26937_s9 + $0x678] sm:$0xff]  ;;  %v28612_v52 = vrot.slane %v2399_v35, %v26958_v24  ;;  %v25963_v53 = vcombine.high %v5655_v37, %v6039_v42  ;;  %v6043_v35 = vld [vmem:[%s26937_s9 + $0x1290] sm:$0x11] }
 0x37e   : > { %v16093_v2 = vpop.f32.mrf.mxu0  ;;  %v16133_v3 = vpop.f32.mrf.mxu1  ;;  %18089 = vmatprep.mubr.bf16.mxu0 %v5081_v56  ;;  %18129 = vmatprep.mubr.bf16.mxu1 %v5083_v57  ;;  %v25965_v54 = vcombine.high %v5656_v43, %v6040_v44  ;;  %v2416_v63 = vcombine.high %v368_v55, %v368_v55 }
 0x37f   : > { %v16132_v7 = vadd.f32 %v16131_v0, %v16092_v1  ;;  %18151 = vmatprep.subr.bf16.mxu0 %v25955_v60  ;;  %18191 = vmatprep.subr.bf16.mxu1 %v25957_v61  ;;  %v2414_v61 = vcombine.high %v28609_v51, %v28609_v51  ;;  %v2415_v62 = vcombine.high %v28612_v52, %v28612_v52  ;;  %v5657_v1 = vld [vmem:[%s26937_s9 + $0x680] sm:$0xff] }
 0x380   : > { %v16094_v9 = vpop.f32.mrf.mxu0  ;;  %v16134_v10 = vpop.f32.mrf.mxu1  ;;  %v5094_v34 = vpack.c.bf16 %v28612_v52, %v28612_v52 }
 0x381   : > { %v25962_v9 = vcombine.low %v5655_v37, %v6039_v42  ;;  %v25964_v10 = vcombine.low %v5656_v43, %v6040_v44  ;;  %v5093_v13 = vpack.c.bf16 %v2414_v61, %v2414_v61  ;;  %v5095_v14 = vpack.c.bf16 %v2415_v62, %v2415_v62  ;;  %v6044_v37 = vld [vmem:[%s26937_s9 + $0x1298] sm:$0x11] }
 0x382   : > { %v16095_v18 = vpop.f32.mrf.mxu0  ;;  %v16135_v19 = vpop.f32.mrf.mxu1  ;;  %v5096_v61 = vpack.c.bf16 %v28628_v15, %v28628_v15 }
 0x383   : > { %v369_v19 = vld [vmem:[%s26930_s5 + $0x348] sm:$0xff] }
 0x384   : > { %v16171_v28 = vpop.f32.mrf.mxu0  ;;  %v16211_v29 = vpop.f32.mrf.mxu1  ;;  %18090 = vmatmul.mubr.bf16.vlgmr.msra.gmra.mxu0 %v5080_v11  ;;  %18130 = vmatmul.mubr.bf16.vlgmr.msra.gmra.mxu1 %v5082_v12  ;;  %v28647_v44 = vrot.slane %v369_v19, %v26958_v24 }
 0x385   : > { %v16172_v30 = vadd.f32 %v16171_v28, %v16132_v7  ;;  %18152 = vmatpush1.bf16.xpose.msra.mxu0 %v25954_v16  ;;  %18192 = vmatpush1.bf16.xpose.msra.mxu1 %v25956_v17  ;;  %v5658_v7 = vld [vmem:[%s26937_s9 + $0x688] sm:$0xff]  ;;  %v28631_v16 = vrot.slane %v2416_v63, %v26958_v24  ;;  %v25967_v17 = vcombine.high %v5657_v1, %v6041_v6  ;;  %v6045_v63 = vld [vmem:[%s26937_s9 + $0x12a0] sm:$0x11] }
 0x386   : > { %v16173_v31 = vpop.f32.mrf.mxu0  ;;  %v16213_v32 = vpop.f32.mrf.mxu1  ;;  %18169 = vmatprep.mubr.bf16.mxu0 %v5085_v20  ;;  %18209 = vmatprep.mubr.bf16.mxu1 %v5087_v21  ;;  %v25969_v18 = vcombine.high %v5658_v7, %v6042_v8  ;;  %v2433_v28 = vcombine.high %v369_v19, %v369_v19 }
 0x387   : > { %v16212_v36 = vadd.f32 %v16211_v29, %v16172_v30  ;;  %18231 = vmatprep.subr.bf16.mxu0 %v25959_v25  ;;  %18271 = vmatprep.subr.bf16.mxu1 %v25961_v26  ;;  %v2431_v26 = vcombine.high %v28628_v15, %v28628_v15  ;;  %v2432_v27 = vcombine.high %v28631_v16, %v28631_v16  ;;  %v5659_v30 = vld [vmem:[%s26937_s9 + $0x690] sm:$0xff] }
 0x388   : > { %v16174_v38 = vpop.f32.mrf.mxu0  ;;  %v16214_v39 = vpop.f32.mrf.mxu1  ;;  %v5098_v62 = vpack.c.bf16 %v28631_v16, %v28631_v16 }
 0x389   : > { %v25966_v38 = vcombine.low %v5657_v1, %v6041_v6  ;;  %v25968_v39 = vcombine.low %v5658_v7, %v6042_v8  ;;  %v5097_v42 = vpack.c.bf16 %v2431_v26, %v2431_v26  ;;  %v5099_v43 = vpack.c.bf16 %v2432_v27, %v2432_v27  ;;  %v6046_v1 = vld [vmem:[%s26937_s9 + $0x12a8] sm:$0x11] }
 0x38a   : > { %v16175_v47 = vpop.f32.mrf.mxu0  ;;  %v16215_v48 = vpop.f32.mrf.mxu1  ;;  %v5100_v26 = vpack.c.bf16 %v28647_v44, %v28647_v44 }
 0x38b   : > { %v370_v48 = vld [vmem:[%s26930_s5 + $0x350] sm:$0xff] }
 0x38c   : > { %v16251_v56 = vpop.f32.mrf.mxu0  ;;  %v16291_v57 = vpop.f32.mrf.mxu1  ;;  %18170 = vmatmul.mubr.bf16.vlgmr.msra.gmra.mxu0 %v5084_v40  ;;  %18210 = vmatmul.mubr.bf16.vlgmr.msra.gmra.mxu1 %v5086_v41  ;;  %v28666_v8 = vrot.slane %v370_v48, %v26958_v24 }
 0x38d   : > { %v16252_v58 = vadd.f32 %v16251_v56, %v16212_v36  ;;  %18232 = vmatpush1.bf16.xpose.msra.mxu0 %v25958_v45  ;;  %18272 = vmatpush1.bf16.xpose.msra.mxu1 %v25960_v46  ;;  %v5660_v36 = vld [vmem:[%s26937_s9 + $0x698] sm:$0xff]  ;;  %v28650_v45 = vrot.slane %v2433_v28, %v26958_v24  ;;  %v25971_v46 = vcombine.high %v5659_v30, %v6043_v35  ;;  %v6047_v28 = vld [vmem:[%s26937_s9 + $0x12b0] sm:$0x11] }
 0x38e   : > { %v16253_v59 = vpop.f32.mrf.mxu0  ;;  %v16293_v60 = vpop.f32.mrf.mxu1  ;;  %18249 = vmatprep.mubr.bf16.mxu0 %v5089_v49  ;;  %18289 = vmatprep.mubr.bf16.mxu1 %v5091_v50  ;;  %v25973_v47 = vcombine.high %v5660_v36, %v6044_v37  ;;  %v2450_v56 = vcombine.high %v370_v48, %v370_v48 }
 0x38f   : > { %v16292_v0 = vadd.f32 %v16291_v57, %v16252_v58  ;;  %18311 = vmatprep.subr.bf16.mxu0 %v25963_v53  ;;  %18351 = vmatprep.subr.bf16.mxu1 %v25965_v54  ;;  %v2448_v54 = vcombine.high %v28647_v44, %v28647_v44  ;;  %v2449_v55 = vcombine.high %v28650_v45, %v28650_v45  ;;  %v5661_v58 = vld [vmem:[%s26937_s9 + $0x6a0] sm:$0xff] }
 0x390   : > { %v16254_v2 = vpop.f32.mrf.mxu0  ;;  %v16294_v3 = vpop.f32.mrf.mxu1  ;;  %v5102_v27 = vpack.c.bf16 %v28650_v45, %v28650_v45 }
 0x391   : > { %v25970_v2 = vcombine.low %v5659_v30, %v6043_v35  ;;  %v25972_v3 = vcombine.low %v5660_v36, %v6044_v37  ;;  %v5101_v6 = vpack.c.bf16 %v2448_v54, %v2448_v54  ;;  %v5103_v7 = vpack.c.bf16 %v2449_v55, %v2449_v55  ;;  %v6048_v30 = vld [vmem:[%s26937_s9 + $0x12b8] sm:$0x11] }
 0x392   : > { %v16255_v11 = vpop.f32.mrf.mxu0  ;;  %v16295_v12 = vpop.f32.mrf.mxu1  ;;  %v5104_v54 = vpack.c.bf16 %v28666_v8, %v28666_v8 }
 0x393   : > { %v371_v12 = vld [vmem:[%s26930_s5 + $0x358] sm:$0xff] }
 0x394   : > { %v16331_v20 = vpop.f32.mrf.mxu0  ;;  %v16371_v21 = vpop.f32.mrf.mxu1  ;;  %18250 = vmatmul.mubr.bf16.vlgmr.msra.gmra.mxu0 %v5088_v4  ;;  %18290 = vmatmul.mubr.bf16.vlgmr.msra.gmra.mxu1 %v5090_v5  ;;  %v28685_v37 = vrot.slane %v371_v12, %v26958_v24 }
 0x395   : > { %v16332_v22 = vadd.f32 %v16331_v20, %v16292_v0  ;;  %18312 = vmatpush1.bf16.xpose.msra.mxu0 %v25962_v9  ;;  %18352 = vmatpush1.bf16.xpose.msra.mxu1 %v25964_v10  ;;  %v5662_v0 = vld [vmem:[%s26937_s9 + $0x6a8] sm:$0xff]  ;;  %v28669_v9 = vrot.slane %v2450_v56, %v26958_v24  ;;  %v25975_v10 = vcombine.high %v5661_v58, %v6045_v63  ;;  %v6049_v56 = vld [vmem:[%s26937_s9 + $0x12c0] sm:$0x11] }
 0x396   : > { %v16333_v23 = vpop.f32.mrf.mxu0  ;;  %v16373_v25 = vpop.f32.mrf.mxu1  ;;  %18329 = vmatprep.mubr.bf16.mxu0 %v5093_v13  ;;  %18369 = vmatprep.mubr.bf16.mxu1 %v5095_v14  ;;  %v25977_v11 = vcombine.high %v5662_v0, %v6046_v1  ;;  %v2467_v20 = vcombine.high %v371_v12, %v371_v12 }
 0x397   : > { %v16372_v29 = vadd.f32 %v16371_v21, %v16332_v22  ;;  %18391 = vmatprep.subr.bf16.mxu0 %v25967_v17  ;;  %18431 = vmatprep.subr.bf16.mxu1 %v25969_v18  ;;  %v2465_v18 = vcombine.high %v28666_v8, %v28666_v8  ;;  %v2466_v19 = vcombine.high %v28669_v9, %v28669_v9  ;;  %v5663_v22 = vld [vmem:[%s26937_s9 + $0x6b0] sm:$0xff] }
 0x398   : > { %v16334_v31 = vpop.f32.mrf.mxu0  ;;  %v16374_v32 = vpop.f32.mrf.mxu1  ;;  %v5106_v55 = vpack.c.bf16 %v28669_v9, %v28669_v9 }
 0x399   : > { %v25974_v31 = vcombine.low %v5661_v58, %v6045_v63  ;;  %v25976_v32 = vcombine.low %v5662_v0, %v6046_v1  ;;  %v5105_v35 = vpack.c.bf16 %v2465_v18, %v2465_v18  ;;  %v5107_v36 = vpack.c.bf16 %v2466_v19, %v2466_v19  ;;  %v6050_v58 = vld [vmem:[%s26937_s9 + $0x12c8] sm:$0x11] }
 0x39a   : > { %v16335_v40 = vpop.f32.mrf.mxu0  ;;  %v16375_v41 = vpop.f32.mrf.mxu1  ;;  %v5108_v18 = vpack.c.bf16 %v28685_v37, %v28685_v37 }
 0x39b   : > { %v372_v41 = vld [vmem:[%s26930_s5 + $0x360] sm:$0xff] }
 0x39c   : > { %v16411_v49 = vpop.f32.mrf.mxu0  ;;  %v16451_v50 = vpop.f32.mrf.mxu1  ;;  %18330 = vmatmul.mubr.bf16.vlgmr.msra.gmra.mxu0 %v5092_v33  ;;  %18370 = vmatmul.mubr.bf16.vlgmr.msra.gmra.mxu1 %v5094_v34  ;;  %v28704_v1 = vrot.slane %v372_v41, %v26958_v24 }
 0x39d   : > { %v16412_v51 = vadd.f32 %v16411_v49, %v16372_v29  ;;  %18392 = vmatpush1.bf16.xpose.msra.mxu0 %v25966_v38  ;;  %18432 = vmatpush1.bf16.xpose.msra.mxu1 %v25968_v39  ;;  %v5664_v29 = vld [vmem:[%s26937_s9 + $0x6b8] sm:$0xff]  ;;  %v28688_v38 = vrot.slane %v2467_v20, %v26958_v24  ;;  %v25979_v39 = vcombine.high %v5663_v22, %v6047_v28  ;;  %v6051_v20 = vld [vmem:[%s26937_s9 + $0x12d0] sm:$0x11] }
 0x39e   : > { %v16413_v52 = vpop.f32.mrf.mxu0  ;;  %v16453_v53 = vpop.f32.mrf.mxu1  ;;  %18409 = vmatprep.mubr.bf16.mxu0 %v5097_v42  ;;  %18449 = vmatprep.mubr.bf16.mxu1 %v5099_v43  ;;  %v25981_v40 = vcombine.high %v5664_v29, %v6048_v30  ;;  %v2484_v49 = vcombine.high %v372_v41, %v372_v41 }
 0x39f   : > { %v16452_v57 = vadd.f32 %v16451_v50, %v16412_v51  ;;  %18471 = vmatprep.subr.bf16.mxu0 %v25971_v46  ;;  %18511 = vmatprep.subr.bf16.mxu1 %v25973_v47  ;;  %v2482_v47 = vcombine.high %v28685_v37, %v28685_v37  ;;  %v2483_v48 = vcombine.high %v28688_v38, %v28688_v38  ;;  %v5665_v51 = vld [vmem:[%s26937_s9 + $0x6c0] sm:$0xff] }
 0x3a0   : > { %v16414_v59 = vpop.f32.mrf.mxu0  ;;  %v16454_v60 = vpop.f32.mrf.mxu1  ;;  %v5110_v19 = vpack.c.bf16 %v28688_v38, %v28688_v38 }
 0x3a1   : > { %v25978_v59 = vcombine.low %v5663_v22, %v6047_v28  ;;  %v25980_v60 = vcombine.low %v5664_v29, %v6048_v30  ;;  %v5109_v63 = vpack.c.bf16 %v2482_v47, %v2482_v47  ;;  %v5111_v0 = vpack.c.bf16 %v2483_v48, %v2483_v48  ;;  %v6052_v22 = vld [vmem:[%s26937_s9 + $0x12d8] sm:$0x11] }
 0x3a2   : > { %v16415_v4 = vpop.f32.mrf.mxu0  ;;  %v16455_v5 = vpop.f32.mrf.mxu1  ;;  %v5112_v47 = vpack.c.bf16 %v28704_v1, %v28704_v1 }
 0x3a3   : > { %v373_v5 = vld [vmem:[%s26930_s5 + $0x368] sm:$0xff] }
 0x3a4   : > { %v16491_v13 = vpop.f32.mrf.mxu0  ;;  %v16531_v14 = vpop.f32.mrf.mxu1  ;;  %18410 = vmatmul.mubr.bf16.vlgmr.msra.gmra.mxu0 %v5096_v61  ;;  %18450 = vmatmul.mubr.bf16.vlgmr.msra.gmra.mxu1 %v5098_v62  ;;  %v28723_v30 = vrot.slane %v373_v5, %v26958_v24 }
 0x3a5   : > { %v16492_v15 = vadd.f32 %v16491_v13, %v16452_v57  ;;  %18472 = vmatpush1.bf16.xpose.msra.mxu0 %v25970_v2  ;;  %18512 = vmatpush1.bf16.xpose.msra.mxu1 %v25972_v3  ;;  %v5666_v57 = vld [vmem:[%s26937_s9 + $0x6c8] sm:$0xff]  ;;  %v28707_v2 = vrot.slane %v2484_v49, %v26958_v24  ;;  %v25983_v3 = vcombine.high %v5665_v51, %v6049_v56  ;;  %v6053_v49 = vld [vmem:[%s26937_s9 + $0x12e0] sm:$0x11] }
 0x3a6   : > { %v16493_v16 = vpop.f32.mrf.mxu0  ;;  %v16533_v17 = vpop.f32.mrf.mxu1  ;;  %18489 = vmatprep.mubr.bf16.mxu0 %v5101_v6  ;;  %18529 = vmatprep.mubr.bf16.mxu1 %v5103_v7  ;;  %v25985_v4 = vcombine.high %v5666_v57, %v6050_v58  ;;  %v2501_v13 = vcombine.high %v373_v5, %v373_v5 }
 0x3a7   : > { %v16532_v21 = vadd.f32 %v16531_v14, %v16492_v15  ;;  %18551 = vmatprep.subr.bf16.mxu0 %v25975_v10  ;;  %18591 = vmatprep.subr.bf16.mxu1 %v25977_v11  ;;  %v2499_v11 = vcombine.high %v28704_v1, %v28704_v1  ;;  %v2500_v12 = vcombine.high %v28707_v2, %v28707_v2  ;;  %v5667_v15 = vld [vmem:[%s26937_s9 + $0x6d0] sm:$0xff] }
 0x3a8   : > { %v16494_v23 = vpop.f32.mrf.mxu0  ;;  %v16534_v25 = vpop.f32.mrf.mxu1  ;;  %v5114_v48 = vpack.c.bf16 %v28707_v2, %v28707_v2 }
 0x3a9   : > { %v25982_v23 = vcombine.low %v5665_v51, %v6049_v56  ;;  %v25984_v25 = vcombine.low %v5666_v57, %v6050_v58  ;;  %v5113_v28 = vpack.c.bf16 %v2499_v11, %v2499_v11  ;;  %v5115_v29 = vpack.c.bf16 %v2500_v12, %v2500_v12  ;;  %v6054_v51 = vld [vmem:[%s26937_s9 + $0x12e8] sm:$0x11] }
 0x3aa   : > { %v16495_v33 = vpop.f32.mrf.mxu0  ;;  %v16535_v34 = vpop.f32.mrf.mxu1  ;;  %v5116_v11 = vpack.c.bf16 %v28723_v30, %v28723_v30 }
 0x3ab   : > { %v374_v34 = vld [vmem:[%s26930_s5 + $0x370] sm:$0xff] }
 0x3ac   : > { %v16571_v42 = vpop.f32.mrf.mxu0  ;;  %v16611_v43 = vpop.f32.mrf.mxu1  ;;  %18490 = vmatmul.mubr.bf16.vlgmr.msra.gmra.mxu0 %v5100_v26  ;;  %18530 = vmatmul.mubr.bf16.vlgmr.msra.gmra.mxu1 %v5102_v27  ;;  %v28742_v58 = vrot.slane %v374_v34, %v26958_v24 }
 0x3ad   : > { %v16572_v44 = vadd.f32 %v16571_v42, %v16532_v21  ;;  %18552 = vmatpush1.bf16.xpose.msra.mxu0 %v25974_v31  ;;  %18592 = vmatpush1.bf16.xpose.msra.mxu1 %v25976_v32  ;;  %v5668_v21 = vld [vmem:[%s26937_s9 + $0x6d8] sm:$0xff]  ;;  %v28726_v31 = vrot.slane %v2501_v13, %v26958_v24  ;;  %v25987_v32 = vcombine.high %v5667_v15, %v6051_v20  ;;  %v6055_v13 = vld [vmem:[%s26937_s9 + $0x12f0] sm:$0x11] }
 0x3ae   : > { %v16573_v45 = vpop.f32.mrf.mxu0  ;;  %v16613_v46 = vpop.f32.mrf.mxu1  ;;  %18569 = vmatprep.mubr.bf16.mxu0 %v5105_v35  ;;  %18609 = vmatprep.mubr.bf16.mxu1 %v5107_v36  ;;  %v25989_v33 = vcombine.high %v5668_v21, %v6052_v22  ;;  %v2518_v42 = vcombine.high %v374_v34, %v374_v34 }
 0x3af   : > { %v16612_v50 = vadd.f32 %v16611_v43, %v16572_v44  ;;  %18631 = vmatprep.subr.bf16.mxu0 %v25979_v39  ;;  %18671 = vmatprep.subr.bf16.mxu1 %v25981_v40  ;;  %v2516_v40 = vcombine.high %v28723_v30, %v28723_v30  ;;  %v2517_v41 = vcombine.high %v28726_v31, %v28726_v31  ;;  %v5669_v44 = vld [vmem:[%s26937_s9 + $0x6e0] sm:$0xff] }
 0x3b0   : > { %v16574_v52 = vpop.f32.mrf.mxu0  ;;  %v16614_v53 = vpop.f32.mrf.mxu1  ;;  %v5118_v12 = vpack.c.bf16 %v28726_v31, %v28726_v31 }
 0x3b1   : > { %v25986_v52 = vcombine.low %v5667_v15, %v6051_v20  ;;  %v25988_v53 = vcombine.low %v5668_v21, %v6052_v22  ;;  %v5117_v56 = vpack.c.bf16 %v2516_v40, %v2516_v40  ;;  %v5119_v57 = vpack.c.bf16 %v2517_v41, %v2517_v41  ;;  %v6056_v15 = vld [vmem:[%s26937_s9 + $0x12f8] sm:$0x11] }
 0x3b2   : > { %v16575_v61 = vpop.f32.mrf.mxu0  ;;  %v16615_v62 = vpop.f32.mrf.mxu1  ;;  %v5120_v40 = vpack.c.bf16 %v28742_v58, %v28742_v58 }
 0x3b3   : > { %v375_v62 = vld [vmem:[%s26930_s5 + $0x378] sm:$0xff] }
 0x3b4   : > { %v16651_v6 = vpop.f32.mrf.mxu0  ;;  %v16691_v7 = vpop.f32.mrf.mxu1  ;;  %18570 = vmatmul.mubr.bf16.vlgmr.msra.gmra.mxu0 %v5104_v54  ;;  %18610 = vmatmul.mubr.bf16.vlgmr.msra.gmra.mxu1 %v5106_v55  ;;  %v28761_v22 = vrot.slane %v375_v62, %v26958_v24 }
 0x3b5   : > { %v16652_v8 = vadd.f32 %v16651_v6, %v16612_v50  ;;  %18632 = vmatpush1.bf16.xpose.msra.mxu0 %v25978_v59  ;;  %18672 = vmatpush1.bf16.xpose.msra.mxu1 %v25980_v60  ;;  %v5670_v50 = vld [vmem:[%s26937_s9 + $0x6e8] sm:$0xff]  ;;  %v28745_v59 = vrot.slane %v2518_v42, %v26958_v24  ;;  %v25991_v60 = vcombine.high %v5669_v44, %v6053_v49  ;;  %v6057_v42 = vld [vmem:[%s26937_s9 + $0x1300] sm:$0x11] }
 0x3b6   : > { %v16653_v9 = vpop.f32.mrf.mxu0  ;;  %v16693_v10 = vpop.f32.mrf.mxu1  ;;  %18649 = vmatprep.mubr.bf16.mxu0 %v5109_v63  ;;  %18689 = vmatprep.mubr.bf16.mxu1 %v5111_v0  ;;  %v25993_v61 = vcombine.high %v5670_v50, %v6054_v51  ;;  %v2535_v6 = vcombine.high %v375_v62, %v375_v62 }
 0x3b7   : > { %v16692_v14 = vadd.f32 %v16691_v7, %v16652_v8  ;;  %18711 = vmatprep.subr.bf16.mxu0 %v25983_v3  ;;  %18751 = vmatprep.subr.bf16.mxu1 %v25985_v4  ;;  %v2533_v4 = vcombine.high %v28742_v58, %v28742_v58  ;;  %v2534_v5 = vcombine.high %v28745_v59, %v28745_v59  ;;  %v5671_v8 = vld [vmem:[%s26937_s9 + $0x6f0] sm:$0xff] }
 0x3b8   : > { %v16654_v16 = vpop.f32.mrf.mxu0  ;;  %v16694_v17 = vpop.f32.mrf.mxu1  ;;  %v5122_v41 = vpack.c.bf16 %v28745_v59, %v28745_v59 }
 0x3b9   : > { %v25990_v16 = vcombine.low %v5669_v44, %v6053_v49  ;;  %v25992_v17 = vcombine.low %v5670_v50, %v6054_v51  ;;  %v5121_v20 = vpack.c.bf16 %v2533_v4, %v2533_v4  ;;  %v5123_v21 = vpack.c.bf16 %v2534_v5, %v2534_v5  ;;  %v6058_v44 = vld [vmem:[%s26937_s9 + $0x1308] sm:$0x11] }
 0x3ba   : > { %v16655_v26 = vpop.f32.mrf.mxu0  ;;  %v16695_v27 = vpop.f32.mrf.mxu1  ;;  %v5124_v4 = vpack.c.bf16 %v28761_v22, %v28761_v22 }
 0x3bb   : > { %v376_v27 = vld [vmem:[%s26930_s5 + $0x380] sm:$0xff] }
 0x3bc   : > { %v16731_v35 = vpop.f32.mrf.mxu0  ;;  %v16771_v36 = vpop.f32.mrf.mxu1  ;;  %18650 = vmatmul.mubr.bf16.vlgmr.msra.gmra.mxu0 %v5108_v18  ;;  %18690 = vmatmul.mubr.bf16.vlgmr.msra.gmra.mxu1 %v5110_v19  ;;  %v28780_v51 = vrot.slane %v376_v27, %v26958_v24 }
 0x3bd   : > { %v16732_v37 = vadd.f32 %v16731_v35, %v16692_v14  ;;  %18712 = vmatpush1.bf16.xpose.msra.mxu0 %v25982_v23  ;;  %18752 = vmatpush1.bf16.xpose.msra.mxu1 %v25984_v25  ;;  %v5672_v14 = vld [vmem:[%s26937_s9 + $0x6f8] sm:$0xff]  ;;  %v28764_v23 = vrot.slane %v2535_v6, %v26958_v24  ;;  %v25995_v25 = vcombine.high %v5671_v8, %v6055_v13  ;;  %v6059_v6 = vld [vmem:[%s26937_s9 + $0x1310] sm:$0x11] }
 0x3be   : > { %v16733_v38 = vpop.f32.mrf.mxu0  ;;  %v16773_v39 = vpop.f32.mrf.mxu1  ;;  %18729 = vmatprep.mubr.bf16.mxu0 %v5113_v28  ;;  %18769 = vmatprep.mubr.bf16.mxu1 %v5115_v29  ;;  %v25997_v26 = vcombine.high %v5672_v14, %v6056_v15  ;;  %v2552_v35 = vcombine.high %v376_v27, %v376_v27 }
 0x3bf   : > { %v16772_v43 = vadd.f32 %v16771_v36, %v16732_v37  ;;  %18791 = vmatprep.subr.bf16.mxu0 %v25987_v32  ;;  %18831 = vmatprep.subr.bf16.mxu1 %v25989_v33  ;;  %v2550_v33 = vcombine.high %v28761_v22, %v28761_v22  ;;  %v2551_v34 = vcombine.high %v28764_v23, %v28764_v23  ;;  %v5673_v37 = vld [vmem:[%s26937_s9 + $0x700] sm:$0xff] }
 0x3c0   : > { %v16734_v45 = vpop.f32.mrf.mxu0  ;;  %v16774_v46 = vpop.f32.mrf.mxu1  ;;  %v5126_v5 = vpack.c.bf16 %v28764_v23, %v28764_v23 }
 0x3c1   : > { %v25994_v45 = vcombine.low %v5671_v8, %v6055_v13  ;;  %v25996_v46 = vcombine.low %v5672_v14, %v6056_v15  ;;  %v5125_v49 = vpack.c.bf16 %v2550_v33, %v2550_v33  ;;  %v5127_v50 = vpack.c.bf16 %v2551_v34, %v2551_v34  ;;  %v6060_v8 = vld [vmem:[%s26937_s9 + $0x1318] sm:$0x11] }
 0x3c2   : > { %v16735_v54 = vpop.f32.mrf.mxu0  ;;  %v16775_v55 = vpop.f32.mrf.mxu1  ;;  %v5128_v33 = vpack.c.bf16 %v28780_v51, %v28780_v51 }
 0x3c3   : > { %v377_v55 = vld [vmem:[%s26930_s5 + $0x388] sm:$0xff] }
 0x3c4   : > { %v16811_v63 = vpop.f32.mrf.mxu0  ;;  %v16851_v0 = vpop.f32.mrf.mxu1  ;;  %18730 = vmatmul.mubr.bf16.vlgmr.msra.gmra.mxu0 %v5112_v47  ;;  %18770 = vmatmul.mubr.bf16.vlgmr.msra.gmra.mxu1 %v5114_v48  ;;  %v28799_v15 = vrot.slane %v377_v55, %v26958_v24 }
 0x3c5   : > { %v16812_v1 = vadd.f32 %v16811_v63, %v16772_v43  ;;  %18792 = vmatpush1.bf16.xpose.msra.mxu0 %v25986_v52  ;;  %18832 = vmatpush1.bf16.xpose.msra.mxu1 %v25988_v53  ;;  %v5674_v43 = vld [vmem:[%s26937_s9 + $0x708] sm:$0xff]  ;;  %v28783_v52 = vrot.slane %v2552_v35, %v26958_v24  ;;  %v25999_v53 = vcombine.high %v5673_v37, %v6057_v42  ;;  %v6061_v35 = vld [vmem:[%s26937_s9 + $0x1320] sm:$0x11] }
 0x3c6   : > { %v16813_v2 = vpop.f32.mrf.mxu0  ;;  %v16853_v3 = vpop.f32.mrf.mxu1  ;;  %18809 = vmatprep.mubr.bf16.mxu0 %v5117_v56  ;;  %18849 = vmatprep.mubr.bf16.mxu1 %v5119_v57  ;;  %v26001_v54 = vcombine.high %v5674_v43, %v6058_v44  ;;  %v2569_v63 = vcombine.high %v377_v55, %v377_v55 }
 0x3c7   : > { %v16852_v7 = vadd.f32 %v16851_v0, %v16812_v1  ;;  %18871 = vmatprep.subr.bf16.mxu0 %v25991_v60  ;;  %18911 = vmatprep.subr.bf16.mxu1 %v25993_v61  ;;  %v2567_v61 = vcombine.high %v28780_v51, %v28780_v51  ;;  %v2568_v62 = vcombine.high %v28783_v52, %v28783_v52  ;;  %v5675_v1 = vld [vmem:[%s26937_s9 + $0x710] sm:$0xff] }
 0x3c8   : > { %v16814_v9 = vpop.f32.mrf.mxu0  ;;  %v16854_v10 = vpop.f32.mrf.mxu1  ;;  %v5130_v34 = vpack.c.bf16 %v28783_v52, %v28783_v52 }
 0x3c9   : > { %v25998_v9 = vcombine.low %v5673_v37, %v6057_v42  ;;  %v26000_v10 = vcombine.low %v5674_v43, %v6058_v44  ;;  %v5129_v13 = vpack.c.bf16 %v2567_v61, %v2567_v61  ;;  %v5131_v14 = vpack.c.bf16 %v2568_v62, %v2568_v62  ;;  %v6062_v37 = vld [vmem:[%s26937_s9 + $0x1328] sm:$0x11] }
 0x3ca   : > { %v16815_v18 = vpop.f32.mrf.mxu0  ;;  %v16855_v19 = vpop.f32.mrf.mxu1  ;;  %v5132_v61 = vpack.c.bf16 %v28799_v15, %v28799_v15 }
 0x3cb   : > { %v378_v19 = vld [vmem:[%s26930_s5 + $0x390] sm:$0xff] }
 0x3cc   : > { %v16891_v28 = vpop.f32.mrf.mxu0  ;;  %v16931_v29 = vpop.f32.mrf.mxu1  ;;  %18810 = vmatmul.mubr.bf16.vlgmr.msra.gmra.mxu0 %v5116_v11  ;;  %18850 = vmatmul.mubr.bf16.vlgmr.msra.gmra.mxu1 %v5118_v12  ;;  %v28818_v44 = vrot.slane %v378_v19, %v26958_v24 }
 0x3cd   : > { %v16892_v30 = vadd.f32 %v16891_v28, %v16852_v7  ;;  %18872 = vmatpush1.bf16.xpose.msra.mxu0 %v25990_v16  ;;  %18912 = vmatpush1.bf16.xpose.msra.mxu1 %v25992_v17  ;;  %v5676_v7 = vld [vmem:[%s26937_s9 + $0x718] sm:$0xff]  ;;  %v28802_v16 = vrot.slane %v2569_v63, %v26958_v24  ;;  %v26003_v17 = vcombine.high %v5675_v1, %v6059_v6  ;;  %v6063_v63 = vld [vmem:[%s26937_s9 + $0x1330] sm:$0x11] }
 0x3ce   : > { %v16893_v31 = vpop.f32.mrf.mxu0  ;;  %v16933_v32 = vpop.f32.mrf.mxu1  ;;  %18889 = vmatprep.mubr.bf16.mxu0 %v5121_v20  ;;  %18929 = vmatprep.mubr.bf16.mxu1 %v5123_v21  ;;  %v26005_v18 = vcombine.high %v5676_v7, %v6060_v8  ;;  %v2586_v28 = vcombine.high %v378_v19, %v378_v19 }
 0x3cf   : > { %v16932_v36 = vadd.f32 %v16931_v29, %v16892_v30  ;;  %18951 = vmatprep.subr.bf16.mxu0 %v25995_v25  ;;  %18991 = vmatprep.subr.bf16.mxu1 %v25997_v26  ;;  %v2584_v26 = vcombine.high %v28799_v15, %v28799_v15  ;;  %v2585_v27 = vcombine.high %v28802_v16, %v28802_v16  ;;  %v5677_v30 = vld [vmem:[%s26937_s9 + $0x720] sm:$0xff] }
 0x3d0   : > { %v16894_v38 = vpop.f32.mrf.mxu0  ;;  %v16934_v39 = vpop.f32.mrf.mxu1  ;;  %v5134_v62 = vpack.c.bf16 %v28802_v16, %v28802_v16 }
 0x3d1   : > { %v26002_v38 = vcombine.low %v5675_v1, %v6059_v6  ;;  %v26004_v39 = vcombine.low %v5676_v7, %v6060_v8  ;;  %v5133_v42 = vpack.c.bf16 %v2584_v26, %v2584_v26  ;;  %v5135_v43 = vpack.c.bf16 %v2585_v27, %v2585_v27  ;;  %v6064_v1 = vld [vmem:[%s26937_s9 + $0x1338] sm:$0x11] }
 0x3d2   : > { %v16895_v47 = vpop.f32.mrf.mxu0  ;;  %v16935_v48 = vpop.f32.mrf.mxu1  ;;  %v5136_v26 = vpack.c.bf16 %v28818_v44, %v28818_v44 }
 0x3d3   : > { %v379_v48 = vld [vmem:[%s26930_s5 + $0x398] sm:$0xff] }
 0x3d4   : > { %v16971_v56 = vpop.f32.mrf.mxu0  ;;  %v17011_v57 = vpop.f32.mrf.mxu1  ;;  %18890 = vmatmul.mubr.bf16.vlgmr.msra.gmra.mxu0 %v5120_v40  ;;  %18930 = vmatmul.mubr.bf16.vlgmr.msra.gmra.mxu1 %v5122_v41  ;;  %v28837_v8 = vrot.slane %v379_v48, %v26958_v24 }
 0x3d5   : > { %v16972_v58 = vadd.f32 %v16971_v56, %v16932_v36  ;;  %18952 = vmatpush1.bf16.xpose.msra.mxu0 %v25994_v45  ;;  %18992 = vmatpush1.bf16.xpose.msra.mxu1 %v25996_v46  ;;  %v5678_v36 = vld [vmem:[%s26937_s9 + $0x728] sm:$0xff]  ;;  %v28821_v45 = vrot.slane %v2586_v28, %v26958_v24  ;;  %v26007_v46 = vcombine.high %v5677_v30, %v6061_v35  ;;  %v6065_v28 = vld [vmem:[%s26937_s9 + $0x1340] sm:$0x11] }
 0x3d6   : > { %v16973_v59 = vpop.f32.mrf.mxu0  ;;  %v17013_v60 = vpop.f32.mrf.mxu1  ;;  %18969 = vmatprep.mubr.bf16.mxu0 %v5125_v49  ;;  %19009 = vmatprep.mubr.bf16.mxu1 %v5127_v50  ;;  %v26009_v47 = vcombine.high %v5678_v36, %v6062_v37  ;;  %v2603_v56 = vcombine.high %v379_v48, %v379_v48 }
 0x3d7   : > { %v17012_v0 = vadd.f32 %v17011_v57, %v16972_v58  ;;  %19031 = vmatprep.subr.bf16.mxu0 %v25999_v53  ;;  %19071 = vmatprep.subr.bf16.mxu1 %v26001_v54  ;;  %v2601_v54 = vcombine.high %v28818_v44, %v28818_v44  ;;  %v2602_v55 = vcombine.high %v28821_v45, %v28821_v45  ;;  %v5679_v58 = vld [vmem:[%s26937_s9 + $0x730] sm:$0xff] }
 0x3d8   : > { %v16974_v2 = vpop.f32.mrf.mxu0  ;;  %v17014_v3 = vpop.f32.mrf.mxu1  ;;  %v5138_v27 = vpack.c.bf16 %v28821_v45, %v28821_v45 }
 0x3d9   : > { %v26006_v2 = vcombine.low %v5677_v30, %v6061_v35  ;;  %v26008_v3 = vcombine.low %v5678_v36, %v6062_v37  ;;  %v5137_v6 = vpack.c.bf16 %v2601_v54, %v2601_v54  ;;  %v5139_v7 = vpack.c.bf16 %v2602_v55, %v2602_v55  ;;  %v6066_v30 = vld [vmem:[%s26937_s9 + $0x1348] sm:$0x11] }
 0x3da   : > { %v16975_v11 = vpop.f32.mrf.mxu0  ;;  %v17015_v12 = vpop.f32.mrf.mxu1  ;;  %v5140_v54 = vpack.c.bf16 %v28837_v8, %v28837_v8 }
 0x3db   : > { %v380_v12 = vld [vmem:[%s26930_s5 + $0x3a0] sm:$0xff] }
 0x3dc   : > { %v17051_v20 = vpop.f32.mrf.mxu0  ;;  %v17091_v21 = vpop.f32.mrf.mxu1  ;;  %18970 = vmatmul.mubr.bf16.vlgmr.msra.gmra.mxu0 %v5124_v4  ;;  %19010 = vmatmul.mubr.bf16.vlgmr.msra.gmra.mxu1 %v5126_v5  ;;  %v28856_v37 = vrot.slane %v380_v12, %v26958_v24 }
 0x3dd   : > { %v17052_v22 = vadd.f32 %v17051_v20, %v17012_v0  ;;  %19032 = vmatpush1.bf16.xpose.msra.mxu0 %v25998_v9  ;;  %19072 = vmatpush1.bf16.xpose.msra.mxu1 %v26000_v10  ;;  %v5680_v0 = vld [vmem:[%s26937_s9 + $0x738] sm:$0xff]  ;;  %v28840_v9 = vrot.slane %v2603_v56, %v26958_v24  ;;  %v26011_v10 = vcombine.high %v5679_v58, %v6063_v63  ;;  %v6067_v56 = vld [vmem:[%s26937_s9 + $0x1350] sm:$0x11] }
 0x3de   : > { %v17053_v23 = vpop.f32.mrf.mxu0  ;;  %v17093_v25 = vpop.f32.mrf.mxu1  ;;  %19049 = vmatprep.mubr.bf16.mxu0 %v5129_v13  ;;  %19089 = vmatprep.mubr.bf16.mxu1 %v5131_v14  ;;  %v26013_v11 = vcombine.high %v5680_v0, %v6064_v1  ;;  %v2620_v20 = vcombine.high %v380_v12, %v380_v12 }
 0x3df   : > { %v17092_v29 = vadd.f32 %v17091_v21, %v17052_v22  ;;  %19111 = vmatprep.subr.bf16.mxu0 %v26003_v17  ;;  %19151 = vmatprep.subr.bf16.mxu1 %v26005_v18  ;;  %v2618_v18 = vcombine.high %v28837_v8, %v28837_v8  ;;  %v2619_v19 = vcombine.high %v28840_v9, %v28840_v9  ;;  %v5681_v22 = vld [vmem:[%s26937_s9 + $0x740] sm:$0xff] }
 0x3e0   : > { %v17054_v31 = vpop.f32.mrf.mxu0  ;;  %v17094_v32 = vpop.f32.mrf.mxu1  ;;  %v5142_v55 = vpack.c.bf16 %v28840_v9, %v28840_v9 }
 0x3e1   : > { %v26010_v31 = vcombine.low %v5679_v58, %v6063_v63  ;;  %v26012_v32 = vcombine.low %v5680_v0, %v6064_v1  ;;  %v5141_v35 = vpack.c.bf16 %v2618_v18, %v2618_v18  ;;  %v5143_v36 = vpack.c.bf16 %v2619_v19, %v2619_v19  ;;  %v6068_v58 = vld [vmem:[%s26937_s9 + $0x1358] sm:$0x11] }
 0x3e2   : > { %v17055_v40 = vpop.f32.mrf.mxu0  ;;  %v17095_v41 = vpop.f32.mrf.mxu1  ;;  %v5144_v18 = vpack.c.bf16 %v28856_v37, %v28856_v37 }
 0x3e3   : > { %v381_v41 = vld [vmem:[%s26930_s5 + $0x3a8] sm:$0xff] }
 0x3e4   : > { %v17131_v49 = vpop.f32.mrf.mxu0  ;;  %v17171_v50 = vpop.f32.mrf.mxu1  ;;  %19050 = vmatmul.mubr.bf16.vlgmr.msra.gmra.mxu0 %v5128_v33  ;;  %19090 = vmatmul.mubr.bf16.vlgmr.msra.gmra.mxu1 %v5130_v34  ;;  %v28875_v1 = vrot.slane %v381_v41, %v26958_v24 }
 0x3e5   : > { %v17132_v51 = vadd.f32 %v17131_v49, %v17092_v29  ;;  %19112 = vmatpush1.bf16.xpose.msra.mxu0 %v26002_v38  ;;  %19152 = vmatpush1.bf16.xpose.msra.mxu1 %v26004_v39  ;;  %v5682_v29 = vld [vmem:[%s26937_s9 + $0x748] sm:$0xff]  ;;  %v28859_v38 = vrot.slane %v2620_v20, %v26958_v24  ;;  %v26015_v39 = vcombine.high %v5681_v22, %v6065_v28  ;;  %v6069_v20 = vld [vmem:[%s26937_s9 + $0x1360] sm:$0x11] }
 0x3e6   : > { %v17133_v52 = vpop.f32.mrf.mxu0  ;;  %v17173_v53 = vpop.f32.mrf.mxu1  ;;  %19129 = vmatprep.mubr.bf16.mxu0 %v5133_v42  ;;  %19169 = vmatprep.mubr.bf16.mxu1 %v5135_v43  ;;  %v26017_v40 = vcombine.high %v5682_v29, %v6066_v30  ;;  %v2637_v49 = vcombine.high %v381_v41, %v381_v41 }
 0x3e7   : > { %v17172_v57 = vadd.f32 %v17171_v50, %v17132_v51  ;;  %19191 = vmatprep.subr.bf16.mxu0 %v26007_v46  ;;  %19231 = vmatprep.subr.bf16.mxu1 %v26009_v47  ;;  %v2635_v47 = vcombine.high %v28856_v37, %v28856_v37  ;;  %v2636_v48 = vcombine.high %v28859_v38, %v28859_v38  ;;  %v5683_v51 = vld [vmem:[%s26937_s9 + $0x750] sm:$0xff] }
 0x3e8   : > { %v17134_v59 = vpop.f32.mrf.mxu0  ;;  %v17174_v60 = vpop.f32.mrf.mxu1  ;;  %v5146_v19 = vpack.c.bf16 %v28859_v38, %v28859_v38 }
 0x3e9   : > { %v26014_v59 = vcombine.low %v5681_v22, %v6065_v28  ;;  %v26016_v60 = vcombine.low %v5682_v29, %v6066_v30  ;;  %v5145_v63 = vpack.c.bf16 %v2635_v47, %v2635_v47  ;;  %v5147_v0 = vpack.c.bf16 %v2636_v48, %v2636_v48  ;;  %v6070_v22 = vld [vmem:[%s26937_s9 + $0x1368] sm:$0x11] }
 0x3ea   : > { %v17135_v4 = vpop.f32.mrf.mxu0  ;;  %v17175_v5 = vpop.f32.mrf.mxu1  ;;  %v5148_v47 = vpack.c.bf16 %v28875_v1, %v28875_v1 }
 0x3eb   : > { %v382_v5 = vld [vmem:[%s26930_s5 + $0x3b0] sm:$0xff] }
 0x3ec   : > { %v17211_v13 = vpop.f32.mrf.mxu0  ;;  %v17251_v14 = vpop.f32.mrf.mxu1  ;;  %19130 = vmatmul.mubr.bf16.vlgmr.msra.gmra.mxu0 %v5132_v61  ;;  %19170 = vmatmul.mubr.bf16.vlgmr.msra.gmra.mxu1 %v5134_v62  ;;  %v28894_v30 = vrot.slane %v382_v5, %v26958_v24 }
 0x3ed   : > { %v17212_v15 = vadd.f32 %v17211_v13, %v17172_v57  ;;  %19192 = vmatpush1.bf16.xpose.msra.mxu0 %v26006_v2  ;;  %19232 = vmatpush1.bf16.xpose.msra.mxu1 %v26008_v3  ;;  %v5684_v57 = vld [vmem:[%s26937_s9 + $0x758] sm:$0xff]  ;;  %v28878_v2 = vrot.slane %v2637_v49, %v26958_v24  ;;  %v26019_v3 = vcombine.high %v5683_v51, %v6067_v56  ;;  %v6071_v49 = vld [vmem:[%s26937_s9 + $0x1370] sm:$0x11] }
 0x3ee   : > { %v17213_v16 = vpop.f32.mrf.mxu0  ;;  %v17253_v17 = vpop.f32.mrf.mxu1  ;;  %19209 = vmatprep.mubr.bf16.mxu0 %v5137_v6  ;;  %19249 = vmatprep.mubr.bf16.mxu1 %v5139_v7  ;;  %v26021_v4 = vcombine.high %v5684_v57, %v6068_v58  ;;  %v2654_v13 = vcombine.high %v382_v5, %v382_v5 }
 0x3ef   : > { %v17252_v21 = vadd.f32 %v17251_v14, %v17212_v15  ;;  %19271 = vmatprep.subr.bf16.mxu0 %v26011_v10  ;;  %19311 = vmatprep.subr.bf16.mxu1 %v26013_v11  ;;  %v2652_v11 = vcombine.high %v28875_v1, %v28875_v1  ;;  %v2653_v12 = vcombine.high %v28878_v2, %v28878_v2  ;;  %v5685_v15 = vld [vmem:[%s26937_s9 + $0x760] sm:$0xff] }
 0x3f0   : > { %v17214_v23 = vpop.f32.mrf.mxu0  ;;  %v17254_v25 = vpop.f32.mrf.mxu1  ;;  %v5150_v48 = vpack.c.bf16 %v28878_v2, %v28878_v2 }
 0x3f1   : > { %v26018_v23 = vcombine.low %v5683_v51, %v6067_v56  ;;  %v26020_v25 = vcombine.low %v5684_v57, %v6068_v58  ;;  %v5149_v28 = vpack.c.bf16 %v2652_v11, %v2652_v11  ;;  %v5151_v29 = vpack.c.bf16 %v2653_v12, %v2653_v12  ;;  %v6072_v51 = vld [vmem:[%s26937_s9 + $0x1378] sm:$0x11] }
 0x3f2   : > { %v17215_v33 = vpop.f32.mrf.mxu0  ;;  %v17255_v34 = vpop.f32.mrf.mxu1  ;;  %v5152_v11 = vpack.c.bf16 %v28894_v30, %v28894_v30 }
 0x3f3   : > { %v383_v34 = vld [vmem:[%s26930_s5 + $0x3b8] sm:$0xff] }
 0x3f4   : > { %v17291_v42 = vpop.f32.mrf.mxu0  ;;  %v17331_v43 = vpop.f32.mrf.mxu1  ;;  %19210 = vmatmul.mubr.bf16.vlgmr.msra.gmra.mxu0 %v5136_v26  ;;  %19250 = vmatmul.mubr.bf16.vlgmr.msra.gmra.mxu1 %v5138_v27  ;;  %v28913_v58 = vrot.slane %v383_v34, %v26958_v24 }
 0x3f5   : > { %v17292_v44 = vadd.f32 %v17291_v42, %v17252_v21  ;;  %19272 = vmatpush1.bf16.xpose.msra.mxu0 %v26010_v31  ;;  %19312 = vmatpush1.bf16.xpose.msra.mxu1 %v26012_v32  ;;  %v5686_v21 = vld [vmem:[%s26937_s9 + $0x768] sm:$0xff]  ;;  %v28897_v31 = vrot.slane %v2654_v13, %v26958_v24  ;;  %v26023_v32 = vcombine.high %v5685_v15, %v6069_v20  ;;  %v6073_v13 = vld [vmem:[%s26937_s9 + $0x1380] sm:$0x11] }
 0x3f6   : > { %v17293_v45 = vpop.f32.mrf.mxu0  ;;  %v17333_v46 = vpop.f32.mrf.mxu1  ;;  %19289 = vmatprep.mubr.bf16.mxu0 %v5141_v35  ;;  %19329 = vmatprep.mubr.bf16.mxu1 %v5143_v36  ;;  %v26025_v33 = vcombine.high %v5686_v21, %v6070_v22  ;;  %v2671_v42 = vcombine.high %v383_v34, %v383_v34 }
 0x3f7   : > { %v17332_v50 = vadd.f32 %v17331_v43, %v17292_v44  ;;  %19351 = vmatprep.subr.bf16.mxu0 %v26015_v39  ;;  %19391 = vmatprep.subr.bf16.mxu1 %v26017_v40  ;;  %v2669_v40 = vcombine.high %v28894_v30, %v28894_v30  ;;  %v2670_v41 = vcombine.high %v28897_v31, %v28897_v31  ;;  %v5687_v44 = vld [vmem:[%s26937_s9 + $0x770] sm:$0xff] }
 0x3f8   : > { %v17294_v52 = vpop.f32.mrf.mxu0  ;;  %v17334_v53 = vpop.f32.mrf.mxu1  ;;  %v5154_v12 = vpack.c.bf16 %v28897_v31, %v28897_v31 }
 0x3f9   : > { %v26022_v52 = vcombine.low %v5685_v15, %v6069_v20  ;;  %v26024_v53 = vcombine.low %v5686_v21, %v6070_v22  ;;  %v5153_v56 = vpack.c.bf16 %v2669_v40, %v2669_v40  ;;  %v5155_v57 = vpack.c.bf16 %v2670_v41, %v2670_v41  ;;  %v6074_v15 = vld [vmem:[%s26937_s9 + $0x1388] sm:$0x11] }
 0x3fa   : > { %v17295_v61 = vpop.f32.mrf.mxu0  ;;  %v17335_v62 = vpop.f32.mrf.mxu1  ;;  %v5156_v40 = vpack.c.bf16 %v28913_v58, %v28913_v58 }
 0x3fb   : > { %v384_v62 = vld [vmem:[%s26930_s5 + $0x3c0] sm:$0xff] }
 0x3fc   : > { %v17371_v6 = vpop.f32.mrf.mxu0  ;;  %v17411_v7 = vpop.f32.mrf.mxu1  ;;  %19290 = vmatmul.mubr.bf16.vlgmr.msra.gmra.mxu0 %v5140_v54  ;;  %19330 = vmatmul.mubr.bf16.vlgmr.msra.gmra.mxu1 %v5142_v55  ;;  %v28932_v22 = vrot.slane %v384_v62, %v26958_v24 }
 0x3fd   : > { %v17372_v8 = vadd.f32 %v17371_v6, %v17332_v50  ;;  %19352 = vmatpush1.bf16.xpose.msra.mxu0 %v26014_v59  ;;  %19392 = vmatpush1.bf16.xpose.msra.mxu1 %v26016_v60  ;;  %v5688_v50 = vld [vmem:[%s26937_s9 + $0x778] sm:$0xff]  ;;  %v28916_v59 = vrot.slane %v2671_v42, %v26958_v24  ;;  %v26027_v60 = vcombine.high %v5687_v44, %v6071_v49  ;;  %v6075_v42 = vld [vmem:[%s26937_s9 + $0x1390] sm:$0x11] }
 0x3fe   : > { %v17373_v9 = vpop.f32.mrf.mxu0  ;;  %v17413_v10 = vpop.f32.mrf.mxu1  ;;  %19369 = vmatprep.mubr.bf16.mxu0 %v5145_v63  ;;  %19409 = vmatprep.mubr.bf16.mxu1 %v5147_v0  ;;  %v26029_v61 = vcombine.high %v5688_v50, %v6072_v51  ;;  %v2688_v6 = vcombine.high %v384_v62, %v384_v62 }
 0x3ff   : > { %v17412_v14 = vadd.f32 %v17411_v7, %v17372_v8  ;;  %19431 = vmatprep.subr.bf16.mxu0 %v26019_v3  ;;  %19471 = vmatprep.subr.bf16.mxu1 %v26021_v4  ;;  %v2686_v4 = vcombine.high %v28913_v58, %v28913_v58  ;;  %v2687_v5 = vcombine.high %v28916_v59, %v28916_v59  ;;  %v5689_v8 = vld [vmem:[%s26937_s9 + $0x780] sm:$0xff] }
 0x400   : > { %v17374_v16 = vpop.f32.mrf.mxu0  ;;  %v17414_v17 = vpop.f32.mrf.mxu1  ;;  %v5158_v41 = vpack.c.bf16 %v28916_v59, %v28916_v59 }
 0x401   : > { %v26026_v16 = vcombine.low %v5687_v44, %v6071_v49  ;;  %v26028_v17 = vcombine.low %v5688_v50, %v6072_v51  ;;  %v5157_v20 = vpack.c.bf16 %v2686_v4, %v2686_v4  ;;  %v5159_v21 = vpack.c.bf16 %v2687_v5, %v2687_v5  ;;  %v6076_v44 = vld [vmem:[%s26937_s9 + $0x1398] sm:$0x11] }
 0x402   : > { %v17375_v26 = vpop.f32.mrf.mxu0  ;;  %v17415_v27 = vpop.f32.mrf.mxu1  ;;  %v5160_v4 = vpack.c.bf16 %v28932_v22, %v28932_v22 }
 0x403   : > { %v385_v27 = vld [vmem:[%s26930_s5 + $0x3c8] sm:$0xff] }
 0x404   : > { %v17451_v35 = vpop.f32.mrf.mxu0  ;;  %v17491_v36 = vpop.f32.mrf.mxu1  ;;  %19370 = vmatmul.mubr.bf16.vlgmr.msra.gmra.mxu0 %v5144_v18  ;;  %19410 = vmatmul.mubr.bf16.vlgmr.msra.gmra.mxu1 %v5146_v19  ;;  %v28951_v51 = vrot.slane %v385_v27, %v26958_v24 }
 0x405   : > { %v17452_v37 = vadd.f32 %v17451_v35, %v17412_v14  ;;  %19432 = vmatpush1.bf16.xpose.msra.mxu0 %v26018_v23  ;;  %19472 = vmatpush1.bf16.xpose.msra.mxu1 %v26020_v25  ;;  %v5690_v14 = vld [vmem:[%s26937_s9 + $0x788] sm:$0xff]  ;;  %v28935_v23 = vrot.slane %v2688_v6, %v26958_v24  ;;  %v26031_v25 = vcombine.high %v5689_v8, %v6073_v13  ;;  %v6077_v6 = vld [vmem:[%s26937_s9 + $0x13a0] sm:$0x11] }
 0x406   : > { %v17453_v38 = vpop.f32.mrf.mxu0  ;;  %v17493_v39 = vpop.f32.mrf.mxu1  ;;  %19449 = vmatprep.mubr.bf16.mxu0 %v5149_v28  ;;  %19489 = vmatprep.mubr.bf16.mxu1 %v5151_v29  ;;  %v26033_v26 = vcombine.high %v5690_v14, %v6074_v15  ;;  %v2705_v35 = vcombine.high %v385_v27, %v385_v27 }
 0x407   : > { %v17492_v43 = vadd.f32 %v17491_v36, %v17452_v37  ;;  %19511 = vmatprep.subr.bf16.mxu0 %v26023_v32  ;;  %19551 = vmatprep.subr.bf16.mxu1 %v26025_v33  ;;  %v2703_v33 = vcombine.high %v28932_v22, %v28932_v22  ;;  %v2704_v34 = vcombine.high %v28935_v23, %v28935_v23  ;;  %v5691_v37 = vld [vmem:[%s26937_s9 + $0x790] sm:$0xff] }
 0x408   : > { %v17454_v45 = vpop.f32.mrf.mxu0  ;;  %v17494_v46 = vpop.f32.mrf.mxu1  ;;  %v5162_v5 = vpack.c.bf16 %v28935_v23, %v28935_v23 }
 0x409   : > { %v26030_v45 = vcombine.low %v5689_v8, %v6073_v13  ;;  %v26032_v46 = vcombine.low %v5690_v14, %v6074_v15  ;;  %v5161_v49 = vpack.c.bf16 %v2703_v33, %v2703_v33  ;;  %v5163_v50 = vpack.c.bf16 %v2704_v34, %v2704_v34  ;;  %v6078_v8 = vld [vmem:[%s26937_s9 + $0x13a8] sm:$0x11] }
 0x40a   : > { %v17455_v54 = vpop.f32.mrf.mxu0  ;;  %v17495_v55 = vpop.f32.mrf.mxu1  ;;  %v5164_v33 = vpack.c.bf16 %v28951_v51, %v28951_v51 }
 0x40b   : > { %v386_v55 = vld [vmem:[%s26930_s5 + $0x3d0] sm:$0xff] }
 0x40c   : > { %v17531_v63 = vpop.f32.mrf.mxu0  ;;  %v17571_v0 = vpop.f32.mrf.mxu1  ;;  %19450 = vmatmul.mubr.bf16.vlgmr.msra.gmra.mxu0 %v5148_v47  ;;  %19490 = vmatmul.mubr.bf16.vlgmr.msra.gmra.mxu1 %v5150_v48  ;;  %v28970_v15 = vrot.slane %v386_v55, %v26958_v24 }
 0x40d   : > { %v17532_v1 = vadd.f32 %v17531_v63, %v17492_v43  ;;  %19512 = vmatpush1.bf16.xpose.msra.mxu0 %v26022_v52  ;;  %19552 = vmatpush1.bf16.xpose.msra.mxu1 %v26024_v53  ;;  %v5692_v43 = vld [vmem:[%s26937_s9 + $0x798] sm:$0xff]  ;;  %v28954_v52 = vrot.slane %v2705_v35, %v26958_v24  ;;  %v26035_v53 = vcombine.high %v5691_v37, %v6075_v42  ;;  %v6079_v35 = vld [vmem:[%s26937_s9 + $0x13b0] sm:$0x11] }
 0x40e   : > { %v17533_v2 = vpop.f32.mrf.mxu0  ;;  %v17573_v3 = vpop.f32.mrf.mxu1  ;;  %19529 = vmatprep.mubr.bf16.mxu0 %v5153_v56  ;;  %19569 = vmatprep.mubr.bf16.mxu1 %v5155_v57  ;;  %v26037_v54 = vcombine.high %v5692_v43, %v6076_v44  ;;  %v2722_v63 = vcombine.high %v386_v55, %v386_v55 }
 0x40f   : > { %v17572_v7 = vadd.f32 %v17571_v0, %v17532_v1  ;;  %19591 = vmatprep.subr.bf16.mxu0 %v26027_v60  ;;  %19631 = vmatprep.subr.bf16.mxu1 %v26029_v61  ;;  %v2720_v61 = vcombine.high %v28951_v51, %v28951_v51  ;;  %v2721_v62 = vcombine.high %v28954_v52, %v28954_v52  ;;  %v5693_v1 = vld [vmem:[%s26937_s9 + $0x7a0] sm:$0xff] }
 0x410   : > { %v17534_v9 = vpop.f32.mrf.mxu0  ;;  %v17574_v10 = vpop.f32.mrf.mxu1  ;;  %v5166_v34 = vpack.c.bf16 %v28954_v52, %v28954_v52 }
 0x411   : > { %v26034_v9 = vcombine.low %v5691_v37, %v6075_v42  ;;  %v26036_v10 = vcombine.low %v5692_v43, %v6076_v44  ;;  %v5165_v13 = vpack.c.bf16 %v2720_v61, %v2720_v61  ;;  %v5167_v14 = vpack.c.bf16 %v2721_v62, %v2721_v62  ;;  %v6080_v37 = vld [vmem:[%s26937_s9 + $0x13b8] sm:$0x11] }
 0x412   : > { %v17535_v18 = vpop.f32.mrf.mxu0  ;;  %v17575_v19 = vpop.f32.mrf.mxu1  ;;  %v5168_v61 = vpack.c.bf16 %v28970_v15, %v28970_v15 }
 0x413   : > { %v387_v19 = vld [vmem:[%s26930_s5 + $0x3d8] sm:$0xff] }
 0x414   : > { %v17611_v28 = vpop.f32.mrf.mxu0  ;;  %v17651_v29 = vpop.f32.mrf.mxu1  ;;  %19530 = vmatmul.mubr.bf16.vlgmr.msra.gmra.mxu0 %v5152_v11  ;;  %19570 = vmatmul.mubr.bf16.vlgmr.msra.gmra.mxu1 %v5154_v12  ;;  %v28989_v44 = vrot.slane %v387_v19, %v26958_v24 }
 0x415   : > { %v17612_v30 = vadd.f32 %v17611_v28, %v17572_v7  ;;  %19592 = vmatpush1.bf16.xpose.msra.mxu0 %v26026_v16  ;;  %19632 = vmatpush1.bf16.xpose.msra.mxu1 %v26028_v17  ;;  %v5694_v7 = vld [vmem:[%s26937_s9 + $0x7a8] sm:$0xff]  ;;  %v28973_v16 = vrot.slane %v2722_v63, %v26958_v24  ;;  %v26039_v17 = vcombine.high %v5693_v1, %v6077_v6  ;;  %v6081_v63 = vld [vmem:[%s26937_s9 + $0x13c0] sm:$0x11] }
 0x416   : > { %v17613_v31 = vpop.f32.mrf.mxu0  ;;  %v17653_v32 = vpop.f32.mrf.mxu1  ;;  %19609 = vmatprep.mubr.bf16.mxu0 %v5157_v20  ;;  %19649 = vmatprep.mubr.bf16.mxu1 %v5159_v21  ;;  %v26041_v18 = vcombine.high %v5694_v7, %v6078_v8  ;;  %v2739_v28 = vcombine.high %v387_v19, %v387_v19 }
 0x417   : > { %v17652_v36 = vadd.f32 %v17651_v29, %v17612_v30  ;;  %19671 = vmatprep.subr.bf16.mxu0 %v26031_v25  ;;  %19711 = vmatprep.subr.bf16.mxu1 %v26033_v26  ;;  %v2737_v26 = vcombine.high %v28970_v15, %v28970_v15  ;;  %v2738_v27 = vcombine.high %v28973_v16, %v28973_v16  ;;  %v5695_v30 = vld [vmem:[%s26937_s9 + $0x7b0] sm:$0xff] }
 0x418   : > { %v17614_v38 = vpop.f32.mrf.mxu0  ;;  %v17654_v39 = vpop.f32.mrf.mxu1  ;;  %v5170_v62 = vpack.c.bf16 %v28973_v16, %v28973_v16 }
 0x419   : > { %v26038_v38 = vcombine.low %v5693_v1, %v6077_v6  ;;  %v26040_v39 = vcombine.low %v5694_v7, %v6078_v8  ;;  %v5169_v42 = vpack.c.bf16 %v2737_v26, %v2737_v26  ;;  %v5171_v43 = vpack.c.bf16 %v2738_v27, %v2738_v27  ;;  %v6082_v1 = vld [vmem:[%s26937_s9 + $0x13c8] sm:$0x11] }
 0x41a   : > { %v17615_v47 = vpop.f32.mrf.mxu0  ;;  %v17655_v48 = vpop.f32.mrf.mxu1  ;;  %v5172_v26 = vpack.c.bf16 %v28989_v44, %v28989_v44 }
 0x41b   : > { %v388_v48 = vld [vmem:[%s26930_s5 + $0x3e0] sm:$0xff] }
 0x41c   : > { %v17691_v56 = vpop.f32.mrf.mxu0  ;;  %v17731_v57 = vpop.f32.mrf.mxu1  ;;  %19610 = vmatmul.mubr.bf16.vlgmr.msra.gmra.mxu0 %v5156_v40  ;;  %19650 = vmatmul.mubr.bf16.vlgmr.msra.gmra.mxu1 %v5158_v41  ;;  %v29008_v8 = vrot.slane %v388_v48, %v26958_v24 }
 0x41d   : > { %v17692_v58 = vadd.f32 %v17691_v56, %v17652_v36  ;;  %19672 = vmatpush1.bf16.xpose.msra.mxu0 %v26030_v45  ;;  %19712 = vmatpush1.bf16.xpose.msra.mxu1 %v26032_v46  ;;  %v5696_v36 = vld [vmem:[%s26937_s9 + $0x7b8] sm:$0xff]  ;;  %v28992_v45 = vrot.slane %v2739_v28, %v26958_v24  ;;  %v26043_v46 = vcombine.high %v5695_v30, %v6079_v35  ;;  %v6083_v28 = vld [vmem:[%s26937_s9 + $0x13d0] sm:$0x11] }
 0x41e   : > { %v17693_v59 = vpop.f32.mrf.mxu0  ;;  %v17733_v60 = vpop.f32.mrf.mxu1  ;;  %19689 = vmatprep.mubr.bf16.mxu0 %v5161_v49  ;;  %19729 = vmatprep.mubr.bf16.mxu1 %v5163_v50  ;;  %v26045_v47 = vcombine.high %v5696_v36, %v6080_v37  ;;  %v2756_v56 = vcombine.high %v388_v48, %v388_v48 }
 0x41f   : > { %v17732_v0 = vadd.f32 %v17731_v57, %v17692_v58  ;;  %19751 = vmatprep.subr.bf16.mxu0 %v26035_v53  ;;  %19791 = vmatprep.subr.bf16.mxu1 %v26037_v54  ;;  %v2754_v54 = vcombine.high %v28989_v44, %v28989_v44  ;;  %v2755_v55 = vcombine.high %v28992_v45, %v28992_v45  ;;  %v5697_v58 = vld [vmem:[%s26937_s9 + $0x7c0] sm:$0xff] }
 0x420   : > { %v17694_v2 = vpop.f32.mrf.mxu0  ;;  %v17734_v3 = vpop.f32.mrf.mxu1  ;;  %v5174_v27 = vpack.c.bf16 %v28992_v45, %v28992_v45 }
 0x421   : > { %v26042_v2 = vcombine.low %v5695_v30, %v6079_v35  ;;  %v26044_v3 = vcombine.low %v5696_v36, %v6080_v37  ;;  %v5173_v6 = vpack.c.bf16 %v2754_v54, %v2754_v54  ;;  %v5175_v7 = vpack.c.bf16 %v2755_v55, %v2755_v55  ;;  %v6084_v30 = vld [vmem:[%s26937_s9 + $0x13d8] sm:$0x11] }
 0x422   : > { %v17695_v11 = vpop.f32.mrf.mxu0  ;;  %v17735_v12 = vpop.f32.mrf.mxu1  ;;  %v5176_v54 = vpack.c.bf16 %v29008_v8, %v29008_v8 }
 0x423   : > { %v389_v12 = vld [vmem:[%s26930_s5 + $0x3e8] sm:$0xff] }
 0x424   : > { %v17771_v20 = vpop.f32.mrf.mxu0  ;;  %v17811_v21 = vpop.f32.mrf.mxu1  ;;  %19690 = vmatmul.mubr.bf16.vlgmr.msra.gmra.mxu0 %v5160_v4  ;;  %19730 = vmatmul.mubr.bf16.vlgmr.msra.gmra.mxu1 %v5162_v5  ;;  %v29027_v37 = vrot.slane %v389_v12, %v26958_v24 }
 0x425   : > { %v17772_v22 = vadd.f32 %v17771_v20, %v17732_v0  ;;  %19752 = vmatpush1.bf16.xpose.msra.mxu0 %v26034_v9  ;;  %19792 = vmatpush1.bf16.xpose.msra.mxu1 %v26036_v10  ;;  %v5698_v0 = vld [vmem:[%s26937_s9 + $0x7c8] sm:$0xff]  ;;  %v29011_v9 = vrot.slane %v2756_v56, %v26958_v24  ;;  %v26047_v10 = vcombine.high %v5697_v58, %v6081_v63  ;;  %v6085_v56 = vld [vmem:[%s26937_s9 + $0x13e0] sm:$0x11] }
 0x426   : > { %v17773_v23 = vpop.f32.mrf.mxu0  ;;  %v17813_v25 = vpop.f32.mrf.mxu1  ;;  %19769 = vmatprep.mubr.bf16.mxu0 %v5165_v13  ;;  %19809 = vmatprep.mubr.bf16.mxu1 %v5167_v14  ;;  %v26049_v11 = vcombine.high %v5698_v0, %v6082_v1  ;;  %v2773_v20 = vcombine.high %v389_v12, %v389_v12 }
 0x427   : > { %v17812_v29 = vadd.f32 %v17811_v21, %v17772_v22  ;;  %19831 = vmatprep.subr.bf16.mxu0 %v26039_v17  ;;  %19871 = vmatprep.subr.bf16.mxu1 %v26041_v18  ;;  %v2771_v18 = vcombine.high %v29008_v8, %v29008_v8  ;;  %v2772_v19 = vcombine.high %v29011_v9, %v29011_v9  ;;  %v5699_v22 = vld [vmem:[%s26937_s9 + $0x7d0] sm:$0xff] }
 0x428   : > { %v17774_v31 = vpop.f32.mrf.mxu0  ;;  %v17814_v32 = vpop.f32.mrf.mxu1  ;;  %v5178_v55 = vpack.c.bf16 %v29011_v9, %v29011_v9 }
 0x429   : > { %v26046_v31 = vcombine.low %v5697_v58, %v6081_v63  ;;  %v26048_v32 = vcombine.low %v5698_v0, %v6082_v1  ;;  %v5177_v35 = vpack.c.bf16 %v2771_v18, %v2771_v18  ;;  %v5179_v36 = vpack.c.bf16 %v2772_v19, %v2772_v19  ;;  %v6086_v58 = vld [vmem:[%s26937_s9 + $0x13e8] sm:$0x11] }
 0x42a   : > { %v17775_v40 = vpop.f32.mrf.mxu0  ;;  %v17815_v41 = vpop.f32.mrf.mxu1  ;;  %v5180_v18 = vpack.c.bf16 %v29027_v37, %v29027_v37 }
 0x42b   : > { %v390_v41 = vld [vmem:[%s26930_s5 + $0x3f0] sm:$0xff] }
 0x42c   : > { %v17851_v49 = vpop.f32.mrf.mxu0  ;;  %v17891_v50 = vpop.f32.mrf.mxu1  ;;  %19770 = vmatmul.mubr.bf16.vlgmr.msra.gmra.mxu0 %v5164_v33  ;;  %19810 = vmatmul.mubr.bf16.vlgmr.msra.gmra.mxu1 %v5166_v34  ;;  %v29046_v1 = vrot.slane %v390_v41, %v26958_v24 }
 0x42d   : > { %v17852_v51 = vadd.f32 %v17851_v49, %v17812_v29  ;;  %19832 = vmatpush1.bf16.xpose.msra.mxu0 %v26038_v38  ;;  %19872 = vmatpush1.bf16.xpose.msra.mxu1 %v26040_v39  ;;  %v5700_v29 = vld [vmem:[%s26937_s9 + $0x7d8] sm:$0xff]  ;;  %v29030_v38 = vrot.slane %v2773_v20, %v26958_v24  ;;  %v26051_v39 = vcombine.high %v5699_v22, %v6083_v28  ;;  %v6087_v20 = vld [vmem:[%s26937_s9 + $0x13f0] sm:$0x11] }
 0x42e   : > { %v17853_v52 = vpop.f32.mrf.mxu0  ;;  %v17893_v53 = vpop.f32.mrf.mxu1  ;;  %19849 = vmatprep.mubr.bf16.mxu0 %v5169_v42  ;;  %19889 = vmatprep.mubr.bf16.mxu1 %v5171_v43  ;;  %v26053_v40 = vcombine.high %v5700_v29, %v6084_v30  ;;  %v2790_v49 = vcombine.high %v390_v41, %v390_v41 }
 0x42f   : > { %v17892_v57 = vadd.f32 %v17891_v50, %v17852_v51  ;;  %19911 = vmatprep.subr.bf16.mxu0 %v26043_v46  ;;  %19951 = vmatprep.subr.bf16.mxu1 %v26045_v47  ;;  %v2788_v47 = vcombine.high %v29027_v37, %v29027_v37  ;;  %v2789_v48 = vcombine.high %v29030_v38, %v29030_v38  ;;  %v5701_v51 = vld [vmem:[%s26937_s9 + $0x7e0] sm:$0xff] }
 0x430   : > { %v17854_v59 = vpop.f32.mrf.mxu0  ;;  %v17894_v60 = vpop.f32.mrf.mxu1  ;;  %v5182_v19 = vpack.c.bf16 %v29030_v38, %v29030_v38 }
 0x431   : > { %v26050_v59 = vcombine.low %v5699_v22, %v6083_v28  ;;  %v26052_v60 = vcombine.low %v5700_v29, %v6084_v30  ;;  %v5181_v63 = vpack.c.bf16 %v2788_v47, %v2788_v47  ;;  %v5183_v0 = vpack.c.bf16 %v2789_v48, %v2789_v48  ;;  %v6088_v22 = vld [vmem:[%s26937_s9 + $0x13f8] sm:$0x11] }
 0x432   : > { %v17855_v4 = vpop.f32.mrf.mxu0  ;;  %v17895_v5 = vpop.f32.mrf.mxu1  ;;  %v5184_v47 = vpack.c.bf16 %v29046_v1, %v29046_v1 }
 0x433   : > { %v391_v5 = vld [vmem:[%s26930_s5 + $0x3f8] sm:$0xff] }
 0x434   : > { %v17931_v13 = vpop.f32.mrf.mxu0  ;;  %v17971_v14 = vpop.f32.mrf.mxu1  ;;  %19850 = vmatmul.mubr.bf16.vlgmr.msra.gmra.mxu0 %v5168_v61  ;;  %19890 = vmatmul.mubr.bf16.vlgmr.msra.gmra.mxu1 %v5170_v62  ;;  %v29065_v30 = vrot.slane %v391_v5, %v26958_v24 }
 0x435   : > { %v17932_v15 = vadd.f32 %v17931_v13, %v17892_v57  ;;  %19912 = vmatpush1.bf16.xpose.msra.mxu0 %v26042_v2  ;;  %19952 = vmatpush1.bf16.xpose.msra.mxu1 %v26044_v3  ;;  %v5702_v57 = vld [vmem:[%s26937_s9 + $0x7e8] sm:$0xff]  ;;  %v29049_v2 = vrot.slane %v2790_v49, %v26958_v24  ;;  %v26055_v3 = vcombine.high %v5701_v51, %v6085_v56  ;;  %v6089_v49 = vld [vmem:[%s26937_s9 + $0x1400] sm:$0x11] }
 0x436   : > { %v17933_v16 = vpop.f32.mrf.mxu0  ;;  %v17973_v17 = vpop.f32.mrf.mxu1  ;;  %19929 = vmatprep.mubr.bf16.mxu0 %v5173_v6  ;;  %19969 = vmatprep.mubr.bf16.mxu1 %v5175_v7  ;;  %v26057_v4 = vcombine.high %v5702_v57, %v6086_v58  ;;  %v2807_v13 = vcombine.high %v391_v5, %v391_v5 }
 0x437   : > { %v17972_v21 = vadd.f32 %v17971_v14, %v17932_v15  ;;  %19991 = vmatprep.subr.bf16.mxu0 %v26047_v10  ;;  %20031 = vmatprep.subr.bf16.mxu1 %v26049_v11  ;;  %v2805_v11 = vcombine.high %v29046_v1, %v29046_v1  ;;  %v2806_v12 = vcombine.high %v29049_v2, %v29049_v2  ;;  %v5703_v15 = vld [vmem:[%s26937_s9 + $0x7f0] sm:$0xff] }
 0x438   : > { %v17934_v23 = vpop.f32.mrf.mxu0  ;;  %v17974_v25 = vpop.f32.mrf.mxu1  ;;  %v5186_v48 = vpack.c.bf16 %v29049_v2, %v29049_v2 }
 0x439   : > { %v26054_v23 = vcombine.low %v5701_v51, %v6085_v56  ;;  %v26056_v25 = vcombine.low %v5702_v57, %v6086_v58  ;;  %v5185_v28 = vpack.c.bf16 %v2805_v11, %v2805_v11  ;;  %v5187_v29 = vpack.c.bf16 %v2806_v12, %v2806_v12  ;;  %v6090_v51 = vld [vmem:[%s26937_s9 + $0x1408] sm:$0x11] }
 0x43a   : > { %v17935_v33 = vpop.f32.mrf.mxu0  ;;  %v17975_v34 = vpop.f32.mrf.mxu1  ;;  %v5188_v11 = vpack.c.bf16 %v29065_v30, %v29065_v30 }
 0x43b   : > { %v392_v34 = vld [vmem:[%s26930_s5 + $0x400] sm:$0xff] }
 0x43c   : > { %v18011_v42 = vpop.f32.mrf.mxu0  ;;  %v18051_v43 = vpop.f32.mrf.mxu1  ;;  %19930 = vmatmul.mubr.bf16.vlgmr.msra.gmra.mxu0 %v5172_v26  ;;  %19970 = vmatmul.mubr.bf16.vlgmr.msra.gmra.mxu1 %v5174_v27  ;;  %v29084_v58 = vrot.slane %v392_v34, %v26958_v24 }
 0x43d   : > { %v18012_v44 = vadd.f32 %v18011_v42, %v17972_v21  ;;  %19992 = vmatpush1.bf16.xpose.msra.mxu0 %v26046_v31  ;;  %20032 = vmatpush1.bf16.xpose.msra.mxu1 %v26048_v32  ;;  %v5704_v21 = vld [vmem:[%s26937_s9 + $0x7f8] sm:$0xff]  ;;  %v29068_v31 = vrot.slane %v2807_v13, %v26958_v24  ;;  %v26059_v32 = vcombine.high %v5703_v15, %v6087_v20  ;;  %v6091_v13 = vld [vmem:[%s26937_s9 + $0x1410] sm:$0x11] }
 0x43e   : > { %v18013_v45 = vpop.f32.mrf.mxu0  ;;  %v18053_v46 = vpop.f32.mrf.mxu1  ;;  %20009 = vmatprep.mubr.bf16.mxu0 %v5177_v35  ;;  %20049 = vmatprep.mubr.bf16.mxu1 %v5179_v36  ;;  %v26061_v33 = vcombine.high %v5704_v21, %v6088_v22  ;;  %v2824_v42 = vcombine.high %v392_v34, %v392_v34 }
 0x43f   : > { %v18052_v50 = vadd.f32 %v18051_v43, %v18012_v44  ;;  %20071 = vmatprep.subr.bf16.mxu0 %v26051_v39  ;;  %20111 = vmatprep.subr.bf16.mxu1 %v26053_v40  ;;  %v2822_v40 = vcombine.high %v29065_v30, %v29065_v30  ;;  %v2823_v41 = vcombine.high %v29068_v31, %v29068_v31  ;;  %v5705_v44 = vld [vmem:[%s26937_s9 + $0x800] sm:$0xff] }
 0x440   : > { %v18014_v52 = vpop.f32.mrf.mxu0  ;;  %v18054_v53 = vpop.f32.mrf.mxu1  ;;  %v5190_v12 = vpack.c.bf16 %v29068_v31, %v29068_v31 }
 0x441   : > { %v26058_v52 = vcombine.low %v5703_v15, %v6087_v20  ;;  %v26060_v53 = vcombine.low %v5704_v21, %v6088_v22  ;;  %v5189_v56 = vpack.c.bf16 %v2822_v40, %v2822_v40  ;;  %v5191_v57 = vpack.c.bf16 %v2823_v41, %v2823_v41  ;;  %v6092_v15 = vld [vmem:[%s26937_s9 + $0x1418] sm:$0x11] }
 0x442   : > { %v18015_v61 = vpop.f32.mrf.mxu0  ;;  %v18055_v62 = vpop.f32.mrf.mxu1  ;;  %v5192_v40 = vpack.c.bf16 %v29084_v58, %v29084_v58 }
 0x443   : > { %v393_v62 = vld [vmem:[%s26930_s5 + $0x408] sm:$0xff] }
 0x444   : > { %v18091_v6 = vpop.f32.mrf.mxu0  ;;  %v18131_v7 = vpop.f32.mrf.mxu1  ;;  %20010 = vmatmul.mubr.bf16.vlgmr.msra.gmra.mxu0 %v5176_v54  ;;  %20050 = vmatmul.mubr.bf16.vlgmr.msra.gmra.mxu1 %v5178_v55  ;;  %v29103_v22 = vrot.slane %v393_v62, %v26958_v24 }
 0x445   : > { %v18092_v8 = vadd.f32 %v18091_v6, %v18052_v50  ;;  %20072 = vmatpush1.bf16.xpose.msra.mxu0 %v26050_v59  ;;  %20112 = vmatpush1.bf16.xpose.msra.mxu1 %v26052_v60  ;;  %v5706_v50 = vld [vmem:[%s26937_s9 + $0x808] sm:$0xff]  ;;  %v29087_v59 = vrot.slane %v2824_v42, %v26958_v24  ;;  %v26063_v60 = vcombine.high %v5705_v44, %v6089_v49  ;;  %v6093_v42 = vld [vmem:[%s26937_s9 + $0x1420] sm:$0x11] }
 0x446   : > { %v18093_v9 = vpop.f32.mrf.mxu0  ;;  %v18133_v10 = vpop.f32.mrf.mxu1  ;;  %20089 = vmatprep.mubr.bf16.mxu0 %v5181_v63  ;;  %20129 = vmatprep.mubr.bf16.mxu1 %v5183_v0  ;;  %v26065_v61 = vcombine.high %v5706_v50, %v6090_v51  ;;  %v2841_v6 = vcombine.high %v393_v62, %v393_v62 }
 0x447   : > { %v18132_v14 = vadd.f32 %v18131_v7, %v18092_v8  ;;  %20151 = vmatprep.subr.bf16.mxu0 %v26055_v3  ;;  %20191 = vmatprep.subr.bf16.mxu1 %v26057_v4  ;;  %v2839_v4 = vcombine.high %v29084_v58, %v29084_v58  ;;  %v2840_v5 = vcombine.high %v29087_v59, %v29087_v59  ;;  %v5707_v8 = vld [vmem:[%s26937_s9 + $0x810] sm:$0xff] }
 0x448   : > { %v18094_v16 = vpop.f32.mrf.mxu0  ;;  %v18134_v17 = vpop.f32.mrf.mxu1  ;;  %v5194_v41 = vpack.c.bf16 %v29087_v59, %v29087_v59 }
 0x449   : > { %v26062_v16 = vcombine.low %v5705_v44, %v6089_v49  ;;  %v26064_v17 = vcombine.low %v5706_v50, %v6090_v51  ;;  %v5193_v20 = vpack.c.bf16 %v2839_v4, %v2839_v4  ;;  %v5195_v21 = vpack.c.bf16 %v2840_v5, %v2840_v5  ;;  %v6094_v44 = vld [vmem:[%s26937_s9 + $0x1428] sm:$0x11] }
 0x44a   : > { %v18095_v26 = vpop.f32.mrf.mxu0  ;;  %v18135_v27 = vpop.f32.mrf.mxu1  ;;  %v5196_v4 = vpack.c.bf16 %v29103_v22, %v29103_v22 }
 0x44b   : > { %v394_v27 = vld [vmem:[%s26930_s5 + $0x410] sm:$0xff] }
 0x44c   : > { %v18171_v35 = vpop.f32.mrf.mxu0  ;;  %v18211_v36 = vpop.f32.mrf.mxu1  ;;  %20090 = vmatmul.mubr.bf16.vlgmr.msra.gmra.mxu0 %v5180_v18  ;;  %20130 = vmatmul.mubr.bf16.vlgmr.msra.gmra.mxu1 %v5182_v19  ;;  %v29122_v51 = vrot.slane %v394_v27, %v26958_v24 }
 0x44d   : > { %v18172_v37 = vadd.f32 %v18171_v35, %v18132_v14  ;;  %20152 = vmatpush1.bf16.xpose.msra.mxu0 %v26054_v23  ;;  %20192 = vmatpush1.bf16.xpose.msra.mxu1 %v26056_v25  ;;  %v5708_v14 = vld [vmem:[%s26937_s9 + $0x818] sm:$0xff]  ;;  %v29106_v23 = vrot.slane %v2841_v6, %v26958_v24  ;;  %v26067_v25 = vcombine.high %v5707_v8, %v6091_v13  ;;  %v6095_v6 = vld [vmem:[%s26937_s9 + $0x1430] sm:$0x11] }
 0x44e   : > { %v18173_v38 = vpop.f32.mrf.mxu0  ;;  %v18213_v39 = vpop.f32.mrf.mxu1  ;;  %20169 = vmatprep.mubr.bf16.mxu0 %v5185_v28  ;;  %20209 = vmatprep.mubr.bf16.mxu1 %v5187_v29  ;;  %v26069_v26 = vcombine.high %v5708_v14, %v6092_v15  ;;  %v2858_v35 = vcombine.high %v394_v27, %v394_v27 }
 0x44f   : > { %v18212_v43 = vadd.f32 %v18211_v36, %v18172_v37  ;;  %20231 = vmatprep.subr.bf16.mxu0 %v26059_v32  ;;  %20271 = vmatprep.subr.bf16.mxu1 %v26061_v33  ;;  %v2856_v33 = vcombine.high %v29103_v22, %v29103_v22  ;;  %v2857_v34 = vcombine.high %v29106_v23, %v29106_v23  ;;  %v5709_v37 = vld [vmem:[%s26937_s9 + $0x820] sm:$0xff] }
 0x450   : > { %v18174_v45 = vpop.f32.mrf.mxu0  ;;  %v18214_v46 = vpop.f32.mrf.mxu1  ;;  %v5198_v5 = vpack.c.bf16 %v29106_v23, %v29106_v23 }
 0x451   : > { %v26066_v45 = vcombine.low %v5707_v8, %v6091_v13  ;;  %v26068_v46 = vcombine.low %v5708_v14, %v6092_v15  ;;  %v5197_v49 = vpack.c.bf16 %v2856_v33, %v2856_v33  ;;  %v5199_v50 = vpack.c.bf16 %v2857_v34, %v2857_v34  ;;  %v6096_v8 = vld [vmem:[%s26937_s9 + $0x1438] sm:$0x11] }
 0x452   : > { %v18175_v54 = vpop.f32.mrf.mxu0  ;;  %v18215_v55 = vpop.f32.mrf.mxu1  ;;  %v5200_v33 = vpack.c.bf16 %v29122_v51, %v29122_v51 }
 0x453   : > { %v395_v55 = vld [vmem:[%s26930_s5 + $0x418] sm:$0xff] }
 0x454   : > { %v18251_v63 = vpop.f32.mrf.mxu0  ;;  %v18291_v0 = vpop.f32.mrf.mxu1  ;;  %20170 = vmatmul.mubr.bf16.vlgmr.msra.gmra.mxu0 %v5184_v47  ;;  %20210 = vmatmul.mubr.bf16.vlgmr.msra.gmra.mxu1 %v5186_v48  ;;  %v29141_v15 = vrot.slane %v395_v55, %v26958_v24 }
 0x455   : > { %v18252_v1 = vadd.f32 %v18251_v63, %v18212_v43  ;;  %20232 = vmatpush1.bf16.xpose.msra.mxu0 %v26058_v52  ;;  %20272 = vmatpush1.bf16.xpose.msra.mxu1 %v26060_v53  ;;  %v5710_v43 = vld [vmem:[%s26937_s9 + $0x828] sm:$0xff]  ;;  %v29125_v52 = vrot.slane %v2858_v35, %v26958_v24  ;;  %v26071_v53 = vcombine.high %v5709_v37, %v6093_v42  ;;  %v6097_v35 = vld [vmem:[%s26937_s9 + $0x1440] sm:$0x11] }
 0x456   : > { %v18253_v2 = vpop.f32.mrf.mxu0  ;;  %v18293_v3 = vpop.f32.mrf.mxu1  ;;  %20249 = vmatprep.mubr.bf16.mxu0 %v5189_v56  ;;  %20289 = vmatprep.mubr.bf16.mxu1 %v5191_v57  ;;  %v26073_v54 = vcombine.high %v5710_v43, %v6094_v44  ;;  %v2875_v63 = vcombine.high %v395_v55, %v395_v55 }
 0x457   : > { %v18292_v7 = vadd.f32 %v18291_v0, %v18252_v1  ;;  %20311 = vmatprep.subr.bf16.mxu0 %v26063_v60  ;;  %20351 = vmatprep.subr.bf16.mxu1 %v26065_v61  ;;  %v2873_v61 = vcombine.high %v29122_v51, %v29122_v51  ;;  %v2874_v62 = vcombine.high %v29125_v52, %v29125_v52  ;;  %v5711_v1 = vld [vmem:[%s26937_s9 + $0x830] sm:$0xff] }
 0x458   : > { %v18254_v9 = vpop.f32.mrf.mxu0  ;;  %v18294_v10 = vpop.f32.mrf.mxu1  ;;  %v5202_v34 = vpack.c.bf16 %v29125_v52, %v29125_v52 }
 0x459   : > { %v26070_v9 = vcombine.low %v5709_v37, %v6093_v42  ;;  %v26072_v10 = vcombine.low %v5710_v43, %v6094_v44  ;;  %v5201_v13 = vpack.c.bf16 %v2873_v61, %v2873_v61  ;;  %v5203_v14 = vpack.c.bf16 %v2874_v62, %v2874_v62  ;;  %v6098_v37 = vld [vmem:[%s26937_s9 + $0x1448] sm:$0x11] }
 0x45a   : > { %v18255_v18 = vpop.f32.mrf.mxu0  ;;  %v18295_v19 = vpop.f32.mrf.mxu1  ;;  %v5204_v61 = vpack.c.bf16 %v29141_v15, %v29141_v15 }
 0x45b   : > { %v396_v19 = vld [vmem:[%s26930_s5 + $0x420] sm:$0xff] }
 0x45c   : > { %v18331_v28 = vpop.f32.mrf.mxu0  ;;  %v18371_v29 = vpop.f32.mrf.mxu1  ;;  %20250 = vmatmul.mubr.bf16.vlgmr.msra.gmra.mxu0 %v5188_v11  ;;  %20290 = vmatmul.mubr.bf16.vlgmr.msra.gmra.mxu1 %v5190_v12  ;;  %v29160_v44 = vrot.slane %v396_v19, %v26958_v24 }
 0x45d   : > { %v18332_v30 = vadd.f32 %v18331_v28, %v18292_v7  ;;  %20312 = vmatpush1.bf16.xpose.msra.mxu0 %v26062_v16  ;;  %20352 = vmatpush1.bf16.xpose.msra.mxu1 %v26064_v17  ;;  %v5712_v7 = vld [vmem:[%s26937_s9 + $0x838] sm:$0xff]  ;;  %v29144_v16 = vrot.slane %v2875_v63, %v26958_v24  ;;  %v26075_v17 = vcombine.high %v5711_v1, %v6095_v6  ;;  %v6099_v63 = vld [vmem:[%s26937_s9 + $0x1450] sm:$0x11] }
 0x45e   : > { %v18333_v31 = vpop.f32.mrf.mxu0  ;;  %v18373_v32 = vpop.f32.mrf.mxu1  ;;  %20329 = vmatprep.mubr.bf16.mxu0 %v5193_v20  ;;  %20369 = vmatprep.mubr.bf16.mxu1 %v5195_v21  ;;  %v26077_v18 = vcombine.high %v5712_v7, %v6096_v8  ;;  %v2892_v28 = vcombine.high %v396_v19, %v396_v19 }
 0x45f   : > { %v18372_v36 = vadd.f32 %v18371_v29, %v18332_v30  ;;  %20391 = vmatprep.subr.bf16.mxu0 %v26067_v25  ;;  %20431 = vmatprep.subr.bf16.mxu1 %v26069_v26  ;;  %v2890_v26 = vcombine.high %v29141_v15, %v29141_v15  ;;  %v2891_v27 = vcombine.high %v29144_v16, %v29144_v16  ;;  %v5713_v30 = vld [vmem:[%s26937_s9 + $0x840] sm:$0xff] }
 0x460   : > { %v18334_v38 = vpop.f32.mrf.mxu0  ;;  %v18374_v39 = vpop.f32.mrf.mxu1  ;;  %v5206_v62 = vpack.c.bf16 %v29144_v16, %v29144_v16 }
 0x461   : > { %v26074_v38 = vcombine.low %v5711_v1, %v6095_v6  ;;  %v26076_v39 = vcombine.low %v5712_v7, %v6096_v8  ;;  %v5205_v42 = vpack.c.bf16 %v2890_v26, %v2890_v26  ;;  %v5207_v43 = vpack.c.bf16 %v2891_v27, %v2891_v27  ;;  %v6100_v1 = vld [vmem:[%s26937_s9 + $0x1458] sm:$0x11] }
 0x462   : > { %v18335_v47 = vpop.f32.mrf.mxu0  ;;  %v18375_v48 = vpop.f32.mrf.mxu1  ;;  %v5208_v26 = vpack.c.bf16 %v29160_v44, %v29160_v44 }
 0x463   : > { %v397_v48 = vld [vmem:[%s26930_s5 + $0x428] sm:$0xff] }
 0x464   : > { %v18411_v56 = vpop.f32.mrf.mxu0  ;;  %v18451_v57 = vpop.f32.mrf.mxu1  ;;  %20330 = vmatmul.mubr.bf16.vlgmr.msra.gmra.mxu0 %v5192_v40  ;;  %20370 = vmatmul.mubr.bf16.vlgmr.msra.gmra.mxu1 %v5194_v41  ;;  %v29179_v8 = vrot.slane %v397_v48, %v26958_v24 }
 0x465   : > { %v18412_v58 = vadd.f32 %v18411_v56, %v18372_v36  ;;  %20392 = vmatpush1.bf16.xpose.msra.mxu0 %v26066_v45  ;;  %20432 = vmatpush1.bf16.xpose.msra.mxu1 %v26068_v46  ;;  %v5714_v36 = vld [vmem:[%s26937_s9 + $0x848] sm:$0xff]  ;;  %v29163_v45 = vrot.slane %v2892_v28, %v26958_v24  ;;  %v26079_v46 = vcombine.high %v5713_v30, %v6097_v35  ;;  %v6101_v28 = vld [vmem:[%s26937_s9 + $0x1460] sm:$0x11] }
 0x466   : > { %v18413_v59 = vpop.f32.mrf.mxu0  ;;  %v18453_v60 = vpop.f32.mrf.mxu1  ;;  %20409 = vmatprep.mubr.bf16.mxu0 %v5197_v49  ;;  %20449 = vmatprep.mubr.bf16.mxu1 %v5199_v50  ;;  %v26081_v47 = vcombine.high %v5714_v36, %v6098_v37  ;;  %v2909_v56 = vcombine.high %v397_v48, %v397_v48 }
 0x467   : > { %v18452_v0 = vadd.f32 %v18451_v57, %v18412_v58  ;;  %20471 = vmatprep.subr.bf16.mxu0 %v26071_v53  ;;  %20511 = vmatprep.subr.bf16.mxu1 %v26073_v54  ;;  %v2907_v54 = vcombine.high %v29160_v44, %v29160_v44  ;;  %v2908_v55 = vcombine.high %v29163_v45, %v29163_v45  ;;  %v5715_v58 = vld [vmem:[%s26937_s9 + $0x850] sm:$0xff] }
 0x468   : > { %v18414_v2 = vpop.f32.mrf.mxu0  ;;  %v18454_v3 = vpop.f32.mrf.mxu1  ;;  %v5210_v27 = vpack.c.bf16 %v29163_v45, %v29163_v45 }
 0x469   : > { %v26078_v2 = vcombine.low %v5713_v30, %v6097_v35  ;;  %v26080_v3 = vcombine.low %v5714_v36, %v6098_v37  ;;  %v5209_v6 = vpack.c.bf16 %v2907_v54, %v2907_v54  ;;  %v5211_v7 = vpack.c.bf16 %v2908_v55, %v2908_v55  ;;  %v6102_v30 = vld [vmem:[%s26937_s9 + $0x1468] sm:$0x11] }
 0x46a   : > { %v18415_v11 = vpop.f32.mrf.mxu0  ;;  %v18455_v12 = vpop.f32.mrf.mxu1  ;;  %v5212_v54 = vpack.c.bf16 %v29179_v8, %v29179_v8 }
 0x46b   : > { %v398_v12 = vld [vmem:[%s26930_s5 + $0x430] sm:$0xff] }
 0x46c   : > { %v18491_v20 = vpop.f32.mrf.mxu0  ;;  %v18531_v21 = vpop.f32.mrf.mxu1  ;;  %20410 = vmatmul.mubr.bf16.vlgmr.msra.gmra.mxu0 %v5196_v4  ;;  %20450 = vmatmul.mubr.bf16.vlgmr.msra.gmra.mxu1 %v5198_v5  ;;  %v29198_v37 = vrot.slane %v398_v12, %v26958_v24 }
 0x46d   : > { %v18492_v22 = vadd.f32 %v18491_v20, %v18452_v0  ;;  %20472 = vmatpush1.bf16.xpose.msra.mxu0 %v26070_v9  ;;  %20512 = vmatpush1.bf16.xpose.msra.mxu1 %v26072_v10  ;;  %v5716_v0 = vld [vmem:[%s26937_s9 + $0x858] sm:$0xff]  ;;  %v29182_v9 = vrot.slane %v2909_v56, %v26958_v24  ;;  %v26083_v10 = vcombine.high %v5715_v58, %v6099_v63  ;;  %v6103_v56 = vld [vmem:[%s26937_s9 + $0x1470] sm:$0x11] }
 0x46e   : > { %v18493_v23 = vpop.f32.mrf.mxu0  ;;  %v18533_v25 = vpop.f32.mrf.mxu1  ;;  %20489 = vmatprep.mubr.bf16.mxu0 %v5201_v13  ;;  %20529 = vmatprep.mubr.bf16.mxu1 %v5203_v14  ;;  %v26085_v11 = vcombine.high %v5716_v0, %v6100_v1  ;;  %v2926_v20 = vcombine.high %v398_v12, %v398_v12 }
 0x46f   : > { %v18532_v29 = vadd.f32 %v18531_v21, %v18492_v22  ;;  %20551 = vmatprep.subr.bf16.mxu0 %v26075_v17  ;;  %20591 = vmatprep.subr.bf16.mxu1 %v26077_v18  ;;  %v2924_v18 = vcombine.high %v29179_v8, %v29179_v8  ;;  %v2925_v19 = vcombine.high %v29182_v9, %v29182_v9  ;;  %v5717_v22 = vld [vmem:[%s26937_s9 + $0x860] sm:$0xff] }
 0x470   : > { %v18494_v31 = vpop.f32.mrf.mxu0  ;;  %v18534_v32 = vpop.f32.mrf.mxu1  ;;  %v5214_v55 = vpack.c.bf16 %v29182_v9, %v29182_v9 }
 0x471   : > { %v26082_v31 = vcombine.low %v5715_v58, %v6099_v63  ;;  %v26084_v32 = vcombine.low %v5716_v0, %v6100_v1  ;;  %v5213_v35 = vpack.c.bf16 %v2924_v18, %v2924_v18  ;;  %v5215_v36 = vpack.c.bf16 %v2925_v19, %v2925_v19  ;;  %v6104_v58 = vld [vmem:[%s26937_s9 + $0x1478] sm:$0x11] }
 0x472   : > { %v18495_v40 = vpop.f32.mrf.mxu0  ;;  %v18535_v41 = vpop.f32.mrf.mxu1  ;;  %v5216_v18 = vpack.c.bf16 %v29198_v37, %v29198_v37 }
 0x473   : > { %v399_v41 = vld [vmem:[%s26930_s5 + $0x438] sm:$0xff] }
 0x474   : > { %v18571_v49 = vpop.f32.mrf.mxu0  ;;  %v18611_v50 = vpop.f32.mrf.mxu1  ;;  %20490 = vmatmul.mubr.bf16.vlgmr.msra.gmra.mxu0 %v5200_v33  ;;  %20530 = vmatmul.mubr.bf16.vlgmr.msra.gmra.mxu1 %v5202_v34  ;;  %v29217_v1 = vrot.slane %v399_v41, %v26958_v24 }
 0x475   : > { %v18572_v51 = vadd.f32 %v18571_v49, %v18532_v29  ;;  %20552 = vmatpush1.bf16.xpose.msra.mxu0 %v26074_v38  ;;  %20592 = vmatpush1.bf16.xpose.msra.mxu1 %v26076_v39  ;;  %v5718_v29 = vld [vmem:[%s26937_s9 + $0x868] sm:$0xff]  ;;  %v29201_v38 = vrot.slane %v2926_v20, %v26958_v24  ;;  %v26087_v39 = vcombine.high %v5717_v22, %v6101_v28  ;;  %v6105_v20 = vld [vmem:[%s26937_s9 + $0x1480] sm:$0x11] }
 0x476   : > { %v18573_v52 = vpop.f32.mrf.mxu0  ;;  %v18613_v53 = vpop.f32.mrf.mxu1  ;;  %20569 = vmatprep.mubr.bf16.mxu0 %v5205_v42  ;;  %20609 = vmatprep.mubr.bf16.mxu1 %v5207_v43  ;;  %v26089_v40 = vcombine.high %v5718_v29, %v6102_v30  ;;  %v2943_v49 = vcombine.high %v399_v41, %v399_v41 }
 0x477   : > { %v18612_v57 = vadd.f32 %v18611_v50, %v18572_v51  ;;  %20631 = vmatprep.subr.bf16.mxu0 %v26079_v46  ;;  %20671 = vmatprep.subr.bf16.mxu1 %v26081_v47  ;;  %v2941_v47 = vcombine.high %v29198_v37, %v29198_v37  ;;  %v2942_v48 = vcombine.high %v29201_v38, %v29201_v38  ;;  %v5719_v51 = vld [vmem:[%s26937_s9 + $0x870] sm:$0xff] }
 0x478   : > { %v18574_v59 = vpop.f32.mrf.mxu0  ;;  %v18614_v60 = vpop.f32.mrf.mxu1  ;;  %v5218_v19 = vpack.c.bf16 %v29201_v38, %v29201_v38 }
 0x479   : > { %v26086_v59 = vcombine.low %v5717_v22, %v6101_v28  ;;  %v26088_v60 = vcombine.low %v5718_v29, %v6102_v30  ;;  %v5217_v63 = vpack.c.bf16 %v2941_v47, %v2941_v47  ;;  %v5219_v0 = vpack.c.bf16 %v2942_v48, %v2942_v48  ;;  %v6106_v22 = vld [vmem:[%s26937_s9 + $0x1488] sm:$0x11] }
 0x47a   : > { %v18575_v4 = vpop.f32.mrf.mxu0  ;;  %v18615_v5 = vpop.f32.mrf.mxu1  ;;  %v5220_v47 = vpack.c.bf16 %v29217_v1, %v29217_v1 }
 0x47b   : > { %v400_v5 = vld [vmem:[%s26930_s5 + $0x440] sm:$0xff] }
 0x47c   : > { %v18651_v13 = vpop.f32.mrf.mxu0  ;;  %v18691_v14 = vpop.f32.mrf.mxu1  ;;  %20570 = vmatmul.mubr.bf16.vlgmr.msra.gmra.mxu0 %v5204_v61  ;;  %20610 = vmatmul.mubr.bf16.vlgmr.msra.gmra.mxu1 %v5206_v62  ;;  %v29236_v30 = vrot.slane %v400_v5, %v26958_v24 }
 0x47d   : > { %v18652_v15 = vadd.f32 %v18651_v13, %v18612_v57  ;;  %20632 = vmatpush1.bf16.xpose.msra.mxu0 %v26078_v2  ;;  %20672 = vmatpush1.bf16.xpose.msra.mxu1 %v26080_v3  ;;  %v5720_v57 = vld [vmem:[%s26937_s9 + $0x878] sm:$0xff]  ;;  %v29220_v2 = vrot.slane %v2943_v49, %v26958_v24  ;;  %v26091_v3 = vcombine.high %v5719_v51, %v6103_v56  ;;  %v6107_v49 = vld [vmem:[%s26937_s9 + $0x1490] sm:$0x11] }
 0x47e   : > { %v18653_v16 = vpop.f32.mrf.mxu0  ;;  %v18693_v17 = vpop.f32.mrf.mxu1  ;;  %20649 = vmatprep.mubr.bf16.mxu0 %v5209_v6  ;;  %20689 = vmatprep.mubr.bf16.mxu1 %v5211_v7  ;;  %v26093_v4 = vcombine.high %v5720_v57, %v6104_v58  ;;  %v2960_v13 = vcombine.high %v400_v5, %v400_v5 }
 0x47f   : > { %v18692_v21 = vadd.f32 %v18691_v14, %v18652_v15  ;;  %20711 = vmatprep.subr.bf16.mxu0 %v26083_v10  ;;  %20751 = vmatprep.subr.bf16.mxu1 %v26085_v11  ;;  %v2958_v11 = vcombine.high %v29217_v1, %v29217_v1  ;;  %v2959_v12 = vcombine.high %v29220_v2, %v29220_v2  ;;  %v5721_v15 = vld [vmem:[%s26937_s9 + $0x880] sm:$0xff] }
 0x480   : > { %v18654_v23 = vpop.f32.mrf.mxu0  ;;  %v18694_v25 = vpop.f32.mrf.mxu1  ;;  %v5222_v48 = vpack.c.bf16 %v29220_v2, %v29220_v2 }
 0x481   : > { %v26090_v23 = vcombine.low %v5719_v51, %v6103_v56  ;;  %v26092_v25 = vcombine.low %v5720_v57, %v6104_v58  ;;  %v5221_v28 = vpack.c.bf16 %v2958_v11, %v2958_v11  ;;  %v5223_v29 = vpack.c.bf16 %v2959_v12, %v2959_v12  ;;  %v6108_v51 = vld [vmem:[%s26937_s9 + $0x1498] sm:$0x11] }
 0x482   : > { %v18655_v33 = vpop.f32.mrf.mxu0  ;;  %v18695_v34 = vpop.f32.mrf.mxu1  ;;  %v5224_v11 = vpack.c.bf16 %v29236_v30, %v29236_v30 }
 0x483   : > { %v401_v34 = vld [vmem:[%s26930_s5 + $0x448] sm:$0xff] }
 0x484   : > { %v18731_v42 = vpop.f32.mrf.mxu0  ;;  %v18771_v43 = vpop.f32.mrf.mxu1  ;;  %20650 = vmatmul.mubr.bf16.vlgmr.msra.gmra.mxu0 %v5208_v26  ;;  %20690 = vmatmul.mubr.bf16.vlgmr.msra.gmra.mxu1 %v5210_v27  ;;  %v29255_v58 = vrot.slane %v401_v34, %v26958_v24 }
 0x485   : > { %v18732_v44 = vadd.f32 %v18731_v42, %v18692_v21  ;;  %20712 = vmatpush1.bf16.xpose.msra.mxu0 %v26082_v31  ;;  %20752 = vmatpush1.bf16.xpose.msra.mxu1 %v26084_v32  ;;  %v5722_v21 = vld [vmem:[%s26937_s9 + $0x888] sm:$0xff]  ;;  %v29239_v31 = vrot.slane %v2960_v13, %v26958_v24  ;;  %v26095_v32 = vcombine.high %v5721_v15, %v6105_v20  ;;  %v6109_v13 = vld [vmem:[%s26937_s9 + $0x14a0] sm:$0x11] }
 0x486   : > { %v18733_v45 = vpop.f32.mrf.mxu0  ;;  %v18773_v46 = vpop.f32.mrf.mxu1  ;;  %20729 = vmatprep.mubr.bf16.mxu0 %v5213_v35  ;;  %20769 = vmatprep.mubr.bf16.mxu1 %v5215_v36  ;;  %v26097_v33 = vcombine.high %v5722_v21, %v6106_v22  ;;  %v2977_v42 = vcombine.high %v401_v34, %v401_v34 }
 0x487   : > { %v18772_v50 = vadd.f32 %v18771_v43, %v18732_v44  ;;  %20791 = vmatprep.subr.bf16.mxu0 %v26087_v39  ;;  %20831 = vmatprep.subr.bf16.mxu1 %v26089_v40  ;;  %v2975_v40 = vcombine.high %v29236_v30, %v29236_v30  ;;  %v2976_v41 = vcombine.high %v29239_v31, %v29239_v31  ;;  %v5723_v44 = vld [vmem:[%s26937_s9 + $0x890] sm:$0xff] }
 0x488   : > { %v18734_v52 = vpop.f32.mrf.mxu0  ;;  %v18774_v53 = vpop.f32.mrf.mxu1  ;;  %v5226_v12 = vpack.c.bf16 %v29239_v31, %v29239_v31 }
 0x489   : > { %v26094_v52 = vcombine.low %v5721_v15, %v6105_v20  ;;  %v26096_v53 = vcombine.low %v5722_v21, %v6106_v22  ;;  %v5225_v56 = vpack.c.bf16 %v2975_v40, %v2975_v40  ;;  %v5227_v57 = vpack.c.bf16 %v2976_v41, %v2976_v41  ;;  %v6110_v15 = vld [vmem:[%s26937_s9 + $0x14a8] sm:$0x11] }
 0x48a   : > { %v18735_v61 = vpop.f32.mrf.mxu0  ;;  %v18775_v62 = vpop.f32.mrf.mxu1  ;;  %v5228_v40 = vpack.c.bf16 %v29255_v58, %v29255_v58 }
 0x48b   : > { %v402_v62 = vld [vmem:[%s26930_s5 + $0x450] sm:$0xff] }
 0x48c   : > { %v18811_v6 = vpop.f32.mrf.mxu0  ;;  %v18851_v7 = vpop.f32.mrf.mxu1  ;;  %20730 = vmatmul.mubr.bf16.vlgmr.msra.gmra.mxu0 %v5212_v54  ;;  %20770 = vmatmul.mubr.bf16.vlgmr.msra.gmra.mxu1 %v5214_v55  ;;  %v29274_v22 = vrot.slane %v402_v62, %v26958_v24 }
 0x48d   : > { %v18812_v8 = vadd.f32 %v18811_v6, %v18772_v50  ;;  %20792 = vmatpush1.bf16.xpose.msra.mxu0 %v26086_v59  ;;  %20832 = vmatpush1.bf16.xpose.msra.mxu1 %v26088_v60  ;;  %v5724_v50 = vld [vmem:[%s26937_s9 + $0x898] sm:$0xff]  ;;  %v29258_v59 = vrot.slane %v2977_v42, %v26958_v24  ;;  %v26099_v60 = vcombine.high %v5723_v44, %v6107_v49  ;;  %v6111_v42 = vld [vmem:[%s26937_s9 + $0x14b0] sm:$0x11] }
 0x48e   : > { %v18813_v9 = vpop.f32.mrf.mxu0  ;;  %v18853_v10 = vpop.f32.mrf.mxu1  ;;  %20809 = vmatprep.mubr.bf16.mxu0 %v5217_v63  ;;  %20849 = vmatprep.mubr.bf16.mxu1 %v5219_v0  ;;  %v26101_v61 = vcombine.high %v5724_v50, %v6108_v51  ;;  %v2994_v6 = vcombine.high %v402_v62, %v402_v62 }
 0x48f   : > { %v18852_v14 = vadd.f32 %v18851_v7, %v18812_v8  ;;  %20871 = vmatprep.subr.bf16.mxu0 %v26091_v3  ;;  %20911 = vmatprep.subr.bf16.mxu1 %v26093_v4  ;;  %v2992_v4 = vcombine.high %v29255_v58, %v29255_v58  ;;  %v2993_v5 = vcombine.high %v29258_v59, %v29258_v59  ;;  %v5725_v8 = vld [vmem:[%s26937_s9 + $0x8a0] sm:$0xff] }
 0x490   : > { %v18814_v16 = vpop.f32.mrf.mxu0  ;;  %v18854_v17 = vpop.f32.mrf.mxu1  ;;  %v5230_v41 = vpack.c.bf16 %v29258_v59, %v29258_v59 }
 0x491   : > { %v26098_v16 = vcombine.low %v5723_v44, %v6107_v49  ;;  %v26100_v17 = vcombine.low %v5724_v50, %v6108_v51  ;;  %v5229_v20 = vpack.c.bf16 %v2992_v4, %v2992_v4  ;;  %v5231_v21 = vpack.c.bf16 %v2993_v5, %v2993_v5  ;;  %v6112_v44 = vld [vmem:[%s26937_s9 + $0x14b8] sm:$0x11] }
 0x492   : > { %v18815_v26 = vpop.f32.mrf.mxu0  ;;  %v18855_v27 = vpop.f32.mrf.mxu1  ;;  %v5232_v4 = vpack.c.bf16 %v29274_v22, %v29274_v22 }
 0x493   : > { %v403_v27 = vld [vmem:[%s26930_s5 + $0x458] sm:$0xff] }
 0x494   : > { %v18891_v35 = vpop.f32.mrf.mxu0  ;;  %v18931_v36 = vpop.f32.mrf.mxu1  ;;  %20810 = vmatmul.mubr.bf16.vlgmr.msra.gmra.mxu0 %v5216_v18  ;;  %20850 = vmatmul.mubr.bf16.vlgmr.msra.gmra.mxu1 %v5218_v19  ;;  %v29293_v51 = vrot.slane %v403_v27, %v26958_v24 }
 0x495   : > { %v18892_v37 = vadd.f32 %v18891_v35, %v18852_v14  ;;  %20872 = vmatpush1.bf16.xpose.msra.mxu0 %v26090_v23  ;;  %20912 = vmatpush1.bf16.xpose.msra.mxu1 %v26092_v25  ;;  %v5726_v14 = vld [vmem:[%s26937_s9 + $0x8a8] sm:$0xff]  ;;  %v29277_v23 = vrot.slane %v2994_v6, %v26958_v24  ;;  %v26103_v25 = vcombine.high %v5725_v8, %v6109_v13  ;;  %v6113_v6 = vld [vmem:[%s26937_s9 + $0x14c0] sm:$0x11] }
 0x496   : > { %v18893_v38 = vpop.f32.mrf.mxu0  ;;  %v18933_v39 = vpop.f32.mrf.mxu1  ;;  %20889 = vmatprep.mubr.bf16.mxu0 %v5221_v28  ;;  %20929 = vmatprep.mubr.bf16.mxu1 %v5223_v29  ;;  %v26105_v26 = vcombine.high %v5726_v14, %v6110_v15  ;;  %v3011_v35 = vcombine.high %v403_v27, %v403_v27 }
 0x497   : > { %v18932_v43 = vadd.f32 %v18931_v36, %v18892_v37  ;;  %20951 = vmatprep.subr.bf16.mxu0 %v26095_v32  ;;  %20991 = vmatprep.subr.bf16.mxu1 %v26097_v33  ;;  %v3009_v33 = vcombine.high %v29274_v22, %v29274_v22  ;;  %v3010_v34 = vcombine.high %v29277_v23, %v29277_v23  ;;  %v5727_v37 = vld [vmem:[%s26937_s9 + $0x8b0] sm:$0xff] }
 0x498   : > { %v18894_v45 = vpop.f32.mrf.mxu0  ;;  %v18934_v46 = vpop.f32.mrf.mxu1  ;;  %v5234_v5 = vpack.c.bf16 %v29277_v23, %v29277_v23 }
 0x499   : > { %v26102_v45 = vcombine.low %v5725_v8, %v6109_v13  ;;  %v26104_v46 = vcombine.low %v5726_v14, %v6110_v15  ;;  %v5233_v49 = vpack.c.bf16 %v3009_v33, %v3009_v33  ;;  %v5235_v50 = vpack.c.bf16 %v3010_v34, %v3010_v34  ;;  %v6114_v8 = vld [vmem:[%s26937_s9 + $0x14c8] sm:$0x11] }
 0x49a   : > { %v18895_v54 = vpop.f32.mrf.mxu0  ;;  %v18935_v55 = vpop.f32.mrf.mxu1  ;;  %v5236_v33 = vpack.c.bf16 %v29293_v51, %v29293_v51 }
 0x49b   : > { %v404_v55 = vld [vmem:[%s26930_s5 + $0x460] sm:$0xff] }
 0x49c   : > { %v18971_v63 = vpop.f32.mrf.mxu0  ;;  %v19011_v0 = vpop.f32.mrf.mxu1  ;;  %20890 = vmatmul.mubr.bf16.vlgmr.msra.gmra.mxu0 %v5220_v47  ;;  %20930 = vmatmul.mubr.bf16.vlgmr.msra.gmra.mxu1 %v5222_v48  ;;  %v29312_v15 = vrot.slane %v404_v55, %v26958_v24 }
 0x49d   : > { %v18972_v1 = vadd.f32 %v18971_v63, %v18932_v43  ;;  %20952 = vmatpush1.bf16.xpose.msra.mxu0 %v26094_v52  ;;  %20992 = vmatpush1.bf16.xpose.msra.mxu1 %v26096_v53  ;;  %v5728_v43 = vld [vmem:[%s26937_s9 + $0x8b8] sm:$0xff]  ;;  %v29296_v52 = vrot.slane %v3011_v35, %v26958_v24  ;;  %v26107_v53 = vcombine.high %v5727_v37, %v6111_v42  ;;  %v6115_v35 = vld [vmem:[%s26937_s9 + $0x14d0] sm:$0x11] }
 0x49e   : > { %v18973_v2 = vpop.f32.mrf.mxu0  ;;  %v19013_v3 = vpop.f32.mrf.mxu1  ;;  %20969 = vmatprep.mubr.bf16.mxu0 %v5225_v56  ;;  %21009 = vmatprep.mubr.bf16.mxu1 %v5227_v57  ;;  %v26109_v54 = vcombine.high %v5728_v43, %v6112_v44  ;;  %v3028_v63 = vcombine.high %v404_v55, %v404_v55 }
 0x49f   : > { %v19012_v7 = vadd.f32 %v19011_v0, %v18972_v1  ;;  %21031 = vmatprep.subr.bf16.mxu0 %v26099_v60  ;;  %21071 = vmatprep.subr.bf16.mxu1 %v26101_v61  ;;  %v3026_v61 = vcombine.high %v29293_v51, %v29293_v51  ;;  %v3027_v62 = vcombine.high %v29296_v52, %v29296_v52  ;;  %v5729_v1 = vld [vmem:[%s26937_s9 + $0x8c0] sm:$0xff] }
 0x4a0   : > { %v18974_v9 = vpop.f32.mrf.mxu0  ;;  %v19014_v10 = vpop.f32.mrf.mxu1  ;;  %v5238_v34 = vpack.c.bf16 %v29296_v52, %v29296_v52 }
 0x4a1   : > { %v26106_v9 = vcombine.low %v5727_v37, %v6111_v42  ;;  %v26108_v10 = vcombine.low %v5728_v43, %v6112_v44  ;;  %v5237_v13 = vpack.c.bf16 %v3026_v61, %v3026_v61  ;;  %v5239_v14 = vpack.c.bf16 %v3027_v62, %v3027_v62  ;;  %v6116_v37 = vld [vmem:[%s26937_s9 + $0x14d8] sm:$0x11] }
 0x4a2   : > { %v18975_v18 = vpop.f32.mrf.mxu0  ;;  %v19015_v19 = vpop.f32.mrf.mxu1  ;;  %v5240_v61 = vpack.c.bf16 %v29312_v15, %v29312_v15 }
 0x4a3   : > { %v405_v19 = vld [vmem:[%s26930_s5 + $0x468] sm:$0xff] }
 0x4a4   : > { %v19051_v28 = vpop.f32.mrf.mxu0  ;;  %v19091_v29 = vpop.f32.mrf.mxu1  ;;  %20970 = vmatmul.mubr.bf16.vlgmr.msra.gmra.mxu0 %v5224_v11  ;;  %21010 = vmatmul.mubr.bf16.vlgmr.msra.gmra.mxu1 %v5226_v12  ;;  %v29331_v44 = vrot.slane %v405_v19, %v26958_v24 }
 0x4a5   : > { %v19052_v30 = vadd.f32 %v19051_v28, %v19012_v7  ;;  %21032 = vmatpush1.bf16.xpose.msra.mxu0 %v26098_v16  ;;  %21072 = vmatpush1.bf16.xpose.msra.mxu1 %v26100_v17  ;;  %v5730_v7 = vld [vmem:[%s26937_s9 + $0x8c8] sm:$0xff]  ;;  %v29315_v16 = vrot.slane %v3028_v63, %v26958_v24  ;;  %v26111_v17 = vcombine.high %v5729_v1, %v6113_v6  ;;  %v6117_v63 = vld [vmem:[%s26937_s9 + $0x14e0] sm:$0x11] }
 0x4a6   : > { %v19053_v31 = vpop.f32.mrf.mxu0  ;;  %v19093_v32 = vpop.f32.mrf.mxu1  ;;  %21049 = vmatprep.mubr.bf16.mxu0 %v5229_v20  ;;  %21089 = vmatprep.mubr.bf16.mxu1 %v5231_v21  ;;  %v26113_v18 = vcombine.high %v5730_v7, %v6114_v8  ;;  %v3045_v28 = vcombine.high %v405_v19, %v405_v19 }
 0x4a7   : > { %v19092_v36 = vadd.f32 %v19091_v29, %v19052_v30  ;;  %21111 = vmatprep.subr.bf16.mxu0 %v26103_v25  ;;  %21151 = vmatprep.subr.bf16.mxu1 %v26105_v26  ;;  %v3043_v26 = vcombine.high %v29312_v15, %v29312_v15  ;;  %v3044_v27 = vcombine.high %v29315_v16, %v29315_v16  ;;  %v5731_v30 = vld [vmem:[%s26937_s9 + $0x8d0] sm:$0xff] }
 0x4a8   : > { %v19054_v38 = vpop.f32.mrf.mxu0  ;;  %v19094_v39 = vpop.f32.mrf.mxu1  ;;  %v5242_v62 = vpack.c.bf16 %v29315_v16, %v29315_v16 }
 0x4a9   : > { %v26110_v38 = vcombine.low %v5729_v1, %v6113_v6  ;;  %v26112_v39 = vcombine.low %v5730_v7, %v6114_v8  ;;  %v5241_v42 = vpack.c.bf16 %v3043_v26, %v3043_v26  ;;  %v5243_v43 = vpack.c.bf16 %v3044_v27, %v3044_v27  ;;  %v6118_v1 = vld [vmem:[%s26937_s9 + $0x14e8] sm:$0x11] }
 0x4aa   : > { %v19055_v47 = vpop.f32.mrf.mxu0  ;;  %v19095_v48 = vpop.f32.mrf.mxu1  ;;  %v5244_v26 = vpack.c.bf16 %v29331_v44, %v29331_v44 }
 0x4ab   : > { %v406_v48 = vld [vmem:[%s26930_s5 + $0x470] sm:$0xff] }
 0x4ac   : > { %v19131_v56 = vpop.f32.mrf.mxu0  ;;  %v19171_v57 = vpop.f32.mrf.mxu1  ;;  %21050 = vmatmul.mubr.bf16.vlgmr.msra.gmra.mxu0 %v5228_v40  ;;  %21090 = vmatmul.mubr.bf16.vlgmr.msra.gmra.mxu1 %v5230_v41  ;;  %v29350_v8 = vrot.slane %v406_v48, %v26958_v24 }
 0x4ad   : > { %v19132_v58 = vadd.f32 %v19131_v56, %v19092_v36  ;;  %21112 = vmatpush1.bf16.xpose.msra.mxu0 %v26102_v45  ;;  %21152 = vmatpush1.bf16.xpose.msra.mxu1 %v26104_v46  ;;  %v5732_v36 = vld [vmem:[%s26937_s9 + $0x8d8] sm:$0xff]  ;;  %v29334_v45 = vrot.slane %v3045_v28, %v26958_v24  ;;  %v26115_v46 = vcombine.high %v5731_v30, %v6115_v35  ;;  %v6119_v28 = vld [vmem:[%s26937_s9 + $0x14f0] sm:$0x11] }
 0x4ae   : > { %v19133_v59 = vpop.f32.mrf.mxu0  ;;  %v19173_v60 = vpop.f32.mrf.mxu1  ;;  %21129 = vmatprep.mubr.bf16.mxu0 %v5233_v49  ;;  %21169 = vmatprep.mubr.bf16.mxu1 %v5235_v50  ;;  %v26117_v47 = vcombine.high %v5732_v36, %v6116_v37  ;;  %v3062_v56 = vcombine.high %v406_v48, %v406_v48 }
 0x4af   : > { %v19172_v0 = vadd.f32 %v19171_v57, %v19132_v58  ;;  %21191 = vmatprep.subr.bf16.mxu0 %v26107_v53  ;;  %21231 = vmatprep.subr.bf16.mxu1 %v26109_v54  ;;  %v3060_v54 = vcombine.high %v29331_v44, %v29331_v44  ;;  %v3061_v55 = vcombine.high %v29334_v45, %v29334_v45  ;;  %v5733_v58 = vld [vmem:[%s26937_s9 + $0x8e0] sm:$0xff] }
 0x4b0   : > { %v19134_v2 = vpop.f32.mrf.mxu0  ;;  %v19174_v3 = vpop.f32.mrf.mxu1  ;;  %v5246_v27 = vpack.c.bf16 %v29334_v45, %v29334_v45 }
 0x4b1   : > { %v26114_v2 = vcombine.low %v5731_v30, %v6115_v35  ;;  %v26116_v3 = vcombine.low %v5732_v36, %v6116_v37  ;;  %v5245_v6 = vpack.c.bf16 %v3060_v54, %v3060_v54  ;;  %v5247_v7 = vpack.c.bf16 %v3061_v55, %v3061_v55  ;;  %v6120_v30 = vld [vmem:[%s26937_s9 + $0x14f8] sm:$0x11] }
 0x4b2   : > { %v19135_v11 = vpop.f32.mrf.mxu0  ;;  %v19175_v12 = vpop.f32.mrf.mxu1  ;;  %v5248_v54 = vpack.c.bf16 %v29350_v8, %v29350_v8 }
 0x4b3   : > { %v407_v12 = vld [vmem:[%s26930_s5 + $0x478] sm:$0xff] }
 0x4b4   : > { %v19211_v20 = vpop.f32.mrf.mxu0  ;;  %v19251_v21 = vpop.f32.mrf.mxu1  ;;  %21130 = vmatmul.mubr.bf16.vlgmr.msra.gmra.mxu0 %v5232_v4  ;;  %21170 = vmatmul.mubr.bf16.vlgmr.msra.gmra.mxu1 %v5234_v5  ;;  %v29369_v37 = vrot.slane %v407_v12, %v26958_v24 }
 0x4b5   : > { %v19212_v22 = vadd.f32 %v19211_v20, %v19172_v0  ;;  %21192 = vmatpush1.bf16.xpose.msra.mxu0 %v26106_v9  ;;  %21232 = vmatpush1.bf16.xpose.msra.mxu1 %v26108_v10  ;;  %v5734_v0 = vld [vmem:[%s26937_s9 + $0x8e8] sm:$0xff]  ;;  %v29353_v9 = vrot.slane %v3062_v56, %v26958_v24  ;;  %v26119_v10 = vcombine.high %v5733_v58, %v6117_v63  ;;  %v6121_v56 = vld [vmem:[%s26937_s9 + $0x1500] sm:$0x11] }
 0x4b6   : > { %v19213_v23 = vpop.f32.mrf.mxu0  ;;  %v19253_v25 = vpop.f32.mrf.mxu1  ;;  %21209 = vmatprep.mubr.bf16.mxu0 %v5237_v13  ;;  %21249 = vmatprep.mubr.bf16.mxu1 %v5239_v14  ;;  %v26121_v11 = vcombine.high %v5734_v0, %v6118_v1  ;;  %v3079_v20 = vcombine.high %v407_v12, %v407_v12 }
 0x4b7   : > { %v19252_v29 = vadd.f32 %v19251_v21, %v19212_v22  ;;  %21271 = vmatprep.subr.bf16.mxu0 %v26111_v17  ;;  %21311 = vmatprep.subr.bf16.mxu1 %v26113_v18  ;;  %v3077_v18 = vcombine.high %v29350_v8, %v29350_v8  ;;  %v3078_v19 = vcombine.high %v29353_v9, %v29353_v9  ;;  %v5735_v22 = vld [vmem:[%s26937_s9 + $0x8f0] sm:$0xff] }
 0x4b8   : > { %v19214_v31 = vpop.f32.mrf.mxu0  ;;  %v19254_v32 = vpop.f32.mrf.mxu1  ;;  %v5250_v55 = vpack.c.bf16 %v29353_v9, %v29353_v9 }
 0x4b9   : > { %v26118_v31 = vcombine.low %v5733_v58, %v6117_v63  ;;  %v26120_v32 = vcombine.low %v5734_v0, %v6118_v1  ;;  %v5249_v35 = vpack.c.bf16 %v3077_v18, %v3077_v18  ;;  %v5251_v36 = vpack.c.bf16 %v3078_v19, %v3078_v19  ;;  %v6122_v58 = vld [vmem:[%s26937_s9 + $0x1508] sm:$0x11] }
 0x4ba   : > { %v19215_v40 = vpop.f32.mrf.mxu0  ;;  %v19255_v41 = vpop.f32.mrf.mxu1  ;;  %v5252_v18 = vpack.c.bf16 %v29369_v37, %v29369_v37 }
 0x4bb   : > { %v408_v41 = vld [vmem:[%s26930_s5 + $0x480] sm:$0xff] }
 0x4bc   : > { %v19291_v49 = vpop.f32.mrf.mxu0  ;;  %v19331_v50 = vpop.f32.mrf.mxu1  ;;  %21210 = vmatmul.mubr.bf16.vlgmr.msra.gmra.mxu0 %v5236_v33  ;;  %21250 = vmatmul.mubr.bf16.vlgmr.msra.gmra.mxu1 %v5238_v34  ;;  %v29388_v1 = vrot.slane %v408_v41, %v26958_v24 }
 0x4bd   : > { %v19292_v51 = vadd.f32 %v19291_v49, %v19252_v29  ;;  %21272 = vmatpush1.bf16.xpose.msra.mxu0 %v26110_v38  ;;  %21312 = vmatpush1.bf16.xpose.msra.mxu1 %v26112_v39  ;;  %v5736_v29 = vld [vmem:[%s26937_s9 + $0x8f8] sm:$0xff]  ;;  %v29372_v38 = vrot.slane %v3079_v20, %v26958_v24  ;;  %v26123_v39 = vcombine.high %v5735_v22, %v6119_v28  ;;  %v6123_v20 = vld [vmem:[%s26937_s9 + $0x1510] sm:$0x11] }
 0x4be   : > { %v19293_v52 = vpop.f32.mrf.mxu0  ;;  %v19333_v53 = vpop.f32.mrf.mxu1  ;;  %21289 = vmatprep.mubr.bf16.mxu0 %v5241_v42  ;;  %21329 = vmatprep.mubr.bf16.mxu1 %v5243_v43  ;;  %v26125_v40 = vcombine.high %v5736_v29, %v6120_v30  ;;  %v3096_v49 = vcombine.high %v408_v41, %v408_v41 }
 0x4bf   : > { %v19332_v57 = vadd.f32 %v19331_v50, %v19292_v51  ;;  %21351 = vmatprep.subr.bf16.mxu0 %v26115_v46  ;;  %21391 = vmatprep.subr.bf16.mxu1 %v26117_v47  ;;  %v3094_v47 = vcombine.high %v29369_v37, %v29369_v37  ;;  %v3095_v48 = vcombine.high %v29372_v38, %v29372_v38  ;;  %v5737_v51 = vld [vmem:[%s26937_s9 + $0x900] sm:$0xff] }
 0x4c0   : > { %v19294_v59 = vpop.f32.mrf.mxu0  ;;  %v19334_v60 = vpop.f32.mrf.mxu1  ;;  %v5254_v19 = vpack.c.bf16 %v29372_v38, %v29372_v38 }
 0x4c1   : > { %v26122_v59 = vcombine.low %v5735_v22, %v6119_v28  ;;  %v26124_v60 = vcombine.low %v5736_v29, %v6120_v30  ;;  %v5253_v63 = vpack.c.bf16 %v3094_v47, %v3094_v47  ;;  %v5255_v0 = vpack.c.bf16 %v3095_v48, %v3095_v48  ;;  %v6124_v22 = vld [vmem:[%s26937_s9 + $0x1518] sm:$0x11] }
 0x4c2   : > { %v19295_v4 = vpop.f32.mrf.mxu0  ;;  %v19335_v5 = vpop.f32.mrf.mxu1  ;;  %v5256_v47 = vpack.c.bf16 %v29388_v1, %v29388_v1 }
 0x4c3   : > { %v409_v5 = vld [vmem:[%s26930_s5 + $0x488] sm:$0xff] }
 0x4c4   : > { %v19371_v13 = vpop.f32.mrf.mxu0  ;;  %v19411_v14 = vpop.f32.mrf.mxu1  ;;  %21290 = vmatmul.mubr.bf16.vlgmr.msra.gmra.mxu0 %v5240_v61  ;;  %21330 = vmatmul.mubr.bf16.vlgmr.msra.gmra.mxu1 %v5242_v62  ;;  %v29407_v30 = vrot.slane %v409_v5, %v26958_v24 }
 0x4c5   : > { %v19372_v15 = vadd.f32 %v19371_v13, %v19332_v57  ;;  %21352 = vmatpush1.bf16.xpose.msra.mxu0 %v26114_v2  ;;  %21392 = vmatpush1.bf16.xpose.msra.mxu1 %v26116_v3  ;;  %v5738_v57 = vld [vmem:[%s26937_s9 + $0x908] sm:$0xff]  ;;  %v29391_v2 = vrot.slane %v3096_v49, %v26958_v24  ;;  %v26127_v3 = vcombine.high %v5737_v51, %v6121_v56  ;;  %v6125_v49 = vld [vmem:[%s26937_s9 + $0x1520] sm:$0x11] }
 0x4c6   : > { %v19373_v16 = vpop.f32.mrf.mxu0  ;;  %v19413_v17 = vpop.f32.mrf.mxu1  ;;  %21369 = vmatprep.mubr.bf16.mxu0 %v5245_v6  ;;  %21409 = vmatprep.mubr.bf16.mxu1 %v5247_v7  ;;  %v26129_v4 = vcombine.high %v5738_v57, %v6122_v58  ;;  %v3113_v13 = vcombine.high %v409_v5, %v409_v5 }
 0x4c7   : > { %v19412_v21 = vadd.f32 %v19411_v14, %v19372_v15  ;;  %21431 = vmatprep.subr.bf16.mxu0 %v26119_v10  ;;  %21471 = vmatprep.subr.bf16.mxu1 %v26121_v11  ;;  %v3111_v11 = vcombine.high %v29388_v1, %v29388_v1  ;;  %v3112_v12 = vcombine.high %v29391_v2, %v29391_v2  ;;  %v5739_v15 = vld [vmem:[%s26937_s9 + $0x910] sm:$0xff] }
 0x4c8   : > { %v19374_v23 = vpop.f32.mrf.mxu0  ;;  %v19414_v25 = vpop.f32.mrf.mxu1  ;;  %v5258_v48 = vpack.c.bf16 %v29391_v2, %v29391_v2 }
 0x4c9   : > { %v26126_v23 = vcombine.low %v5737_v51, %v6121_v56  ;;  %v26128_v25 = vcombine.low %v5738_v57, %v6122_v58  ;;  %v5257_v28 = vpack.c.bf16 %v3111_v11, %v3111_v11  ;;  %v5259_v29 = vpack.c.bf16 %v3112_v12, %v3112_v12  ;;  %v6126_v51 = vld [vmem:[%s26937_s9 + $0x1528] sm:$0x11] }
 0x4ca   : > { %v19375_v33 = vpop.f32.mrf.mxu0  ;;  %v19415_v34 = vpop.f32.mrf.mxu1  ;;  %v5260_v11 = vpack.c.bf16 %v29407_v30, %v29407_v30 }
 0x4cb   : > { %v410_v34 = vld [vmem:[%s26930_s5 + $0x490] sm:$0xff] }
 0x4cc   : > { %v19451_v42 = vpop.f32.mrf.mxu0  ;;  %v19491_v43 = vpop.f32.mrf.mxu1  ;;  %21370 = vmatmul.mubr.bf16.vlgmr.msra.gmra.mxu0 %v5244_v26  ;;  %21410 = vmatmul.mubr.bf16.vlgmr.msra.gmra.mxu1 %v5246_v27  ;;  %v29426_v58 = vrot.slane %v410_v34, %v26958_v24 }
 0x4cd   : > { %v19452_v44 = vadd.f32 %v19451_v42, %v19412_v21  ;;  %21432 = vmatpush1.bf16.xpose.msra.mxu0 %v26118_v31  ;;  %21472 = vmatpush1.bf16.xpose.msra.mxu1 %v26120_v32  ;;  %v5740_v21 = vld [vmem:[%s26937_s9 + $0x918] sm:$0xff]  ;;  %v29410_v31 = vrot.slane %v3113_v13, %v26958_v24  ;;  %v26131_v32 = vcombine.high %v5739_v15, %v6123_v20  ;;  %v6127_v13 = vld [vmem:[%s26937_s9 + $0x1530] sm:$0x11] }
 0x4ce   : > { %v19453_v45 = vpop.f32.mrf.mxu0  ;;  %v19493_v46 = vpop.f32.mrf.mxu1  ;;  %21449 = vmatprep.mubr.bf16.mxu0 %v5249_v35  ;;  %21489 = vmatprep.mubr.bf16.mxu1 %v5251_v36  ;;  %v26133_v33 = vcombine.high %v5740_v21, %v6124_v22  ;;  %v3130_v42 = vcombine.high %v410_v34, %v410_v34 }
 0x4cf   : > { %v19492_v50 = vadd.f32 %v19491_v43, %v19452_v44  ;;  %21511 = vmatprep.subr.bf16.mxu0 %v26123_v39  ;;  %21551 = vmatprep.subr.bf16.mxu1 %v26125_v40  ;;  %v3128_v40 = vcombine.high %v29407_v30, %v29407_v30  ;;  %v3129_v41 = vcombine.high %v29410_v31, %v29410_v31  ;;  %v5741_v44 = vld [vmem:[%s26937_s9 + $0x920] sm:$0xff] }
 0x4d0   : > { %v19454_v52 = vpop.f32.mrf.mxu0  ;;  %v19494_v53 = vpop.f32.mrf.mxu1  ;;  %v5262_v12 = vpack.c.bf16 %v29410_v31, %v29410_v31 }
 0x4d1   : > { %v26130_v52 = vcombine.low %v5739_v15, %v6123_v20  ;;  %v26132_v53 = vcombine.low %v5740_v21, %v6124_v22  ;;  %v5261_v56 = vpack.c.bf16 %v3128_v40, %v3128_v40  ;;  %v5263_v57 = vpack.c.bf16 %v3129_v41, %v3129_v41  ;;  %v6128_v15 = vld [vmem:[%s26937_s9 + $0x1538] sm:$0x11] }
 0x4d2   : > { %v19455_v61 = vpop.f32.mrf.mxu0  ;;  %v19495_v62 = vpop.f32.mrf.mxu1  ;;  %v5264_v40 = vpack.c.bf16 %v29426_v58, %v29426_v58 }
 0x4d3   : > { %v411_v62 = vld [vmem:[%s26930_s5 + $0x498] sm:$0xff] }
 0x4d4   : > { %v19531_v6 = vpop.f32.mrf.mxu0  ;;  %v19571_v7 = vpop.f32.mrf.mxu1  ;;  %21450 = vmatmul.mubr.bf16.vlgmr.msra.gmra.mxu0 %v5248_v54  ;;  %21490 = vmatmul.mubr.bf16.vlgmr.msra.gmra.mxu1 %v5250_v55  ;;  %v29445_v22 = vrot.slane %v411_v62, %v26958_v24 }
 0x4d5   : > { %v19532_v8 = vadd.f32 %v19531_v6, %v19492_v50  ;;  %21512 = vmatpush1.bf16.xpose.msra.mxu0 %v26122_v59  ;;  %21552 = vmatpush1.bf16.xpose.msra.mxu1 %v26124_v60  ;;  %v5742_v50 = vld [vmem:[%s26937_s9 + $0x928] sm:$0xff]  ;;  %v29429_v59 = vrot.slane %v3130_v42, %v26958_v24  ;;  %v26135_v60 = vcombine.high %v5741_v44, %v6125_v49  ;;  %v6129_v42 = vld [vmem:[%s26937_s9 + $0x1540] sm:$0x11] }
 0x4d6   : > { %v19533_v9 = vpop.f32.mrf.mxu0  ;;  %v19573_v10 = vpop.f32.mrf.mxu1  ;;  %21529 = vmatprep.mubr.bf16.mxu0 %v5253_v63  ;;  %21569 = vmatprep.mubr.bf16.mxu1 %v5255_v0  ;;  %v26137_v61 = vcombine.high %v5742_v50, %v6126_v51  ;;  %v3147_v6 = vcombine.high %v411_v62, %v411_v62 }
 0x4d7   : > { %v19572_v14 = vadd.f32 %v19571_v7, %v19532_v8  ;;  %21591 = vmatprep.subr.bf16.mxu0 %v26127_v3  ;;  %21631 = vmatprep.subr.bf16.mxu1 %v26129_v4  ;;  %v3145_v4 = vcombine.high %v29426_v58, %v29426_v58  ;;  %v3146_v5 = vcombine.high %v29429_v59, %v29429_v59  ;;  %v5743_v8 = vld [vmem:[%s26937_s9 + $0x930] sm:$0xff] }
 0x4d8   : > { %v19534_v16 = vpop.f32.mrf.mxu0  ;;  %v19574_v17 = vpop.f32.mrf.mxu1  ;;  %v5266_v41 = vpack.c.bf16 %v29429_v59, %v29429_v59 }
 0x4d9   : > { %v26134_v16 = vcombine.low %v5741_v44, %v6125_v49  ;;  %v26136_v17 = vcombine.low %v5742_v50, %v6126_v51  ;;  %v5265_v20 = vpack.c.bf16 %v3145_v4, %v3145_v4  ;;  %v5267_v21 = vpack.c.bf16 %v3146_v5, %v3146_v5  ;;  %v6130_v44 = vld [vmem:[%s26937_s9 + $0x1548] sm:$0x11] }
 0x4da   : > { %v19535_v26 = vpop.f32.mrf.mxu0  ;;  %v19575_v27 = vpop.f32.mrf.mxu1  ;;  %v5268_v4 = vpack.c.bf16 %v29445_v22, %v29445_v22 }
 0x4db   : > { %v412_v27 = vld [vmem:[%s26930_s5 + $0x4a0] sm:$0xff] }
 0x4dc   : > { %v19611_v35 = vpop.f32.mrf.mxu0  ;;  %v19651_v36 = vpop.f32.mrf.mxu1  ;;  %21530 = vmatmul.mubr.bf16.vlgmr.msra.gmra.mxu0 %v5252_v18  ;;  %21570 = vmatmul.mubr.bf16.vlgmr.msra.gmra.mxu1 %v5254_v19  ;;  %v29464_v51 = vrot.slane %v412_v27, %v26958_v24 }
 0x4dd   : > { %v19612_v37 = vadd.f32 %v19611_v35, %v19572_v14  ;;  %21592 = vmatpush1.bf16.xpose.msra.mxu0 %v26126_v23  ;;  %21632 = vmatpush1.bf16.xpose.msra.mxu1 %v26128_v25  ;;  %v5744_v14 = vld [vmem:[%s26937_s9 + $0x938] sm:$0xff]  ;;  %v29448_v23 = vrot.slane %v3147_v6, %v26958_v24  ;;  %v26139_v25 = vcombine.high %v5743_v8, %v6127_v13  ;;  %v6131_v6 = vld [vmem:[%s26937_s9 + $0x1550] sm:$0x11] }
 0x4de   : > { %v19613_v38 = vpop.f32.mrf.mxu0  ;;  %v19653_v39 = vpop.f32.mrf.mxu1  ;;  %21609 = vmatprep.mubr.bf16.mxu0 %v5257_v28  ;;  %21649 = vmatprep.mubr.bf16.mxu1 %v5259_v29  ;;  %v26141_v26 = vcombine.high %v5744_v14, %v6128_v15  ;;  %v3164_v35 = vcombine.high %v412_v27, %v412_v27 }
 0x4df   : > { %v19652_v43 = vadd.f32 %v19651_v36, %v19612_v37  ;;  %21671 = vmatprep.subr.bf16.mxu0 %v26131_v32  ;;  %21711 = vmatprep.subr.bf16.mxu1 %v26133_v33  ;;  %v3162_v33 = vcombine.high %v29445_v22, %v29445_v22  ;;  %v3163_v34 = vcombine.high %v29448_v23, %v29448_v23  ;;  %v5745_v37 = vld [vmem:[%s26937_s9 + $0x940] sm:$0xff] }
 0x4e0   : > { %v19614_v45 = vpop.f32.mrf.mxu0  ;;  %v19654_v46 = vpop.f32.mrf.mxu1  ;;  %v5270_v5 = vpack.c.bf16 %v29448_v23, %v29448_v23 }
 0x4e1   : > { %v26138_v45 = vcombine.low %v5743_v8, %v6127_v13  ;;  %v26140_v46 = vcombine.low %v5744_v14, %v6128_v15  ;;  %v5269_v49 = vpack.c.bf16 %v3162_v33, %v3162_v33  ;;  %v5271_v50 = vpack.c.bf16 %v3163_v34, %v3163_v34  ;;  %v6132_v8 = vld [vmem:[%s26937_s9 + $0x1558] sm:$0x11] }
 0x4e2   : > { %v19615_v54 = vpop.f32.mrf.mxu0  ;;  %v19655_v55 = vpop.f32.mrf.mxu1  ;;  %v5272_v33 = vpack.c.bf16 %v29464_v51, %v29464_v51 }
 0x4e3   : > { %v413_v55 = vld [vmem:[%s26930_s5 + $0x4a8] sm:$0xff] }
 0x4e4   : > { %v19691_v63 = vpop.f32.mrf.mxu0  ;;  %v19731_v0 = vpop.f32.mrf.mxu1  ;;  %21610 = vmatmul.mubr.bf16.vlgmr.msra.gmra.mxu0 %v5256_v47  ;;  %21650 = vmatmul.mubr.bf16.vlgmr.msra.gmra.mxu1 %v5258_v48  ;;  %v29483_v15 = vrot.slane %v413_v55, %v26958_v24 }
 0x4e5   : > { %v19692_v1 = vadd.f32 %v19691_v63, %v19652_v43  ;;  %21672 = vmatpush1.bf16.xpose.msra.mxu0 %v26130_v52  ;;  %21712 = vmatpush1.bf16.xpose.msra.mxu1 %v26132_v53  ;;  %v5746_v43 = vld [vmem:[%s26937_s9 + $0x948] sm:$0xff]  ;;  %v29467_v52 = vrot.slane %v3164_v35, %v26958_v24  ;;  %v26143_v53 = vcombine.high %v5745_v37, %v6129_v42  ;;  %v6133_v35 = vld [vmem:[%s26937_s9 + $0x1560] sm:$0x11] }
 0x4e6   : > { %v19693_v2 = vpop.f32.mrf.mxu0  ;;  %v19733_v3 = vpop.f32.mrf.mxu1  ;;  %21689 = vmatprep.mubr.bf16.mxu0 %v5261_v56  ;;  %21729 = vmatprep.mubr.bf16.mxu1 %v5263_v57  ;;  %v26145_v54 = vcombine.high %v5746_v43, %v6130_v44  ;;  %v3181_v63 = vcombine.high %v413_v55, %v413_v55 }
 0x4e7   : > { %v19732_v7 = vadd.f32 %v19731_v0, %v19692_v1  ;;  %21751 = vmatprep.subr.bf16.mxu0 %v26135_v60  ;;  %21791 = vmatprep.subr.bf16.mxu1 %v26137_v61  ;;  %v3179_v61 = vcombine.high %v29464_v51, %v29464_v51  ;;  %v3180_v62 = vcombine.high %v29467_v52, %v29467_v52  ;;  %v5747_v1 = vld [vmem:[%s26937_s9 + $0x950] sm:$0xff] }
 0x4e8   : > { %v19694_v9 = vpop.f32.mrf.mxu0  ;;  %v19734_v10 = vpop.f32.mrf.mxu1  ;;  %v5274_v34 = vpack.c.bf16 %v29467_v52, %v29467_v52 }
 0x4e9   : > { %v26142_v9 = vcombine.low %v5745_v37, %v6129_v42  ;;  %v26144_v10 = vcombine.low %v5746_v43, %v6130_v44  ;;  %v5273_v13 = vpack.c.bf16 %v3179_v61, %v3179_v61  ;;  %v5275_v14 = vpack.c.bf16 %v3180_v62, %v3180_v62  ;;  %v6134_v37 = vld [vmem:[%s26937_s9 + $0x1568] sm:$0x11] }
 0x4ea   : > { %v19695_v18 = vpop.f32.mrf.mxu0  ;;  %v19735_v19 = vpop.f32.mrf.mxu1  ;;  %v5276_v61 = vpack.c.bf16 %v29483_v15, %v29483_v15 }
 0x4eb   : > { %v414_v19 = vld [vmem:[%s26930_s5 + $0x4b0] sm:$0xff] }
 0x4ec   : > { %v19771_v28 = vpop.f32.mrf.mxu0  ;;  %v19811_v29 = vpop.f32.mrf.mxu1  ;;  %21690 = vmatmul.mubr.bf16.vlgmr.msra.gmra.mxu0 %v5260_v11  ;;  %21730 = vmatmul.mubr.bf16.vlgmr.msra.gmra.mxu1 %v5262_v12  ;;  %v29502_v44 = vrot.slane %v414_v19, %v26958_v24 }
 0x4ed   : > { %v19772_v30 = vadd.f32 %v19771_v28, %v19732_v7  ;;  %21752 = vmatpush1.bf16.xpose.msra.mxu0 %v26134_v16  ;;  %21792 = vmatpush1.bf16.xpose.msra.mxu1 %v26136_v17  ;;  %v5748_v7 = vld [vmem:[%s26937_s9 + $0x958] sm:$0xff]  ;;  %v29486_v16 = vrot.slane %v3181_v63, %v26958_v24  ;;  %v26147_v17 = vcombine.high %v5747_v1, %v6131_v6  ;;  %v6135_v63 = vld [vmem:[%s26937_s9 + $0x1570] sm:$0x11] }
 0x4ee   : > { %v19773_v31 = vpop.f32.mrf.mxu0  ;;  %v19813_v32 = vpop.f32.mrf.mxu1  ;;  %21769 = vmatprep.mubr.bf16.mxu0 %v5265_v20  ;;  %21809 = vmatprep.mubr.bf16.mxu1 %v5267_v21  ;;  %v26149_v18 = vcombine.high %v5748_v7, %v6132_v8  ;;  %v3198_v28 = vcombine.high %v414_v19, %v414_v19 }
 0x4ef   : > { %v19812_v36 = vadd.f32 %v19811_v29, %v19772_v30  ;;  %21831 = vmatprep.subr.bf16.mxu0 %v26139_v25  ;;  %21871 = vmatprep.subr.bf16.mxu1 %v26141_v26  ;;  %v3196_v26 = vcombine.high %v29483_v15, %v29483_v15  ;;  %v3197_v27 = vcombine.high %v29486_v16, %v29486_v16  ;;  %v5749_v30 = vld [vmem:[%s26937_s9 + $0x960] sm:$0xff] }
 0x4f0   : > { %v19774_v38 = vpop.f32.mrf.mxu0  ;;  %v19814_v39 = vpop.f32.mrf.mxu1  ;;  %v5278_v62 = vpack.c.bf16 %v29486_v16, %v29486_v16 }
 0x4f1   : > { %v26146_v38 = vcombine.low %v5747_v1, %v6131_v6  ;;  %v26148_v39 = vcombine.low %v5748_v7, %v6132_v8  ;;  %v5277_v42 = vpack.c.bf16 %v3196_v26, %v3196_v26  ;;  %v5279_v43 = vpack.c.bf16 %v3197_v27, %v3197_v27  ;;  %v6136_v1 = vld [vmem:[%s26937_s9 + $0x1578] sm:$0x11] }
 0x4f2   : > { %v19775_v47 = vpop.f32.mrf.mxu0  ;;  %v19815_v48 = vpop.f32.mrf.mxu1  ;;  %v5280_v26 = vpack.c.bf16 %v29502_v44, %v29502_v44 }
 0x4f3   : > { %v415_v48 = vld [vmem:[%s26930_s5 + $0x4b8] sm:$0xff] }
 0x4f4   : > { %v19851_v56 = vpop.f32.mrf.mxu0  ;;  %v19891_v57 = vpop.f32.mrf.mxu1  ;;  %21770 = vmatmul.mubr.bf16.vlgmr.msra.gmra.mxu0 %v5264_v40  ;;  %21810 = vmatmul.mubr.bf16.vlgmr.msra.gmra.mxu1 %v5266_v41  ;;  %v29521_v8 = vrot.slane %v415_v48, %v26958_v24 }
 0x4f5   : > { %v19852_v58 = vadd.f32 %v19851_v56, %v19812_v36  ;;  %21832 = vmatpush1.bf16.xpose.msra.mxu0 %v26138_v45  ;;  %21872 = vmatpush1.bf16.xpose.msra.mxu1 %v26140_v46  ;;  %v5750_v36 = vld [vmem:[%s26937_s9 + $0x968] sm:$0xff]  ;;  %v29505_v45 = vrot.slane %v3198_v28, %v26958_v24  ;;  %v26151_v46 = vcombine.high %v5749_v30, %v6133_v35  ;;  %v6137_v28 = vld [vmem:[%s26937_s9 + $0x1580] sm:$0x11] }
 0x4f6   : > { %v19853_v59 = vpop.f32.mrf.mxu0  ;;  %v19893_v60 = vpop.f32.mrf.mxu1  ;;  %21849 = vmatprep.mubr.bf16.mxu0 %v5269_v49  ;;  %21889 = vmatprep.mubr.bf16.mxu1 %v5271_v50  ;;  %v26153_v47 = vcombine.high %v5750_v36, %v6134_v37  ;;  %v3215_v56 = vcombine.high %v415_v48, %v415_v48 }
 0x4f7   : > { %v19892_v0 = vadd.f32 %v19891_v57, %v19852_v58  ;;  %21911 = vmatprep.subr.bf16.mxu0 %v26143_v53  ;;  %21951 = vmatprep.subr.bf16.mxu1 %v26145_v54  ;;  %v3213_v54 = vcombine.high %v29502_v44, %v29502_v44  ;;  %v3214_v55 = vcombine.high %v29505_v45, %v29505_v45  ;;  %v5751_v58 = vld [vmem:[%s26937_s9 + $0x970] sm:$0xff] }
 0x4f8   : > { %v19854_v2 = vpop.f32.mrf.mxu0  ;;  %v19894_v3 = vpop.f32.mrf.mxu1  ;;  %v5282_v27 = vpack.c.bf16 %v29505_v45, %v29505_v45 }
 0x4f9   : > { %v26150_v2 = vcombine.low %v5749_v30, %v6133_v35  ;;  %v26152_v3 = vcombine.low %v5750_v36, %v6134_v37  ;;  %v5281_v6 = vpack.c.bf16 %v3213_v54, %v3213_v54  ;;  %v5283_v7 = vpack.c.bf16 %v3214_v55, %v3214_v55  ;;  %v6138_v30 = vld [vmem:[%s26937_s9 + $0x1588] sm:$0x11] }
 0x4fa   : > { %v19855_v11 = vpop.f32.mrf.mxu0  ;;  %v19895_v12 = vpop.f32.mrf.mxu1  ;;  %v5284_v54 = vpack.c.bf16 %v29521_v8, %v29521_v8 }
 0x4fb   : > { %v416_v12 = vld [vmem:[%s26930_s5 + $0x4c0] sm:$0xff] }
 0x4fc   : > { %v19931_v20 = vpop.f32.mrf.mxu0  ;;  %v19971_v21 = vpop.f32.mrf.mxu1  ;;  %21850 = vmatmul.mubr.bf16.vlgmr.msra.gmra.mxu0 %v5268_v4  ;;  %21890 = vmatmul.mubr.bf16.vlgmr.msra.gmra.mxu1 %v5270_v5  ;;  %v29540_v37 = vrot.slane %v416_v12, %v26958_v24 }
 0x4fd   : > { %v19932_v22 = vadd.f32 %v19931_v20, %v19892_v0  ;;  %21912 = vmatpush1.bf16.xpose.msra.mxu0 %v26142_v9  ;;  %21952 = vmatpush1.bf16.xpose.msra.mxu1 %v26144_v10  ;;  %v5752_v0 = vld [vmem:[%s26937_s9 + $0x978] sm:$0xff]  ;;  %v29524_v9 = vrot.slane %v3215_v56, %v26958_v24  ;;  %v26155_v10 = vcombine.high %v5751_v58, %v6135_v63  ;;  %v6139_v56 = vld [vmem:[%s26937_s9 + $0x1590] sm:$0x11] }
 0x4fe   : > { %v19933_v23 = vpop.f32.mrf.mxu0  ;;  %v19973_v25 = vpop.f32.mrf.mxu1  ;;  %21929 = vmatprep.mubr.bf16.mxu0 %v5273_v13  ;;  %21969 = vmatprep.mubr.bf16.mxu1 %v5275_v14  ;;  %v26157_v11 = vcombine.high %v5752_v0, %v6136_v1  ;;  %v3232_v20 = vcombine.high %v416_v12, %v416_v12 }
 0x4ff   : > { %v19972_v29 = vadd.f32 %v19971_v21, %v19932_v22  ;;  %21991 = vmatprep.subr.bf16.mxu0 %v26147_v17  ;;  %22031 = vmatprep.subr.bf16.mxu1 %v26149_v18  ;;  %v3230_v18 = vcombine.high %v29521_v8, %v29521_v8  ;;  %v3231_v19 = vcombine.high %v29524_v9, %v29524_v9  ;;  %v5753_v22 = vld [vmem:[%s26937_s9 + $0x980] sm:$0xff] }
 0x500   : > { %v19934_v31 = vpop.f32.mrf.mxu0  ;;  %v19974_v32 = vpop.f32.mrf.mxu1  ;;  %v5286_v55 = vpack.c.bf16 %v29524_v9, %v29524_v9 }
 0x501   : > { %v26154_v31 = vcombine.low %v5751_v58, %v6135_v63  ;;  %v26156_v32 = vcombine.low %v5752_v0, %v6136_v1  ;;  %v5285_v35 = vpack.c.bf16 %v3230_v18, %v3230_v18  ;;  %v5287_v36 = vpack.c.bf16 %v3231_v19, %v3231_v19  ;;  %v6140_v58 = vld [vmem:[%s26937_s9 + $0x1598] sm:$0x11] }
 0x502   : > { %v19935_v40 = vpop.f32.mrf.mxu0  ;;  %v19975_v41 = vpop.f32.mrf.mxu1  ;;  %v5288_v18 = vpack.c.bf16 %v29540_v37, %v29540_v37 }
 0x503   : > { %v417_v41 = vld [vmem:[%s26930_s5 + $0x4c8] sm:$0xff] }
 0x504   : > { %v20011_v49 = vpop.f32.mrf.mxu0  ;;  %v20051_v50 = vpop.f32.mrf.mxu1  ;;  %21930 = vmatmul.mubr.bf16.vlgmr.msra.gmra.mxu0 %v5272_v33  ;;  %21970 = vmatmul.mubr.bf16.vlgmr.msra.gmra.mxu1 %v5274_v34  ;;  %v29559_v1 = vrot.slane %v417_v41, %v26958_v24 }
 0x505   : > { %v20012_v51 = vadd.f32 %v20011_v49, %v19972_v29  ;;  %21992 = vmatpush1.bf16.xpose.msra.mxu0 %v26146_v38  ;;  %22032 = vmatpush1.bf16.xpose.msra.mxu1 %v26148_v39  ;;  %v5754_v29 = vld [vmem:[%s26937_s9 + $0x988] sm:$0xff]  ;;  %v29543_v38 = vrot.slane %v3232_v20, %v26958_v24  ;;  %v26159_v39 = vcombine.high %v5753_v22, %v6137_v28  ;;  %v6141_v20 = vld [vmem:[%s26937_s9 + $0x15a0] sm:$0x11] }
 0x506   : > { %v20013_v52 = vpop.f32.mrf.mxu0  ;;  %v20053_v53 = vpop.f32.mrf.mxu1  ;;  %22009 = vmatprep.mubr.bf16.mxu0 %v5277_v42  ;;  %22049 = vmatprep.mubr.bf16.mxu1 %v5279_v43  ;;  %v26161_v40 = vcombine.high %v5754_v29, %v6138_v30  ;;  %v3249_v49 = vcombine.high %v417_v41, %v417_v41 }
 0x507   : > { %v20052_v57 = vadd.f32 %v20051_v50, %v20012_v51  ;;  %22071 = vmatprep.subr.bf16.mxu0 %v26151_v46  ;;  %22111 = vmatprep.subr.bf16.mxu1 %v26153_v47  ;;  %v3247_v47 = vcombine.high %v29540_v37, %v29540_v37  ;;  %v3248_v48 = vcombine.high %v29543_v38, %v29543_v38  ;;  %v5755_v51 = vld [vmem:[%s26937_s9 + $0x990] sm:$0xff] }
 0x508   : > { %v20014_v59 = vpop.f32.mrf.mxu0  ;;  %v20054_v60 = vpop.f32.mrf.mxu1  ;;  %v5290_v19 = vpack.c.bf16 %v29543_v38, %v29543_v38 }
 0x509   : > { %v26158_v59 = vcombine.low %v5753_v22, %v6137_v28  ;;  %v26160_v60 = vcombine.low %v5754_v29, %v6138_v30  ;;  %v5289_v63 = vpack.c.bf16 %v3247_v47, %v3247_v47  ;;  %v5291_v0 = vpack.c.bf16 %v3248_v48, %v3248_v48  ;;  %v6142_v22 = vld [vmem:[%s26937_s9 + $0x15a8] sm:$0x11] }
 0x50a   : > { %v20015_v4 = vpop.f32.mrf.mxu0  ;;  %v20055_v5 = vpop.f32.mrf.mxu1  ;;  %v5292_v47 = vpack.c.bf16 %v29559_v1, %v29559_v1 }
 0x50b   : > { %v418_v5 = vld [vmem:[%s26930_s5 + $0x4d0] sm:$0xff] }
 0x50c   : > { %v20091_v13 = vpop.f32.mrf.mxu0  ;;  %v20131_v14 = vpop.f32.mrf.mxu1  ;;  %22010 = vmatmul.mubr.bf16.vlgmr.msra.gmra.mxu0 %v5276_v61  ;;  %22050 = vmatmul.mubr.bf16.vlgmr.msra.gmra.mxu1 %v5278_v62  ;;  %v29578_v30 = vrot.slane %v418_v5, %v26958_v24 }
 0x50d   : > { %v20092_v15 = vadd.f32 %v20091_v13, %v20052_v57  ;;  %22072 = vmatpush1.bf16.xpose.msra.mxu0 %v26150_v2  ;;  %22112 = vmatpush1.bf16.xpose.msra.mxu1 %v26152_v3  ;;  %v5756_v57 = vld [vmem:[%s26937_s9 + $0x998] sm:$0xff]  ;;  %v29562_v2 = vrot.slane %v3249_v49, %v26958_v24  ;;  %v26163_v3 = vcombine.high %v5755_v51, %v6139_v56  ;;  %v6143_v49 = vld [vmem:[%s26937_s9 + $0x15b0] sm:$0x11] }
 0x50e   : > { %v20093_v16 = vpop.f32.mrf.mxu0  ;;  %v20133_v17 = vpop.f32.mrf.mxu1  ;;  %22089 = vmatprep.mubr.bf16.mxu0 %v5281_v6  ;;  %22129 = vmatprep.mubr.bf16.mxu1 %v5283_v7  ;;  %v26165_v4 = vcombine.high %v5756_v57, %v6140_v58  ;;  %v3266_v13 = vcombine.high %v418_v5, %v418_v5 }
 0x50f   : > { %v20132_v21 = vadd.f32 %v20131_v14, %v20092_v15  ;;  %22151 = vmatprep.subr.bf16.mxu0 %v26155_v10  ;;  %22191 = vmatprep.subr.bf16.mxu1 %v26157_v11  ;;  %v3264_v11 = vcombine.high %v29559_v1, %v29559_v1  ;;  %v3265_v12 = vcombine.high %v29562_v2, %v29562_v2  ;;  %v5757_v15 = vld [vmem:[%s26937_s9 + $0x9a0] sm:$0xff] }
 0x510   : > { %v20094_v23 = vpop.f32.mrf.mxu0  ;;  %v20134_v25 = vpop.f32.mrf.mxu1  ;;  %v5294_v48 = vpack.c.bf16 %v29562_v2, %v29562_v2 }
 0x511   : > { %v26162_v23 = vcombine.low %v5755_v51, %v6139_v56  ;;  %v26164_v25 = vcombine.low %v5756_v57, %v6140_v58  ;;  %v5293_v28 = vpack.c.bf16 %v3264_v11, %v3264_v11  ;;  %v5295_v29 = vpack.c.bf16 %v3265_v12, %v3265_v12  ;;  %v6144_v51 = vld [vmem:[%s26937_s9 + $0x15b8] sm:$0x11] }
 0x512   : > { %v20095_v33 = vpop.f32.mrf.mxu0  ;;  %v20135_v34 = vpop.f32.mrf.mxu1  ;;  %v5296_v11 = vpack.c.bf16 %v29578_v30, %v29578_v30 }
 0x513   : > { %v419_v34 = vld [vmem:[%s26930_s5 + $0x4d8] sm:$0xff] }
 0x514   : > { %v20171_v42 = vpop.f32.mrf.mxu0  ;;  %v20211_v43 = vpop.f32.mrf.mxu1  ;;  %22090 = vmatmul.mubr.bf16.vlgmr.msra.gmra.mxu0 %v5280_v26  ;;  %22130 = vmatmul.mubr.bf16.vlgmr.msra.gmra.mxu1 %v5282_v27  ;;  %v29597_v58 = vrot.slane %v419_v34, %v26958_v24 }
 0x515   : > { %v20172_v44 = vadd.f32 %v20171_v42, %v20132_v21  ;;  %22152 = vmatpush1.bf16.xpose.msra.mxu0 %v26154_v31  ;;  %22192 = vmatpush1.bf16.xpose.msra.mxu1 %v26156_v32  ;;  %v5758_v21 = vld [vmem:[%s26937_s9 + $0x9a8] sm:$0xff]  ;;  %v29581_v31 = vrot.slane %v3266_v13, %v26958_v24  ;;  %v26167_v32 = vcombine.high %v5757_v15, %v6141_v20  ;;  %v6145_v13 = vld [vmem:[%s26937_s9 + $0x15c0] sm:$0x11] }
 0x516   : > { %v20173_v45 = vpop.f32.mrf.mxu0  ;;  %v20213_v46 = vpop.f32.mrf.mxu1  ;;  %22169 = vmatprep.mubr.bf16.mxu0 %v5285_v35  ;;  %22209 = vmatprep.mubr.bf16.mxu1 %v5287_v36  ;;  %v26169_v33 = vcombine.high %v5758_v21, %v6142_v22  ;;  %v3283_v42 = vcombine.high %v419_v34, %v419_v34 }
 0x517   : > { %v20212_v50 = vadd.f32 %v20211_v43, %v20172_v44  ;;  %22231 = vmatprep.subr.bf16.mxu0 %v26159_v39  ;;  %22271 = vmatprep.subr.bf16.mxu1 %v26161_v40  ;;  %v3281_v40 = vcombine.high %v29578_v30, %v29578_v30  ;;  %v3282_v41 = vcombine.high %v29581_v31, %v29581_v31  ;;  %v5759_v44 = vld [vmem:[%s26937_s9 + $0x9b0] sm:$0xff] }
 0x518   : > { %v20174_v52 = vpop.f32.mrf.mxu0  ;;  %v20214_v53 = vpop.f32.mrf.mxu1  ;;  %v5298_v12 = vpack.c.bf16 %v29581_v31, %v29581_v31 }
 0x519   : > { %v26166_v52 = vcombine.low %v5757_v15, %v6141_v20  ;;  %v26168_v53 = vcombine.low %v5758_v21, %v6142_v22  ;;  %v5297_v56 = vpack.c.bf16 %v3281_v40, %v3281_v40  ;;  %v5299_v57 = vpack.c.bf16 %v3282_v41, %v3282_v41  ;;  %v6146_v15 = vld [vmem:[%s26937_s9 + $0x15c8] sm:$0x11] }
 0x51a   : > { %v20175_v61 = vpop.f32.mrf.mxu0  ;;  %v20215_v62 = vpop.f32.mrf.mxu1  ;;  %v5300_v40 = vpack.c.bf16 %v29597_v58, %v29597_v58 }
 0x51b   : > { %v420_v62 = vld [vmem:[%s26930_s5 + $0x4e0] sm:$0xff] }
 0x51c   : > { %v20251_v6 = vpop.f32.mrf.mxu0  ;;  %v20291_v7 = vpop.f32.mrf.mxu1  ;;  %22170 = vmatmul.mubr.bf16.vlgmr.msra.gmra.mxu0 %v5284_v54  ;;  %22210 = vmatmul.mubr.bf16.vlgmr.msra.gmra.mxu1 %v5286_v55  ;;  %v29616_v22 = vrot.slane %v420_v62, %v26958_v24 }
 0x51d   : > { %v20252_v8 = vadd.f32 %v20251_v6, %v20212_v50  ;;  %22232 = vmatpush1.bf16.xpose.msra.mxu0 %v26158_v59  ;;  %22272 = vmatpush1.bf16.xpose.msra.mxu1 %v26160_v60  ;;  %v5760_v50 = vld [vmem:[%s26937_s9 + $0x9b8] sm:$0xff]  ;;  %v29600_v59 = vrot.slane %v3283_v42, %v26958_v24  ;;  %v26171_v60 = vcombine.high %v5759_v44, %v6143_v49  ;;  %v6147_v42 = vld [vmem:[%s26937_s9 + $0x15d0] sm:$0x11] }
 0x51e   : > { %v20253_v9 = vpop.f32.mrf.mxu0  ;;  %v20293_v10 = vpop.f32.mrf.mxu1  ;;  %22249 = vmatprep.mubr.bf16.mxu0 %v5289_v63  ;;  %22289 = vmatprep.mubr.bf16.mxu1 %v5291_v0  ;;  %v26173_v61 = vcombine.high %v5760_v50, %v6144_v51  ;;  %v3300_v6 = vcombine.high %v420_v62, %v420_v62 }
 0x51f   : > { %v20292_v14 = vadd.f32 %v20291_v7, %v20252_v8  ;;  %22311 = vmatprep.subr.bf16.mxu0 %v26163_v3  ;;  %22351 = vmatprep.subr.bf16.mxu1 %v26165_v4  ;;  %v3298_v4 = vcombine.high %v29597_v58, %v29597_v58  ;;  %v3299_v5 = vcombine.high %v29600_v59, %v29600_v59  ;;  %v5761_v8 = vld [vmem:[%s26937_s9 + $0x9c0] sm:$0xff] }
 0x520   : > { %v20254_v16 = vpop.f32.mrf.mxu0  ;;  %v20294_v17 = vpop.f32.mrf.mxu1  ;;  %v5302_v41 = vpack.c.bf16 %v29600_v59, %v29600_v59 }
 0x521   : > { %v26170_v16 = vcombine.low %v5759_v44, %v6143_v49  ;;  %v26172_v17 = vcombine.low %v5760_v50, %v6144_v51  ;;  %v5301_v20 = vpack.c.bf16 %v3298_v4, %v3298_v4  ;;  %v5303_v21 = vpack.c.bf16 %v3299_v5, %v3299_v5  ;;  %v6148_v44 = vld [vmem:[%s26937_s9 + $0x15d8] sm:$0x11] }
 0x522   : > { %v20255_v26 = vpop.f32.mrf.mxu0  ;;  %v20295_v27 = vpop.f32.mrf.mxu1  ;;  %v5304_v4 = vpack.c.bf16 %v29616_v22, %v29616_v22 }
 0x523   : > { %v421_v27 = vld [vmem:[%s26930_s5 + $0x4e8] sm:$0xff] }
 0x524   : > { %v20331_v35 = vpop.f32.mrf.mxu0  ;;  %v20371_v36 = vpop.f32.mrf.mxu1  ;;  %22250 = vmatmul.mubr.bf16.vlgmr.msra.gmra.mxu0 %v5288_v18  ;;  %22290 = vmatmul.mubr.bf16.vlgmr.msra.gmra.mxu1 %v5290_v19  ;;  %v29635_v51 = vrot.slane %v421_v27, %v26958_v24 }
 0x525   : > { %v20332_v37 = vadd.f32 %v20331_v35, %v20292_v14  ;;  %22312 = vmatpush1.bf16.xpose.msra.mxu0 %v26162_v23  ;;  %22352 = vmatpush1.bf16.xpose.msra.mxu1 %v26164_v25  ;;  %v5762_v14 = vld [vmem:[%s26937_s9 + $0x9c8] sm:$0xff]  ;;  %v29619_v23 = vrot.slane %v3300_v6, %v26958_v24  ;;  %v26175_v25 = vcombine.high %v5761_v8, %v6145_v13  ;;  %v6149_v6 = vld [vmem:[%s26937_s9 + $0x15e0] sm:$0x11] }
 0x526   : > { %v20333_v38 = vpop.f32.mrf.mxu0  ;;  %v20373_v39 = vpop.f32.mrf.mxu1  ;;  %22329 = vmatprep.mubr.bf16.mxu0 %v5293_v28  ;;  %22369 = vmatprep.mubr.bf16.mxu1 %v5295_v29  ;;  %v26177_v26 = vcombine.high %v5762_v14, %v6146_v15  ;;  %v3317_v35 = vcombine.high %v421_v27, %v421_v27 }
 0x527   : > { %v20372_v43 = vadd.f32 %v20371_v36, %v20332_v37  ;;  %22391 = vmatprep.subr.bf16.mxu0 %v26167_v32  ;;  %22431 = vmatprep.subr.bf16.mxu1 %v26169_v33  ;;  %v3315_v33 = vcombine.high %v29616_v22, %v29616_v22  ;;  %v3316_v34 = vcombine.high %v29619_v23, %v29619_v23  ;;  %v5763_v37 = vld [vmem:[%s26937_s9 + $0x9d0] sm:$0xff] }
 0x528   : > { %v20334_v45 = vpop.f32.mrf.mxu0  ;;  %v20374_v46 = vpop.f32.mrf.mxu1  ;;  %v5306_v5 = vpack.c.bf16 %v29619_v23, %v29619_v23 }
 0x529   : > { %v26174_v45 = vcombine.low %v5761_v8, %v6145_v13  ;;  %v26176_v46 = vcombine.low %v5762_v14, %v6146_v15  ;;  %v5305_v49 = vpack.c.bf16 %v3315_v33, %v3315_v33  ;;  %v5307_v50 = vpack.c.bf16 %v3316_v34, %v3316_v34  ;;  %v6150_v8 = vld [vmem:[%s26937_s9 + $0x15e8] sm:$0x11] }
 0x52a   : > { %v20335_v54 = vpop.f32.mrf.mxu0  ;;  %v20375_v55 = vpop.f32.mrf.mxu1  ;;  %v5308_v33 = vpack.c.bf16 %v29635_v51, %v29635_v51 }
 0x52b   : > { %v422_v55 = vld [vmem:[%s26930_s5 + $0x4f0] sm:$0xff] }
 0x52c   : > { %v20411_v63 = vpop.f32.mrf.mxu0  ;;  %v20451_v0 = vpop.f32.mrf.mxu1  ;;  %22330 = vmatmul.mubr.bf16.vlgmr.msra.gmra.mxu0 %v5292_v47  ;;  %22370 = vmatmul.mubr.bf16.vlgmr.msra.gmra.mxu1 %v5294_v48  ;;  %v29654_v15 = vrot.slane %v422_v55, %v26958_v24 }
 0x52d   : > { %v20412_v1 = vadd.f32 %v20411_v63, %v20372_v43  ;;  %22392 = vmatpush1.bf16.xpose.msra.mxu0 %v26166_v52  ;;  %22432 = vmatpush1.bf16.xpose.msra.mxu1 %v26168_v53  ;;  %v5764_v43 = vld [vmem:[%s26937_s9 + $0x9d8] sm:$0xff]  ;;  %v29638_v52 = vrot.slane %v3317_v35, %v26958_v24  ;;  %v26179_v53 = vcombine.high %v5763_v37, %v6147_v42  ;;  %v6151_v35 = vld [vmem:[%s26937_s9 + $0x15f0] sm:$0x11] }
 0x52e   : > { %v20413_v2 = vpop.f32.mrf.mxu0  ;;  %v20453_v3 = vpop.f32.mrf.mxu1  ;;  %22409 = vmatprep.mubr.bf16.mxu0 %v5297_v56  ;;  %22449 = vmatprep.mubr.bf16.mxu1 %v5299_v57  ;;  %v26181_v54 = vcombine.high %v5764_v43, %v6148_v44  ;;  %v3334_v63 = vcombine.high %v422_v55, %v422_v55 }
 0x52f   : > { %v20452_v7 = vadd.f32 %v20451_v0, %v20412_v1  ;;  %22471 = vmatprep.subr.bf16.mxu0 %v26171_v60  ;;  %22511 = vmatprep.subr.bf16.mxu1 %v26173_v61  ;;  %v3332_v61 = vcombine.high %v29635_v51, %v29635_v51  ;;  %v3333_v62 = vcombine.high %v29638_v52, %v29638_v52  ;;  %v5765_v1 = vld [vmem:[%s26937_s9 + $0x9e0] sm:$0xff] }
 0x530   : > { %v20414_v9 = vpop.f32.mrf.mxu0  ;;  %v20454_v10 = vpop.f32.mrf.mxu1  ;;  %v5310_v34 = vpack.c.bf16 %v29638_v52, %v29638_v52 }
 0x531   : > { %v26178_v9 = vcombine.low %v5763_v37, %v6147_v42  ;;  %v26180_v10 = vcombine.low %v5764_v43, %v6148_v44  ;;  %v5309_v13 = vpack.c.bf16 %v3332_v61, %v3332_v61  ;;  %v5311_v14 = vpack.c.bf16 %v3333_v62, %v3333_v62  ;;  %v6152_v37 = vld [vmem:[%s26937_s9 + $0x15f8] sm:$0x11] }
 0x532   : > { %v20415_v18 = vpop.f32.mrf.mxu0  ;;  %v20455_v19 = vpop.f32.mrf.mxu1  ;;  %v5312_v61 = vpack.c.bf16 %v29654_v15, %v29654_v15 }
 0x533   : > { %v423_v19 = vld [vmem:[%s26930_s5 + $0x4f8] sm:$0xff] }
 0x534   : > { %v20491_v28 = vpop.f32.mrf.mxu0  ;;  %v20531_v29 = vpop.f32.mrf.mxu1  ;;  %22410 = vmatmul.mubr.bf16.vlgmr.msra.gmra.mxu0 %v5296_v11  ;;  %22450 = vmatmul.mubr.bf16.vlgmr.msra.gmra.mxu1 %v5298_v12  ;;  %v29673_v44 = vrot.slane %v423_v19, %v26958_v24 }
 0x535   : > { %v20492_v30 = vadd.f32 %v20491_v28, %v20452_v7  ;;  %22472 = vmatpush1.bf16.xpose.msra.mxu0 %v26170_v16  ;;  %22512 = vmatpush1.bf16.xpose.msra.mxu1 %v26172_v17  ;;  %v5766_v7 = vld [vmem:[%s26937_s9 + $0x9e8] sm:$0xff]  ;;  %v29657_v16 = vrot.slane %v3334_v63, %v26958_v24  ;;  %v26183_v17 = vcombine.high %v5765_v1, %v6149_v6  ;;  %v6153_v63 = vld [vmem:[%s26937_s9 + $0x1600] sm:$0x11] }
 0x536   : > { %v20493_v31 = vpop.f32.mrf.mxu0  ;;  %v20533_v32 = vpop.f32.mrf.mxu1  ;;  %22489 = vmatprep.mubr.bf16.mxu0 %v5301_v20  ;;  %22529 = vmatprep.mubr.bf16.mxu1 %v5303_v21  ;;  %v26185_v18 = vcombine.high %v5766_v7, %v6150_v8  ;;  %v3351_v28 = vcombine.high %v423_v19, %v423_v19 }
 0x537   : > { %v20532_v36 = vadd.f32 %v20531_v29, %v20492_v30  ;;  %22551 = vmatprep.subr.bf16.mxu0 %v26175_v25  ;;  %22591 = vmatprep.subr.bf16.mxu1 %v26177_v26  ;;  %v3349_v26 = vcombine.high %v29654_v15, %v29654_v15  ;;  %v3350_v27 = vcombine.high %v29657_v16, %v29657_v16  ;;  %v5767_v30 = vld [vmem:[%s26937_s9 + $0x9f0] sm:$0xff] }
 0x538   : > { %v20494_v38 = vpop.f32.mrf.mxu0  ;;  %v20534_v39 = vpop.f32.mrf.mxu1  ;;  %v5314_v62 = vpack.c.bf16 %v29657_v16, %v29657_v16 }
 0x539   : > { %v26182_v38 = vcombine.low %v5765_v1, %v6149_v6  ;;  %v26184_v39 = vcombine.low %v5766_v7, %v6150_v8  ;;  %v5313_v42 = vpack.c.bf16 %v3349_v26, %v3349_v26  ;;  %v5315_v43 = vpack.c.bf16 %v3350_v27, %v3350_v27  ;;  %v6154_v1 = vld [vmem:[%s26937_s9 + $0x1608] sm:$0x11] }
 0x53a   : > { %v20495_v47 = vpop.f32.mrf.mxu0  ;;  %v20535_v48 = vpop.f32.mrf.mxu1  ;;  %v5316_v26 = vpack.c.bf16 %v29673_v44, %v29673_v44 }
 0x53b   : > { %v424_v48 = vld [vmem:[%s26930_s5 + $0x500] sm:$0xff] }
 0x53c   : > { %v20571_v56 = vpop.f32.mrf.mxu0  ;;  %v20611_v57 = vpop.f32.mrf.mxu1  ;;  %22490 = vmatmul.mubr.bf16.vlgmr.msra.gmra.mxu0 %v5300_v40  ;;  %22530 = vmatmul.mubr.bf16.vlgmr.msra.gmra.mxu1 %v5302_v41  ;;  %v29692_v8 = vrot.slane %v424_v48, %v26958_v24 }
 0x53d   : > { %v20572_v58 = vadd.f32 %v20571_v56, %v20532_v36  ;;  %22552 = vmatpush1.bf16.xpose.msra.mxu0 %v26174_v45  ;;  %22592 = vmatpush1.bf16.xpose.msra.mxu1 %v26176_v46  ;;  %v5768_v36 = vld [vmem:[%s26937_s9 + $0x9f8] sm:$0xff]  ;;  %v29676_v45 = vrot.slane %v3351_v28, %v26958_v24  ;;  %v26187_v46 = vcombine.high %v5767_v30, %v6151_v35  ;;  %v6155_v28 = vld [vmem:[%s26937_s9 + $0x1610] sm:$0x11] }
 0x53e   : > { %v20573_v59 = vpop.f32.mrf.mxu0  ;;  %v20613_v60 = vpop.f32.mrf.mxu1  ;;  %22569 = vmatprep.mubr.bf16.mxu0 %v5305_v49  ;;  %22609 = vmatprep.mubr.bf16.mxu1 %v5307_v50  ;;  %v26189_v47 = vcombine.high %v5768_v36, %v6152_v37  ;;  %v3368_v56 = vcombine.high %v424_v48, %v424_v48 }
 0x53f   : > { %v20612_v0 = vadd.f32 %v20611_v57, %v20572_v58  ;;  %22631 = vmatprep.subr.bf16.mxu0 %v26179_v53  ;;  %22671 = vmatprep.subr.bf16.mxu1 %v26181_v54  ;;  %v3366_v54 = vcombine.high %v29673_v44, %v29673_v44  ;;  %v3367_v55 = vcombine.high %v29676_v45, %v29676_v45  ;;  %v5769_v58 = vld [vmem:[%s26937_s9 + $0xa00] sm:$0xff] }
 0x540   : > { %v20574_v2 = vpop.f32.mrf.mxu0  ;;  %v20614_v3 = vpop.f32.mrf.mxu1  ;;  %v5318_v27 = vpack.c.bf16 %v29676_v45, %v29676_v45 }
 0x541   : > { %v26186_v2 = vcombine.low %v5767_v30, %v6151_v35  ;;  %v26188_v3 = vcombine.low %v5768_v36, %v6152_v37  ;;  %v5317_v6 = vpack.c.bf16 %v3366_v54, %v3366_v54  ;;  %v5319_v7 = vpack.c.bf16 %v3367_v55, %v3367_v55  ;;  %v6156_v30 = vld [vmem:[%s26937_s9 + $0x1618] sm:$0x11] }
 0x542   : > { %v20575_v11 = vpop.f32.mrf.mxu0  ;;  %v20615_v12 = vpop.f32.mrf.mxu1  ;;  %v5320_v54 = vpack.c.bf16 %v29692_v8, %v29692_v8 }
 0x543   : > { %v425_v12 = vld [vmem:[%s26930_s5 + $0x508] sm:$0xff] }
 0x544   : > { %v20651_v20 = vpop.f32.mrf.mxu0  ;;  %v20691_v21 = vpop.f32.mrf.mxu1  ;;  %22570 = vmatmul.mubr.bf16.vlgmr.msra.gmra.mxu0 %v5304_v4  ;;  %22610 = vmatmul.mubr.bf16.vlgmr.msra.gmra.mxu1 %v5306_v5  ;;  %v29711_v37 = vrot.slane %v425_v12, %v26958_v24 }
 0x545   : > { %v20652_v22 = vadd.f32 %v20651_v20, %v20612_v0  ;;  %22632 = vmatpush1.bf16.xpose.msra.mxu0 %v26178_v9  ;;  %22672 = vmatpush1.bf16.xpose.msra.mxu1 %v26180_v10  ;;  %v5770_v0 = vld [vmem:[%s26937_s9 + $0xa08] sm:$0xff]  ;;  %v29695_v9 = vrot.slane %v3368_v56, %v26958_v24  ;;  %v26191_v10 = vcombine.high %v5769_v58, %v6153_v63  ;;  %v6157_v56 = vld [vmem:[%s26937_s9 + $0x1620] sm:$0x11] }
 0x546   : > { %v20653_v23 = vpop.f32.mrf.mxu0  ;;  %v20693_v25 = vpop.f32.mrf.mxu1  ;;  %22649 = vmatprep.mubr.bf16.mxu0 %v5309_v13  ;;  %22689 = vmatprep.mubr.bf16.mxu1 %v5311_v14  ;;  %v26193_v11 = vcombine.high %v5770_v0, %v6154_v1  ;;  %v3385_v20 = vcombine.high %v425_v12, %v425_v12 }
 0x547   : > { %v20692_v29 = vadd.f32 %v20691_v21, %v20652_v22  ;;  %22711 = vmatprep.subr.bf16.mxu0 %v26183_v17  ;;  %22751 = vmatprep.subr.bf16.mxu1 %v26185_v18  ;;  %v3383_v18 = vcombine.high %v29692_v8, %v29692_v8  ;;  %v3384_v19 = vcombine.high %v29695_v9, %v29695_v9  ;;  %v5771_v22 = vld [vmem:[%s26937_s9 + $0xa10] sm:$0xff] }
 0x548   : > { %v20654_v31 = vpop.f32.mrf.mxu0  ;;  %v20694_v32 = vpop.f32.mrf.mxu1  ;;  %v5322_v55 = vpack.c.bf16 %v29695_v9, %v29695_v9 }
 0x549   : > { %v26190_v31 = vcombine.low %v5769_v58, %v6153_v63  ;;  %v26192_v32 = vcombine.low %v5770_v0, %v6154_v1  ;;  %v5321_v35 = vpack.c.bf16 %v3383_v18, %v3383_v18  ;;  %v5323_v36 = vpack.c.bf16 %v3384_v19, %v3384_v19  ;;  %v6158_v58 = vld [vmem:[%s26937_s9 + $0x1628] sm:$0x11] }
 0x54a   : > { %v20655_v40 = vpop.f32.mrf.mxu0  ;;  %v20695_v41 = vpop.f32.mrf.mxu1  ;;  %v5324_v18 = vpack.c.bf16 %v29711_v37, %v29711_v37 }
 0x54b   : > { %v426_v41 = vld [vmem:[%s26930_s5 + $0x510] sm:$0xff] }
 0x54c   : > { %v20731_v49 = vpop.f32.mrf.mxu0  ;;  %v20771_v50 = vpop.f32.mrf.mxu1  ;;  %22650 = vmatmul.mubr.bf16.vlgmr.msra.gmra.mxu0 %v5308_v33  ;;  %22690 = vmatmul.mubr.bf16.vlgmr.msra.gmra.mxu1 %v5310_v34  ;;  %v29730_v1 = vrot.slane %v426_v41, %v26958_v24 }
 0x54d   : > { %v20732_v51 = vadd.f32 %v20731_v49, %v20692_v29  ;;  %22712 = vmatpush1.bf16.xpose.msra.mxu0 %v26182_v38  ;;  %22752 = vmatpush1.bf16.xpose.msra.mxu1 %v26184_v39  ;;  %v5772_v29 = vld [vmem:[%s26937_s9 + $0xa18] sm:$0xff]  ;;  %v29714_v38 = vrot.slane %v3385_v20, %v26958_v24  ;;  %v26195_v39 = vcombine.high %v5771_v22, %v6155_v28  ;;  %v6159_v20 = vld [vmem:[%s26937_s9 + $0x1630] sm:$0x11] }
 0x54e   : > { %v20733_v52 = vpop.f32.mrf.mxu0  ;;  %v20773_v53 = vpop.f32.mrf.mxu1  ;;  %22729 = vmatprep.mubr.bf16.mxu0 %v5313_v42  ;;  %22769 = vmatprep.mubr.bf16.mxu1 %v5315_v43  ;;  %v26197_v40 = vcombine.high %v5772_v29, %v6156_v30  ;;  %v3402_v49 = vcombine.high %v426_v41, %v426_v41 }
 0x54f   : > { %v20772_v57 = vadd.f32 %v20771_v50, %v20732_v51  ;;  %22791 = vmatprep.subr.bf16.mxu0 %v26187_v46  ;;  %22831 = vmatprep.subr.bf16.mxu1 %v26189_v47  ;;  %v3400_v47 = vcombine.high %v29711_v37, %v29711_v37  ;;  %v3401_v48 = vcombine.high %v29714_v38, %v29714_v38  ;;  %v5773_v51 = vld [vmem:[%s26937_s9 + $0xa20] sm:$0xff] }
 0x550   : > { %v20734_v59 = vpop.f32.mrf.mxu0  ;;  %v20774_v60 = vpop.f32.mrf.mxu1  ;;  %v5326_v19 = vpack.c.bf16 %v29714_v38, %v29714_v38 }
 0x551   : > { %v26194_v59 = vcombine.low %v5771_v22, %v6155_v28  ;;  %v26196_v60 = vcombine.low %v5772_v29, %v6156_v30  ;;  %v5325_v63 = vpack.c.bf16 %v3400_v47, %v3400_v47  ;;  %v5327_v0 = vpack.c.bf16 %v3401_v48, %v3401_v48  ;;  %v6160_v22 = vld [vmem:[%s26937_s9 + $0x1638] sm:$0x11] }
 0x552   : > { %v20735_v4 = vpop.f32.mrf.mxu0  ;;  %v20775_v5 = vpop.f32.mrf.mxu1  ;;  %v5328_v47 = vpack.c.bf16 %v29730_v1, %v29730_v1 }
 0x553   : > { %v427_v5 = vld [vmem:[%s26930_s5 + $0x518] sm:$0xff] }
 0x554   : > { %v20811_v13 = vpop.f32.mrf.mxu0  ;;  %v20851_v14 = vpop.f32.mrf.mxu1  ;;  %22730 = vmatmul.mubr.bf16.vlgmr.msra.gmra.mxu0 %v5312_v61  ;;  %22770 = vmatmul.mubr.bf16.vlgmr.msra.gmra.mxu1 %v5314_v62  ;;  %v29749_v30 = vrot.slane %v427_v5, %v26958_v24 }
 0x555   : > { %v20812_v15 = vadd.f32 %v20811_v13, %v20772_v57  ;;  %22792 = vmatpush1.bf16.xpose.msra.mxu0 %v26186_v2  ;;  %22832 = vmatpush1.bf16.xpose.msra.mxu1 %v26188_v3  ;;  %v5774_v57 = vld [vmem:[%s26937_s9 + $0xa28] sm:$0xff]  ;;  %v29733_v2 = vrot.slane %v3402_v49, %v26958_v24  ;;  %v26199_v3 = vcombine.high %v5773_v51, %v6157_v56  ;;  %v6161_v49 = vld [vmem:[%s26937_s9 + $0x1640] sm:$0x11] }
 0x556   : > { %v20813_v16 = vpop.f32.mrf.mxu0  ;;  %v20853_v17 = vpop.f32.mrf.mxu1  ;;  %22809 = vmatprep.mubr.bf16.mxu0 %v5317_v6  ;;  %22849 = vmatprep.mubr.bf16.mxu1 %v5319_v7  ;;  %v26201_v4 = vcombine.high %v5774_v57, %v6158_v58  ;;  %v3419_v13 = vcombine.high %v427_v5, %v427_v5 }
 0x557   : > { %v20852_v21 = vadd.f32 %v20851_v14, %v20812_v15  ;;  %22871 = vmatprep.subr.bf16.mxu0 %v26191_v10  ;;  %22911 = vmatprep.subr.bf16.mxu1 %v26193_v11  ;;  %v3417_v11 = vcombine.high %v29730_v1, %v29730_v1  ;;  %v3418_v12 = vcombine.high %v29733_v2, %v29733_v2  ;;  %v5775_v15 = vld [vmem:[%s26937_s9 + $0xa30] sm:$0xff] }
 0x558   : > { %v20814_v23 = vpop.f32.mrf.mxu0  ;;  %v20854_v25 = vpop.f32.mrf.mxu1  ;;  %v5330_v48 = vpack.c.bf16 %v29733_v2, %v29733_v2 }
 0x559   : > { %v26198_v23 = vcombine.low %v5773_v51, %v6157_v56  ;;  %v26200_v25 = vcombine.low %v5774_v57, %v6158_v58  ;;  %v5329_v28 = vpack.c.bf16 %v3417_v11, %v3417_v11  ;;  %v5331_v29 = vpack.c.bf16 %v3418_v12, %v3418_v12  ;;  %v6162_v51 = vld [vmem:[%s26937_s9 + $0x1648] sm:$0x11] }
 0x55a   : > { %v20815_v33 = vpop.f32.mrf.mxu0  ;;  %v20855_v34 = vpop.f32.mrf.mxu1  ;;  %v5332_v11 = vpack.c.bf16 %v29749_v30, %v29749_v30 }
 0x55b   : > { %v428_v34 = vld [vmem:[%s26930_s5 + $0x520] sm:$0xff] }
 0x55c   : > { %v20891_v42 = vpop.f32.mrf.mxu0  ;;  %v20931_v43 = vpop.f32.mrf.mxu1  ;;  %22810 = vmatmul.mubr.bf16.vlgmr.msra.gmra.mxu0 %v5316_v26  ;;  %22850 = vmatmul.mubr.bf16.vlgmr.msra.gmra.mxu1 %v5318_v27  ;;  %v29768_v58 = vrot.slane %v428_v34, %v26958_v24 }
 0x55d   : > { %v20892_v44 = vadd.f32 %v20891_v42, %v20852_v21  ;;  %22872 = vmatpush1.bf16.xpose.msra.mxu0 %v26190_v31  ;;  %22912 = vmatpush1.bf16.xpose.msra.mxu1 %v26192_v32  ;;  %v5776_v21 = vld [vmem:[%s26937_s9 + $0xa38] sm:$0xff]  ;;  %v29752_v31 = vrot.slane %v3419_v13, %v26958_v24  ;;  %v26203_v32 = vcombine.high %v5775_v15, %v6159_v20  ;;  %v6163_v13 = vld [vmem:[%s26937_s9 + $0x1650] sm:$0x11] }
 0x55e   : > { %v20893_v45 = vpop.f32.mrf.mxu0  ;;  %v20933_v46 = vpop.f32.mrf.mxu1  ;;  %22889 = vmatprep.mubr.bf16.mxu0 %v5321_v35  ;;  %22929 = vmatprep.mubr.bf16.mxu1 %v5323_v36  ;;  %v26205_v33 = vcombine.high %v5776_v21, %v6160_v22  ;;  %v3436_v42 = vcombine.high %v428_v34, %v428_v34 }
 0x55f   : > { %v20932_v50 = vadd.f32 %v20931_v43, %v20892_v44  ;;  %22951 = vmatprep.subr.bf16.mxu0 %v26195_v39  ;;  %22991 = vmatprep.subr.bf16.mxu1 %v26197_v40  ;;  %v3434_v40 = vcombine.high %v29749_v30, %v29749_v30  ;;  %v3435_v41 = vcombine.high %v29752_v31, %v29752_v31  ;;  %v5777_v44 = vld [vmem:[%s26937_s9 + $0xa40] sm:$0xff] }
 0x560   : > { %v20894_v52 = vpop.f32.mrf.mxu0  ;;  %v20934_v53 = vpop.f32.mrf.mxu1  ;;  %v5334_v12 = vpack.c.bf16 %v29752_v31, %v29752_v31 }
 0x561   : > { %v26202_v52 = vcombine.low %v5775_v15, %v6159_v20  ;;  %v26204_v53 = vcombine.low %v5776_v21, %v6160_v22  ;;  %v5333_v56 = vpack.c.bf16 %v3434_v40, %v3434_v40  ;;  %v5335_v57 = vpack.c.bf16 %v3435_v41, %v3435_v41  ;;  %v6164_v15 = vld [vmem:[%s26937_s9 + $0x1658] sm:$0x11] }
 0x562   : > { %v20895_v61 = vpop.f32.mrf.mxu0  ;;  %v20935_v62 = vpop.f32.mrf.mxu1  ;;  %v5336_v40 = vpack.c.bf16 %v29768_v58, %v29768_v58 }
 0x563   : > { %v429_v62 = vld [vmem:[%s26930_s5 + $0x528] sm:$0xff] }
 0x564   : > { %v20971_v6 = vpop.f32.mrf.mxu0  ;;  %v21011_v7 = vpop.f32.mrf.mxu1  ;;  %22890 = vmatmul.mubr.bf16.vlgmr.msra.gmra.mxu0 %v5320_v54  ;;  %22930 = vmatmul.mubr.bf16.vlgmr.msra.gmra.mxu1 %v5322_v55  ;;  %v29787_v22 = vrot.slane %v429_v62, %v26958_v24 }
 0x565   : > { %v20972_v8 = vadd.f32 %v20971_v6, %v20932_v50  ;;  %22952 = vmatpush1.bf16.xpose.msra.mxu0 %v26194_v59  ;;  %22992 = vmatpush1.bf16.xpose.msra.mxu1 %v26196_v60  ;;  %v5778_v50 = vld [vmem:[%s26937_s9 + $0xa48] sm:$0xff]  ;;  %v29771_v59 = vrot.slane %v3436_v42, %v26958_v24  ;;  %v26207_v60 = vcombine.high %v5777_v44, %v6161_v49  ;;  %v6165_v42 = vld [vmem:[%s26937_s9 + $0x1660] sm:$0x11] }
 0x566   : > { %v20973_v9 = vpop.f32.mrf.mxu0  ;;  %v21013_v10 = vpop.f32.mrf.mxu1  ;;  %22969 = vmatprep.mubr.bf16.mxu0 %v5325_v63  ;;  %23009 = vmatprep.mubr.bf16.mxu1 %v5327_v0  ;;  %v26209_v61 = vcombine.high %v5778_v50, %v6162_v51  ;;  %v3453_v6 = vcombine.high %v429_v62, %v429_v62 }
 0x567   : > { %v21012_v14 = vadd.f32 %v21011_v7, %v20972_v8  ;;  %23031 = vmatprep.subr.bf16.mxu0 %v26199_v3  ;;  %23071 = vmatprep.subr.bf16.mxu1 %v26201_v4  ;;  %v3451_v4 = vcombine.high %v29768_v58, %v29768_v58  ;;  %v3452_v5 = vcombine.high %v29771_v59, %v29771_v59  ;;  %v5779_v8 = vld [vmem:[%s26937_s9 + $0xa50] sm:$0xff] }
 0x568   : > { %v20974_v16 = vpop.f32.mrf.mxu0  ;;  %v21014_v17 = vpop.f32.mrf.mxu1  ;;  %v5338_v41 = vpack.c.bf16 %v29771_v59, %v29771_v59 }
 0x569   : > { %v26206_v16 = vcombine.low %v5777_v44, %v6161_v49  ;;  %v26208_v17 = vcombine.low %v5778_v50, %v6162_v51  ;;  %v5337_v20 = vpack.c.bf16 %v3451_v4, %v3451_v4  ;;  %v5339_v21 = vpack.c.bf16 %v3452_v5, %v3452_v5  ;;  %v6166_v44 = vld [vmem:[%s26937_s9 + $0x1668] sm:$0x11] }
 0x56a   : > { %v20975_v26 = vpop.f32.mrf.mxu0  ;;  %v21015_v27 = vpop.f32.mrf.mxu1  ;;  %v5340_v4 = vpack.c.bf16 %v29787_v22, %v29787_v22 }
 0x56b   : > { %v430_v27 = vld [vmem:[%s26930_s5 + $0x530] sm:$0xff] }
 0x56c   : > { %v21051_v35 = vpop.f32.mrf.mxu0  ;;  %v21091_v36 = vpop.f32.mrf.mxu1  ;;  %22970 = vmatmul.mubr.bf16.vlgmr.msra.gmra.mxu0 %v5324_v18  ;;  %23010 = vmatmul.mubr.bf16.vlgmr.msra.gmra.mxu1 %v5326_v19  ;;  %v29806_v51 = vrot.slane %v430_v27, %v26958_v24 }
 0x56d   : > { %v21052_v37 = vadd.f32 %v21051_v35, %v21012_v14  ;;  %23032 = vmatpush1.bf16.xpose.msra.mxu0 %v26198_v23  ;;  %23072 = vmatpush1.bf16.xpose.msra.mxu1 %v26200_v25  ;;  %v5780_v14 = vld [vmem:[%s26937_s9 + $0xa58] sm:$0xff]  ;;  %v29790_v23 = vrot.slane %v3453_v6, %v26958_v24  ;;  %v26211_v25 = vcombine.high %v5779_v8, %v6163_v13  ;;  %v6167_v6 = vld [vmem:[%s26937_s9 + $0x1670] sm:$0x11] }
 0x56e   : > { %v21053_v38 = vpop.f32.mrf.mxu0  ;;  %v21093_v39 = vpop.f32.mrf.mxu1  ;;  %23049 = vmatprep.mubr.bf16.mxu0 %v5329_v28  ;;  %23089 = vmatprep.mubr.bf16.mxu1 %v5331_v29  ;;  %v26213_v26 = vcombine.high %v5780_v14, %v6164_v15  ;;  %v3470_v35 = vcombine.high %v430_v27, %v430_v27 }
 0x56f   : > { %v21092_v43 = vadd.f32 %v21091_v36, %v21052_v37  ;;  %23111 = vmatprep.subr.bf16.mxu0 %v26203_v32  ;;  %23151 = vmatprep.subr.bf16.mxu1 %v26205_v33  ;;  %v3468_v33 = vcombine.high %v29787_v22, %v29787_v22  ;;  %v3469_v34 = vcombine.high %v29790_v23, %v29790_v23  ;;  %v5781_v37 = vld [vmem:[%s26937_s9 + $0xa60] sm:$0xff] }
 0x570   : > { %v21054_v45 = vpop.f32.mrf.mxu0  ;;  %v21094_v46 = vpop.f32.mrf.mxu1  ;;  %v5342_v5 = vpack.c.bf16 %v29790_v23, %v29790_v23 }
 0x571   : > { %v26210_v45 = vcombine.low %v5779_v8, %v6163_v13  ;;  %v26212_v46 = vcombine.low %v5780_v14, %v6164_v15  ;;  %v5341_v49 = vpack.c.bf16 %v3468_v33, %v3468_v33  ;;  %v5343_v50 = vpack.c.bf16 %v3469_v34, %v3469_v34  ;;  %v6168_v8 = vld [vmem:[%s26937_s9 + $0x1678] sm:$0x11] }
 0x572   : > { %v21055_v54 = vpop.f32.mrf.mxu0  ;;  %v21095_v55 = vpop.f32.mrf.mxu1  ;;  %v5344_v33 = vpack.c.bf16 %v29806_v51, %v29806_v51 }
 0x573   : > { %v431_v55 = vld [vmem:[%s26930_s5 + $0x538] sm:$0xff] }
 0x574   : > { %v21131_v63 = vpop.f32.mrf.mxu0  ;;  %v21171_v0 = vpop.f32.mrf.mxu1  ;;  %23050 = vmatmul.mubr.bf16.vlgmr.msra.gmra.mxu0 %v5328_v47  ;;  %23090 = vmatmul.mubr.bf16.vlgmr.msra.gmra.mxu1 %v5330_v48  ;;  %v29825_v15 = vrot.slane %v431_v55, %v26958_v24 }
 0x575   : > { %v21132_v1 = vadd.f32 %v21131_v63, %v21092_v43  ;;  %23112 = vmatpush1.bf16.xpose.msra.mxu0 %v26202_v52  ;;  %23152 = vmatpush1.bf16.xpose.msra.mxu1 %v26204_v53  ;;  %v5782_v43 = vld [vmem:[%s26937_s9 + $0xa68] sm:$0xff]  ;;  %v29809_v52 = vrot.slane %v3470_v35, %v26958_v24  ;;  %v26215_v53 = vcombine.high %v5781_v37, %v6165_v42  ;;  %v6169_v35 = vld [vmem:[%s26937_s9 + $0x1680] sm:$0x11] }
 0x576   : > { %v21133_v2 = vpop.f32.mrf.mxu0  ;;  %v21173_v3 = vpop.f32.mrf.mxu1  ;;  %23129 = vmatprep.mubr.bf16.mxu0 %v5333_v56  ;;  %23169 = vmatprep.mubr.bf16.mxu1 %v5335_v57  ;;  %v26217_v54 = vcombine.high %v5782_v43, %v6166_v44  ;;  %v3487_v63 = vcombine.high %v431_v55, %v431_v55 }
 0x577   : > { %v21172_v7 = vadd.f32 %v21171_v0, %v21132_v1  ;;  %23191 = vmatprep.subr.bf16.mxu0 %v26207_v60  ;;  %23231 = vmatprep.subr.bf16.mxu1 %v26209_v61  ;;  %v3485_v61 = vcombine.high %v29806_v51, %v29806_v51  ;;  %v3486_v62 = vcombine.high %v29809_v52, %v29809_v52  ;;  %v5783_v1 = vld [vmem:[%s26937_s9 + $0xa70] sm:$0xff] }
 0x578   : > { %v21134_v9 = vpop.f32.mrf.mxu0  ;;  %v21174_v10 = vpop.f32.mrf.mxu1  ;;  %v5346_v34 = vpack.c.bf16 %v29809_v52, %v29809_v52 }
 0x579   : > { %v26214_v9 = vcombine.low %v5781_v37, %v6165_v42  ;;  %v26216_v10 = vcombine.low %v5782_v43, %v6166_v44  ;;  %v5345_v13 = vpack.c.bf16 %v3485_v61, %v3485_v61  ;;  %v5347_v14 = vpack.c.bf16 %v3486_v62, %v3486_v62  ;;  %v6170_v37 = vld [vmem:[%s26937_s9 + $0x1688] sm:$0x11] }
 0x57a   : > { %v21135_v18 = vpop.f32.mrf.mxu0  ;;  %v21175_v19 = vpop.f32.mrf.mxu1  ;;  %v5348_v61 = vpack.c.bf16 %v29825_v15, %v29825_v15 }
 0x57b   : > { %v432_v19 = vld [vmem:[%s26930_s5 + $0x540] sm:$0xff] }
 0x57c   : > { %v21211_v28 = vpop.f32.mrf.mxu0  ;;  %v21251_v29 = vpop.f32.mrf.mxu1  ;;  %23130 = vmatmul.mubr.bf16.vlgmr.msra.gmra.mxu0 %v5332_v11  ;;  %23170 = vmatmul.mubr.bf16.vlgmr.msra.gmra.mxu1 %v5334_v12  ;;  %v29844_v44 = vrot.slane %v432_v19, %v26958_v24 }
 0x57d   : > { %v21212_v30 = vadd.f32 %v21211_v28, %v21172_v7  ;;  %23192 = vmatpush1.bf16.xpose.msra.mxu0 %v26206_v16  ;;  %23232 = vmatpush1.bf16.xpose.msra.mxu1 %v26208_v17  ;;  %v5784_v7 = vld [vmem:[%s26937_s9 + $0xa78] sm:$0xff]  ;;  %v29828_v16 = vrot.slane %v3487_v63, %v26958_v24  ;;  %v26219_v17 = vcombine.high %v5783_v1, %v6167_v6  ;;  %v6171_v63 = vld [vmem:[%s26937_s9 + $0x1690] sm:$0x11] }
 0x57e   : > { %v21213_v31 = vpop.f32.mrf.mxu0  ;;  %v21253_v32 = vpop.f32.mrf.mxu1  ;;  %23209 = vmatprep.mubr.bf16.mxu0 %v5337_v20  ;;  %23249 = vmatprep.mubr.bf16.mxu1 %v5339_v21  ;;  %v26221_v18 = vcombine.high %v5784_v7, %v6168_v8  ;;  %v3504_v28 = vcombine.high %v432_v19, %v432_v19 }
 0x57f   : > { %v21252_v36 = vadd.f32 %v21251_v29, %v21212_v30  ;;  %23271 = vmatprep.subr.bf16.mxu0 %v26211_v25  ;;  %23311 = vmatprep.subr.bf16.mxu1 %v26213_v26  ;;  %v3502_v26 = vcombine.high %v29825_v15, %v29825_v15  ;;  %v3503_v27 = vcombine.high %v29828_v16, %v29828_v16  ;;  %v5785_v30 = vld [vmem:[%s26937_s9 + $0xa80] sm:$0xff] }
 0x580   : > { %v21214_v38 = vpop.f32.mrf.mxu0  ;;  %v21254_v39 = vpop.f32.mrf.mxu1  ;;  %v5350_v62 = vpack.c.bf16 %v29828_v16, %v29828_v16 }
 0x581   : > { %v26218_v38 = vcombine.low %v5783_v1, %v6167_v6  ;;  %v26220_v39 = vcombine.low %v5784_v7, %v6168_v8  ;;  %v5349_v42 = vpack.c.bf16 %v3502_v26, %v3502_v26  ;;  %v5351_v43 = vpack.c.bf16 %v3503_v27, %v3503_v27  ;;  %v6172_v1 = vld [vmem:[%s26937_s9 + $0x1698] sm:$0x11] }
 0x582   : > { %v21215_v47 = vpop.f32.mrf.mxu0  ;;  %v21255_v48 = vpop.f32.mrf.mxu1  ;;  %v5352_v26 = vpack.c.bf16 %v29844_v44, %v29844_v44 }
 0x583   : > { %v433_v48 = vld [vmem:[%s26930_s5 + $0x548] sm:$0xff] }
 0x584   : > { %v21291_v56 = vpop.f32.mrf.mxu0  ;;  %v21331_v57 = vpop.f32.mrf.mxu1  ;;  %23210 = vmatmul.mubr.bf16.vlgmr.msra.gmra.mxu0 %v5336_v40  ;;  %23250 = vmatmul.mubr.bf16.vlgmr.msra.gmra.mxu1 %v5338_v41  ;;  %v29863_v8 = vrot.slane %v433_v48, %v26958_v24 }
 0x585   : > { %v21292_v58 = vadd.f32 %v21291_v56, %v21252_v36  ;;  %23272 = vmatpush1.bf16.xpose.msra.mxu0 %v26210_v45  ;;  %23312 = vmatpush1.bf16.xpose.msra.mxu1 %v26212_v46  ;;  %v5786_v36 = vld [vmem:[%s26937_s9 + $0xa88] sm:$0xff]  ;;  %v29847_v45 = vrot.slane %v3504_v28, %v26958_v24  ;;  %v26223_v46 = vcombine.high %v5785_v30, %v6169_v35  ;;  %v6173_v28 = vld [vmem:[%s26937_s9 + $0x16a0] sm:$0x11] }
 0x586   : > { %v21293_v59 = vpop.f32.mrf.mxu0  ;;  %v21333_v60 = vpop.f32.mrf.mxu1  ;;  %23289 = vmatprep.mubr.bf16.mxu0 %v5341_v49  ;;  %23329 = vmatprep.mubr.bf16.mxu1 %v5343_v50  ;;  %v26225_v47 = vcombine.high %v5786_v36, %v6170_v37  ;;  %v3521_v56 = vcombine.high %v433_v48, %v433_v48 }
 0x587   : > { %v21332_v0 = vadd.f32 %v21331_v57, %v21292_v58  ;;  %23351 = vmatprep.subr.bf16.mxu0 %v26215_v53  ;;  %23391 = vmatprep.subr.bf16.mxu1 %v26217_v54  ;;  %v3519_v54 = vcombine.high %v29844_v44, %v29844_v44  ;;  %v3520_v55 = vcombine.high %v29847_v45, %v29847_v45  ;;  %v5787_v58 = vld [vmem:[%s26937_s9 + $0xa90] sm:$0xff] }
 0x588   : > { %v21294_v2 = vpop.f32.mrf.mxu0  ;;  %v21334_v3 = vpop.f32.mrf.mxu1  ;;  %v5354_v27 = vpack.c.bf16 %v29847_v45, %v29847_v45 }
 0x589   : > { %v26222_v2 = vcombine.low %v5785_v30, %v6169_v35  ;;  %v26224_v3 = vcombine.low %v5786_v36, %v6170_v37  ;;  %v5353_v6 = vpack.c.bf16 %v3519_v54, %v3519_v54  ;;  %v5355_v7 = vpack.c.bf16 %v3520_v55, %v3520_v55  ;;  %v6174_v30 = vld [vmem:[%s26937_s9 + $0x16a8] sm:$0x11] }
 0x58a   : > { %v21295_v11 = vpop.f32.mrf.mxu0  ;;  %v21335_v12 = vpop.f32.mrf.mxu1  ;;  %v5356_v54 = vpack.c.bf16 %v29863_v8, %v29863_v8 }
 0x58b   : > { %v434_v12 = vld [vmem:[%s26930_s5 + $0x550] sm:$0xff] }
 0x58c   : > { %v21371_v20 = vpop.f32.mrf.mxu0  ;;  %v21411_v21 = vpop.f32.mrf.mxu1  ;;  %23290 = vmatmul.mubr.bf16.vlgmr.msra.gmra.mxu0 %v5340_v4  ;;  %23330 = vmatmul.mubr.bf16.vlgmr.msra.gmra.mxu1 %v5342_v5  ;;  %v29882_v37 = vrot.slane %v434_v12, %v26958_v24 }
 0x58d   : > { %v21372_v22 = vadd.f32 %v21371_v20, %v21332_v0  ;;  %23352 = vmatpush1.bf16.xpose.msra.mxu0 %v26214_v9  ;;  %23392 = vmatpush1.bf16.xpose.msra.mxu1 %v26216_v10  ;;  %v5788_v0 = vld [vmem:[%s26937_s9 + $0xa98] sm:$0xff]  ;;  %v29866_v9 = vrot.slane %v3521_v56, %v26958_v24  ;;  %v26227_v10 = vcombine.high %v5787_v58, %v6171_v63  ;;  %v6175_v56 = vld [vmem:[%s26937_s9 + $0x16b0] sm:$0x11] }
 0x58e   : > { %v21373_v23 = vpop.f32.mrf.mxu0  ;;  %v21413_v25 = vpop.f32.mrf.mxu1  ;;  %23369 = vmatprep.mubr.bf16.mxu0 %v5345_v13  ;;  %23409 = vmatprep.mubr.bf16.mxu1 %v5347_v14  ;;  %v26229_v11 = vcombine.high %v5788_v0, %v6172_v1  ;;  %v3538_v20 = vcombine.high %v434_v12, %v434_v12 }
 0x58f   : > { %v21412_v29 = vadd.f32 %v21411_v21, %v21372_v22  ;;  %23431 = vmatprep.subr.bf16.mxu0 %v26219_v17  ;;  %23471 = vmatprep.subr.bf16.mxu1 %v26221_v18  ;;  %v3536_v18 = vcombine.high %v29863_v8, %v29863_v8  ;;  %v3537_v19 = vcombine.high %v29866_v9, %v29866_v9  ;;  %v5789_v22 = vld [vmem:[%s26937_s9 + $0xaa0] sm:$0xff] }
 0x590   : > { %v21374_v31 = vpop.f32.mrf.mxu0  ;;  %v21414_v32 = vpop.f32.mrf.mxu1  ;;  %v5358_v55 = vpack.c.bf16 %v29866_v9, %v29866_v9 }
 0x591   : > { %v26226_v31 = vcombine.low %v5787_v58, %v6171_v63  ;;  %v26228_v32 = vcombine.low %v5788_v0, %v6172_v1  ;;  %v5357_v35 = vpack.c.bf16 %v3536_v18, %v3536_v18  ;;  %v5359_v36 = vpack.c.bf16 %v3537_v19, %v3537_v19  ;;  %v6176_v58 = vld [vmem:[%s26937_s9 + $0x16b8] sm:$0x11] }
 0x592   : > { %v21375_v40 = vpop.f32.mrf.mxu0  ;;  %v21415_v41 = vpop.f32.mrf.mxu1  ;;  %v5360_v18 = vpack.c.bf16 %v29882_v37, %v29882_v37 }
 0x593   : > { %v435_v41 = vld [vmem:[%s26930_s5 + $0x558] sm:$0xff] }
 0x594   : > { %v21451_v49 = vpop.f32.mrf.mxu0  ;;  %v21491_v50 = vpop.f32.mrf.mxu1  ;;  %23370 = vmatmul.mubr.bf16.vlgmr.msra.gmra.mxu0 %v5344_v33  ;;  %23410 = vmatmul.mubr.bf16.vlgmr.msra.gmra.mxu1 %v5346_v34  ;;  %v29901_v1 = vrot.slane %v435_v41, %v26958_v24 }
 0x595   : > { %v21452_v51 = vadd.f32 %v21451_v49, %v21412_v29  ;;  %23432 = vmatpush1.bf16.xpose.msra.mxu0 %v26218_v38  ;;  %23472 = vmatpush1.bf16.xpose.msra.mxu1 %v26220_v39  ;;  %v5790_v29 = vld [vmem:[%s26937_s9 + $0xaa8] sm:$0xff]  ;;  %v29885_v38 = vrot.slane %v3538_v20, %v26958_v24  ;;  %v26231_v39 = vcombine.high %v5789_v22, %v6173_v28  ;;  %v6177_v20 = vld [vmem:[%s26937_s9 + $0x16c0] sm:$0x11] }
 0x596   : > { %v21453_v52 = vpop.f32.mrf.mxu0  ;;  %v21493_v53 = vpop.f32.mrf.mxu1  ;;  %23449 = vmatprep.mubr.bf16.mxu0 %v5349_v42  ;;  %23489 = vmatprep.mubr.bf16.mxu1 %v5351_v43  ;;  %v26233_v40 = vcombine.high %v5790_v29, %v6174_v30  ;;  %v3555_v49 = vcombine.high %v435_v41, %v435_v41 }
 0x597   : > { %v21492_v57 = vadd.f32 %v21491_v50, %v21452_v51  ;;  %23511 = vmatprep.subr.bf16.mxu0 %v26223_v46  ;;  %23551 = vmatprep.subr.bf16.mxu1 %v26225_v47  ;;  %v3553_v47 = vcombine.high %v29882_v37, %v29882_v37  ;;  %v3554_v48 = vcombine.high %v29885_v38, %v29885_v38  ;;  %v5791_v51 = vld [vmem:[%s26937_s9 + $0xab0] sm:$0xff] }
 0x598   : > { %v21454_v59 = vpop.f32.mrf.mxu0  ;;  %v21494_v60 = vpop.f32.mrf.mxu1  ;;  %v5362_v19 = vpack.c.bf16 %v29885_v38, %v29885_v38 }
 0x599   : > { %v26230_v59 = vcombine.low %v5789_v22, %v6173_v28  ;;  %v26232_v60 = vcombine.low %v5790_v29, %v6174_v30  ;;  %v5361_v63 = vpack.c.bf16 %v3553_v47, %v3553_v47  ;;  %v5363_v0 = vpack.c.bf16 %v3554_v48, %v3554_v48  ;;  %v6178_v22 = vld [vmem:[%s26937_s9 + $0x16c8] sm:$0x11] }
 0x59a   : > { %v21455_v4 = vpop.f32.mrf.mxu0  ;;  %v21495_v5 = vpop.f32.mrf.mxu1  ;;  %v5364_v47 = vpack.c.bf16 %v29901_v1, %v29901_v1 }
 0x59b   : > { %v436_v5 = vld [vmem:[%s26930_s5 + $0x560] sm:$0xff] }
 0x59c   : > { %v21531_v13 = vpop.f32.mrf.mxu0  ;;  %v21571_v14 = vpop.f32.mrf.mxu1  ;;  %23450 = vmatmul.mubr.bf16.vlgmr.msra.gmra.mxu0 %v5348_v61  ;;  %23490 = vmatmul.mubr.bf16.vlgmr.msra.gmra.mxu1 %v5350_v62  ;;  %v29920_v30 = vrot.slane %v436_v5, %v26958_v24 }
 0x59d   : > { %v21532_v15 = vadd.f32 %v21531_v13, %v21492_v57  ;;  %23512 = vmatpush1.bf16.xpose.msra.mxu0 %v26222_v2  ;;  %23552 = vmatpush1.bf16.xpose.msra.mxu1 %v26224_v3  ;;  %v5792_v57 = vld [vmem:[%s26937_s9 + $0xab8] sm:$0xff]  ;;  %v29904_v2 = vrot.slane %v3555_v49, %v26958_v24  ;;  %v26235_v3 = vcombine.high %v5791_v51, %v6175_v56  ;;  %v6179_v49 = vld [vmem:[%s26937_s9 + $0x16d0] sm:$0x11] }
 0x59e   : > { %v21533_v16 = vpop.f32.mrf.mxu0  ;;  %v21573_v17 = vpop.f32.mrf.mxu1  ;;  %23529 = vmatprep.mubr.bf16.mxu0 %v5353_v6  ;;  %23569 = vmatprep.mubr.bf16.mxu1 %v5355_v7  ;;  %v26237_v4 = vcombine.high %v5792_v57, %v6176_v58  ;;  %v3572_v13 = vcombine.high %v436_v5, %v436_v5 }
 0x59f   : > { %v21572_v21 = vadd.f32 %v21571_v14, %v21532_v15  ;;  %23591 = vmatprep.subr.bf16.mxu0 %v26227_v10  ;;  %23631 = vmatprep.subr.bf16.mxu1 %v26229_v11  ;;  %v3570_v11 = vcombine.high %v29901_v1, %v29901_v1  ;;  %v3571_v12 = vcombine.high %v29904_v2, %v29904_v2  ;;  %v5793_v15 = vld [vmem:[%s26937_s9 + $0xac0] sm:$0xff] }
 0x5a0   : > { %v21534_v23 = vpop.f32.mrf.mxu0  ;;  %v21574_v25 = vpop.f32.mrf.mxu1  ;;  %v5366_v48 = vpack.c.bf16 %v29904_v2, %v29904_v2 }
 0x5a1   : > { %v26234_v23 = vcombine.low %v5791_v51, %v6175_v56  ;;  %v26236_v25 = vcombine.low %v5792_v57, %v6176_v58  ;;  %v5365_v28 = vpack.c.bf16 %v3570_v11, %v3570_v11  ;;  %v5367_v29 = vpack.c.bf16 %v3571_v12, %v3571_v12  ;;  %v6180_v51 = vld [vmem:[%s26937_s9 + $0x16d8] sm:$0x11] }
 0x5a2   : > { %v21535_v33 = vpop.f32.mrf.mxu0  ;;  %v21575_v34 = vpop.f32.mrf.mxu1  ;;  %v5368_v11 = vpack.c.bf16 %v29920_v30, %v29920_v30 }
 0x5a3   : > { %v437_v34 = vld [vmem:[%s26930_s5 + $0x568] sm:$0xff] }
 0x5a4   : > { %v21611_v42 = vpop.f32.mrf.mxu0  ;;  %v21651_v43 = vpop.f32.mrf.mxu1  ;;  %23530 = vmatmul.mubr.bf16.vlgmr.msra.gmra.mxu0 %v5352_v26  ;;  %23570 = vmatmul.mubr.bf16.vlgmr.msra.gmra.mxu1 %v5354_v27  ;;  %v29939_v58 = vrot.slane %v437_v34, %v26958_v24 }
 0x5a5   : > { %v21612_v44 = vadd.f32 %v21611_v42, %v21572_v21  ;;  %23592 = vmatpush1.bf16.xpose.msra.mxu0 %v26226_v31  ;;  %23632 = vmatpush1.bf16.xpose.msra.mxu1 %v26228_v32  ;;  %v5794_v21 = vld [vmem:[%s26937_s9 + $0xac8] sm:$0xff]  ;;  %v29923_v31 = vrot.slane %v3572_v13, %v26958_v24  ;;  %v26239_v32 = vcombine.high %v5793_v15, %v6177_v20  ;;  %v6181_v13 = vld [vmem:[%s26937_s9 + $0x16e0] sm:$0x11] }
 0x5a6   : > { %v21613_v45 = vpop.f32.mrf.mxu0  ;;  %v21653_v46 = vpop.f32.mrf.mxu1  ;;  %23609 = vmatprep.mubr.bf16.mxu0 %v5357_v35  ;;  %23649 = vmatprep.mubr.bf16.mxu1 %v5359_v36  ;;  %v26241_v33 = vcombine.high %v5794_v21, %v6178_v22  ;;  %v3589_v42 = vcombine.high %v437_v34, %v437_v34 }
 0x5a7   : > { %v21652_v50 = vadd.f32 %v21651_v43, %v21612_v44  ;;  %23671 = vmatprep.subr.bf16.mxu0 %v26231_v39  ;;  %23711 = vmatprep.subr.bf16.mxu1 %v26233_v40  ;;  %v3587_v40 = vcombine.high %v29920_v30, %v29920_v30  ;;  %v3588_v41 = vcombine.high %v29923_v31, %v29923_v31  ;;  %v5795_v44 = vld [vmem:[%s26937_s9 + $0xad0] sm:$0xff] }
 0x5a8   : > { %v21614_v52 = vpop.f32.mrf.mxu0  ;;  %v21654_v53 = vpop.f32.mrf.mxu1  ;;  %v5370_v12 = vpack.c.bf16 %v29923_v31, %v29923_v31 }
 0x5a9   : > { %v26238_v52 = vcombine.low %v5793_v15, %v6177_v20  ;;  %v26240_v53 = vcombine.low %v5794_v21, %v6178_v22  ;;  %v5369_v56 = vpack.c.bf16 %v3587_v40, %v3587_v40  ;;  %v5371_v57 = vpack.c.bf16 %v3588_v41, %v3588_v41  ;;  %v6182_v15 = vld [vmem:[%s26937_s9 + $0x16e8] sm:$0x11] }
 0x5aa   : > { %v21615_v61 = vpop.f32.mrf.mxu0  ;;  %v21655_v62 = vpop.f32.mrf.mxu1  ;;  %v5372_v40 = vpack.c.bf16 %v29939_v58, %v29939_v58 }
 0x5ab   : > { %v438_v62 = vld [vmem:[%s26930_s5 + $0x570] sm:$0xff] }
 0x5ac   : > { %v21691_v6 = vpop.f32.mrf.mxu0  ;;  %v21731_v7 = vpop.f32.mrf.mxu1  ;;  %23610 = vmatmul.mubr.bf16.vlgmr.msra.gmra.mxu0 %v5356_v54  ;;  %23650 = vmatmul.mubr.bf16.vlgmr.msra.gmra.mxu1 %v5358_v55  ;;  %v29958_v22 = vrot.slane %v438_v62, %v26958_v24 }
 0x5ad   : > { %v21692_v8 = vadd.f32 %v21691_v6, %v21652_v50  ;;  %23672 = vmatpush1.bf16.xpose.msra.mxu0 %v26230_v59  ;;  %23712 = vmatpush1.bf16.xpose.msra.mxu1 %v26232_v60  ;;  %v5796_v50 = vld [vmem:[%s26937_s9 + $0xad8] sm:$0xff]  ;;  %v29942_v59 = vrot.slane %v3589_v42, %v26958_v24  ;;  %v26243_v60 = vcombine.high %v5795_v44, %v6179_v49  ;;  %v6183_v42 = vld [vmem:[%s26937_s9 + $0x16f0] sm:$0x11] }
 0x5ae   : > { %v21693_v9 = vpop.f32.mrf.mxu0  ;;  %v21733_v10 = vpop.f32.mrf.mxu1  ;;  %23689 = vmatprep.mubr.bf16.mxu0 %v5361_v63  ;;  %23729 = vmatprep.mubr.bf16.mxu1 %v5363_v0  ;;  %v26245_v61 = vcombine.high %v5796_v50, %v6180_v51  ;;  %v3606_v6 = vcombine.high %v438_v62, %v438_v62 }
 0x5af   : > { %v21732_v14 = vadd.f32 %v21731_v7, %v21692_v8  ;;  %23751 = vmatprep.subr.bf16.mxu0 %v26235_v3  ;;  %23791 = vmatprep.subr.bf16.mxu1 %v26237_v4  ;;  %v3604_v4 = vcombine.high %v29939_v58, %v29939_v58  ;;  %v3605_v5 = vcombine.high %v29942_v59, %v29942_v59  ;;  %v5797_v8 = vld [vmem:[%s26937_s9 + $0xae0] sm:$0xff] }
 0x5b0   : > { %v21694_v16 = vpop.f32.mrf.mxu0  ;;  %v21734_v17 = vpop.f32.mrf.mxu1  ;;  %v5374_v41 = vpack.c.bf16 %v29942_v59, %v29942_v59 }
 0x5b1   : > { %v26242_v16 = vcombine.low %v5795_v44, %v6179_v49  ;;  %v26244_v17 = vcombine.low %v5796_v50, %v6180_v51  ;;  %v5373_v20 = vpack.c.bf16 %v3604_v4, %v3604_v4  ;;  %v5375_v21 = vpack.c.bf16 %v3605_v5, %v3605_v5  ;;  %v6184_v44 = vld [vmem:[%s26937_s9 + $0x16f8] sm:$0x11] }
 0x5b2   : > { %v21695_v26 = vpop.f32.mrf.mxu0  ;;  %v21735_v27 = vpop.f32.mrf.mxu1  ;;  %v5376_v4 = vpack.c.bf16 %v29958_v22, %v29958_v22 }
 0x5b3   : > { %v439_v27 = vld [vmem:[%s26930_s5 + $0x578] sm:$0xff] }
 0x5b4   : > { %v21771_v35 = vpop.f32.mrf.mxu0  ;;  %v21811_v36 = vpop.f32.mrf.mxu1  ;;  %23690 = vmatmul.mubr.bf16.vlgmr.msra.gmra.mxu0 %v5360_v18  ;;  %23730 = vmatmul.mubr.bf16.vlgmr.msra.gmra.mxu1 %v5362_v19  ;;  %v29977_v51 = vrot.slane %v439_v27, %v26958_v24 }
 0x5b5   : > { %v21772_v37 = vadd.f32 %v21771_v35, %v21732_v14  ;;  %23752 = vmatpush1.bf16.xpose.msra.mxu0 %v26234_v23  ;;  %23792 = vmatpush1.bf16.xpose.msra.mxu1 %v26236_v25  ;;  %v5798_v14 = vld [vmem:[%s26937_s9 + $0xae8] sm:$0xff]  ;;  %v29961_v23 = vrot.slane %v3606_v6, %v26958_v24  ;;  %v26247_v25 = vcombine.high %v5797_v8, %v6181_v13  ;;  %v6185_v6 = vld [vmem:[%s26937_s9 + $0x1700] sm:$0x11] }
 0x5b6   : > { %v21773_v38 = vpop.f32.mrf.mxu0  ;;  %v21813_v39 = vpop.f32.mrf.mxu1  ;;  %23769 = vmatprep.mubr.bf16.mxu0 %v5365_v28  ;;  %23809 = vmatprep.mubr.bf16.mxu1 %v5367_v29  ;;  %v26249_v26 = vcombine.high %v5798_v14, %v6182_v15  ;;  %v3623_v35 = vcombine.high %v439_v27, %v439_v27 }
 0x5b7   : > { %v21812_v43 = vadd.f32 %v21811_v36, %v21772_v37  ;;  %23831 = vmatprep.subr.bf16.mxu0 %v26239_v32  ;;  %23871 = vmatprep.subr.bf16.mxu1 %v26241_v33  ;;  %v3621_v33 = vcombine.high %v29958_v22, %v29958_v22  ;;  %v3622_v34 = vcombine.high %v29961_v23, %v29961_v23  ;;  %v5799_v37 = vld [vmem:[%s26937_s9 + $0xaf0] sm:$0xff] }
 0x5b8   : > { %v21774_v45 = vpop.f32.mrf.mxu0  ;;  %v21814_v46 = vpop.f32.mrf.mxu1  ;;  %v5378_v5 = vpack.c.bf16 %v29961_v23, %v29961_v23 }
 0x5b9   : > { %v26246_v45 = vcombine.low %v5797_v8, %v6181_v13  ;;  %v26248_v46 = vcombine.low %v5798_v14, %v6182_v15  ;;  %v5377_v49 = vpack.c.bf16 %v3621_v33, %v3621_v33  ;;  %v5379_v50 = vpack.c.bf16 %v3622_v34, %v3622_v34  ;;  %v6186_v8 = vld [vmem:[%s26937_s9 + $0x1708] sm:$0x11] }
 0x5ba   : > { %v21775_v54 = vpop.f32.mrf.mxu0  ;;  %v21815_v55 = vpop.f32.mrf.mxu1  ;;  %v5380_v33 = vpack.c.bf16 %v29977_v51, %v29977_v51 }
 0x5bb   : > { %v440_v55 = vld [vmem:[%s26930_s5 + $0x580] sm:$0xff] }
 0x5bc   : > { %v21851_v63 = vpop.f32.mrf.mxu0  ;;  %v21891_v0 = vpop.f32.mrf.mxu1  ;;  %23770 = vmatmul.mubr.bf16.vlgmr.msra.gmra.mxu0 %v5364_v47  ;;  %23810 = vmatmul.mubr.bf16.vlgmr.msra.gmra.mxu1 %v5366_v48  ;;  %v29996_v15 = vrot.slane %v440_v55, %v26958_v24 }
 0x5bd   : > { %v21852_v1 = vadd.f32 %v21851_v63, %v21812_v43  ;;  %23832 = vmatpush1.bf16.xpose.msra.mxu0 %v26238_v52  ;;  %23872 = vmatpush1.bf16.xpose.msra.mxu1 %v26240_v53  ;;  %v5800_v43 = vld [vmem:[%s26937_s9 + $0xaf8] sm:$0xff]  ;;  %v29980_v52 = vrot.slane %v3623_v35, %v26958_v24  ;;  %v26251_v53 = vcombine.high %v5799_v37, %v6183_v42  ;;  %v6187_v35 = vld [vmem:[%s26937_s9 + $0x1710] sm:$0x11] }
 0x5be   : > { %v21853_v2 = vpop.f32.mrf.mxu0  ;;  %v21893_v3 = vpop.f32.mrf.mxu1  ;;  %23849 = vmatprep.mubr.bf16.mxu0 %v5369_v56  ;;  %23889 = vmatprep.mubr.bf16.mxu1 %v5371_v57  ;;  %v26253_v54 = vcombine.high %v5800_v43, %v6184_v44  ;;  %v3640_v63 = vcombine.high %v440_v55, %v440_v55 }
 0x5bf   : > { %v21892_v7 = vadd.f32 %v21891_v0, %v21852_v1  ;;  %23911 = vmatprep.subr.bf16.mxu0 %v26243_v60  ;;  %23951 = vmatprep.subr.bf16.mxu1 %v26245_v61  ;;  %v3638_v61 = vcombine.high %v29977_v51, %v29977_v51  ;;  %v3639_v62 = vcombine.high %v29980_v52, %v29980_v52  ;;  %v5801_v1 = vld [vmem:[%s26937_s9 + $0xb00] sm:$0xff] }
 0x5c0   : > { %v21854_v9 = vpop.f32.mrf.mxu0  ;;  %v21894_v10 = vpop.f32.mrf.mxu1  ;;  %v5382_v34 = vpack.c.bf16 %v29980_v52, %v29980_v52 }
 0x5c1   : > { %v26250_v9 = vcombine.low %v5799_v37, %v6183_v42  ;;  %v26252_v10 = vcombine.low %v5800_v43, %v6184_v44  ;;  %v5381_v13 = vpack.c.bf16 %v3638_v61, %v3638_v61  ;;  %v5383_v14 = vpack.c.bf16 %v3639_v62, %v3639_v62  ;;  %v6188_v37 = vld [vmem:[%s26937_s9 + $0x1718] sm:$0x11] }
 0x5c2   : > { %v21855_v18 = vpop.f32.mrf.mxu0  ;;  %v21895_v19 = vpop.f32.mrf.mxu1  ;;  %v5384_v61 = vpack.c.bf16 %v29996_v15, %v29996_v15 }
 0x5c3   : > { %v441_v19 = vld [vmem:[%s26930_s5 + $0x588] sm:$0xff] }
 0x5c4   : > { %v21931_v28 = vpop.f32.mrf.mxu0  ;;  %v21971_v29 = vpop.f32.mrf.mxu1  ;;  %23850 = vmatmul.mubr.bf16.vlgmr.msra.gmra.mxu0 %v5368_v11  ;;  %23890 = vmatmul.mubr.bf16.vlgmr.msra.gmra.mxu1 %v5370_v12  ;;  %v30015_v44 = vrot.slane %v441_v19, %v26958_v24 }
 0x5c5   : > { %v21932_v30 = vadd.f32 %v21931_v28, %v21892_v7  ;;  %23912 = vmatpush1.bf16.xpose.msra.mxu0 %v26242_v16  ;;  %23952 = vmatpush1.bf16.xpose.msra.mxu1 %v26244_v17  ;;  %v5802_v7 = vld [vmem:[%s26937_s9 + $0xb08] sm:$0xff]  ;;  %v29999_v16 = vrot.slane %v3640_v63, %v26958_v24  ;;  %v26255_v17 = vcombine.high %v5801_v1, %v6185_v6  ;;  %v6189_v63 = vld [vmem:[%s26937_s9 + $0x1720] sm:$0x11] }
 0x5c6   : > { %v21933_v31 = vpop.f32.mrf.mxu0  ;;  %v21973_v32 = vpop.f32.mrf.mxu1  ;;  %23929 = vmatprep.mubr.bf16.mxu0 %v5373_v20  ;;  %23969 = vmatprep.mubr.bf16.mxu1 %v5375_v21  ;;  %v26257_v18 = vcombine.high %v5802_v7, %v6186_v8  ;;  %v3657_v28 = vcombine.high %v441_v19, %v441_v19 }
 0x5c7   : > { %v21972_v36 = vadd.f32 %v21971_v29, %v21932_v30  ;;  %23991 = vmatprep.subr.bf16.mxu0 %v26247_v25  ;;  %24031 = vmatprep.subr.bf16.mxu1 %v26249_v26  ;;  %v3655_v26 = vcombine.high %v29996_v15, %v29996_v15  ;;  %v3656_v27 = vcombine.high %v29999_v16, %v29999_v16  ;;  %v5803_v30 = vld [vmem:[%s26937_s9 + $0xb10] sm:$0xff] }
 0x5c8   : > { %v21934_v38 = vpop.f32.mrf.mxu0  ;;  %v21974_v39 = vpop.f32.mrf.mxu1  ;;  %v5386_v62 = vpack.c.bf16 %v29999_v16, %v29999_v16 }
 0x5c9   : > { %v26254_v38 = vcombine.low %v5801_v1, %v6185_v6  ;;  %v26256_v39 = vcombine.low %v5802_v7, %v6186_v8  ;;  %v5385_v42 = vpack.c.bf16 %v3655_v26, %v3655_v26  ;;  %v5387_v43 = vpack.c.bf16 %v3656_v27, %v3656_v27  ;;  %v6190_v1 = vld [vmem:[%s26937_s9 + $0x1728] sm:$0x11] }
 0x5ca   : > { %v21935_v47 = vpop.f32.mrf.mxu0  ;;  %v21975_v48 = vpop.f32.mrf.mxu1  ;;  %v5388_v26 = vpack.c.bf16 %v30015_v44, %v30015_v44 }
 0x5cb   : > { %v442_v48 = vld [vmem:[%s26930_s5 + $0x590] sm:$0xff] }
 0x5cc   : > { %v22011_v56 = vpop.f32.mrf.mxu0  ;;  %v22051_v57 = vpop.f32.mrf.mxu1  ;;  %23930 = vmatmul.mubr.bf16.vlgmr.msra.gmra.mxu0 %v5372_v40  ;;  %23970 = vmatmul.mubr.bf16.vlgmr.msra.gmra.mxu1 %v5374_v41  ;;  %v30034_v8 = vrot.slane %v442_v48, %v26958_v24 }
 0x5cd   : > { %v22012_v58 = vadd.f32 %v22011_v56, %v21972_v36  ;;  %23992 = vmatpush1.bf16.xpose.msra.mxu0 %v26246_v45  ;;  %24032 = vmatpush1.bf16.xpose.msra.mxu1 %v26248_v46  ;;  %v5804_v36 = vld [vmem:[%s26937_s9 + $0xb18] sm:$0xff]  ;;  %v30018_v45 = vrot.slane %v3657_v28, %v26958_v24  ;;  %v26259_v46 = vcombine.high %v5803_v30, %v6187_v35  ;;  %v6191_v28 = vld [vmem:[%s26937_s9 + $0x1730] sm:$0x11] }
 0x5ce   : > { %v22013_v59 = vpop.f32.mrf.mxu0  ;;  %v22053_v60 = vpop.f32.mrf.mxu1  ;;  %24009 = vmatprep.mubr.bf16.mxu0 %v5377_v49  ;;  %24049 = vmatprep.mubr.bf16.mxu1 %v5379_v50  ;;  %v26261_v47 = vcombine.high %v5804_v36, %v6188_v37  ;;  %v3674_v56 = vcombine.high %v442_v48, %v442_v48 }
 0x5cf   : > { %v22052_v0 = vadd.f32 %v22051_v57, %v22012_v58  ;;  %24071 = vmatprep.subr.bf16.mxu0 %v26251_v53  ;;  %24111 = vmatprep.subr.bf16.mxu1 %v26253_v54  ;;  %v3672_v54 = vcombine.high %v30015_v44, %v30015_v44  ;;  %v3673_v55 = vcombine.high %v30018_v45, %v30018_v45  ;;  %v5805_v58 = vld [vmem:[%s26937_s9 + $0xb20] sm:$0xff] }
 0x5d0   : > { %v22014_v2 = vpop.f32.mrf.mxu0  ;;  %v22054_v3 = vpop.f32.mrf.mxu1  ;;  %v5390_v27 = vpack.c.bf16 %v30018_v45, %v30018_v45 }
 0x5d1   : > { %v26258_v2 = vcombine.low %v5803_v30, %v6187_v35  ;;  %v26260_v3 = vcombine.low %v5804_v36, %v6188_v37  ;;  %v5389_v6 = vpack.c.bf16 %v3672_v54, %v3672_v54  ;;  %v5391_v7 = vpack.c.bf16 %v3673_v55, %v3673_v55  ;;  %v6192_v30 = vld [vmem:[%s26937_s9 + $0x1738] sm:$0x11] }
 0x5d2   : > { %v22015_v11 = vpop.f32.mrf.mxu0  ;;  %v22055_v12 = vpop.f32.mrf.mxu1  ;;  %v5392_v54 = vpack.c.bf16 %v30034_v8, %v30034_v8 }
 0x5d3   : > { %v443_v12 = vld [vmem:[%s26930_s5 + $0x598] sm:$0xff] }
 0x5d4   : > { %v22091_v20 = vpop.f32.mrf.mxu0  ;;  %v22131_v21 = vpop.f32.mrf.mxu1  ;;  %24010 = vmatmul.mubr.bf16.vlgmr.msra.gmra.mxu0 %v5376_v4  ;;  %24050 = vmatmul.mubr.bf16.vlgmr.msra.gmra.mxu1 %v5378_v5  ;;  %v30053_v37 = vrot.slane %v443_v12, %v26958_v24 }
 0x5d5   : > { %v22092_v22 = vadd.f32 %v22091_v20, %v22052_v0  ;;  %24072 = vmatpush1.bf16.xpose.msra.mxu0 %v26250_v9  ;;  %24112 = vmatpush1.bf16.xpose.msra.mxu1 %v26252_v10  ;;  %v5806_v0 = vld [vmem:[%s26937_s9 + $0xb28] sm:$0xff]  ;;  %v30037_v9 = vrot.slane %v3674_v56, %v26958_v24  ;;  %v26263_v10 = vcombine.high %v5805_v58, %v6189_v63  ;;  %v6193_v56 = vld [vmem:[%s26937_s9 + $0x1740] sm:$0x11] }
 0x5d6   : > { %v22093_v23 = vpop.f32.mrf.mxu0  ;;  %v22133_v25 = vpop.f32.mrf.mxu1  ;;  %24089 = vmatprep.mubr.bf16.mxu0 %v5381_v13  ;;  %24129 = vmatprep.mubr.bf16.mxu1 %v5383_v14  ;;  %v26265_v11 = vcombine.high %v5806_v0, %v6190_v1  ;;  %v3691_v20 = vcombine.high %v443_v12, %v443_v12 }
 0x5d7   : > { %v22132_v29 = vadd.f32 %v22131_v21, %v22092_v22  ;;  %24151 = vmatprep.subr.bf16.mxu0 %v26255_v17  ;;  %24191 = vmatprep.subr.bf16.mxu1 %v26257_v18  ;;  %v3689_v18 = vcombine.high %v30034_v8, %v30034_v8  ;;  %v3690_v19 = vcombine.high %v30037_v9, %v30037_v9  ;;  %v5807_v22 = vld [vmem:[%s26937_s9 + $0xb30] sm:$0xff] }
 0x5d8   : > { %v22094_v31 = vpop.f32.mrf.mxu0  ;;  %v22134_v32 = vpop.f32.mrf.mxu1  ;;  %v5394_v55 = vpack.c.bf16 %v30037_v9, %v30037_v9 }
 0x5d9   : > { %v26262_v31 = vcombine.low %v5805_v58, %v6189_v63  ;;  %v26264_v32 = vcombine.low %v5806_v0, %v6190_v1  ;;  %v5393_v35 = vpack.c.bf16 %v3689_v18, %v3689_v18  ;;  %v5395_v36 = vpack.c.bf16 %v3690_v19, %v3690_v19  ;;  %v6194_v58 = vld [vmem:[%s26937_s9 + $0x1748] sm:$0x11] }
 0x5da   : > { %v22095_v40 = vpop.f32.mrf.mxu0  ;;  %v22135_v41 = vpop.f32.mrf.mxu1  ;;  %v5396_v18 = vpack.c.bf16 %v30053_v37, %v30053_v37 }
 0x5db   : > { %v444_v41 = vld [vmem:[%s26930_s5 + $0x5a0] sm:$0xff] }
 0x5dc   : > { %v22171_v49 = vpop.f32.mrf.mxu0  ;;  %v22211_v50 = vpop.f32.mrf.mxu1  ;;  %24090 = vmatmul.mubr.bf16.vlgmr.msra.gmra.mxu0 %v5380_v33  ;;  %24130 = vmatmul.mubr.bf16.vlgmr.msra.gmra.mxu1 %v5382_v34  ;;  %v30072_v1 = vrot.slane %v444_v41, %v26958_v24 }
 0x5dd   : > { %v22172_v51 = vadd.f32 %v22171_v49, %v22132_v29  ;;  %24152 = vmatpush1.bf16.xpose.msra.mxu0 %v26254_v38  ;;  %24192 = vmatpush1.bf16.xpose.msra.mxu1 %v26256_v39  ;;  %v5808_v29 = vld [vmem:[%s26937_s9 + $0xb38] sm:$0xff]  ;;  %v30056_v38 = vrot.slane %v3691_v20, %v26958_v24  ;;  %v26267_v39 = vcombine.high %v5807_v22, %v6191_v28  ;;  %v6195_v20 = vld [vmem:[%s26937_s9 + $0x1750] sm:$0x11] }
 0x5de   : > { %v22173_v52 = vpop.f32.mrf.mxu0  ;;  %v22213_v53 = vpop.f32.mrf.mxu1  ;;  %24169 = vmatprep.mubr.bf16.mxu0 %v5385_v42  ;;  %24209 = vmatprep.mubr.bf16.mxu1 %v5387_v43  ;;  %v26269_v40 = vcombine.high %v5808_v29, %v6192_v30  ;;  %v3708_v49 = vcombine.high %v444_v41, %v444_v41 }
 0x5df   : > { %v22212_v57 = vadd.f32 %v22211_v50, %v22172_v51  ;;  %24231 = vmatprep.subr.bf16.mxu0 %v26259_v46  ;;  %24271 = vmatprep.subr.bf16.mxu1 %v26261_v47  ;;  %v3706_v47 = vcombine.high %v30053_v37, %v30053_v37  ;;  %v3707_v48 = vcombine.high %v30056_v38, %v30056_v38  ;;  %v5809_v51 = vld [vmem:[%s26937_s9 + $0xb40] sm:$0xff] }
 0x5e0   : > { %v22174_v59 = vpop.f32.mrf.mxu0  ;;  %v22214_v60 = vpop.f32.mrf.mxu1  ;;  %v5398_v19 = vpack.c.bf16 %v30056_v38, %v30056_v38 }
 0x5e1   : > { %v26266_v59 = vcombine.low %v5807_v22, %v6191_v28  ;;  %v26268_v60 = vcombine.low %v5808_v29, %v6192_v30  ;;  %v5397_v63 = vpack.c.bf16 %v3706_v47, %v3706_v47  ;;  %v5399_v0 = vpack.c.bf16 %v3707_v48, %v3707_v48  ;;  %v6196_v22 = vld [vmem:[%s26937_s9 + $0x1758] sm:$0x11] }
 0x5e2   : > { %v22175_v4 = vpop.f32.mrf.mxu0  ;;  %v22215_v5 = vpop.f32.mrf.mxu1  ;;  %v5400_v47 = vpack.c.bf16 %v30072_v1, %v30072_v1 }
 0x5e3   : > { %v445_v5 = vld [vmem:[%s26930_s5 + $0x5a8] sm:$0xff] }
 0x5e4   : > { %v22251_v13 = vpop.f32.mrf.mxu0  ;;  %v22291_v14 = vpop.f32.mrf.mxu1  ;;  %24170 = vmatmul.mubr.bf16.vlgmr.msra.gmra.mxu0 %v5384_v61  ;;  %24210 = vmatmul.mubr.bf16.vlgmr.msra.gmra.mxu1 %v5386_v62  ;;  %v30091_v30 = vrot.slane %v445_v5, %v26958_v24 }
 0x5e5   : > { %v22252_v15 = vadd.f32 %v22251_v13, %v22212_v57  ;;  %24232 = vmatpush1.bf16.xpose.msra.mxu0 %v26258_v2  ;;  %24272 = vmatpush1.bf16.xpose.msra.mxu1 %v26260_v3  ;;  %v5810_v57 = vld [vmem:[%s26937_s9 + $0xb48] sm:$0xff]  ;;  %v30075_v2 = vrot.slane %v3708_v49, %v26958_v24  ;;  %v26271_v3 = vcombine.high %v5809_v51, %v6193_v56  ;;  %v6197_v49 = vld [vmem:[%s26937_s9 + $0x1760] sm:$0x11] }
 0x5e6   : > { %v22253_v16 = vpop.f32.mrf.mxu0  ;;  %v22293_v17 = vpop.f32.mrf.mxu1  ;;  %24249 = vmatprep.mubr.bf16.mxu0 %v5389_v6  ;;  %24289 = vmatprep.mubr.bf16.mxu1 %v5391_v7  ;;  %v26273_v4 = vcombine.high %v5810_v57, %v6194_v58  ;;  %v3725_v13 = vcombine.high %v445_v5, %v445_v5 }
 0x5e7   : > { %v22292_v21 = vadd.f32 %v22291_v14, %v22252_v15  ;;  %24311 = vmatprep.subr.bf16.mxu0 %v26263_v10  ;;  %24351 = vmatprep.subr.bf16.mxu1 %v26265_v11  ;;  %v3723_v11 = vcombine.high %v30072_v1, %v30072_v1  ;;  %v3724_v12 = vcombine.high %v30075_v2, %v30075_v2  ;;  %v5811_v15 = vld [vmem:[%s26937_s9 + $0xb50] sm:$0xff] }
 0x5e8   : > { %v22254_v23 = vpop.f32.mrf.mxu0  ;;  %v22294_v25 = vpop.f32.mrf.mxu1  ;;  %v5402_v48 = vpack.c.bf16 %v30075_v2, %v30075_v2 }
 0x5e9   : > { %v26270_v23 = vcombine.low %v5809_v51, %v6193_v56  ;;  %v26272_v25 = vcombine.low %v5810_v57, %v6194_v58  ;;  %v5401_v28 = vpack.c.bf16 %v3723_v11, %v3723_v11  ;;  %v5403_v29 = vpack.c.bf16 %v3724_v12, %v3724_v12  ;;  %v6198_v51 = vld [vmem:[%s26937_s9 + $0x1768] sm:$0x11] }
 0x5ea   : > { %v22255_v33 = vpop.f32.mrf.mxu0  ;;  %v22295_v34 = vpop.f32.mrf.mxu1  ;;  %v5404_v11 = vpack.c.bf16 %v30091_v30, %v30091_v30 }
 0x5eb   : > { %v446_v34 = vld [vmem:[%s26930_s5 + $0x5b0] sm:$0xff] }
 0x5ec   : > { %v22331_v42 = vpop.f32.mrf.mxu0  ;;  %v22371_v43 = vpop.f32.mrf.mxu1  ;;  %24250 = vmatmul.mubr.bf16.vlgmr.msra.gmra.mxu0 %v5388_v26  ;;  %24290 = vmatmul.mubr.bf16.vlgmr.msra.gmra.mxu1 %v5390_v27  ;;  %v30110_v58 = vrot.slane %v446_v34, %v26958_v24 }
 0x5ed   : > { %v22332_v44 = vadd.f32 %v22331_v42, %v22292_v21  ;;  %24312 = vmatpush1.bf16.xpose.msra.mxu0 %v26262_v31  ;;  %24352 = vmatpush1.bf16.xpose.msra.mxu1 %v26264_v32  ;;  %v5812_v21 = vld [vmem:[%s26937_s9 + $0xb58] sm:$0xff]  ;;  %v30094_v31 = vrot.slane %v3725_v13, %v26958_v24  ;;  %v26275_v32 = vcombine.high %v5811_v15, %v6195_v20  ;;  %v6199_v13 = vld [vmem:[%s26937_s9 + $0x1770] sm:$0x11] }
 0x5ee   : > { %v22333_v45 = vpop.f32.mrf.mxu0  ;;  %v22373_v46 = vpop.f32.mrf.mxu1  ;;  %24329 = vmatprep.mubr.bf16.mxu0 %v5393_v35  ;;  %24369 = vmatprep.mubr.bf16.mxu1 %v5395_v36  ;;  %v26277_v33 = vcombine.high %v5812_v21, %v6196_v22  ;;  %v3742_v42 = vcombine.high %v446_v34, %v446_v34 }
 0x5ef   : > { %v22372_v50 = vadd.f32 %v22371_v43, %v22332_v44  ;;  %24391 = vmatprep.subr.bf16.mxu0 %v26267_v39  ;;  %24431 = vmatprep.subr.bf16.mxu1 %v26269_v40  ;;  %v3740_v40 = vcombine.high %v30091_v30, %v30091_v30  ;;  %v3741_v41 = vcombine.high %v30094_v31, %v30094_v31  ;;  %v5813_v44 = vld [vmem:[%s26937_s9 + $0xb60] sm:$0xff] }
 0x5f0   : > { %v22334_v52 = vpop.f32.mrf.mxu0  ;;  %v22374_v53 = vpop.f32.mrf.mxu1  ;;  %v5406_v12 = vpack.c.bf16 %v30094_v31, %v30094_v31 }
 0x5f1   : > { %v26274_v52 = vcombine.low %v5811_v15, %v6195_v20  ;;  %v26276_v53 = vcombine.low %v5812_v21, %v6196_v22  ;;  %v5405_v56 = vpack.c.bf16 %v3740_v40, %v3740_v40  ;;  %v5407_v57 = vpack.c.bf16 %v3741_v41, %v3741_v41  ;;  %v6200_v15 = vld [vmem:[%s26937_s9 + $0x1778] sm:$0x11] }
 0x5f2   : > { %v22335_v61 = vpop.f32.mrf.mxu0  ;;  %v22375_v62 = vpop.f32.mrf.mxu1  ;;  %v5408_v40 = vpack.c.bf16 %v30110_v58, %v30110_v58 }
 0x5f3   : > { %v447_v62 = vld [vmem:[%s26930_s5 + $0x5b8] sm:$0xff] }
 0x5f4   : > { %v22411_v6 = vpop.f32.mrf.mxu0  ;;  %v22451_v7 = vpop.f32.mrf.mxu1  ;;  %24330 = vmatmul.mubr.bf16.vlgmr.msra.gmra.mxu0 %v5392_v54  ;;  %24370 = vmatmul.mubr.bf16.vlgmr.msra.gmra.mxu1 %v5394_v55  ;;  %v30129_v22 = vrot.slane %v447_v62, %v26958_v24 }
 0x5f5   : > { %v22412_v8 = vadd.f32 %v22411_v6, %v22372_v50  ;;  %24392 = vmatpush1.bf16.xpose.msra.mxu0 %v26266_v59  ;;  %24432 = vmatpush1.bf16.xpose.msra.mxu1 %v26268_v60  ;;  %v5814_v50 = vld [vmem:[%s26937_s9 + $0xb68] sm:$0xff]  ;;  %v30113_v59 = vrot.slane %v3742_v42, %v26958_v24  ;;  %v26279_v60 = vcombine.high %v5813_v44, %v6197_v49  ;;  %v6201_v42 = vld [vmem:[%s26937_s9 + $0x1780] sm:$0x11] }
 0x5f6   : > { %v22413_v9 = vpop.f32.mrf.mxu0  ;;  %v22453_v10 = vpop.f32.mrf.mxu1  ;;  %24409 = vmatprep.mubr.bf16.mxu0 %v5397_v63  ;;  %24449 = vmatprep.mubr.bf16.mxu1 %v5399_v0  ;;  %v26281_v61 = vcombine.high %v5814_v50, %v6198_v51  ;;  %v3759_v6 = vcombine.high %v447_v62, %v447_v62 }
 0x5f7   : > { %v22452_v14 = vadd.f32 %v22451_v7, %v22412_v8  ;;  %24471 = vmatprep.subr.bf16.mxu0 %v26271_v3  ;;  %24511 = vmatprep.subr.bf16.mxu1 %v26273_v4  ;;  %v3757_v4 = vcombine.high %v30110_v58, %v30110_v58  ;;  %v3758_v5 = vcombine.high %v30113_v59, %v30113_v59  ;;  %v5815_v8 = vld [vmem:[%s26937_s9 + $0xb70] sm:$0xff] }
 0x5f8   : > { %v22414_v16 = vpop.f32.mrf.mxu0  ;;  %v22454_v17 = vpop.f32.mrf.mxu1  ;;  %v5410_v41 = vpack.c.bf16 %v30113_v59, %v30113_v59 }
 0x5f9   : > { %v26278_v16 = vcombine.low %v5813_v44, %v6197_v49  ;;  %v26280_v17 = vcombine.low %v5814_v50, %v6198_v51  ;;  %v5409_v20 = vpack.c.bf16 %v3757_v4, %v3757_v4  ;;  %v5411_v21 = vpack.c.bf16 %v3758_v5, %v3758_v5  ;;  %v6202_v44 = vld [vmem:[%s26937_s9 + $0x1788] sm:$0x11] }
 0x5fa   : > { %v22415_v26 = vpop.f32.mrf.mxu0  ;;  %v22455_v27 = vpop.f32.mrf.mxu1  ;;  %v5412_v4 = vpack.c.bf16 %v30129_v22, %v30129_v22 }
 0x5fb   : > { %v448_v27 = vld [vmem:[%s26930_s5 + $0x5c0] sm:$0xff] }
 0x5fc   : > { %v22491_v35 = vpop.f32.mrf.mxu0  ;;  %v22531_v36 = vpop.f32.mrf.mxu1  ;;  %24410 = vmatmul.mubr.bf16.vlgmr.msra.gmra.mxu0 %v5396_v18  ;;  %24450 = vmatmul.mubr.bf16.vlgmr.msra.gmra.mxu1 %v5398_v19  ;;  %v30148_v51 = vrot.slane %v448_v27, %v26958_v24 }
 0x5fd   : > { %v22492_v37 = vadd.f32 %v22491_v35, %v22452_v14  ;;  %24472 = vmatpush1.bf16.xpose.msra.mxu0 %v26270_v23  ;;  %24512 = vmatpush1.bf16.xpose.msra.mxu1 %v26272_v25  ;;  %v5816_v14 = vld [vmem:[%s26937_s9 + $0xb78] sm:$0xff]  ;;  %v30132_v23 = vrot.slane %v3759_v6, %v26958_v24  ;;  %v26283_v25 = vcombine.high %v5815_v8, %v6199_v13  ;;  %v6203_v6 = vld [vmem:[%s26937_s9 + $0x1790] sm:$0x11] }
 0x5fe   : > { %v22493_v38 = vpop.f32.mrf.mxu0  ;;  %v22533_v39 = vpop.f32.mrf.mxu1  ;;  %24489 = vmatprep.mubr.bf16.mxu0 %v5401_v28  ;;  %24529 = vmatprep.mubr.bf16.mxu1 %v5403_v29  ;;  %v26285_v26 = vcombine.high %v5816_v14, %v6200_v15  ;;  %v3776_v35 = vcombine.high %v448_v27, %v448_v27 }
 0x5ff   : > { %v22532_v43 = vadd.f32 %v22531_v36, %v22492_v37  ;;  %24551 = vmatprep.subr.bf16.mxu0 %v26275_v32  ;;  %24591 = vmatprep.subr.bf16.mxu1 %v26277_v33  ;;  %v3774_v33 = vcombine.high %v30129_v22, %v30129_v22  ;;  %v3775_v34 = vcombine.high %v30132_v23, %v30132_v23  ;;  %v5817_v37 = vld [vmem:[%s26937_s9 + $0xb80] sm:$0xff] }
 0x600   : > { %v22494_v45 = vpop.f32.mrf.mxu0  ;;  %v22534_v46 = vpop.f32.mrf.mxu1  ;;  %v5414_v5 = vpack.c.bf16 %v30132_v23, %v30132_v23 }
 0x601   : > { %v26282_v45 = vcombine.low %v5815_v8, %v6199_v13  ;;  %v26284_v46 = vcombine.low %v5816_v14, %v6200_v15  ;;  %v5413_v49 = vpack.c.bf16 %v3774_v33, %v3774_v33  ;;  %v5415_v50 = vpack.c.bf16 %v3775_v34, %v3775_v34  ;;  %v6204_v8 = vld [vmem:[%s26937_s9 + $0x1798] sm:$0x11] }
 0x602   : > { %v22495_v54 = vpop.f32.mrf.mxu0  ;;  %v22535_v55 = vpop.f32.mrf.mxu1  ;;  %v5416_v33 = vpack.c.bf16 %v30148_v51, %v30148_v51 }
 0x603   : > { %v449_v55 = vld [vmem:[%s26930_s5 + $0x5c8] sm:$0xff] }
 0x604   : > { %v22571_v63 = vpop.f32.mrf.mxu0  ;;  %v22611_v0 = vpop.f32.mrf.mxu1  ;;  %24490 = vmatmul.mubr.bf16.vlgmr.msra.gmra.mxu0 %v5400_v47  ;;  %24530 = vmatmul.mubr.bf16.vlgmr.msra.gmra.mxu1 %v5402_v48  ;;  %v30167_v15 = vrot.slane %v449_v55, %v26958_v24 }
 0x605   : > { %v22572_v1 = vadd.f32 %v22571_v63, %v22532_v43  ;;  %24552 = vmatpush1.bf16.xpose.msra.mxu0 %v26274_v52  ;;  %24592 = vmatpush1.bf16.xpose.msra.mxu1 %v26276_v53  ;;  %v5818_v43 = vld [vmem:[%s26937_s9 + $0xb88] sm:$0xff]  ;;  %v30151_v52 = vrot.slane %v3776_v35, %v26958_v24  ;;  %v26287_v53 = vcombine.high %v5817_v37, %v6201_v42  ;;  %v6205_v35 = vld [vmem:[%s26937_s9 + $0x17a0] sm:$0x11] }
 0x606   : > { %v22573_v2 = vpop.f32.mrf.mxu0  ;;  %v22613_v3 = vpop.f32.mrf.mxu1  ;;  %24569 = vmatprep.mubr.bf16.mxu0 %v5405_v56  ;;  %24609 = vmatprep.mubr.bf16.mxu1 %v5407_v57  ;;  %v26289_v54 = vcombine.high %v5818_v43, %v6202_v44  ;;  %v3793_v63 = vcombine.high %v449_v55, %v449_v55 }
 0x607   : > { %v22612_v7 = vadd.f32 %v22611_v0, %v22572_v1  ;;  %24631 = vmatprep.subr.bf16.mxu0 %v26279_v60  ;;  %24671 = vmatprep.subr.bf16.mxu1 %v26281_v61  ;;  %v3791_v61 = vcombine.high %v30148_v51, %v30148_v51  ;;  %v3792_v62 = vcombine.high %v30151_v52, %v30151_v52  ;;  %v5819_v1 = vld [vmem:[%s26937_s9 + $0xb90] sm:$0xff] }
 0x608   : > { %v22574_v9 = vpop.f32.mrf.mxu0  ;;  %v22614_v10 = vpop.f32.mrf.mxu1  ;;  %v5418_v34 = vpack.c.bf16 %v30151_v52, %v30151_v52 }
 0x609   : > { %v26286_v9 = vcombine.low %v5817_v37, %v6201_v42  ;;  %v26288_v10 = vcombine.low %v5818_v43, %v6202_v44  ;;  %v5417_v13 = vpack.c.bf16 %v3791_v61, %v3791_v61  ;;  %v5419_v14 = vpack.c.bf16 %v3792_v62, %v3792_v62  ;;  %v6206_v37 = vld [vmem:[%s26937_s9 + $0x17a8] sm:$0x11] }
 0x60a   : > { %v22575_v18 = vpop.f32.mrf.mxu0  ;;  %v22615_v19 = vpop.f32.mrf.mxu1  ;;  %v5420_v61 = vpack.c.bf16 %v30167_v15, %v30167_v15 }
 0x60b   : > { %v450_v19 = vld [vmem:[%s26930_s5 + $0x5d0] sm:$0xff] }
 0x60c   : > { %v22651_v28 = vpop.f32.mrf.mxu0  ;;  %v22691_v29 = vpop.f32.mrf.mxu1  ;;  %24570 = vmatmul.mubr.bf16.vlgmr.msra.gmra.mxu0 %v5404_v11  ;;  %24610 = vmatmul.mubr.bf16.vlgmr.msra.gmra.mxu1 %v5406_v12  ;;  %v30186_v44 = vrot.slane %v450_v19, %v26958_v24 }
 0x60d   : > { %v22652_v30 = vadd.f32 %v22651_v28, %v22612_v7  ;;  %24632 = vmatpush1.bf16.xpose.msra.mxu0 %v26278_v16  ;;  %24672 = vmatpush1.bf16.xpose.msra.mxu1 %v26280_v17  ;;  %v5820_v7 = vld [vmem:[%s26937_s9 + $0xb98] sm:$0xff]  ;;  %v30170_v16 = vrot.slane %v3793_v63, %v26958_v24  ;;  %v26291_v17 = vcombine.high %v5819_v1, %v6203_v6  ;;  %v6207_v63 = vld [vmem:[%s26937_s9 + $0x17b0] sm:$0x11] }
 0x60e   : > { %v22653_v31 = vpop.f32.mrf.mxu0  ;;  %v22693_v32 = vpop.f32.mrf.mxu1  ;;  %24649 = vmatprep.mubr.bf16.mxu0 %v5409_v20  ;;  %24689 = vmatprep.mubr.bf16.mxu1 %v5411_v21  ;;  %v26293_v18 = vcombine.high %v5820_v7, %v6204_v8  ;;  %v3810_v28 = vcombine.high %v450_v19, %v450_v19 }
 0x60f   : > { %v22692_v36 = vadd.f32 %v22691_v29, %v22652_v30  ;;  %24711 = vmatprep.subr.bf16.mxu0 %v26283_v25  ;;  %24751 = vmatprep.subr.bf16.mxu1 %v26285_v26  ;;  %v3808_v26 = vcombine.high %v30167_v15, %v30167_v15  ;;  %v3809_v27 = vcombine.high %v30170_v16, %v30170_v16  ;;  %v5821_v30 = vld [vmem:[%s26937_s9 + $0xba0] sm:$0xff] }
 0x610   : > { %v22654_v38 = vpop.f32.mrf.mxu0  ;;  %v22694_v39 = vpop.f32.mrf.mxu1  ;;  %v5422_v62 = vpack.c.bf16 %v30170_v16, %v30170_v16 }
 0x611   : > { %v26290_v38 = vcombine.low %v5819_v1, %v6203_v6  ;;  %v26292_v39 = vcombine.low %v5820_v7, %v6204_v8  ;;  %v5421_v42 = vpack.c.bf16 %v3808_v26, %v3808_v26  ;;  %v5423_v43 = vpack.c.bf16 %v3809_v27, %v3809_v27  ;;  %v6208_v1 = vld [vmem:[%s26937_s9 + $0x17b8] sm:$0x11] }
 0x612   : > { %v22655_v47 = vpop.f32.mrf.mxu0  ;;  %v22695_v48 = vpop.f32.mrf.mxu1  ;;  %v5424_v26 = vpack.c.bf16 %v30186_v44, %v30186_v44 }
 0x613   : > { %v451_v48 = vld [vmem:[%s26930_s5 + $0x5d8] sm:$0xff] }
 0x614   : > { %v22731_v56 = vpop.f32.mrf.mxu0  ;;  %v22771_v57 = vpop.f32.mrf.mxu1  ;;  %24650 = vmatmul.mubr.bf16.vlgmr.msra.gmra.mxu0 %v5408_v40  ;;  %24690 = vmatmul.mubr.bf16.vlgmr.msra.gmra.mxu1 %v5410_v41  ;;  %v30205_v8 = vrot.slane %v451_v48, %v26958_v24 }
 0x615   : > { %v22732_v58 = vadd.f32 %v22731_v56, %v22692_v36  ;;  %24712 = vmatpush1.bf16.xpose.msra.mxu0 %v26282_v45  ;;  %24752 = vmatpush1.bf16.xpose.msra.mxu1 %v26284_v46  ;;  %v5822_v36 = vld [vmem:[%s26937_s9 + $0xba8] sm:$0xff]  ;;  %v30189_v45 = vrot.slane %v3810_v28, %v26958_v24  ;;  %v26295_v46 = vcombine.high %v5821_v30, %v6205_v35  ;;  %v6209_v28 = vld [vmem:[%s26937_s9 + $0x17c0] sm:$0x11] }
 0x616   : > { %v22733_v59 = vpop.f32.mrf.mxu0  ;;  %v22773_v60 = vpop.f32.mrf.mxu1  ;;  %24729 = vmatprep.mubr.bf16.mxu0 %v5413_v49  ;;  %24769 = vmatprep.mubr.bf16.mxu1 %v5415_v50  ;;  %v26297_v47 = vcombine.high %v5822_v36, %v6206_v37  ;;  %v3827_v56 = vcombine.high %v451_v48, %v451_v48 }
 0x617   : > { %v22772_v0 = vadd.f32 %v22771_v57, %v22732_v58  ;;  %24791 = vmatprep.subr.bf16.mxu0 %v26287_v53  ;;  %24831 = vmatprep.subr.bf16.mxu1 %v26289_v54  ;;  %v3825_v54 = vcombine.high %v30186_v44, %v30186_v44  ;;  %v3826_v55 = vcombine.high %v30189_v45, %v30189_v45  ;;  %v5823_v58 = vld [vmem:[%s26937_s9 + $0xbb0] sm:$0xff] }
 0x618   : > { %v22734_v2 = vpop.f32.mrf.mxu0  ;;  %v22774_v3 = vpop.f32.mrf.mxu1  ;;  %v5426_v27 = vpack.c.bf16 %v30189_v45, %v30189_v45 }
 0x619   : > { %v26294_v2 = vcombine.low %v5821_v30, %v6205_v35  ;;  %v26296_v3 = vcombine.low %v5822_v36, %v6206_v37  ;;  %v5425_v6 = vpack.c.bf16 %v3825_v54, %v3825_v54  ;;  %v5427_v7 = vpack.c.bf16 %v3826_v55, %v3826_v55  ;;  %v6210_v30 = vld [vmem:[%s26937_s9 + $0x17c8] sm:$0x11] }
 0x61a   : > { %v22735_v11 = vpop.f32.mrf.mxu0  ;;  %v22775_v12 = vpop.f32.mrf.mxu1  ;;  %v5428_v54 = vpack.c.bf16 %v30205_v8, %v30205_v8 }
 0x61b   : > { %v452_v12 = vld [vmem:[%s26930_s5 + $0x5e0] sm:$0xff] }
 0x61c   : > { %v22811_v20 = vpop.f32.mrf.mxu0  ;;  %v22851_v21 = vpop.f32.mrf.mxu1  ;;  %24730 = vmatmul.mubr.bf16.vlgmr.msra.gmra.mxu0 %v5412_v4  ;;  %24770 = vmatmul.mubr.bf16.vlgmr.msra.gmra.mxu1 %v5414_v5  ;;  %v30224_v37 = vrot.slane %v452_v12, %v26958_v24 }
 0x61d   : > { %v22812_v22 = vadd.f32 %v22811_v20, %v22772_v0  ;;  %24792 = vmatpush1.bf16.xpose.msra.mxu0 %v26286_v9  ;;  %24832 = vmatpush1.bf16.xpose.msra.mxu1 %v26288_v10  ;;  %v5824_v0 = vld [vmem:[%s26937_s9 + $0xbb8] sm:$0xff]  ;;  %v30208_v9 = vrot.slane %v3827_v56, %v26958_v24  ;;  %v26299_v10 = vcombine.high %v5823_v58, %v6207_v63  ;;  %v6211_v56 = vld [vmem:[%s26937_s9 + $0x17d0] sm:$0x11] }
 0x61e   : > { %v22813_v23 = vpop.f32.mrf.mxu0  ;;  %v22853_v25 = vpop.f32.mrf.mxu1  ;;  %24809 = vmatprep.mubr.bf16.mxu0 %v5417_v13  ;;  %24849 = vmatprep.mubr.bf16.mxu1 %v5419_v14  ;;  %v26301_v11 = vcombine.high %v5824_v0, %v6208_v1  ;;  %v3844_v20 = vcombine.high %v452_v12, %v452_v12 }
 0x61f   : > { %v22852_v29 = vadd.f32 %v22851_v21, %v22812_v22  ;;  %24871 = vmatprep.subr.bf16.mxu0 %v26291_v17  ;;  %24911 = vmatprep.subr.bf16.mxu1 %v26293_v18  ;;  %v3842_v18 = vcombine.high %v30205_v8, %v30205_v8  ;;  %v3843_v19 = vcombine.high %v30208_v9, %v30208_v9  ;;  %v5825_v22 = vld [vmem:[%s26937_s9 + $0xbc0] sm:$0xff] }
 0x620   : > { %v22814_v31 = vpop.f32.mrf.mxu0  ;;  %v22854_v32 = vpop.f32.mrf.mxu1  ;;  %v5430_v55 = vpack.c.bf16 %v30208_v9, %v30208_v9 }
 0x621   : > { %v26298_v31 = vcombine.low %v5823_v58, %v6207_v63  ;;  %v26300_v32 = vcombine.low %v5824_v0, %v6208_v1  ;;  %v5429_v35 = vpack.c.bf16 %v3842_v18, %v3842_v18  ;;  %v5431_v36 = vpack.c.bf16 %v3843_v19, %v3843_v19  ;;  %v6212_v58 = vld [vmem:[%s26937_s9 + $0x17d8] sm:$0x11] }
 0x622   : > { %v22815_v40 = vpop.f32.mrf.mxu0  ;;  %v22855_v41 = vpop.f32.mrf.mxu1  ;;  %v5432_v18 = vpack.c.bf16 %v30224_v37, %v30224_v37 }
 0x623   : > { %v453_v41 = vld [vmem:[%s26930_s5 + $0x5e8] sm:$0xff] }
 0x624   : > { %v22891_v49 = vpop.f32.mrf.mxu0  ;;  %v22931_v50 = vpop.f32.mrf.mxu1  ;;  %24810 = vmatmul.mubr.bf16.vlgmr.msra.gmra.mxu0 %v5416_v33  ;;  %24850 = vmatmul.mubr.bf16.vlgmr.msra.gmra.mxu1 %v5418_v34  ;;  %v30243_v1 = vrot.slane %v453_v41, %v26958_v24 }
 0x625   : > { %v22892_v51 = vadd.f32 %v22891_v49, %v22852_v29  ;;  %24872 = vmatpush1.bf16.xpose.msra.mxu0 %v26290_v38  ;;  %24912 = vmatpush1.bf16.xpose.msra.mxu1 %v26292_v39  ;;  %v5826_v29 = vld [vmem:[%s26937_s9 + $0xbc8] sm:$0xff]  ;;  %v30227_v38 = vrot.slane %v3844_v20, %v26958_v24  ;;  %v26303_v39 = vcombine.high %v5825_v22, %v6209_v28  ;;  %v6213_v20 = vld [vmem:[%s26937_s9 + $0x17e0] sm:$0x11] }
 0x626   : > { %v22893_v52 = vpop.f32.mrf.mxu0  ;;  %v22933_v53 = vpop.f32.mrf.mxu1  ;;  %24889 = vmatprep.mubr.bf16.mxu0 %v5421_v42  ;;  %24929 = vmatprep.mubr.bf16.mxu1 %v5423_v43  ;;  %v26305_v40 = vcombine.high %v5826_v29, %v6210_v30  ;;  %v3861_v49 = vcombine.high %v453_v41, %v453_v41 }
 0x627   : > { %v22932_v57 = vadd.f32 %v22931_v50, %v22892_v51  ;;  %24951 = vmatprep.subr.bf16.mxu0 %v26295_v46  ;;  %24991 = vmatprep.subr.bf16.mxu1 %v26297_v47  ;;  %v3859_v47 = vcombine.high %v30224_v37, %v30224_v37  ;;  %v3860_v48 = vcombine.high %v30227_v38, %v30227_v38  ;;  %v5827_v51 = vld [vmem:[%s26937_s9 + $0xbd0] sm:$0xff] }
 0x628   : > { %v22894_v59 = vpop.f32.mrf.mxu0  ;;  %v22934_v60 = vpop.f32.mrf.mxu1  ;;  %v5434_v19 = vpack.c.bf16 %v30227_v38, %v30227_v38 }
 0x629   : > { %v26302_v59 = vcombine.low %v5825_v22, %v6209_v28  ;;  %v26304_v60 = vcombine.low %v5826_v29, %v6210_v30  ;;  %v5433_v63 = vpack.c.bf16 %v3859_v47, %v3859_v47  ;;  %v5435_v0 = vpack.c.bf16 %v3860_v48, %v3860_v48  ;;  %v6214_v22 = vld [vmem:[%s26937_s9 + $0x17e8] sm:$0x11] }
 0x62a   : > { %v22895_v4 = vpop.f32.mrf.mxu0  ;;  %v22935_v5 = vpop.f32.mrf.mxu1  ;;  %v5436_v47 = vpack.c.bf16 %v30243_v1, %v30243_v1 }
 0x62b   : > { %v454_v5 = vld [vmem:[%s26930_s5 + $0x5f0] sm:$0xff] }
 0x62c   : > { %v22971_v13 = vpop.f32.mrf.mxu0  ;;  %v23011_v14 = vpop.f32.mrf.mxu1  ;;  %24890 = vmatmul.mubr.bf16.vlgmr.msra.gmra.mxu0 %v5420_v61  ;;  %24930 = vmatmul.mubr.bf16.vlgmr.msra.gmra.mxu1 %v5422_v62  ;;  %v30262_v30 = vrot.slane %v454_v5, %v26958_v24 }
 0x62d   : > { %v22972_v15 = vadd.f32 %v22971_v13, %v22932_v57  ;;  %24952 = vmatpush1.bf16.xpose.msra.mxu0 %v26294_v2  ;;  %24992 = vmatpush1.bf16.xpose.msra.mxu1 %v26296_v3  ;;  %v5828_v57 = vld [vmem:[%s26937_s9 + $0xbd8] sm:$0xff]  ;;  %v30246_v2 = vrot.slane %v3861_v49, %v26958_v24  ;;  %v26307_v3 = vcombine.high %v5827_v51, %v6211_v56  ;;  %v6215_v49 = vld [vmem:[%s26937_s9 + $0x17f0] sm:$0x11] }
 0x62e   : > { %v22973_v16 = vpop.f32.mrf.mxu0  ;;  %v23013_v17 = vpop.f32.mrf.mxu1  ;;  %24969 = vmatprep.mubr.bf16.mxu0 %v5425_v6  ;;  %25009 = vmatprep.mubr.bf16.mxu1 %v5427_v7  ;;  %v26309_v4 = vcombine.high %v5828_v57, %v6212_v58  ;;  %v3878_v13 = vcombine.high %v454_v5, %v454_v5 }
 0x62f   : > { %v23012_v21 = vadd.f32 %v23011_v14, %v22972_v15  ;;  %25031 = vmatprep.subr.bf16.mxu0 %v26299_v10  ;;  %25071 = vmatprep.subr.bf16.mxu1 %v26301_v11  ;;  %v3876_v11 = vcombine.high %v30243_v1, %v30243_v1  ;;  %v3877_v12 = vcombine.high %v30246_v2, %v30246_v2  ;;  %v5829_v15 = vld [vmem:[%s26937_s9 + $0xbe0] sm:$0xff] }
 0x630   : > { %v22974_v23 = vpop.f32.mrf.mxu0  ;;  %v23014_v25 = vpop.f32.mrf.mxu1  ;;  %v5438_v48 = vpack.c.bf16 %v30246_v2, %v30246_v2 }
 0x631   : > { %v26306_v23 = vcombine.low %v5827_v51, %v6211_v56  ;;  %v26308_v25 = vcombine.low %v5828_v57, %v6212_v58  ;;  %v5437_v28 = vpack.c.bf16 %v3876_v11, %v3876_v11  ;;  %v5439_v29 = vpack.c.bf16 %v3877_v12, %v3877_v12  ;;  %v6216_v51 = vld [vmem:[%s26937_s9 + $0x17f8] sm:$0x11] }
 0x632   : > { %v22975_v33 = vpop.f32.mrf.mxu0  ;;  %v23015_v34 = vpop.f32.mrf.mxu1 }
 0x633   : > { %v455_v34 = vld [vmem:[%s26930_s5 + $0x5f8] sm:$0xff] }
 0x634   : > { %v23051_v42 = vpop.f32.mrf.mxu0  ;;  %v23091_v43 = vpop.f32.mrf.mxu1  ;;  %24970 = vmatmul.mubr.bf16.vlgmr.msra.gmra.mxu0 %v5424_v26  ;;  %25010 = vmatmul.mubr.bf16.vlgmr.msra.gmra.mxu1 %v5426_v27  ;;  %v3902_v58 = vrot.slane %v455_v34, %v26958_v24 }
 0x635   : > { %v23052_v44 = vadd.f32 %v23051_v42, %v23012_v21  ;;  %25032 = vmatpush1.bf16.xpose.msra.mxu0 %v26298_v31  ;;  %25072 = vmatpush1.bf16.xpose.msra.mxu1 %v26300_v32  ;;  %v5830_v21 = vld [vmem:[%s26937_s9 + $0xbe8] sm:$0xff]  ;;  %v30265_v31 = vrot.slane %v3878_v13, %v26958_v24  ;;  %v26311_v32 = vcombine.high %v5829_v15, %v6213_v20 }
 0x636   : > { %v23053_v45 = vpop.f32.mrf.mxu0  ;;  %v23093_v46 = vpop.f32.mrf.mxu1  ;;  %25049 = vmatprep.mubr.bf16.mxu0 %v5429_v35  ;;  %25089 = vmatprep.mubr.bf16.mxu1 %v5431_v36  ;;  %v26313_v33 = vcombine.high %v5830_v21, %v6214_v22  ;;  %v3895_v42 = vcombine.high %v455_v34, %v455_v34 }
 0x637   : > { %v23092_v50 = vadd.f32 %v23091_v43, %v23052_v44  ;;  %25111 = vmatprep.subr.bf16.mxu0 %v26303_v39  ;;  %25151 = vmatprep.subr.bf16.mxu1 %v26305_v40  ;;  %v3893_v40 = vcombine.high %v30262_v30, %v30262_v30  ;;  %v3894_v41 = vcombine.high %v30265_v31, %v30265_v31  ;;  %v5831_v44 = vld [vmem:[%s26937_s9 + $0xbf0] sm:$0xff] }
 0x638   : > { %v23054_v52 = vpop.f32.mrf.mxu0  ;;  %v23094_v53 = vpop.f32.mrf.mxu1 }
 0x639   : > { %v26310_v52 = vcombine.low %v5829_v15, %v6213_v20  ;;  %v26312_v53 = vcombine.low %v5830_v21, %v6214_v22  ;;  %v5441_v56 = vpack.c.bf16 %v3893_v40, %v3893_v40  ;;  %v5443_v57 = vpack.c.bf16 %v3894_v41, %v3894_v41 }
 0x63a   : > { %v23055_v61 = vpop.f32.mrf.mxu0  ;;  %v23095_v62 = vpop.f32.mrf.mxu1 }
 0x63c   : > { %v23131_v6 = vpop.f32.mrf.mxu0  ;;  %v23171_v7 = vpop.f32.mrf.mxu1  ;;  %25050 = vmatmul.mubr.bf16.vlgmr.msra.gmra.mxu0 %v5428_v54  ;;  %25090 = vmatmul.mubr.bf16.vlgmr.msra.gmra.mxu1 %v5430_v55 }
 0x63d   : > { %v23132_v8 = vadd.f32 %v23131_v6, %v23092_v50  ;;  %25112 = vmatpush1.bf16.xpose.msra.mxu0 %v26302_v59  ;;  %25152 = vmatpush1.bf16.xpose.msra.mxu1 %v26304_v60  ;;  %v5832_v50 = vld [vmem:[%s26937_s9 + $0xbf8] sm:$0xff]  ;;  %v3909_v59 = vrot.slane %v3895_v42, %v26958_v24  ;;  %v26315_v60 = vcombine.high %v5831_v44, %v6215_v49 }
 0x63e   : > { %v23133_v9 = vpop.f32.mrf.mxu0  ;;  %v23173_v10 = vpop.f32.mrf.mxu1  ;;  %25129 = vmatprep.mubr.bf16.mxu0 %v5433_v63  ;;  %25169 = vmatprep.mubr.bf16.mxu1 %v5435_v0  ;;  %v26317_v61 = vcombine.high %v5832_v50, %v6216_v51 }
 0x63f   : > { %v23172_v14 = vadd.f32 %v23171_v7, %v23132_v8  ;;  %25191 = vmatprep.subr.bf16.mxu0 %v26307_v3  ;;  %25231 = vmatprep.subr.bf16.mxu1 %v26309_v4  ;;  %v3910_v3 = vcombine.high %v3902_v58, %v3902_v58  ;;  %v3911_v4 = vcombine.high %v3909_v59, %v3909_v59 }
 0x640   : > { %v23134_v16 = vpop.f32.mrf.mxu0  ;;  %v23174_v17 = vpop.f32.mrf.mxu1  ;;  %v5440_v7 = vpack.c.bf16 %v30262_v30, %v30262_v30  ;;  %v5442_v8 = vpack.c.bf16 %v30265_v31, %v30265_v31  ;;  %v26314_v9 = vcombine.low %v5831_v44, %v6215_v49  ;;  %v26316_v10 = vcombine.low %v5832_v50, %v6216_v51 }
 0x641   : > { %v5445_v13 = vpack.c.bf16 %v3910_v3, %v3910_v3 }
 0x642   : > { %v23135_v26 = vpop.f32.mrf.mxu0  ;;  %v23175_v27 = vpop.f32.mrf.mxu1 }
 0x644   : > { %v23211_v35 = vpop.f32.mrf.mxu0  ;;  %v23251_v36 = vpop.f32.mrf.mxu1  ;;  %25130 = vmatmul.mubr.bf16.vlgmr.msra.gmra.mxu0 %v5432_v18  ;;  %25170 = vmatmul.mubr.bf16.vlgmr.msra.gmra.mxu1 %v5434_v19 }
 0x645   : > { %v23212_v37 = vadd.f32 %v23211_v35, %v23172_v14  ;;  %25192 = vmatpush1.bf16.xpose.msra.mxu0 %v26306_v23  ;;  %25232 = vmatpush1.bf16.xpose.msra.mxu1 %v26308_v25  ;;  %v5447_v14 = vpack.c.bf16 %v3911_v4, %v3911_v4  ;;  %v5444_v23 = vpack.c.bf16 %v3902_v58, %v3902_v58 }
 0x646   : > { %v23213_v38 = vpop.f32.mrf.mxu0  ;;  %v23253_v39 = vpop.f32.mrf.mxu1  ;;  %25209 = vmatprep.mubr.bf16.mxu0 %v5437_v28  ;;  %25249 = vmatprep.mubr.bf16.mxu1 %v5439_v29  ;;  %v5446_v25 = vpack.c.bf16 %v3909_v59, %v3909_v59 }
 0x647   : > { %v23252_v43 = vadd.f32 %v23251_v36, %v23212_v37  ;;  %25271 = vmatprep.subr.bf16.mxu0 %v26311_v32  ;;  %25311 = vmatprep.subr.bf16.mxu1 %v26313_v33 }
 0x648   : > { %v23214_v45 = vpop.f32.mrf.mxu0  ;;  %v23254_v46 = vpop.f32.mrf.mxu1 }
 0x64a   : > { %v23215_v54 = vpop.f32.mrf.mxu0  ;;  %v23255_v55 = vpop.f32.mrf.mxu1 }
 0x64c   : > { %v23291_v62 = vpop.f32.mrf.mxu0  ;;  %v23331_v63 = vpop.f32.mrf.mxu1  ;;  %25210 = vmatmul.mubr.bf16.vlgmr.msra.gmra.mxu0 %v5436_v47  ;;  %25250 = vmatmul.mubr.bf16.vlgmr.msra.gmra.mxu1 %v5438_v48 }
 0x64d   : > { %v23292_v0 = vadd.f32 %v23291_v62, %v23252_v43  ;;  %25272 = vmatpush1.bf16.xpose.msra.mxu0 %v26310_v52  ;;  %25312 = vmatpush1.bf16.xpose.msra.mxu1 %v26312_v53 }
 0x64e   : > { %v23293_v1 = vpop.f32.mrf.mxu0  ;;  %v23333_v2 = vpop.f32.mrf.mxu1  ;;  %25289 = vmatprep.mubr.bf16.mxu0 %v5441_v56  ;;  %25329 = vmatprep.mubr.bf16.mxu1 %v5443_v57 }
 0x64f   : > { %v23332_v5 = vadd.f32 %v23331_v63, %v23292_v0  ;;  %25351 = vmatprep.subr.bf16.mxu0 %v26315_v60  ;;  %25391 = vmatprep.subr.bf16.mxu1 %v26317_v61 }
 0x650   : > { %v23294_v6 = vpop.f32.mrf.mxu0  ;;  %v23334_v24 = vpop.f32.mrf.mxu1 }
 0x652   : > { %v23295_v11 = vpop.f32.mrf.mxu0  ;;  %v23335_v12 = vpop.f32.mrf.mxu1 }
 0x654   : > { %v23371_v15 = vpop.f32.mrf.mxu0  ;;  %v23411_v16 = vpop.f32.mrf.mxu1  ;;  %25290 = vmatmul.mubr.bf16.vlgmr.msra.gmra.mxu0 %v5440_v7  ;;  %25330 = vmatmul.mubr.bf16.vlgmr.msra.gmra.mxu1 %v5442_v8 }
 0x655   : > { %v23372_v17 = vadd.f32 %v23371_v15, %v23332_v5  ;;  %25352 = vmatpush1.bf16.xpose.msra.mxu0 %v26314_v9  ;;  %25392 = vmatpush1.bf16.xpose.msra.mxu1 %v26316_v10 }
 0x656   : > { %v23373_v18 = vpop.f32.mrf.mxu0  ;;  %v23413_v19 = vpop.f32.mrf.mxu1  ;;  %25369 = vmatprep.mubr.bf16.mxu0 %v5445_v13  ;;  %25409 = vmatprep.mubr.bf16.mxu1 %v5447_v14 }
 0x657   : > { %v23412_v20 = vadd.f32 %v23411_v16, %v23372_v17 }
 0x658   : > { %v23374_v21 = vpop.f32.mrf.mxu0  ;;  %v23414_v22 = vpop.f32.mrf.mxu1 }
 0x65a   : > { %v23375_v26 = vpop.f32.mrf.mxu0  ;;  %v23415_v27 = vpop.f32.mrf.mxu1 }
 0x65c   : > { %v23451_v28 = vpop.f32.mrf.mxu0  ;;  %v23491_v29 = vpop.f32.mrf.mxu1  ;;  %25370 = vmatmul.mubr.bf16.vlgmr.msra.gmra.mxu0 %v5444_v23  ;;  %25410 = vmatmul.mubr.bf16.vlgmr.msra.gmra.mxu1 %v5446_v25 }
 0x65d   : > { %v23452_v30 = vadd.f32 %v23451_v28, %v23412_v20 }
 0x65e   : > { %v23453_v31 = vpop.f32.mrf.mxu0  ;;  %v23493_v32 = vpop.f32.mrf.mxu1 }
 0x65f   : > { %v23492_v33 = vadd.f32 %v23491_v29, %v23452_v30 }
 0x660   : > { %v23454_v34 = vpop.f32.mrf.mxu0  ;;  %v23494_v35 = vpop.f32.mrf.mxu1 }
 0x662   : > { %v23455_v36 = vpop.f32.mrf.mxu0  ;;  %v23495_v37 = vpop.f32.mrf.mxu1 }
 0x664   : > { %v23531_v38 = vpop.f32.mrf.mxu0  ;;  %v23571_v39 = vpop.f32.mrf.mxu1 }
 0x665   : > { %v23532_v40 = vadd.f32 %v23531_v38, %v23492_v33 }
 0x666   : > { %v23533_v41 = vpop.f32.mrf.mxu0  ;;  %v23573_v42 = vpop.f32.mrf.mxu1 }
 0x667   : > { %v23572_v43 = vadd.f32 %v23571_v39, %v23532_v40 }
 0x668   : > { %v23534_v44 = vpop.f32.mrf.mxu0  ;;  %v23574_v45 = vpop.f32.mrf.mxu1 }
 0x66a   : > { %v23535_v46 = vpop.f32.mrf.mxu0  ;;  %v23575_v47 = vpop.f32.mrf.mxu1 }
 0x66c   : > { %v23611_v48 = vpop.f32.mrf.mxu0  ;;  %v23651_v49 = vpop.f32.mrf.mxu1 }
 0x66d   : > { %v23612_v50 = vadd.f32 %v23611_v48, %v23572_v43 }
 0x66e   : > { %v23613_v51 = vpop.f32.mrf.mxu0  ;;  %v23653_v52 = vpop.f32.mrf.mxu1 }
 0x66f   : > { %v23652_v53 = vadd.f32 %v23651_v49, %v23612_v50 }
 0x670   : > { %v23614_v54 = vpop.f32.mrf.mxu0  ;;  %v23654_v55 = vpop.f32.mrf.mxu1 }
 0x672   : > { %v23615_v56 = vpop.f32.mrf.mxu0  ;;  %v23655_v57 = vpop.f32.mrf.mxu1 }
 0x674   : > { %v23691_v58 = vpop.f32.mrf.mxu0  ;;  %v23731_v59 = vpop.f32.mrf.mxu1 }
 0x675   : > { %v23692_v60 = vadd.f32 %v23691_v58, %v23652_v53 }
 0x676   : > { %v23693_v61 = vpop.f32.mrf.mxu0  ;;  %v23733_v62 = vpop.f32.mrf.mxu1 }
 0x677   : > { %v23732_v63 = vadd.f32 %v23731_v59, %v23692_v60 }
 0x678   : > { %v23694_v0 = vpop.f32.mrf.mxu0  ;;  %v23734_v1 = vpop.f32.mrf.mxu1 }
 0x67a   : > { %v23695_v2 = vpop.f32.mrf.mxu0  ;;  %v23735_v3 = vpop.f32.mrf.mxu1 }
 0x67c   : > { %v23771_v4 = vpop.f32.mrf.mxu0  ;;  %v23811_v5 = vpop.f32.mrf.mxu1 }
 0x67d   : > { %v23772_v6 = vadd.f32 %v23771_v4, %v23732_v63 }
 0x67e   : > { %v23773_v24 = vpop.f32.mrf.mxu0  ;;  %v23813_v7 = vpop.f32.mrf.mxu1 }
 0x67f   : > { %v23812_v8 = vadd.f32 %v23811_v5, %v23772_v6 }
 0x680   : > { %v23774_v9 = vpop.f32.mrf.mxu0  ;;  %v23814_v10 = vpop.f32.mrf.mxu1 }
 0x682   : > { %v23775_v11 = vpop.f32.mrf.mxu0  ;;  %v23815_v12 = vpop.f32.mrf.mxu1 }
 0x684   : > { %v23851_v13 = vpop.f32.mrf.mxu0  ;;  %v23891_v14 = vpop.f32.mrf.mxu1 }
 0x685   : > { %v23852_v15 = vadd.f32 %v23851_v13, %v23812_v8 }
 0x686   : > { %v23853_v16 = vpop.f32.mrf.mxu0  ;;  %v23893_v17 = vpop.f32.mrf.mxu1 }
 0x687   : > { %v23892_v18 = vadd.f32 %v23891_v14, %v23852_v15 }
 0x688   : > { %v23854_v19 = vpop.f32.mrf.mxu0  ;;  %v23894_v20 = vpop.f32.mrf.mxu1 }
 0x68a   : > { %v23855_v21 = vpop.f32.mrf.mxu0  ;;  %v23895_v22 = vpop.f32.mrf.mxu1 }
 0x68c   : > { %v23931_v23 = vpop.f32.mrf.mxu0  ;;  %v23971_v25 = vpop.f32.mrf.mxu1 }
 0x68d   : > { %v23932_v26 = vadd.f32 %v23931_v23, %v23892_v18 }
 0x68e   : > { %v23933_v27 = vpop.f32.mrf.mxu0  ;;  %v23973_v28 = vpop.f32.mrf.mxu1 }
 0x68f   : > { %v23972_v29 = vadd.f32 %v23971_v25, %v23932_v26 }
 0x690   : > { %v23934_v30 = vpop.f32.mrf.mxu0  ;;  %v23974_v31 = vpop.f32.mrf.mxu1 }
 0x692   : > { %v23935_v32 = vpop.f32.mrf.mxu0  ;;  %v23975_v33 = vpop.f32.mrf.mxu1 }
 0x694   : > { %v24011_v34 = vpop.f32.mrf.mxu0  ;;  %v24051_v35 = vpop.f32.mrf.mxu1 }
 0x695   : > { %v24012_v36 = vadd.f32 %v24011_v34, %v23972_v29 }
 0x696   : > { %v24013_v37 = vpop.f32.mrf.mxu0  ;;  %v24053_v38 = vpop.f32.mrf.mxu1 }
 0x697   : > { %v24052_v39 = vadd.f32 %v24051_v35, %v24012_v36 }
 0x698   : > { %v24014_v40 = vpop.f32.mrf.mxu0  ;;  %v24054_v41 = vpop.f32.mrf.mxu1 }
 0x69a   : > { %v24015_v42 = vpop.f32.mrf.mxu0  ;;  %v24055_v43 = vpop.f32.mrf.mxu1 }
 0x69c   : > { %v24091_v44 = vpop.f32.mrf.mxu0  ;;  %v24131_v45 = vpop.f32.mrf.mxu1 }
 0x69d   : > { %v24092_v46 = vadd.f32 %v24091_v44, %v24052_v39 }
 0x69e   : > { %v24093_v47 = vpop.f32.mrf.mxu0  ;;  %v24133_v48 = vpop.f32.mrf.mxu1 }
 0x69f   : > { %v24132_v49 = vadd.f32 %v24131_v45, %v24092_v46 }
 0x6a0   : > { %v24094_v50 = vpop.f32.mrf.mxu0  ;;  %v24134_v51 = vpop.f32.mrf.mxu1 }
 0x6a2   : > { %v24095_v52 = vpop.f32.mrf.mxu0  ;;  %v24135_v53 = vpop.f32.mrf.mxu1 }
 0x6a4   : > { %v24171_v54 = vpop.f32.mrf.mxu0  ;;  %v24211_v55 = vpop.f32.mrf.mxu1 }
 0x6a5   : > { %v24172_v21 = vadd.f32 %v24171_v54, %v24132_v49 }
 0x6a6   : > { %v24173_v56 = vpop.f32.mrf.mxu0  ;;  %v24213_v57 = vpop.f32.mrf.mxu1 }
 0x6a7   : > { %v24212_v27 = vadd.f32 %v24211_v55, %v24172_v21 }
 0x6a8   : > { %v24174_v58 = vpop.f32.mrf.mxu0  ;;  %v24214_v59 = vpop.f32.mrf.mxu1 }
 0x6aa   : > { %v24175_v60 = vpop.f32.mrf.mxu0  ;;  %v24215_v61 = vpop.f32.mrf.mxu1 }
 0x6ac   : > { %v24251_v62 = vpop.f32.mrf.mxu0  ;;  %v24291_v63 = vpop.f32.mrf.mxu1 }
 0x6ad   : > { %v24252_v30 = vadd.f32 %v24251_v62, %v24212_v27 }
 0x6ae   : > { %v24253_v0 = vpop.f32.mrf.mxu0  ;;  %v24293_v1 = vpop.f32.mrf.mxu1 }
 0x6af   : > { %v24292_v35 = vadd.f32 %v24291_v63, %v24252_v30 }
 0x6b0   : > { %v24254_v2 = vpop.f32.mrf.mxu0  ;;  %v24294_v3 = vpop.f32.mrf.mxu1 }
 0x6b2   : > { %v24255_v4 = vpop.f32.mrf.mxu0  ;;  %v24295_v5 = vpop.f32.mrf.mxu1 }
 0x6b4   : > { %v24331_v6 = vpop.f32.mrf.mxu0  ;;  %v24371_v24 = vpop.f32.mrf.mxu1 }
 0x6b5   : > { %v24332_v38 = vadd.f32 %v24331_v6, %v24292_v35 }
 0x6b6   : > { %v24333_v7 = vpop.f32.mrf.mxu0  ;;  %v24373_v8 = vpop.f32.mrf.mxu1 }
 0x6b7   : > { %v24372_v43 = vadd.f32 %v24371_v24, %v24332_v38 }
 0x6b8   : > { %v24334_v9 = vpop.f32.mrf.mxu0  ;;  %v24374_v10 = vpop.f32.mrf.mxu1 }
 0x6ba   : > { %v24335_v11 = vpop.f32.mrf.mxu0  ;;  %v24375_v12 = vpop.f32.mrf.mxu1 }
 0x6bc   : > { %v24411_v13 = vpop.f32.mrf.mxu0  ;;  %v24451_v14 = vpop.f32.mrf.mxu1 }
 0x6bd   : > { %v24412_v46 = vadd.f32 %v24411_v13, %v24372_v43 }
 0x6be   : > { %v24413_v15 = vpop.f32.mrf.mxu0  ;;  %v24453_v16 = vpop.f32.mrf.mxu1 }
 0x6bf   : > { %v24452_v51 = vadd.f32 %v24451_v14, %v24412_v46 }
 0x6c0   : > { %v24414_v17 = vpop.f32.mrf.mxu0  ;;  %v24454_v18 = vpop.f32.mrf.mxu1 }
 0x6c2   : > { %v24415_v19 = vpop.f32.mrf.mxu0  ;;  %v24455_v20 = vpop.f32.mrf.mxu1 }
 0x6c4   : > { %v24491_v22 = vpop.f32.mrf.mxu0  ;;  %v24531_v23 = vpop.f32.mrf.mxu1 }
 0x6c5   : > { %v24492_v54 = vadd.f32 %v24491_v22, %v24452_v51 }
 0x6c6   : > { %v24493_v25 = vpop.f32.mrf.mxu0  ;;  %v24533_v26 = vpop.f32.mrf.mxu1 }
 0x6c7   : > { %v24532_v59 = vadd.f32 %v24531_v23, %v24492_v54 }
 0x6c8   : > { %v24494_v28 = vpop.f32.mrf.mxu0  ;;  %v24534_v29 = vpop.f32.mrf.mxu1 }
 0x6ca   : > { %v24495_v31 = vpop.f32.mrf.mxu0  ;;  %v24535_v32 = vpop.f32.mrf.mxu1 }
 0x6cc   : > { %v24571_v33 = vpop.f32.mrf.mxu0  ;;  %v24611_v34 = vpop.f32.mrf.mxu1 }
 0x6cd   : > { %v24572_v62 = vadd.f32 %v24571_v33, %v24532_v59 }
 0x6ce   : > { %v24573_v36 = vpop.f32.mrf.mxu0  ;;  %v24613_v37 = vpop.f32.mrf.mxu1 }
 0x6cf   : > { %v24612_v3 = vadd.f32 %v24611_v34, %v24572_v62 }
 0x6d0   : > { %v24574_v39 = vpop.f32.mrf.mxu0  ;;  %v24614_v40 = vpop.f32.mrf.mxu1 }
 0x6d2   : > { %v24575_v41 = vpop.f32.mrf.mxu0  ;;  %v24615_v42 = vpop.f32.mrf.mxu1 }
 0x6d4   : > { %v24651_v44 = vpop.f32.mrf.mxu0  ;;  %v24691_v45 = vpop.f32.mrf.mxu1 }
 0x6d5   : > { %v24652_v6 = vadd.f32 %v24651_v44, %v24612_v3 }
 0x6d6   : > { %v24653_v47 = vpop.f32.mrf.mxu0  ;;  %v24693_v48 = vpop.f32.mrf.mxu1 }
 0x6d7   : > { %v24692_v10 = vadd.f32 %v24691_v45, %v24652_v6 }
 0x6d8   : > { %v24654_v49 = vpop.f32.mrf.mxu0  ;;  %v24694_v50 = vpop.f32.mrf.mxu1 }
 0x6da   : > { %v24655_v52 = vpop.f32.mrf.mxu0  ;;  %v24695_v53 = vpop.f32.mrf.mxu1 }
 0x6dc   : > { %v24731_v55 = vpop.f32.mrf.mxu0  ;;  %v24771_v56 = vpop.f32.mrf.mxu1 }
 0x6dd   : > { %v24732_v13 = vadd.f32 %v24731_v55, %v24692_v10 }
 0x6de   : > { %v24733_v57 = vpop.f32.mrf.mxu0  ;;  %v24773_v58 = vpop.f32.mrf.mxu1 }
 0x6df   : > { %v24772_v18 = vadd.f32 %v24771_v56, %v24732_v13 }
 0x6e0   : > { %v24734_v60 = vpop.f32.mrf.mxu0  ;;  %v24774_v61 = vpop.f32.mrf.mxu1 }
 0x6e2   : > { %v24735_v63 = vpop.f32.mrf.mxu0  ;;  %v24775_v0 = vpop.f32.mrf.mxu1 }
 0x6e4   : > { %v24811_v1 = vpop.f32.mrf.mxu0  ;;  %v24851_v2 = vpop.f32.mrf.mxu1 }
 0x6e5   : > { %v24812_v21 = vadd.f32 %v24811_v1, %v24772_v18 }
 0x6e6   : > { %v24813_v4 = vpop.f32.mrf.mxu0  ;;  %v24853_v5 = vpop.f32.mrf.mxu1 }
 0x6e7   : > { %v24852_v27 = vadd.f32 %v24851_v2, %v24812_v21 }
 0x6e8   : > { %v24814_v24 = vpop.f32.mrf.mxu0  ;;  %v24854_v7 = vpop.f32.mrf.mxu1 }
 0x6ea   : > { %v24815_v8 = vpop.f32.mrf.mxu0  ;;  %v24855_v9 = vpop.f32.mrf.mxu1 }
 0x6ec   : > { %v24891_v11 = vpop.f32.mrf.mxu0  ;;  %v24931_v12 = vpop.f32.mrf.mxu1 }
 0x6ed   : > { %v24892_v30 = vadd.f32 %v24891_v11, %v24852_v27 }
 0x6ee   : > { %v24893_v14 = vpop.f32.mrf.mxu0  ;;  %v24933_v15 = vpop.f32.mrf.mxu1 }
 0x6ef   : > { %v24932_v35 = vadd.f32 %v24931_v12, %v24892_v30  ;;  %v5448_v14 = vld [vmem:[#allocation8] sm:$0x3] }
 0x6f0   : > { %v24894_v16 = vpop.f32.mrf.mxu0  ;;  %v24934_v17 = vpop.f32.mrf.mxu1 }
 0x6f2   : > { %v24895_v19 = vpop.f32.mrf.mxu0  ;;  %v24935_v20 = vpop.f32.mrf.mxu1 }
 0x6f4   : > { %v24971_v22 = vpop.f32.mrf.mxu0  ;;  %v25011_v23 = vpop.f32.mrf.mxu1 }
 0x6f5   : > { %v24972_v38 = vadd.f32 %v24971_v22, %v24932_v35 }
 0x6f6   : > { %v24973_v25 = vpop.f32.mrf.mxu0  ;;  %v25013_v26 = vpop.f32.mrf.mxu1 }
 0x6f7   : > { %v25012_v43 = vadd.f32 %v25011_v23, %v24972_v38 }
 0x6f8   : > { %v24974_v28 = vpop.f32.mrf.mxu0  ;;  %v25014_v29 = vpop.f32.mrf.mxu1 }
 0x6fa   : > { %v24975_v31 = vpop.f32.mrf.mxu0  ;;  %v25015_v32 = vpop.f32.mrf.mxu1 }
 0x6fc   : > { %v25051_v33 = vpop.f32.mrf.mxu0  ;;  %v25091_v34 = vpop.f32.mrf.mxu1 }
 0x6fd   : > { %v25052_v46 = vadd.f32 %v25051_v33, %v25012_v43 }
 0x6fe   : > { %v25053_v36 = vpop.f32.mrf.mxu0  ;;  %v25093_v37 = vpop.f32.mrf.mxu1 }
 0x6ff   : > { %v25092_v51 = vadd.f32 %v25091_v34, %v25052_v46 }
 0x700   : > { %v25054_v39 = vpop.f32.mrf.mxu0  ;;  %v25094_v40 = vpop.f32.mrf.mxu1 }
 0x702   : > { %v25055_v41 = vpop.f32.mrf.mxu0  ;;  %v25095_v42 = vpop.f32.mrf.mxu1 }
 0x704   : > { %v25131_v44 = vpop.f32.mrf.mxu0  ;;  %v25171_v45 = vpop.f32.mrf.mxu1 }
 0x705   : > { %v25132_v54 = vadd.f32 %v25131_v44, %v25092_v51 }
 0x706   : > { %v25133_v47 = vpop.f32.mrf.mxu0  ;;  %v25173_v48 = vpop.f32.mrf.mxu1 }
 0x707   : > { %v25172_v59 = vadd.f32 %v25171_v45, %v25132_v54 }
 0x708   : > { %v25134_v49 = vpop.f32.mrf.mxu0  ;;  %v25174_v50 = vpop.f32.mrf.mxu1 }
 0x70a   : > { %v25135_v52 = vpop.f32.mrf.mxu0  ;;  %v25175_v53 = vpop.f32.mrf.mxu1 }
 0x70c   : > { %v25211_v55 = vpop.f32.mrf.mxu0  ;;  %v25251_v56 = vpop.f32.mrf.mxu1 }
 0x70d   : > { %v25212_v62 = vadd.f32 %v25211_v55, %v25172_v59 }
 0x70e   : > { %v25213_v57 = vpop.f32.mrf.mxu0  ;;  %v25253_v58 = vpop.f32.mrf.mxu1 }
 0x70f   : > { %v25252_v3 = vadd.f32 %v25251_v56, %v25212_v62 }
 0x710   : > { %v25214_v60 = vpop.f32.mrf.mxu0  ;;  %v25254_v61 = vpop.f32.mrf.mxu1 }
 0x712   : > { %v25215_v63 = vpop.f32.mrf.mxu0  ;;  %v25255_v0 = vpop.f32.mrf.mxu1 }
 0x714   : > { %v25291_v1 = vpop.f32.mrf.mxu0  ;;  %v25331_v2 = vpop.f32.mrf.mxu1 }
 0x715   : > { %v25292_v6 = vadd.f32 %v25291_v1, %v25252_v3 }
 0x716   : > { %v25293_v4 = vpop.f32.mrf.mxu0  ;;  %v25333_v5 = vpop.f32.mrf.mxu1 }
 0x717   : > { %v25332_v10 = vadd.f32 %v25331_v2, %v25292_v6 }
 0x718   : > { %v25294_v24 = vpop.f32.mrf.mxu0  ;;  %v25334_v7 = vpop.f32.mrf.mxu1 }
 0x71a   : > { %v25295_v8 = vpop.f32.mrf.mxu0  ;;  %v25335_v9 = vpop.f32.mrf.mxu1 }
 0x71c   : > { %v25371_v11 = vpop.f32.mrf.mxu0  ;;  %v25411_v12 = vpop.f32.mrf.mxu1 }
 0x71d   : > { %v25372_v13 = vadd.f32 %v25371_v11, %v25332_v10 }
 0x71e   : > { %v25373_v15 = vpop.f32.mrf.mxu0  ;;  %v25413_v16 = vpop.f32.mrf.mxu1 }
 0x71f   : > { %v25412_v17 = vadd.f32 %v25411_v12, %v25372_v13  ;;  %25423 = sbr.rel (%p26318_p12) target bundleno = 1838 (0x72e), region = 52 }
 0x720   : > { %v25374_v18 = vpop.f32.mrf.mxu0  ;;  %v25414_v19 = vpop.f32.mrf.mxu1 }
 0x721   : > { %v25417_v20 = vadd.f32 %v25412_v17, %v5448_v14 }
 0x722   : > { %v25375_v21 = vpop.f32.mrf.mxu0  ;;  %v25415_v22 = vpop.f32.mrf.mxu1 }
 0x723   : > { %25419 = vst.msk [vmem:[#allocation8] sm:$0x3] %vm25418_vm1, %v25417_v20 }
 0x724   : > { %v26319_v25 = vld [vmem:[#allocation7] ss:$0 sm:$0xff] }
 0x72a   : > { %v25424_v23 = vld [vmem:[#allocation8] sm:$0x3] }
 0x72b   : > { %v25437_v26 = vadd.f32 %v26319_v25, %v25424_v23 }
 0x72d   : > { %25438 = vst.msk [vmem:[#allocation8] sm:$0x3] %vm25418_vm1, %v25437_v26 }
 0x72e PF: > { %p26356_p13 = scmp.eq.s32.totalorder %s26833_s18, 1  ;;  %s26783_s20 = smov [#allocation8]  }
 0x72f   : > { %s25446_s21 = sshll.u32 %s26783_s20, 4  ;;  %s25447_s21 = int_to_ptr.vmem [resolvable:$true] %s25446_s21 }
 0x730   : > { %s26687_s10 = scalar_lea.vmem %s25447_s21, 32  ;;  %p26694_p7 = scmp.lt.s32.totalorder %s25447_s21, %s25447_s21 }
 0x731   : > { %p26688_p1 = scmp.ne.s32.totalorder %s25447_s21, %s26687_s10  ;;  %p26695_p0 = scmp.lt.s32.totalorder %s26687_s10, %s26687_s10 }
 0x733   : > { %p26689_p3 = pnand %p26688_p1, %p26356_p13  ;;  %p26696_p6 = por %p26695_p0, %p26694_p7 }
 0x735   : > { %p26690_p4 = pneg %p26689_p3 }
 0x737   : > { %p26697_p8 = pnand %p26696_p6, %p26690_p4 }
 0x739   : > { %26700 = shalt.err (!%p26697_p8)
}
 0x73a   : > { %26339 = dma.vmem_to_hbm [thread:$0]  (%p26356_p13), %s25447_s21, 32, %s30320_s3, [#allocation4]  }
 0x73b   : > { %26748 = dma.done.wait (%p26356_p13), [#allocation4], 32  }
 0x73c   : > { %26750 = vsyncadd (%p26356_p13), [#allocation4], 4294967264 }
 0x73d PF: > { %s20_s17 = sadd.s32 1, %s26773_s17   ;;  %s30334_s12 = smov %s26757_s13 }
 0x73e   : > { %p17_p9 = scmp.ge.s32.totalorder %s20_s17, 4   ;;  %s30335_s13 = smov %s26761_s14 }
 0x73f   : > { %s30336_s14 = smov %s26906_s22  ;;  %s30337_s15 = smov %s26769_s16 }
 0x740   : > { %s30338_s16 = smov %s30340_s25  ;;  %19 = sbr.rel (!%p17_p9) target bundleno = 7 (0x7), region = 94 }
 0x745   :  { %25459 = vsyncpa [#allocation3], 1 }
 0x746   :  { %25461 = vsyncpa [#allocation3 + $0x1], 1 }
 0x747   :  { %25462 = vsyncpa [#allocation6], 1 }
 0x748   :  { %25464 = vsyncpa [#allocation6 + $0x1], 1 }
 0x749   :  { %25465 = vsyncpa [#allocation4], 1 }
 0x74a   :  { %25467 = vsyncpa [#allocation4 + $0x1], 1 }

</bundles_post_ra>
